<compile_context>
chip_gen: v5e
topology: v5e:2x2
jax: 0.10.0
libtpu: 0.0.40
codegen_flags: <defaults>
</compile_context>

<pallas_src>
import functools

import jax
import jax.numpy as jnp
from jax.experimental import pallas as pl
from jax.experimental.pallas import tpu as pltpu

EPS = 1e-5


def _cparams():
    # Largest per-call working set here is well under 4 MiB (double-buffered
    # bf16 tiles + full weight block), so 32 MiB scoped VMEM is safe on all of
    # v5e/v6e (128 MiB physical) and v7x (64 MiB physical).
    return pltpu.CompilerParams(
        dimension_semantics=("parallel",),
        vmem_limit_bytes=32 * 1024 * 1024,
    )


def _choose_row_tile(m, align, cap=256):
    """Largest row tile <= cap that is a multiple of `align` and divides m."""
    if m <= cap:
        return m
    t = cap - cap % align
    while t >= align:
        if m % t == 0:
            return t
        t -= align
    return m


def _choose_lane_tile(m, cap=2048):
    """Largest lane tile (multiple of 128) that divides m."""
    if m % 128 != 0:
        return m
    t = min(cap, m) // 128 * 128
    while m % t != 0:
        t -= 128
    return t


# ----------------------------- Pallas kernels ------------------------------

def conv_gemm_stats_kernel(x_ref, w_ref, y_ref, s_ref, q_ref):
    """Conv-as-GEMM tile + per-tile BN partial statistics (phase 1).

    x: (TM, K) bf16 im2col tile, w: (K, Cout) bf16 (full weight block).
    y: (TM, Cout) bf16 pre-BN conv output tile.
    s/q: (1, 1, Cout) f32 per-tile sum / sum-of-squares for the two-phase
    training-mode BatchNorm.  The Conv2d bias is omitted: it is cancelled
    exactly by the BN mean subtraction that follows.
    """
    y = jnp.dot(x_ref[...], w_ref[...], preferred_element_type=jnp.float32)
    y_ref[...] = y.astype(y_ref.dtype)
    cout = y.shape[1]
    s_ref[...] = jnp.sum(y, axis=0, keepdims=True).reshape(1, 1, cout)
    q_ref[...] = jnp.sum(y * y, axis=0, keepdims=True).reshape(1, 1, cout)


def bn_relu_kernel(y_ref, sc_ref, sh_ref, a_ref):
    """Phase 2: per-channel scale/shift (folded BN) + ReLU, f32 math, bf16 out."""
    a = y_ref[...].astype(jnp.float32) * sc_ref[...] + sh_ref[...]
    a_ref[...] = jnp.maximum(a, 0.0).astype(a_ref.dtype)


def bn_relu_pool_kernel(y_ref, sc_ref, sh_ref, a_ref, p_ref):
    """Phase 2 with the 2x2 max-pool fused into the epilogue.

    y/a: (G, 2, Wo, 2, C) tile (G = image-row pairs in this tile), p: (G, Wo, C).
    """
    a = jnp.maximum(
        y_ref[...].astype(jnp.float32) * sc_ref[...] + sh_ref[...], 0.0)
    a_ref[...] = a.astype(a_ref.dtype)
    p = jnp.maximum(jnp.maximum(a[:, 0, :, 0, :], a[:, 0, :, 1, :]),
                    jnp.maximum(a[:, 1, :, 0, :], a[:, 1, :, 1, :]))
    p_ref[...] = p.astype(p_ref.dtype)


def gemm_bias_kernel(x_ref, w_ref, b_ref, o_ref):
    """Tiled GEMM + bias (ConvTranspose2d(kernel=2, stride=2) as a GEMM)."""
    y = jnp.dot(x_ref[...], w_ref[...], preferred_element_type=jnp.float32)
    o_ref[...] = (y + b_ref[...]).astype(o_ref.dtype)


def head_kernel(dt_ref, w_ref, b_ref, r_ref, o_ref):
    """1x1 conv (Cout=1) + bias + residual, lane-dense transposed layout.

    dt: (C, TL) bf16 tile of d1^T (pixels on lanes), w: (C, 1) f32,
    b: (1, 1) f32, r: (1, TL) f32 residual (input channel 0), o: (1, TL) f32.
    Contraction is a sublane reduction; stores are full 128-lane rows.
    """
    y = jnp.sum(dt_ref[...].astype(jnp.float32) * w_ref[...],
                axis=0, keepdims=True)
    o_ref[...] = r_ref[...] + y + b_ref[...]


# ------------------------------ layer wrappers ------------------------------

def im2col3x3(x):
    """(N, H, W, C) -> (N*H*W, 9*C) bf16; 3x3 window, zero padding=1.

    # TODO(synk): fuse the 9-tap expansion into the GEMM kernel (halo row
    # tiles + 9 shifted accumulating dots) so the 9x-wide patch matrix never
    # materializes in HBM.
    """
    n, h, w, c = x.shape
    xp = jnp.pad(x, ((0, 0), (1, 1), (1, 1), (0, 0)))
    patches = [xp[:, dy:dy + h, dx:dx + w, :]
               for dy in range(3) for dx in range(3)]
    return jnp.concatenate(patches, axis=-1).reshape(n * h * w, 9 * c)


def conv3x3_bn_relu(x, p, pool=False):
    """Conv2d(3x3, pad=1) + BatchNorm2d(train) + ReLU (+ fused MaxPool2d(2))."""
    n, h, w_sp, _ = x.shape
    wmat, gamma, beta = p
    cout = wmat.shape[1]
    m = n * h * w_sp

    xcol = im2col3x3(x.astype(jnp.bfloat16))              # (M, 9*Cin) bf16
    k = xcol.shape[1]
    tm = _choose_row_tile(m, 2 * w_sp if pool else 8)
    grid = (m // tm,)
    nt = grid[0]

    # Phase 1: pipelined, megacore-parallel GEMM + per-tile BN partial sums.
    y, s, q = pl.pallas_call(
        conv_gemm_stats_kernel,
        grid=grid,
        in_specs=[pl.BlockSpec((tm, k), lambda i: (i, 0)),
                  pl.BlockSpec((k, cout), lambda i: (0, 0))],
        out_specs=[pl.BlockSpec((tm, cout), lambda i: (i, 0)),
                   pl.BlockSpec((1, 1, cout), lambda i: (i, 0, 0)),
                   pl.BlockSpec((1, 1, cout), lambda i: (i, 0, 0))],
        out_shape=[jax.ShapeDtypeStruct((m, cout), jnp.bfloat16),
                   jax.ShapeDtypeStruct((nt, 1, cout), jnp.float32),
                   jax.ShapeDtypeStruct((nt, 1, cout), jnp.float32)],
        compiler_params=_cparams(),
    )(xcol, wmat.astype(jnp.bfloat16))

    # Finalize batch statistics (tiny glue) and fold BN into scale/shift.
    mean = jnp.sum(s, axis=0)[0] / m                      # (Cout,)
    var = jnp.sum(q, axis=0)[0] / m - mean * mean         # biased (train mode)
    inv = gamma * jax.lax.rsqrt(var + EPS)
    scale = inv.reshape(1, cout)
    shift = (beta - mean * inv).reshape(1, cout)

    if not pool:
        a = pl.pallas_call(
            bn_relu_kernel,
            grid=grid,
            in_specs=[pl.BlockSpec((tm, cout), lambda i: (i, 0)),
                      pl.BlockSpec((1, cout), lambda i: (0, 0)),
                      pl.BlockSpec((1, cout), lambda i: (0, 0))],
            out_specs=pl.BlockSpec((tm, cout), lambda i: (i, 0)),
            out_shape=jax.ShapeDtypeStruct((m, cout), jnp.bfloat16),
            compiler_params=_cparams(),
        )(y, scale, shift)
        return a.reshape(n, h, w_sp, cout)

    # Fused normalize + ReLU + 2x2 max-pool epilogue (row-major reshape is free).
    g2 = 2 * w_sp
    wo = w_sp // 2
    y5 = y.reshape(m // g2, 2, wo, 2, cout)
    a5, ap = pl.pallas_call(
        bn_relu_pool_kernel,
        grid=grid,
        in_specs=[pl.BlockSpec((tm // g2, 2, wo, 2, cout),
                               lambda i: (i, 0, 0, 0, 0)),
                  pl.BlockSpec((1, cout), lambda i: (0, 0)),
                  pl.BlockSpec((1, cout), lambda i: (0, 0))],
        out_specs=[pl.BlockSpec((tm // g2, 2, wo, 2, cout),
                                lambda i: (i, 0, 0, 0, 0)),
                   pl.BlockSpec((tm // g2, wo, cout), lambda i: (i, 0, 0))],
        out_shape=[jax.ShapeDtypeStruct((m // g2, 2, wo, 2, cout), jnp.bfloat16),
                   jax.ShapeDtypeStruct((m // g2, wo, cout), jnp.bfloat16)],
        compiler_params=_cparams(),
    )(y5, scale, shift)
    return (a5.reshape(n, h, w_sp, cout),
            ap.reshape(n, h // 2, w_sp // 2, cout))


def double_conv(x, p1, p2, pool=False):
    return conv3x3_bn_relu(conv3x3_bn_relu(x, p1), p2, pool=pool)


def conv_transpose2x2(x, p):
    """ConvTranspose2d(kernel=2, stride=2): tiled GEMM + pixel-shuffle glue."""
    n, h, w, cin = x.shape
    wmat, b = p                       # wmat: (Cin, 4*Cout), cols = (di*2+dj)*Cout+co
    cout = wmat.shape[1] // 4
    m = n * h * w
    tm = _choose_row_tile(m, 8)
    y = pl.pallas_call(
        gemm_bias_kernel,
        grid=(m // tm,),
        in_specs=[pl.BlockSpec((tm, cin), lambda i: (i, 0)),
                  pl.BlockSpec((cin, 4 * cout), lambda i: (0, 0)),
                  pl.BlockSpec((1, 4 * cout), lambda i: (0, 0))],
        out_specs=pl.BlockSpec((tm, 4 * cout), lambda i: (i, 0)),
        out_shape=jax.ShapeDtypeStruct((m, 4 * cout), jnp.bfloat16),
        compiler_params=_cparams(),
    )(x.reshape(m, cin), wmat.astype(jnp.bfloat16), b)
    y = y.reshape(n, h, w, 2, 2, cout).transpose(0, 1, 3, 2, 4, 5)
    return y.reshape(n, 2 * h, 2 * w, cout)


def out_head(d1, x0, p):
    """out = x0 + Conv2d(base, 1, kernel_size=1)(d1), lane-dense output."""
    n, h, w_sp, c = d1.shape
    wvec, b = p                       # wvec: (C, 1), b: (1, 1)
    m = n * h * w_sp
    tl = _choose_lane_tile(m)
    d1t = d1.reshape(m, c).T          # (C, M): pixels on lanes
    r = x0.reshape(1, m)              # f32 residual (input channel 0)
    y = pl.pallas_call(
        head_kernel,
        grid=(m // tl,),
        in_specs=[pl.BlockSpec((c, tl), lambda i: (0, i)),
                  pl.BlockSpec((c, 1), lambda i: (0, 0)),
                  pl.BlockSpec((1, 1), lambda i: (0, 0)),
                  pl.BlockSpec((1, tl), lambda i: (0, i))],
        out_specs=pl.BlockSpec((1, tl), lambda i: (0, i)),
        out_shape=jax.ShapeDtypeStruct((1, m), jnp.float32),
        compiler_params=_cparams(),
    )(d1t, wvec, b, r)
    return y.reshape(n, h, w_sp, 1)


# -------------------------------- parameters --------------------------------

def init_params(key, in_ch, base):
    keys = iter(jax.random.split(key, 64))

    def nrm(shape, scale):
        return jax.random.normal(next(keys), shape, jnp.float32) * scale

    def conv_bn(cin, cout):
        # Conv2d 3x3 weight in GEMM form; the Conv2d bias is intentionally
        # omitted (cancelled exactly by the following train-mode BatchNorm).
        w = nrm((9 * cin, cout), 1.0 / (3.0 * (cin ** 0.5)))
        gamma = jnp.ones((cout,), jnp.float32)    # BatchNorm2d weight init
        beta = jnp.zeros((cout,), jnp.float32)    # BatchNorm2d bias init
        return (w, gamma, beta)

    def double(cin, cout):
        return (conv_bn(cin, cout), conv_bn(cout, cout))

    def convT(cin, cout):
        w = nrm((cin, 4 * cout), 1.0 / (cin ** 0.5))   # (Cin, Cout, 2, 2) flat
        b = jnp.tile(nrm((1, cout), 0.05), (1, 4))     # bias shared over taps
        return (w, b)

    return {
        "enc1": double(in_ch, base),
        "enc2": double(base, 2 * base),
        "bott": double(2 * base, 4 * base),
        "up2": convT(4 * base, 2 * base),
        "dec2": double(4 * base, 2 * base),
        "up1": convT(2 * base, base),
        "dec1": double(2 * base, base),
        "out": (nrm((base, 1), 1.0 / (base ** 0.5)), nrm((1, 1), 0.05)),
    }


# --------------------------------- forward ----------------------------------

def unet_reg_forward(x_nchw, params):
    x = jnp.transpose(x_nchw, (0, 2, 3, 1))                     # NCHW -> NHWC
    e1, p1 = double_conv(x, *params["enc1"], pool=True)         # pool fused
    e2, p2 = double_conv(p1, *params["enc2"], pool=True)        # pool fused
    b = double_conv(p2, *params["bott"])
    u2 = conv_transpose2x2(b, params["up2"])
    # TODO(synk): fold the skip concatenation into the decoder GEMMs via
    # split-K accumulation instead of materializing the concatenated tensor.
    d2 = double_conv(jnp.concatenate([u2, e2], axis=-1), *params["dec2"])
    u1 = conv_transpose2x2(d2, params["up1"])
    d1 = double_conv(jnp.concatenate([u1, e1], axis=-1), *params["dec1"])
    out = out_head(d1, x[..., 0], params["out"])                # x[:,0:1] + out(d1)
    return jnp.transpose(out, (0, 3, 1, 2))                     # (N, 1, H, W)


if __name__ == "__main__":
    key = jax.random.PRNGKey(0)
    kx, kp = jax.random.split(key)

    N, C, H, W = 2, 4, 16, 16
    base = 16

    x = jax.random.normal(kx, (N, C, H, W), jnp.float32)
    params = init_params(kp, C, base)

    fwd = jax.jit(functools.partial(unet_reg_forward, params=params))
    y = fwd(x)
    jax.block_until_ready(y)

    assert y.shape == (N, 1, H, W), y.shape
    assert y.dtype == jnp.float32
    assert bool(jnp.all(jnp.isfinite(y)))
    print("KERNEL_OK")
</pallas_src>

<mosaic_0001>
module attributes {stable_mosaic.version = 11 : i64} {
  func.func @conv_gemm_stats_kernel(%arg0: i32, %arg1: memref<256x36xbf16, #tpu.memory_space<vmem>>, %arg2: memref<36x16xbf16, #tpu.memory_space<vmem>>, %arg3: memref<256x16xbf16, #tpu.memory_space<vmem>>, %arg4: memref<1x1x16xf32, #tpu.memory_space<vmem>>, %arg5: memref<1x1x16xf32, #tpu.memory_space<vmem>>) attributes {dimension_semantics = [#tpu.dimension_semantics<parallel>], iteration_bounds = array<i64: 2>, scalar_prefetch = 0 : i64, scratch_operands = 0 : i64, tpu.core_type = #tpu.core_type<tc>, window_params = [{transform_indices = @transform_0, window_bounds = array<i64: 256, 36>}, {pipeline_mode = #tpu.pipeline_mode<synchronous>, transform_indices = @transform_1, window_bounds = array<i64: 36, 16>}, {transform_indices = @transform_2, window_bounds = array<i64: 256, 16>}, {transform_indices = @transform_3, window_bounds = array<i64: 1, 1, 16>}, {transform_indices = @transform_4, window_bounds = array<i64: 1, 1, 16>}]} {
    %c0 = arith.constant 0 : index
    %c0_0 = arith.constant 0 : index
    %0 = vector.load %arg1[%c0, %c0_0] : memref<256x36xbf16, #tpu.memory_space<vmem>>, vector<256x36xbf16>
    %c0_1 = arith.constant 0 : index
    %c0_2 = arith.constant 0 : index
    %1 = vector.load %arg2[%c0_1, %c0_2] : memref<36x16xbf16, #tpu.memory_space<vmem>>, vector<36x16xbf16>
    %cst = arith.constant dense<0.000000e+00> : vector<256x16xf32>
    %2 = tpu.matmul %0, %1, %cst {dimension_numbers = #tpu.dot_dimension_numbers<[1], [0], [0], [1], [0, 0, 1, 1], [], []>} : vector<256x36xbf16>, vector<36x16xbf16>, vector<256x16xf32> -> vector<256x16xf32>
    %3 = arith.truncf %2 : vector<256x16xf32> to vector<256x16xbf16>
    %c0_3 = arith.constant 0 : index
    %c0_4 = arith.constant 0 : index
    %4 = vector.load %arg3[%c0_3, %c0_4] : memref<256x16xbf16, #tpu.memory_space<vmem>>, vector<256x16xbf16>
    tpu.vector_store %arg3[%c0_3, %c0_4], %3 {strides = array<i32>} : memref<256x16xbf16, #tpu.memory_space<vmem>>, vector<256x16xbf16>,
    %cst_5 = arith.constant dense<0.000000e+00> : vector<16xf32>
    %5 = vector.multi_reduction <add>, %2, %cst_5 [0] : vector<256x16xf32> to vector<16xf32>
    %6 = vector.shape_cast %5 : vector<16xf32> to vector<1x16xf32>
    %7 = vector.shape_cast %6 : vector<1x16xf32> to vector<1x1x16xf32>
    %c0_6 = arith.constant 0 : index
    %c0_7 = arith.constant 0 : index
    %c0_8 = arith.constant 0 : index
    %8 = vector.load %arg4[%c0_6, %c0_7, %c0_8] : memref<1x1x16xf32, #tpu.memory_space<vmem>>, vector<1x1x16xf32>
    tpu.vector_store %arg4[%c0_6, %c0_7, %c0_8], %7 {strides = array<i32>} : memref<1x1x16xf32, #tpu.memory_space<vmem>>, vector<1x1x16xf32>,
    %9 = arith.mulf %2, %2 : vector<256x16xf32>
    %cst_9 = arith.constant dense<0.000000e+00> : vector<16xf32>
    %10 = vector.multi_reduction <add>, %9, %cst_9 [0] : vector<256x16xf32> to vector<16xf32>
    %11 = vector.shape_cast %10 : vector<16xf32> to vector<1x16xf32>
    %12 = vector.shape_cast %11 : vector<1x16xf32> to vector<1x1x16xf32>
    %c0_10 = arith.constant 0 : index
    %c0_11 = arith.constant 0 : index
    %c0_12 = arith.constant 0 : index
    %13 = vector.load %arg5[%c0_10, %c0_11, %c0_12] : memref<1x1x16xf32, #tpu.memory_space<vmem>>, vector<1x1x16xf32>
    tpu.vector_store %arg5[%c0_10, %c0_11, %c0_12], %12 {strides = array<i32>} : memref<1x1x16xf32, #tpu.memory_space<vmem>>, vector<1x1x16xf32>,
    return
  }
  func.func @transform_0(%arg0: i32) -> (i32, i32) {
    %c0_i32 = arith.constant 0 : i32
    %c0_i32_0 = arith.constant 0 : i32
    return %arg0, %c0_i32 : i32, i32
  }
  func.func @transform_1(%arg0: i32) -> (i32, i32) {
    %c0_i32 = arith.constant 0 : i32
    %c0_i32_0 = arith.constant 0 : i32
    %c0_i32_1 = arith.constant 0 : i32
    return %c0_i32, %c0_i32_0 : i32, i32
  }
  func.func @transform_2(%arg0: i32) -> (i32, i32) {
    %c0_i32 = arith.constant 0 : i32
    %c0_i32_0 = arith.constant 0 : i32
    return %arg0, %c0_i32 : i32, i32
  }
  func.func @transform_3(%arg0: i32) -> (i32, i32, i32) {
    %c0_i32 = arith.constant 0 : i32
    %c0_i32_0 = arith.constant 0 : i32
    %c0_i32_1 = arith.constant 0 : i32
    return %arg0, %c0_i32, %c0_i32_0 : i32, i32, i32
  }
  func.func @transform_4(%arg0: i32) -> (i32, i32, i32) {
    %c0_i32 = arith.constant 0 : i32
    %c0_i32_0 = arith.constant 0 : i32
    %c0_i32_1 = arith.constant 0 : i32
    return %arg0, %c0_i32, %c0_i32_0 : i32, i32, i32
  }
}

module attributes {stable_mosaic.version = 11 : i64} {
  func.func @bn_relu_kernel(%arg0: i32, %arg1: memref<256x16xbf16, #tpu.memory_space<vmem>>, %arg2: memref<1x16xf32, #tpu.memory_space<vmem>>, %arg3: memref<1x16xf32, #tpu.memory_space<vmem>>, %arg4: memref<256x16xbf16, #tpu.memory_space<vmem>>) attributes {dimension_semantics = [#tpu.dimension_semantics<parallel>], iteration_bounds = array<i64: 2>, scalar_prefetch = 0 : i64, scratch_operands = 0 : i64, tpu.core_type = #tpu.core_type<tc>, window_params = [{transform_indices = @transform_0, window_bounds = array<i64: 256, 16>}, {pipeline_mode = #tpu.pipeline_mode<synchronous>, transform_indices = @transform_1, window_bounds = array<i64: 1, 16>}, {pipeline_mode = #tpu.pipeline_mode<synchronous>, transform_indices = @transform_2, window_bounds = array<i64: 1, 16>}, {transform_indices = @transform_3, window_bounds = array<i64: 256, 16>}]} {
    %c0 = arith.constant 0 : index
    %c0_0 = arith.constant 0 : index
    %0 = vector.load %arg1[%c0, %c0_0] : memref<256x16xbf16, #tpu.memory_space<vmem>>, vector<256x16xbf16>
    %1 = arith.extf %0 : vector<256x16xbf16> to vector<256x16xf32>
    %c0_1 = arith.constant 0 : index
    %c0_2 = arith.constant 0 : index
    %2 = vector.load %arg2[%c0_1, %c0_2] : memref<1x16xf32, #tpu.memory_space<vmem>>, vector<1x16xf32>
    %3 = vector.broadcast %2 : vector<1x16xf32> to vector<256x16xf32>
    %4 = arith.mulf %1, %3 : vector<256x16xf32>
    %c0_3 = arith.constant 0 : index
    %c0_4 = arith.constant 0 : index
    %5 = vector.load %arg3[%c0_3, %c0_4] : memref<1x16xf32, #tpu.memory_space<vmem>>, vector<1x16xf32>
    %6 = vector.broadcast %5 : vector<1x16xf32> to vector<256x16xf32>
    %7 = arith.addf %4, %6 : vector<256x16xf32>
    %cst = arith.constant 0.000000e+00 : f32
    %8 = vector.broadcast %cst : f32 to vector<256x16xf32>
    %9 = arith.maximumf %7, %8 : vector<256x16xf32>
    %10 = arith.truncf %9 : vector<256x16xf32> to vector<256x16xbf16>
    %c0_5 = arith.constant 0 : index
    %c0_6 = arith.constant 0 : index
    %11 = vector.load %arg4[%c0_5, %c0_6] : memref<256x16xbf16, #tpu.memory_space<vmem>>, vector<256x16xbf16>
    tpu.vector_store %arg4[%c0_5, %c0_6], %10 {strides = array<i32>} : memref<256x16xbf16, #tpu.memory_space<vmem>>, vector<256x16xbf16>,
    return
  }
  func.func @transform_0(%arg0: i32) -> (i32, i32) {
    %c0_i32 = arith.constant 0 : i32
    %c0_i32_0 = arith.constant 0 : i32
    return %arg0, %c0_i32 : i32, i32
  }
  func.func @transform_1(%arg0: i32) -> (i32, i32) {
    %c0_i32 = arith.constant 0 : i32
    %c0_i32_0 = arith.constant 0 : i32
    %c0_i32_1 = arith.constant 0 : i32
    return %c0_i32, %c0_i32_0 : i32, i32
  }
  func.func @transform_2(%arg0: i32) -> (i32, i32) {
    %c0_i32 = arith.constant 0 : i32
    %c0_i32_0 = arith.constant 0 : i32
    %c0_i32_1 = arith.constant 0 : i32
    return %c0_i32, %c0_i32_0 : i32, i32
  }
  func.func @transform_3(%arg0: i32) -> (i32, i32) {
    %c0_i32 = arith.constant 0 : i32
    %c0_i32_0 = arith.constant 0 : i32
    return %arg0, %c0_i32 : i32, i32
  }
}

module attributes {stable_mosaic.version = 11 : i64} {
  func.func @conv_gemm_stats_kernel(%arg0: i32, %arg1: memref<256x144xbf16, #tpu.memory_space<vmem>>, %arg2: memref<144x16xbf16, #tpu.memory_space<vmem>>, %arg3: memref<256x16xbf16, #tpu.memory_space<vmem>>, %arg4: memref<1x1x16xf32, #tpu.memory_space<vmem>>, %arg5: memref<1x1x16xf32, #tpu.memory_space<vmem>>) attributes {dimension_semantics = [#tpu.dimension_semantics<parallel>], iteration_bounds = array<i64: 2>, scalar_prefetch = 0 : i64, scratch_operands = 0 : i64, tpu.core_type = #tpu.core_type<tc>, window_params = [{transform_indices = @transform_0, window_bounds = array<i64: 256, 144>}, {pipeline_mode = #tpu.pipeline_mode<synchronous>, transform_indices = @transform_1, window_bounds = array<i64: 144, 16>}, {transform_indices = @transform_2, window_bounds = array<i64: 256, 16>}, {transform_indices = @transform_3, window_bounds = array<i64: 1, 1, 16>}, {transform_indices = @transform_4, window_bounds = array<i64: 1, 1, 16>}]} {
    %c0 = arith.constant 0 : index
    %c0_0 = arith.constant 0 : index
    %0 = vector.load %arg1[%c0, %c0_0] : memref<256x144xbf16, #tpu.memory_space<vmem>>, vector<256x144xbf16>
    %c0_1 = arith.constant 0 : index
    %c0_2 = arith.constant 0 : index
    %1 = vector.load %arg2[%c0_1, %c0_2] : memref<144x16xbf16, #tpu.memory_space<vmem>>, vector<144x16xbf16>
    %cst = arith.constant dense<0.000000e+00> : vector<256x16xf32>
    %2 = tpu.matmul %0, %1, %cst {dimension_numbers = #tpu.dot_dimension_numbers<[1], [0], [0], [1], [0, 0, 1, 1], [], []>} : vector<256x144xbf16>, vector<144x16xbf16>, vector<256x16xf32> -> vector<256x16xf32>
    %3 = arith.truncf %2 : vector<256x16xf32> to vector<256x16xbf16>
    %c0_3 = arith.constant 0 : index
    %c0_4 = arith.constant 0 : index
    %4 = vector.load %arg3[%c0_3, %c0_4] : memref<256x16xbf16, #tpu.memory_space<vmem>>, vector<256x16xbf16>
    tpu.vector_store %arg3[%c0_3, %c0_4], %3 {strides = array<i32>} : memref<256x16xbf16, #tpu.memory_space<vmem>>, vector<256x16xbf16>,
    %cst_5 = arith.constant dense<0.000000e+00> : vector<16xf32>
    %5 = vector.multi_reduction <add>, %2, %cst_5 [0] : vector<256x16xf32> to vector<16xf32>
    %6 = vector.shape_cast %5 : vector<16xf32> to vector<1x16xf32>
    %7 = vector.shape_cast %6 : vector<1x16xf32> to vector<1x1x16xf32>
    %c0_6 = arith.constant 0 : index
    %c0_7 = arith.constant 0 : index
    %c0_8 = arith.constant 0 : index
    %8 = vector.load %arg4[%c0_6, %c0_7, %c0_8] : memref<1x1x16xf32, #tpu.memory_space<vmem>>, vector<1x1x16xf32>
    tpu.vector_store %arg4[%c0_6, %c0_7, %c0_8], %7 {strides = array<i32>} : memref<1x1x16xf32, #tpu.memory_space<vmem>>, vector<1x1x16xf32>,
    %9 = arith.mulf %2, %2 : vector<256x16xf32>
    %cst_9 = arith.constant dense<0.000000e+00> : vector<16xf32>
    %10 = vector.multi_reduction <add>, %9, %cst_9 [0] : vector<256x16xf32> to vector<16xf32>
    %11 = vector.shape_cast %10 : vector<16xf32> to vector<1x16xf32>
    %12 = vector.shape_cast %11 : vector<1x16xf32> to vector<1x1x16xf32>
    %c0_10 = arith.constant 0 : index
    %c0_11 = arith.constant 0 : index
    %c0_12 = arith.constant 0 : index
    %13 = vector.load %arg5[%c0_10, %c0_11, %c0_12] : memref<1x1x16xf32, #tpu.memory_space<vmem>>, vector<1x1x16xf32>
    tpu.vector_store %arg5[%c0_10, %c0_11, %c0_12], %12 {strides = array<i32>} : memref<1x1x16xf32, #tpu.memory_space<vmem>>, vector<1x1x16xf32>,
    return
  }
  func.func @transform_0(%arg0: i32) -> (i32, i32) {
    %c0_i32 = arith.constant 0 : i32
    %c0_i32_0 = arith.constant 0 : i32
    return %arg0, %c0_i32 : i32, i32
  }
  func.func @transform_1(%arg0: i32) -> (i32, i32) {
    %c0_i32 = arith.constant 0 : i32
    %c0_i32_0 = arith.constant 0 : i32
    %c0_i32_1 = arith.constant 0 : i32
    return %c0_i32, %c0_i32_0 : i32, i32
  }
  func.func @transform_2(%arg0: i32) -> (i32, i32) {
    %c0_i32 = arith.constant 0 : i32
    %c0_i32_0 = arith.constant 0 : i32
    return %arg0, %c0_i32 : i32, i32
  }
  func.func @transform_3(%arg0: i32) -> (i32, i32, i32) {
    %c0_i32 = arith.constant 0 : i32
    %c0_i32_0 = arith.constant 0 : i32
    %c0_i32_1 = arith.constant 0 : i32
    return %arg0, %c0_i32, %c0_i32_0 : i32, i32, i32
  }
  func.func @transform_4(%arg0: i32) -> (i32, i32, i32) {
    %c0_i32 = arith.constant 0 : i32
    %c0_i32_0 = arith.constant 0 : i32
    %c0_i32_1 = arith.constant 0 : i32
    return %arg0, %c0_i32, %c0_i32_0 : i32, i32, i32
  }
}

module attributes {stable_mosaic.version = 11 : i64} {
  func.func @bn_relu_pool_kernel(%arg0: i32, %arg1: memref<8x2x8x2x16xbf16, #tpu.memory_space<vmem>>, %arg2: memref<1x16xf32, #tpu.memory_space<vmem>>, %arg3: memref<1x16xf32, #tpu.memory_space<vmem>>, %arg4: memref<8x2x8x2x16xbf16, #tpu.memory_space<vmem>>, %arg5: memref<8x8x16xbf16, #tpu.memory_space<vmem>>) attributes {dimension_semantics = [#tpu.dimension_semantics<parallel>], iteration_bounds = array<i64: 2>, scalar_prefetch = 0 : i64, scratch_operands = 0 : i64, tpu.core_type = #tpu.core_type<tc>, window_params = [{transform_indices = @transform_0, window_bounds = array<i64: 8, 2, 8, 2, 16>}, {pipeline_mode = #tpu.pipeline_mode<synchronous>, transform_indices = @transform_1, window_bounds = array<i64: 1, 16>}, {pipeline_mode = #tpu.pipeline_mode<synchronous>, transform_indices = @transform_2, window_bounds = array<i64: 1, 16>}, {transform_indices = @transform_3, window_bounds = array<i64: 8, 2, 8, 2, 16>}, {transform_indices = @transform_4, window_bounds = array<i64: 8, 8, 16>}]} {
    %c0 = arith.constant 0 : index
    %c0_0 = arith.constant 0 : index
    %c0_1 = arith.constant 0 : index
    %c0_2 = arith.constant 0 : index
    %c0_3 = arith.constant 0 : index
    %0 = vector.load %arg1[%c0, %c0_0, %c0_1, %c0_2, %c0_3] : memref<8x2x8x2x16xbf16, #tpu.memory_space<vmem>>, vector<8x2x8x2x16xbf16>
    %1 = arith.extf %0 : vector<8x2x8x2x16xbf16> to vector<8x2x8x2x16xf32>
    %c0_4 = arith.constant 0 : index
    %c0_5 = arith.constant 0 : index
    %2 = vector.load %arg2[%c0_4, %c0_5] : memref<1x16xf32, #tpu.memory_space<vmem>>, vector<1x16xf32>
    %3 = vector.shape_cast %2 : vector<1x16xf32> to vector<1x1x1x1x16xf32>
    %4 = vector.broadcast %3 : vector<1x1x1x1x16xf32> to vector<8x2x8x2x16xf32>
    %5 = arith.mulf %1, %4 : vector<8x2x8x2x16xf32>
    %c0_6 = arith.constant 0 : index
    %c0_7 = arith.constant 0 : index
    %6 = vector.load %arg3[%c0_6, %c0_7] : memref<1x16xf32, #tpu.memory_space<vmem>>, vector<1x16xf32>
    %7 = vector.shape_cast %6 : vector<1x16xf32> to vector<1x1x1x1x16xf32>
    %8 = vector.broadcast %7 : vector<1x1x1x1x16xf32> to vector<8x2x8x2x16xf32>
    %9 = arith.addf %5, %8 : vector<8x2x8x2x16xf32>
    %cst = arith.constant 0.000000e+00 : f32
    %10 = vector.broadcast %cst : f32 to vector<8x2x8x2x16xf32>
    %11 = arith.maximumf %9, %10 : vector<8x2x8x2x16xf32>
    %12 = arith.truncf %11 : vector<8x2x8x2x16xf32> to vector<8x2x8x2x16xbf16>
    %c0_8 = arith.constant 0 : index
    %c0_9 = arith.constant 0 : index
    %c0_10 = arith.constant 0 : index
    %c0_11 = arith.constant 0 : index
    %c0_12 = arith.constant 0 : index
    %13 = vector.load %arg4[%c0_8, %c0_9, %c0_10, %c0_11, %c0_12] : memref<8x2x8x2x16xbf16, #tpu.memory_space<vmem>>, vector<8x2x8x2x16xbf16>
    tpu.vector_store %arg4[%c0_8, %c0_9, %c0_10, %c0_11, %c0_12], %12 {strides = array<i32>} : memref<8x2x8x2x16xbf16, #tpu.memory_space<vmem>>, vector<8x2x8x2x16xbf16>,
    %14 = vector.extract_strided_slice %11 {offsets = [0, 0, 0, 0, 0], sizes = [8, 1, 8, 1, 16], strides = [1, 1, 1, 1, 1]} : vector<8x2x8x2x16xf32> to vector<8x1x8x1x16xf32>
    %15 = vector.shape_cast %14 : vector<8x1x8x1x16xf32> to vector<8x8x16xf32>
    %16 = vector.extract_strided_slice %11 {offsets = [0, 0, 0, 1, 0], sizes = [8, 1, 8, 1, 16], strides = [1, 1, 1, 1, 1]} : vector<8x2x8x2x16xf32> to vector<8x1x8x1x16xf32>
    %17 = vector.shape_cast %16 : vector<8x1x8x1x16xf32> to vector<8x8x16xf32>
    %18 = arith.maximumf %15, %17 : vector<8x8x16xf32>
    %19 = vector.extract_strided_slice %11 {offsets = [0, 1, 0, 0, 0], sizes = [8, 1, 8, 1, 16], strides = [1, 1, 1, 1, 1]} : vector<8x2x8x2x16xf32> to vector<8x1x8x1x16xf32>
    %20 = vector.shape_cast %19 : vector<8x1x8x1x16xf32> to vector<8x8x16xf32>
    %21 = vector.extract_strided_slice %11 {offsets = [0, 1, 0, 1, 0], sizes = [8, 1, 8, 1, 16], strides = [1, 1, 1, 1, 1]} : vector<8x2x8x2x16xf32> to vector<8x1x8x1x16xf32>
    %22 = vector.shape_cast %21 : vector<8x1x8x1x16xf32> to vector<8x8x16xf32>
    %23 = arith.maximumf %20, %22 : vector<8x8x16xf32>
    %24 = arith.maximumf %18, %23 : vector<8x8x16xf32>
    %25 = arith.truncf %24 : vector<8x8x16xf32> to vector<8x8x16xbf16>
    %c0_13 = arith.constant 0 : index
    %c0_14 = arith.constant 0 : index
    %c0_15 = arith.constant 0 : index
    %26 = vector.load %arg5[%c0_13, %c0_14, %c0_15] : memref<8x8x16xbf16, #tpu.memory_space<vmem>>, vector<8x8x16xbf16>
    tpu.vector_store %arg5[%c0_13, %c0_14, %c0_15], %25 {strides = array<i32>} : memref<8x8x16xbf16, #tpu.memory_space<vmem>>, vector<8x8x16xbf16>,
    return
  }
  func.func @transform_0(%arg0: i32) -> (i32, i32, i32, i32, i32) {
    %c0_i32 = arith.constant 0 : i32
    %c0_i32_0 = arith.constant 0 : i32
    %c0_i32_1 = arith.constant 0 : i32
    %c0_i32_2 = arith.constant 0 : i32
    %c0_i32_3 = arith.constant 0 : i32
    return %arg0, %c0_i32, %c0_i32_0, %c0_i32_1, %c0_i32_2 : i32, i32, i32, i32, i32
  }
  func.func @transform_1(%arg0: i32) -> (i32, i32) {
    %c0_i32 = arith.constant 0 : i32
    %c0_i32_0 = arith.constant 0 : i32
    %c0_i32_1 = arith.constant 0 : i32
    return %c0_i32, %c0_i32_0 : i32, i32
  }
  func.func @transform_2(%arg0: i32) -> (i32, i32) {
    %c0_i32 = arith.constant 0 : i32
    %c0_i32_0 = arith.constant 0 : i32
    %c0_i32_1 = arith.constant 0 : i32
    return %c0_i32, %c0_i32_0 : i32, i32
  }
  func.func @transform_3(%arg0: i32) -> (i32, i32, i32, i32, i32) {
    %c0_i32 = arith.constant 0 : i32
    %c0_i32_0 = arith.constant 0 : i32
    %c0_i32_1 = arith.constant 0 : i32
    %c0_i32_2 = arith.constant 0 : i32
    %c0_i32_3 = arith.constant 0 : i32
    return %arg0, %c0_i32, %c0_i32_0, %c0_i32_1, %c0_i32_2 : i32, i32, i32, i32, i32
  }
  func.func @transform_4(%arg0: i32) -> (i32, i32, i32) {
    %c0_i32 = arith.constant 0 : i32
    %c0_i32_0 = arith.constant 0 : i32
    %c0_i32_1 = arith.constant 0 : i32
    return %arg0, %c0_i32, %c0_i32_0 : i32, i32, i32
  }
}

module attributes {stable_mosaic.version = 11 : i64} {
  func.func @conv_gemm_stats_kernel(%arg0: i32, %arg1: memref<128x144xbf16, #tpu.memory_space<vmem>>, %arg2: memref<144x32xbf16, #tpu.memory_space<vmem>>, %arg3: memref<128x32xbf16, #tpu.memory_space<vmem>>, %arg4: memref<1x1x32xf32, #tpu.memory_space<vmem>>, %arg5: memref<1x1x32xf32, #tpu.memory_space<vmem>>) attributes {dimension_semantics = [#tpu.dimension_semantics<parallel>], iteration_bounds = array<i64: 1>, scalar_prefetch = 0 : i64, scratch_operands = 0 : i64, tpu.core_type = #tpu.core_type<tc>, window_params = [{transform_indices = @transform_0, window_bounds = array<i64: 128, 144>}, {pipeline_mode = #tpu.pipeline_mode<synchronous>, transform_indices = @transform_1, window_bounds = array<i64: 144, 32>}, {transform_indices = @transform_2, window_bounds = array<i64: 128, 32>}, {transform_indices = @transform_3, window_bounds = array<i64: 1, 1, 32>}, {transform_indices = @transform_4, window_bounds = array<i64: 1, 1, 32>}]} {
    %c0 = arith.constant 0 : index
    %c0_0 = arith.constant 0 : index
    %0 = vector.load %arg1[%c0, %c0_0] : memref<128x144xbf16, #tpu.memory_space<vmem>>, vector<128x144xbf16>
    %c0_1 = arith.constant 0 : index
    %c0_2 = arith.constant 0 : index
    %1 = vector.load %arg2[%c0_1, %c0_2] : memref<144x32xbf16, #tpu.memory_space<vmem>>, vector<144x32xbf16>
    %cst = arith.constant dense<0.000000e+00> : vector<128x32xf32>
    %2 = tpu.matmul %0, %1, %cst {dimension_numbers = #tpu.dot_dimension_numbers<[1], [0], [0], [1], [0, 0, 1, 1], [], []>} : vector<128x144xbf16>, vector<144x32xbf16>, vector<128x32xf32> -> vector<128x32xf32>
    %3 = arith.truncf %2 : vector<128x32xf32> to vector<128x32xbf16>
    %c0_3 = arith.constant 0 : index
    %c0_4 = arith.constant 0 : index
    %4 = vector.load %arg3[%c0_3, %c0_4] : memref<128x32xbf16, #tpu.memory_space<vmem>>, vector<128x32xbf16>
    tpu.vector_store %arg3[%c0_3, %c0_4], %3 {strides = array<i32>} : memref<128x32xbf16, #tpu.memory_space<vmem>>, vector<128x32xbf16>,
    %cst_5 = arith.constant dense<0.000000e+00> : vector<32xf32>
    %5 = vector.multi_reduction <add>, %2, %cst_5 [0] : vector<128x32xf32> to vector<32xf32>
    %6 = vector.shape_cast %5 : vector<32xf32> to vector<1x32xf32>
    %7 = vector.shape_cast %6 : vector<1x32xf32> to vector<1x1x32xf32>
    %c0_6 = arith.constant 0 : index
    %c0_7 = arith.constant 0 : index
    %c0_8 = arith.constant 0 : index
    %8 = vector.load %arg4[%c0_6, %c0_7, %c0_8] : memref<1x1x32xf32, #tpu.memory_space<vmem>>, vector<1x1x32xf32>
    tpu.vector_store %arg4[%c0_6, %c0_7, %c0_8], %7 {strides = array<i32>} : memref<1x1x32xf32, #tpu.memory_space<vmem>>, vector<1x1x32xf32>,
    %9 = arith.mulf %2, %2 : vector<128x32xf32>
    %cst_9 = arith.constant dense<0.000000e+00> : vector<32xf32>
    %10 = vector.multi_reduction <add>, %9, %cst_9 [0] : vector<128x32xf32> to vector<32xf32>
    %11 = vector.shape_cast %10 : vector<32xf32> to vector<1x32xf32>
    %12 = vector.shape_cast %11 : vector<1x32xf32> to vector<1x1x32xf32>
    %c0_10 = arith.constant 0 : index
    %c0_11 = arith.constant 0 : index
    %c0_12 = arith.constant 0 : index
    %13 = vector.load %arg5[%c0_10, %c0_11, %c0_12] : memref<1x1x32xf32, #tpu.memory_space<vmem>>, vector<1x1x32xf32>
    tpu.vector_store %arg5[%c0_10, %c0_11, %c0_12], %12 {strides = array<i32>} : memref<1x1x32xf32, #tpu.memory_space<vmem>>, vector<1x1x32xf32>,
    return
  }
  func.func @transform_0(%arg0: i32) -> (i32, i32) {
    %c0_i32 = arith.constant 0 : i32
    %c0_i32_0 = arith.constant 0 : i32
    return %arg0, %c0_i32 : i32, i32
  }
  func.func @transform_1(%arg0: i32) -> (i32, i32) {
    %c0_i32 = arith.constant 0 : i32
    %c0_i32_0 = arith.constant 0 : i32
    %c0_i32_1 = arith.constant 0 : i32
    return %c0_i32, %c0_i32_0 : i32, i32
  }
  func.func @transform_2(%arg0: i32) -> (i32, i32) {
    %c0_i32 = arith.constant 0 : i32
    %c0_i32_0 = arith.constant 0 : i32
    return %arg0, %c0_i32 : i32, i32
  }
  func.func @transform_3(%arg0: i32) -> (i32, i32, i32) {
    %c0_i32 = arith.constant 0 : i32
    %c0_i32_0 = arith.constant 0 : i32
    %c0_i32_1 = arith.constant 0 : i32
    return %arg0, %c0_i32, %c0_i32_0 : i32, i32, i32
  }
  func.func @transform_4(%arg0: i32) -> (i32, i32, i32) {
    %c0_i32 = arith.constant 0 : i32
    %c0_i32_0 = arith.constant 0 : i32
    %c0_i32_1 = arith.constant 0 : i32
    return %arg0, %c0_i32, %c0_i32_0 : i32, i32, i32
  }
}

module attributes {stable_mosaic.version = 11 : i64} {
  func.func @bn_relu_kernel(%arg0: i32, %arg1: memref<128x32xbf16, #tpu.memory_space<vmem>>, %arg2: memref<1x32xf32, #tpu.memory_space<vmem>>, %arg3: memref<1x32xf32, #tpu.memory_space<vmem>>, %arg4: memref<128x32xbf16, #tpu.memory_space<vmem>>) attributes {dimension_semantics = [#tpu.dimension_semantics<parallel>], iteration_bounds = array<i64: 1>, scalar_prefetch = 0 : i64, scratch_operands = 0 : i64, tpu.core_type = #tpu.core_type<tc>, window_params = [{transform_indices = @transform_0, window_bounds = array<i64: 128, 32>}, {pipeline_mode = #tpu.pipeline_mode<synchronous>, transform_indices = @transform_1, window_bounds = array<i64: 1, 32>}, {pipeline_mode = #tpu.pipeline_mode<synchronous>, transform_indices = @transform_2, window_bounds = array<i64: 1, 32>}, {transform_indices = @transform_3, window_bounds = array<i64: 128, 32>}]} {
    %c0 = arith.constant 0 : index
    %c0_0 = arith.constant 0 : index
    %0 = vector.load %arg1[%c0, %c0_0] : memref<128x32xbf16, #tpu.memory_space<vmem>>, vector<128x32xbf16>
    %1 = arith.extf %0 : vector<128x32xbf16> to vector<128x32xf32>
    %c0_1 = arith.constant 0 : index
    %c0_2 = arith.constant 0 : index
    %2 = vector.load %arg2[%c0_1, %c0_2] : memref<1x32xf32, #tpu.memory_space<vmem>>, vector<1x32xf32>
    %3 = vector.broadcast %2 : vector<1x32xf32> to vector<128x32xf32>
    %4 = arith.mulf %1, %3 : vector<128x32xf32>
    %c0_3 = arith.constant 0 : index
    %c0_4 = arith.constant 0 : index
    %5 = vector.load %arg3[%c0_3, %c0_4] : memref<1x32xf32, #tpu.memory_space<vmem>>, vector<1x32xf32>
    %6 = vector.broadcast %5 : vector<1x32xf32> to vector<128x32xf32>
    %7 = arith.addf %4, %6 : vector<128x32xf32>
    %cst = arith.constant 0.000000e+00 : f32
    %8 = vector.broadcast %cst : f32 to vector<128x32xf32>
    %9 = arith.maximumf %7, %8 : vector<128x32xf32>
    %10 = arith.truncf %9 : vector<128x32xf32> to vector<128x32xbf16>
    %c0_5 = arith.constant 0 : index
    %c0_6 = arith.constant 0 : index
    %11 = vector.load %arg4[%c0_5, %c0_6] : memref<128x32xbf16, #tpu.memory_space<vmem>>, vector<128x32xbf16>
    tpu.vector_store %arg4[%c0_5, %c0_6], %10 {strides = array<i32>} : memref<128x32xbf16, #tpu.memory_space<vmem>>, vector<128x32xbf16>,
    return
  }
  func.func @transform_0(%arg0: i32) -> (i32, i32) {
    %c0_i32 = arith.constant 0 : i32
    %c0_i32_0 = arith.constant 0 : i32
    return %arg0, %c0_i32 : i32, i32
  }
  func.func @transform_1(%arg0: i32) -> (i32, i32) {
    %c0_i32 = arith.constant 0 : i32
    %c0_i32_0 = arith.constant 0 : i32
    %c0_i32_1 = arith.constant 0 : i32
    return %c0_i32, %c0_i32_0 : i32, i32
  }
  func.func @transform_2(%arg0: i32) -> (i32, i32) {
    %c0_i32 = arith.constant 0 : i32
    %c0_i32_0 = arith.constant 0 : i32
    %c0_i32_1 = arith.constant 0 : i32
    return %c0_i32, %c0_i32_0 : i32, i32
  }
  func.func @transform_3(%arg0: i32) -> (i32, i32) {
    %c0_i32 = arith.constant 0 : i32
    %c0_i32_0 = arith.constant 0 : i32
    return %arg0, %c0_i32 : i32, i32
  }
}

module attributes {stable_mosaic.version = 11 : i64} {
  func.func @conv_gemm_stats_kernel(%arg0: i32, %arg1: memref<128x288xbf16, #tpu.memory_space<vmem>>, %arg2: memref<288x32xbf16, #tpu.memory_space<vmem>>, %arg3: memref<128x32xbf16, #tpu.memory_space<vmem>>, %arg4: memref<1x1x32xf32, #tpu.memory_space<vmem>>, %arg5: memref<1x1x32xf32, #tpu.memory_space<vmem>>) attributes {dimension_semantics = [#tpu.dimension_semantics<parallel>], iteration_bounds = array<i64: 1>, scalar_prefetch = 0 : i64, scratch_operands = 0 : i64, tpu.core_type = #tpu.core_type<tc>, window_params = [{transform_indices = @transform_0, window_bounds = array<i64: 128, 288>}, {pipeline_mode = #tpu.pipeline_mode<synchronous>, transform_indices = @transform_1, window_bounds = array<i64: 288, 32>}, {transform_indices = @transform_2, window_bounds = array<i64: 128, 32>}, {transform_indices = @transform_3, window_bounds = array<i64: 1, 1, 32>}, {transform_indices = @transform_4, window_bounds = array<i64: 1, 1, 32>}]} {
    %c0 = arith.constant 0 : index
    %c0_0 = arith.constant 0 : index
    %0 = vector.load %arg1[%c0, %c0_0] : memref<128x288xbf16, #tpu.memory_space<vmem>>, vector<128x288xbf16>
    %c0_1 = arith.constant 0 : index
    %c0_2 = arith.constant 0 : index
    %1 = vector.load %arg2[%c0_1, %c0_2] : memref<288x32xbf16, #tpu.memory_space<vmem>>, vector<288x32xbf16>
    %cst = arith.constant dense<0.000000e+00> : vector<128x32xf32>
    %2 = tpu.matmul %0, %1, %cst {dimension_numbers = #tpu.dot_dimension_numbers<[1], [0], [0], [1], [0, 0, 1, 1], [], []>} : vector<128x288xbf16>, vector<288x32xbf16>, vector<128x32xf32> -> vector<128x32xf32>
    %3 = arith.truncf %2 : vector<128x32xf32> to vector<128x32xbf16>
    %c0_3 = arith.constant 0 : index
    %c0_4 = arith.constant 0 : index
    %4 = vector.load %arg3[%c0_3, %c0_4] : memref<128x32xbf16, #tpu.memory_space<vmem>>, vector<128x32xbf16>
    tpu.vector_store %arg3[%c0_3, %c0_4], %3 {strides = array<i32>} : memref<128x32xbf16, #tpu.memory_space<vmem>>, vector<128x32xbf16>,
    %cst_5 = arith.constant dense<0.000000e+00> : vector<32xf32>
    %5 = vector.multi_reduction <add>, %2, %cst_5 [0] : vector<128x32xf32> to vector<32xf32>
    %6 = vector.shape_cast %5 : vector<32xf32> to vector<1x32xf32>
    %7 = vector.shape_cast %6 : vector<1x32xf32> to vector<1x1x32xf32>
    %c0_6 = arith.constant 0 : index
    %c0_7 = arith.constant 0 : index
    %c0_8 = arith.constant 0 : index
    %8 = vector.load %arg4[%c0_6, %c0_7, %c0_8] : memref<1x1x32xf32, #tpu.memory_space<vmem>>, vector<1x1x32xf32>
    tpu.vector_store %arg4[%c0_6, %c0_7, %c0_8], %7 {strides = array<i32>} : memref<1x1x32xf32, #tpu.memory_space<vmem>>, vector<1x1x32xf32>,
    %9 = arith.mulf %2, %2 : vector<128x32xf32>
    %cst_9 = arith.constant dense<0.000000e+00> : vector<32xf32>
    %10 = vector.multi_reduction <add>, %9, %cst_9 [0] : vector<128x32xf32> to vector<32xf32>
    %11 = vector.shape_cast %10 : vector<32xf32> to vector<1x32xf32>
    %12 = vector.shape_cast %11 : vector<1x32xf32> to vector<1x1x32xf32>
    %c0_10 = arith.constant 0 : index
    %c0_11 = arith.constant 0 : index
    %c0_12 = arith.constant 0 : index
    %13 = vector.load %arg5[%c0_10, %c0_11, %c0_12] : memref<1x1x32xf32, #tpu.memory_space<vmem>>, vector<1x1x32xf32>
    tpu.vector_store %arg5[%c0_10, %c0_11, %c0_12], %12 {strides = array<i32>} : memref<1x1x32xf32, #tpu.memory_space<vmem>>, vector<1x1x32xf32>,
    return
  }
  func.func @transform_0(%arg0: i32) -> (i32, i32) {
    %c0_i32 = arith.constant 0 : i32
    %c0_i32_0 = arith.constant 0 : i32
    return %arg0, %c0_i32 : i32, i32
  }
  func.func @transform_1(%arg0: i32) -> (i32, i32) {
    %c0_i32 = arith.constant 0 : i32
    %c0_i32_0 = arith.constant 0 : i32
    %c0_i32_1 = arith.constant 0 : i32
    return %c0_i32, %c0_i32_0 : i32, i32
  }
  func.func @transform_2(%arg0: i32) -> (i32, i32) {
    %c0_i32 = arith.constant 0 : i32
    %c0_i32_0 = arith.constant 0 : i32
    return %arg0, %c0_i32 : i32, i32
  }
  func.func @transform_3(%arg0: i32) -> (i32, i32, i32) {
    %c0_i32 = arith.constant 0 : i32
    %c0_i32_0 = arith.constant 0 : i32
    %c0_i32_1 = arith.constant 0 : i32
    return %arg0, %c0_i32, %c0_i32_0 : i32, i32, i32
  }
  func.func @transform_4(%arg0: i32) -> (i32, i32, i32) {
    %c0_i32 = arith.constant 0 : i32
    %c0_i32_0 = arith.constant 0 : i32
    %c0_i32_1 = arith.constant 0 : i32
    return %arg0, %c0_i32, %c0_i32_0 : i32, i32, i32
  }
}

module attributes {stable_mosaic.version = 11 : i64} {
  func.func @bn_relu_pool_kernel(%arg0: i32, %arg1: memref<8x2x4x2x32xbf16, #tpu.memory_space<vmem>>, %arg2: memref<1x32xf32, #tpu.memory_space<vmem>>, %arg3: memref<1x32xf32, #tpu.memory_space<vmem>>, %arg4: memref<8x2x4x2x32xbf16, #tpu.memory_space<vmem>>, %arg5: memref<8x4x32xbf16, #tpu.memory_space<vmem>>) attributes {dimension_semantics = [#tpu.dimension_semantics<parallel>], iteration_bounds = array<i64: 1>, scalar_prefetch = 0 : i64, scratch_operands = 0 : i64, tpu.core_type = #tpu.core_type<tc>, window_params = [{transform_indices = @transform_0, window_bounds = array<i64: 8, 2, 4, 2, 32>}, {pipeline_mode = #tpu.pipeline_mode<synchronous>, transform_indices = @transform_1, window_bounds = array<i64: 1, 32>}, {pipeline_mode = #tpu.pipeline_mode<synchronous>, transform_indices = @transform_2, window_bounds = array<i64: 1, 32>}, {transform_indices = @transform_3, window_bounds = array<i64: 8, 2, 4, 2, 32>}, {transform_indices = @transform_4, window_bounds = array<i64: 8, 4, 32>}]} {
    %c0 = arith.constant 0 : index
    %c0_0 = arith.constant 0 : index
    %c0_1 = arith.constant 0 : index
    %c0_2 = arith.constant 0 : index
    %c0_3 = arith.constant 0 : index
    %0 = vector.load %arg1[%c0, %c0_0, %c0_1, %c0_2, %c0_3] : memref<8x2x4x2x32xbf16, #tpu.memory_space<vmem>>, vector<8x2x4x2x32xbf16>
    %1 = arith.extf %0 : vector<8x2x4x2x32xbf16> to vector<8x2x4x2x32xf32>
    %c0_4 = arith.constant 0 : index
    %c0_5 = arith.constant 0 : index
    %2 = vector.load %arg2[%c0_4, %c0_5] : memref<1x32xf32, #tpu.memory_space<vmem>>, vector<1x32xf32>
    %3 = vector.shape_cast %2 : vector<1x32xf32> to vector<1x1x1x1x32xf32>
    %4 = vector.broadcast %3 : vector<1x1x1x1x32xf32> to vector<8x2x4x2x32xf32>
    %5 = arith.mulf %1, %4 : vector<8x2x4x2x32xf32>
    %c0_6 = arith.constant 0 : index
    %c0_7 = arith.constant 0 : index
    %6 = vector.load %arg3[%c0_6, %c0_7] : memref<1x32xf32, #tpu.memory_space<vmem>>, vector<1x32xf32>
    %7 = vector.shape_cast %6 : vector<1x32xf32> to vector<1x1x1x1x32xf32>
    %8 = vector.broadcast %7 : vector<1x1x1x1x32xf32> to vector<8x2x4x2x32xf32>
    %9 = arith.addf %5, %8 : vector<8x2x4x2x32xf32>
    %cst = arith.constant 0.000000e+00 : f32
    %10 = vector.broadcast %cst : f32 to vector<8x2x4x2x32xf32>
    %11 = arith.maximumf %9, %10 : vector<8x2x4x2x32xf32>
    %12 = arith.truncf %11 : vector<8x2x4x2x32xf32> to vector<8x2x4x2x32xbf16>
    %c0_8 = arith.constant 0 : index
    %c0_9 = arith.constant 0 : index
    %c0_10 = arith.constant 0 : index
    %c0_11 = arith.constant 0 : index
    %c0_12 = arith.constant 0 : index
    %13 = vector.load %arg4[%c0_8, %c0_9, %c0_10, %c0_11, %c0_12] : memref<8x2x4x2x32xbf16, #tpu.memory_space<vmem>>, vector<8x2x4x2x32xbf16>
    tpu.vector_store %arg4[%c0_8, %c0_9, %c0_10, %c0_11, %c0_12], %12 {strides = array<i32>} : memref<8x2x4x2x32xbf16, #tpu.memory_space<vmem>>, vector<8x2x4x2x32xbf16>,
    %14 = vector.extract_strided_slice %11 {offsets = [0, 0, 0, 0, 0], sizes = [8, 1, 4, 1, 32], strides = [1, 1, 1, 1, 1]} : vector<8x2x4x2x32xf32> to vector<8x1x4x1x32xf32>
    %15 = vector.shape_cast %14 : vector<8x1x4x1x32xf32> to vector<8x4x32xf32>
    %16 = vector.extract_strided_slice %11 {offsets = [0, 0, 0, 1, 0], sizes = [8, 1, 4, 1, 32], strides = [1, 1, 1, 1, 1]} : vector<8x2x4x2x32xf32> to vector<8x1x4x1x32xf32>
    %17 = vector.shape_cast %16 : vector<8x1x4x1x32xf32> to vector<8x4x32xf32>
    %18 = arith.maximumf %15, %17 : vector<8x4x32xf32>
    %19 = vector.extract_strided_slice %11 {offsets = [0, 1, 0, 0, 0], sizes = [8, 1, 4, 1, 32], strides = [1, 1, 1, 1, 1]} : vector<8x2x4x2x32xf32> to vector<8x1x4x1x32xf32>
    %20 = vector.shape_cast %19 : vector<8x1x4x1x32xf32> to vector<8x4x32xf32>
    %21 = vector.extract_strided_slice %11 {offsets = [0, 1, 0, 1, 0], sizes = [8, 1, 4, 1, 32], strides = [1, 1, 1, 1, 1]} : vector<8x2x4x2x32xf32> to vector<8x1x4x1x32xf32>
    %22 = vector.shape_cast %21 : vector<8x1x4x1x32xf32> to vector<8x4x32xf32>
    %23 = arith.maximumf %20, %22 : vector<8x4x32xf32>
    %24 = arith.maximumf %18, %23 : vector<8x4x32xf32>
    %25 = arith.truncf %24 : vector<8x4x32xf32> to vector<8x4x32xbf16>
    %c0_13 = arith.constant 0 : index
    %c0_14 = arith.constant 0 : index
    %c0_15 = arith.constant 0 : index
    %26 = vector.load %arg5[%c0_13, %c0_14, %c0_15] : memref<8x4x32xbf16, #tpu.memory_space<vmem>>, vector<8x4x32xbf16>
    tpu.vector_store %arg5[%c0_13, %c0_14, %c0_15], %25 {strides = array<i32>} : memref<8x4x32xbf16, #tpu.memory_space<vmem>>, vector<8x4x32xbf16>,
    return
  }
  func.func @transform_0(%arg0: i32) -> (i32, i32, i32, i32, i32) {
    %c0_i32 = arith.constant 0 : i32
    %c0_i32_0 = arith.constant 0 : i32
    %c0_i32_1 = arith.constant 0 : i32
    %c0_i32_2 = arith.constant 0 : i32
    %c0_i32_3 = arith.constant 0 : i32
    return %arg0, %c0_i32, %c0_i32_0, %c0_i32_1, %c0_i32_2 : i32, i32, i32, i32, i32
  }
  func.func @transform_1(%arg0: i32) -> (i32, i32) {
    %c0_i32 = arith.constant 0 : i32
    %c0_i32_0 = arith.constant 0 : i32
    %c0_i32_1 = arith.constant 0 : i32
    return %c0_i32, %c0_i32_0 : i32, i32
  }
  func.func @transform_2(%arg0: i32) -> (i32, i32) {
    %c0_i32 = arith.constant 0 : i32
    %c0_i32_0 = arith.constant 0 : i32
    %c0_i32_1 = arith.constant 0 : i32
    return %c0_i32, %c0_i32_0 : i32, i32
  }
  func.func @transform_3(%arg0: i32) -> (i32, i32, i32, i32, i32) {
    %c0_i32 = arith.constant 0 : i32
    %c0_i32_0 = arith.constant 0 : i32
    %c0_i32_1 = arith.constant 0 : i32
    %c0_i32_2 = arith.constant 0 : i32
    %c0_i32_3 = arith.constant 0 : i32
    return %arg0, %c0_i32, %c0_i32_0, %c0_i32_1, %c0_i32_2 : i32, i32, i32, i32, i32
  }
  func.func @transform_4(%arg0: i32) -> (i32, i32, i32) {
    %c0_i32 = arith.constant 0 : i32
    %c0_i32_0 = arith.constant 0 : i32
    %c0_i32_1 = arith.constant 0 : i32
    return %arg0, %c0_i32, %c0_i32_0 : i32, i32, i32
  }
}

module attributes {stable_mosaic.version = 11 : i64} {
  func.func @bn_relu_kernel(%arg0: i32, %arg1: memref<32x64xbf16, #tpu.memory_space<vmem>>, %arg2: memref<1x64xf32, #tpu.memory_space<vmem>>, %arg3: memref<1x64xf32, #tpu.memory_space<vmem>>, %arg4: memref<32x64xbf16, #tpu.memory_space<vmem>>) attributes {dimension_semantics = [#tpu.dimension_semantics<parallel>], iteration_bounds = array<i64: 1>, scalar_prefetch = 0 : i64, scratch_operands = 0 : i64, tpu.core_type = #tpu.core_type<tc>, window_params = [{transform_indices = @transform_0, window_bounds = array<i64: 32, 64>}, {pipeline_mode = #tpu.pipeline_mode<synchronous>, transform_indices = @transform_1, window_bounds = array<i64: 1, 64>}, {pipeline_mode = #tpu.pipeline_mode<synchronous>, transform_indices = @transform_2, window_bounds = array<i64: 1, 64>}, {transform_indices = @transform_3, window_bounds = array<i64: 32, 64>}]} {
    %c0 = arith.constant 0 : index
    %c0_0 = arith.constant 0 : index
    %0 = vector.load %arg1[%c0, %c0_0] : memref<32x64xbf16, #tpu.memory_space<vmem>>, vector<32x64xbf16>
    %1 = arith.extf %0 : vector<32x64xbf16> to vector<32x64xf32>
    %c0_1 = arith.constant 0 : index
    %c0_2 = arith.constant 0 : index
    %2 = vector.load %arg2[%c0_1, %c0_2] : memref<1x64xf32, #tpu.memory_space<vmem>>, vector<1x64xf32>
    %3 = vector.broadcast %2 : vector<1x64xf32> to vector<32x64xf32>
    %4 = arith.mulf %1, %3 : vector<32x64xf32>
    %c0_3 = arith.constant 0 : index
    %c0_4 = arith.constant 0 : index
    %5 = vector.load %arg3[%c0_3, %c0_4] : memref<1x64xf32, #tpu.memory_space<vmem>>, vector<1x64xf32>
    %6 = vector.broadcast %5 : vector<1x64xf32> to vector<32x64xf32>
    %7 = arith.addf %4, %6 : vector<32x64xf32>
    %cst = arith.constant 0.000000e+00 : f32
    %8 = vector.broadcast %cst : f32 to vector<32x64xf32>
    %9 = arith.maximumf %7, %8 : vector<32x64xf32>
    %10 = arith.truncf %9 : vector<32x64xf32> to vector<32x64xbf16>
    %c0_5 = arith.constant 0 : index
    %c0_6 = arith.constant 0 : index
    %11 = vector.load %arg4[%c0_5, %c0_6] : memref<32x64xbf16, #tpu.memory_space<vmem>>, vector<32x64xbf16>
    tpu.vector_store %arg4[%c0_5, %c0_6], %10 {strides = array<i32>} : memref<32x64xbf16, #tpu.memory_space<vmem>>, vector<32x64xbf16>,
    return
  }
  func.func @transform_0(%arg0: i32) -> (i32, i32) {
    %c0_i32 = arith.constant 0 : i32
    %c0_i32_0 = arith.constant 0 : i32
    return %arg0, %c0_i32 : i32, i32
  }
  func.func @transform_1(%arg0: i32) -> (i32, i32) {
    %c0_i32 = arith.constant 0 : i32
    %c0_i32_0 = arith.constant 0 : i32
    %c0_i32_1 = arith.constant 0 : i32
    return %c0_i32, %c0_i32_0 : i32, i32
  }
  func.func @transform_2(%arg0: i32) -> (i32, i32) {
    %c0_i32 = arith.constant 0 : i32
    %c0_i32_0 = arith.constant 0 : i32
    %c0_i32_1 = arith.constant 0 : i32
    return %c0_i32, %c0_i32_0 : i32, i32
  }
  func.func @transform_3(%arg0: i32) -> (i32, i32) {
    %c0_i32 = arith.constant 0 : i32
    %c0_i32_0 = arith.constant 0 : i32
    return %arg0, %c0_i32 : i32, i32
  }
}

module attributes {stable_mosaic.version = 11 : i64} {
  func.func @conv_gemm_stats_kernel(%arg0: i32, %arg1: memref<32x288xbf16, #tpu.memory_space<vmem>>, %arg2: memref<288x64xbf16, #tpu.memory_space<vmem>>, %arg3: memref<32x64xbf16, #tpu.memory_space<vmem>>, %arg4: memref<1x1x64xf32, #tpu.memory_space<vmem>>, %arg5: memref<1x1x64xf32, #tpu.memory_space<vmem>>) attributes {dimension_semantics = [#tpu.dimension_semantics<parallel>], iteration_bounds = array<i64: 1>, scalar_prefetch = 0 : i64, scratch_operands = 0 : i64, tpu.core_type = #tpu.core_type<tc>, window_params = [{transform_indices = @transform_0, window_bounds = array<i64: 32, 288>}, {pipeline_mode = #tpu.pipeline_mode<synchronous>, transform_indices = @transform_1, window_bounds = array<i64: 288, 64>}, {transform_indices = @transform_2, window_bounds = array<i64: 32, 64>}, {transform_indices = @transform_3, window_bounds = array<i64: 1, 1, 64>}, {transform_indices = @transform_4, window_bounds = array<i64: 1, 1, 64>}]} {
    %c0 = arith.constant 0 : index
    %c0_0 = arith.constant 0 : index
    %0 = vector.load %arg1[%c0, %c0_0] : memref<32x288xbf16, #tpu.memory_space<vmem>>, vector<32x288xbf16>
    %c0_1 = arith.constant 0 : index
    %c0_2 = arith.constant 0 : index
    %1 = vector.load %arg2[%c0_1, %c0_2] : memref<288x64xbf16, #tpu.memory_space<vmem>>, vector<288x64xbf16>
    %cst = arith.constant dense<0.000000e+00> : vector<32x64xf32>
    %2 = tpu.matmul %0, %1, %cst {dimension_numbers = #tpu.dot_dimension_numbers<[1], [0], [0], [1], [0, 0, 1, 1], [], []>} : vector<32x288xbf16>, vector<288x64xbf16>, vector<32x64xf32> -> vector<32x64xf32>
    %3 = arith.truncf %2 : vector<32x64xf32> to vector<32x64xbf16>
    %c0_3 = arith.constant 0 : index
    %c0_4 = arith.constant 0 : index
    %4 = vector.load %arg3[%c0_3, %c0_4] : memref<32x64xbf16, #tpu.memory_space<vmem>>, vector<32x64xbf16>
    tpu.vector_store %arg3[%c0_3, %c0_4], %3 {strides = array<i32>} : memref<32x64xbf16, #tpu.memory_space<vmem>>, vector<32x64xbf16>,
    %cst_5 = arith.constant dense<0.000000e+00> : vector<64xf32>
    %5 = vector.multi_reduction <add>, %2, %cst_5 [0] : vector<32x64xf32> to vector<64xf32>
    %6 = vector.shape_cast %5 : vector<64xf32> to vector<1x64xf32>
    %7 = vector.shape_cast %6 : vector<1x64xf32> to vector<1x1x64xf32>
    %c0_6 = arith.constant 0 : index
    %c0_7 = arith.constant 0 : index
    %c0_8 = arith.constant 0 : index
    %8 = vector.load %arg4[%c0_6, %c0_7, %c0_8] : memref<1x1x64xf32, #tpu.memory_space<vmem>>, vector<1x1x64xf32>
    tpu.vector_store %arg4[%c0_6, %c0_7, %c0_8], %7 {strides = array<i32>} : memref<1x1x64xf32, #tpu.memory_space<vmem>>, vector<1x1x64xf32>,
    %9 = arith.mulf %2, %2 : vector<32x64xf32>
    %cst_9 = arith.constant dense<0.000000e+00> : vector<64xf32>
    %10 = vector.multi_reduction <add>, %9, %cst_9 [0] : vector<32x64xf32> to vector<64xf32>
    %11 = vector.shape_cast %10 : vector<64xf32> to vector<1x64xf32>
    %12 = vector.shape_cast %11 : vector<1x64xf32> to vector<1x1x64xf32>
    %c0_10 = arith.constant 0 : index
    %c0_11 = arith.constant 0 : index
    %c0_12 = arith.constant 0 : index
    %13 = vector.load %arg5[%c0_10, %c0_11, %c0_12] : memref<1x1x64xf32, #tpu.memory_space<vmem>>, vector<1x1x64xf32>
    tpu.vector_store %arg5[%c0_10, %c0_11, %c0_12], %12 {strides = array<i32>} : memref<1x1x64xf32, #tpu.memory_space<vmem>>, vector<1x1x64xf32>,
    return
  }
  func.func @transform_0(%arg0: i32) -> (i32, i32) {
    %c0_i32 = arith.constant 0 : i32
    %c0_i32_0 = arith.constant 0 : i32
    return %arg0, %c0_i32 : i32, i32
  }
  func.func @transform_1(%arg0: i32) -> (i32, i32) {
    %c0_i32 = arith.constant 0 : i32
    %c0_i32_0 = arith.constant 0 : i32
    %c0_i32_1 = arith.constant 0 : i32
    return %c0_i32, %c0_i32_0 : i32, i32
  }
  func.func @transform_2(%arg0: i32) -> (i32, i32) {
    %c0_i32 = arith.constant 0 : i32
    %c0_i32_0 = arith.constant 0 : i32
    return %arg0, %c0_i32 : i32, i32
  }
  func.func @transform_3(%arg0: i32) -> (i32, i32, i32) {
    %c0_i32 = arith.constant 0 : i32
    %c0_i32_0 = arith.constant 0 : i32
    %c0_i32_1 = arith.constant 0 : i32
    return %arg0, %c0_i32, %c0_i32_0 : i32, i32, i32
  }
  func.func @transform_4(%arg0: i32) -> (i32, i32, i32) {
    %c0_i32 = arith.constant 0 : i32
    %c0_i32_0 = arith.constant 0 : i32
    %c0_i32_1 = arith.constant 0 : i32
    return %arg0, %c0_i32, %c0_i32_0 : i32, i32, i32
  }
}

module attributes {stable_mosaic.version = 11 : i64} {
  func.func @conv_gemm_stats_kernel(%arg0: i32, %arg1: memref<32x576xbf16, #tpu.memory_space<vmem>>, %arg2: memref<576x64xbf16, #tpu.memory_space<vmem>>, %arg3: memref<32x64xbf16, #tpu.memory_space<vmem>>, %arg4: memref<1x1x64xf32, #tpu.memory_space<vmem>>, %arg5: memref<1x1x64xf32, #tpu.memory_space<vmem>>) attributes {dimension_semantics = [#tpu.dimension_semantics<parallel>], iteration_bounds = array<i64: 1>, scalar_prefetch = 0 : i64, scratch_operands = 0 : i64, tpu.core_type = #tpu.core_type<tc>, window_params = [{transform_indices = @transform_0, window_bounds = array<i64: 32, 576>}, {pipeline_mode = #tpu.pipeline_mode<synchronous>, transform_indices = @transform_1, window_bounds = array<i64: 576, 64>}, {transform_indices = @transform_2, window_bounds = array<i64: 32, 64>}, {transform_indices = @transform_3, window_bounds = array<i64: 1, 1, 64>}, {transform_indices = @transform_4, window_bounds = array<i64: 1, 1, 64>}]} {
    %c0 = arith.constant 0 : index
    %c0_0 = arith.constant 0 : index
    %0 = vector.load %arg1[%c0, %c0_0] : memref<32x576xbf16, #tpu.memory_space<vmem>>, vector<32x576xbf16>
    %c0_1 = arith.constant 0 : index
    %c0_2 = arith.constant 0 : index
    %1 = vector.load %arg2[%c0_1, %c0_2] : memref<576x64xbf16, #tpu.memory_space<vmem>>, vector<576x64xbf16>
    %cst = arith.constant dense<0.000000e+00> : vector<32x64xf32>
    %2 = tpu.matmul %0, %1, %cst {dimension_numbers = #tpu.dot_dimension_numbers<[1], [0], [0], [1], [0, 0, 1, 1], [], []>} : vector<32x576xbf16>, vector<576x64xbf16>, vector<32x64xf32> -> vector<32x64xf32>
    %3 = arith.truncf %2 : vector<32x64xf32> to vector<32x64xbf16>
    %c0_3 = arith.constant 0 : index
    %c0_4 = arith.constant 0 : index
    %4 = vector.load %arg3[%c0_3, %c0_4] : memref<32x64xbf16, #tpu.memory_space<vmem>>, vector<32x64xbf16>
    tpu.vector_store %arg3[%c0_3, %c0_4], %3 {strides = array<i32>} : memref<32x64xbf16, #tpu.memory_space<vmem>>, vector<32x64xbf16>,
    %cst_5 = arith.constant dense<0.000000e+00> : vector<64xf32>
    %5 = vector.multi_reduction <add>, %2, %cst_5 [0] : vector<32x64xf32> to vector<64xf32>
    %6 = vector.shape_cast %5 : vector<64xf32> to vector<1x64xf32>
    %7 = vector.shape_cast %6 : vector<1x64xf32> to vector<1x1x64xf32>
    %c0_6 = arith.constant 0 : index
    %c0_7 = arith.constant 0 : index
    %c0_8 = arith.constant 0 : index
    %8 = vector.load %arg4[%c0_6, %c0_7, %c0_8] : memref<1x1x64xf32, #tpu.memory_space<vmem>>, vector<1x1x64xf32>
    tpu.vector_store %arg4[%c0_6, %c0_7, %c0_8], %7 {strides = array<i32>} : memref<1x1x64xf32, #tpu.memory_space<vmem>>, vector<1x1x64xf32>,
    %9 = arith.mulf %2, %2 : vector<32x64xf32>
    %cst_9 = arith.constant dense<0.000000e+00> : vector<64xf32>
    %10 = vector.multi_reduction <add>, %9, %cst_9 [0] : vector<32x64xf32> to vector<64xf32>
    %11 = vector.shape_cast %10 : vector<64xf32> to vector<1x64xf32>
    %12 = vector.shape_cast %11 : vector<1x64xf32> to vector<1x1x64xf32>
    %c0_10 = arith.constant 0 : index
    %c0_11 = arith.constant 0 : index
    %c0_12 = arith.constant 0 : index
    %13 = vector.load %arg5[%c0_10, %c0_11, %c0_12] : memref<1x1x64xf32, #tpu.memory_space<vmem>>, vector<1x1x64xf32>
    tpu.vector_store %arg5[%c0_10, %c0_11, %c0_12], %12 {strides = array<i32>} : memref<1x1x64xf32, #tpu.memory_space<vmem>>, vector<1x1x64xf32>,
    return
  }
  func.func @transform_0(%arg0: i32) -> (i32, i32) {
    %c0_i32 = arith.constant 0 : i32
    %c0_i32_0 = arith.constant 0 : i32
    return %arg0, %c0_i32 : i32, i32
  }
  func.func @transform_1(%arg0: i32) -> (i32, i32) {
    %c0_i32 = arith.constant 0 : i32
    %c0_i32_0 = arith.constant 0 : i32
    %c0_i32_1 = arith.constant 0 : i32
    return %c0_i32, %c0_i32_0 : i32, i32
  }
  func.func @transform_2(%arg0: i32) -> (i32, i32) {
    %c0_i32 = arith.constant 0 : i32
    %c0_i32_0 = arith.constant 0 : i32
    return %arg0, %c0_i32 : i32, i32
  }
  func.func @transform_3(%arg0: i32) -> (i32, i32, i32) {
    %c0_i32 = arith.constant 0 : i32
    %c0_i32_0 = arith.constant 0 : i32
    %c0_i32_1 = arith.constant 0 : i32
    return %arg0, %c0_i32, %c0_i32_0 : i32, i32, i32
  }
  func.func @transform_4(%arg0: i32) -> (i32, i32, i32) {
    %c0_i32 = arith.constant 0 : i32
    %c0_i32_0 = arith.constant 0 : i32
    %c0_i32_1 = arith.constant 0 : i32
    return %arg0, %c0_i32, %c0_i32_0 : i32, i32, i32
  }
}

module attributes {stable_mosaic.version = 11 : i64} {
  func.func @gemm_bias_kernel(%arg0: i32, %arg1: memref<32x64xbf16, #tpu.memory_space<vmem>>, %arg2: memref<64x128xbf16, #tpu.memory_space<vmem>>, %arg3: memref<1x128xf32, #tpu.memory_space<vmem>>, %arg4: memref<32x128xbf16, #tpu.memory_space<vmem>>) attributes {dimension_semantics = [#tpu.dimension_semantics<parallel>], iteration_bounds = array<i64: 1>, scalar_prefetch = 0 : i64, scratch_operands = 0 : i64, tpu.core_type = #tpu.core_type<tc>, window_params = [{transform_indices = @transform_0, window_bounds = array<i64: 32, 64>}, {pipeline_mode = #tpu.pipeline_mode<synchronous>, transform_indices = @transform_1, window_bounds = array<i64: 64, 128>}, {pipeline_mode = #tpu.pipeline_mode<synchronous>, transform_indices = @transform_2, window_bounds = array<i64: 1, 128>}, {transform_indices = @transform_3, window_bounds = array<i64: 32, 128>}]} {
    %c0 = arith.constant 0 : index
    %c0_0 = arith.constant 0 : index
    %0 = vector.load %arg1[%c0, %c0_0] : memref<32x64xbf16, #tpu.memory_space<vmem>>, vector<32x64xbf16>
    %c0_1 = arith.constant 0 : index
    %c0_2 = arith.constant 0 : index
    %1 = vector.load %arg2[%c0_1, %c0_2] : memref<64x128xbf16, #tpu.memory_space<vmem>>, vector<64x128xbf16>
    %cst = arith.constant dense<0.000000e+00> : vector<32x128xf32>
    %2 = tpu.matmul %0, %1, %cst {dimension_numbers = #tpu.dot_dimension_numbers<[1], [0], [0], [1], [0, 0, 1, 1], [], []>} : vector<32x64xbf16>, vector<64x128xbf16>, vector<32x128xf32> -> vector<32x128xf32>
    %c0_3 = arith.constant 0 : index
    %c0_4 = arith.constant 0 : index
    %3 = vector.load %arg3[%c0_3, %c0_4] : memref<1x128xf32, #tpu.memory_space<vmem>>, vector<1x128xf32>
    %4 = vector.broadcast %3 : vector<1x128xf32> to vector<32x128xf32>
    %5 = arith.addf %2, %4 : vector<32x128xf32>
    %6 = arith.truncf %5 : vector<32x128xf32> to vector<32x128xbf16>
    %c0_5 = arith.constant 0 : index
    %c0_6 = arith.constant 0 : index
    %7 = vector.load %arg4[%c0_5, %c0_6] : memref<32x128xbf16, #tpu.memory_space<vmem>>, vector<32x128xbf16>
    tpu.vector_store %arg4[%c0_5, %c0_6], %6 {strides = array<i32>} : memref<32x128xbf16, #tpu.memory_space<vmem>>, vector<32x128xbf16>,
    return
  }
  func.func @transform_0(%arg0: i32) -> (i32, i32) {
    %c0_i32 = arith.constant 0 : i32
    %c0_i32_0 = arith.constant 0 : i32
    return %arg0, %c0_i32 : i32, i32
  }
  func.func @transform_1(%arg0: i32) -> (i32, i32) {
    %c0_i32 = arith.constant 0 : i32
    %c0_i32_0 = arith.constant 0 : i32
    %c0_i32_1 = arith.constant 0 : i32
    return %c0_i32, %c0_i32_0 : i32, i32
  }
  func.func @transform_2(%arg0: i32) -> (i32, i32) {
    %c0_i32 = arith.constant 0 : i32
    %c0_i32_0 = arith.constant 0 : i32
    %c0_i32_1 = arith.constant 0 : i32
    return %c0_i32, %c0_i32_0 : i32, i32
  }
  func.func @transform_3(%arg0: i32) -> (i32, i32) {
    %c0_i32 = arith.constant 0 : i32
    %c0_i32_0 = arith.constant 0 : i32
    return %arg0, %c0_i32 : i32, i32
  }
}

module attributes {stable_mosaic.version = 11 : i64} {
  func.func @gemm_bias_kernel(%arg0: i32, %arg1: memref<128x32xbf16, #tpu.memory_space<vmem>>, %arg2: memref<32x64xbf16, #tpu.memory_space<vmem>>, %arg3: memref<1x64xf32, #tpu.memory_space<vmem>>, %arg4: memref<128x64xbf16, #tpu.memory_space<vmem>>) attributes {dimension_semantics = [#tpu.dimension_semantics<parallel>], iteration_bounds = array<i64: 1>, scalar_prefetch = 0 : i64, scratch_operands = 0 : i64, tpu.core_type = #tpu.core_type<tc>, window_params = [{transform_indices = @transform_0, window_bounds = array<i64: 128, 32>}, {pipeline_mode = #tpu.pipeline_mode<synchronous>, transform_indices = @transform_1, window_bounds = array<i64: 32, 64>}, {pipeline_mode = #tpu.pipeline_mode<synchronous>, transform_indices = @transform_2, window_bounds = array<i64: 1, 64>}, {transform_indices = @transform_3, window_bounds = array<i64: 128, 64>}]} {
    %c0 = arith.constant 0 : index
    %c0_0 = arith.constant 0 : index
    %0 = vector.load %arg1[%c0, %c0_0] : memref<128x32xbf16, #tpu.memory_space<vmem>>, vector<128x32xbf16>
    %c0_1 = arith.constant 0 : index
    %c0_2 = arith.constant 0 : index
    %1 = vector.load %arg2[%c0_1, %c0_2] : memref<32x64xbf16, #tpu.memory_space<vmem>>, vector<32x64xbf16>
    %cst = arith.constant dense<0.000000e+00> : vector<128x64xf32>
    %2 = tpu.matmul %0, %1, %cst {dimension_numbers = #tpu.dot_dimension_numbers<[1], [0], [0], [1], [0, 0, 1, 1], [], []>} : vector<128x32xbf16>, vector<32x64xbf16>, vector<128x64xf32> -> vector<128x64xf32>
    %c0_3 = arith.constant 0 : index
    %c0_4 = arith.constant 0 : index
    %3 = vector.load %arg3[%c0_3, %c0_4] : memref<1x64xf32, #tpu.memory_space<vmem>>, vector<1x64xf32>
    %4 = vector.broadcast %3 : vector<1x64xf32> to vector<128x64xf32>
    %5 = arith.addf %2, %4 : vector<128x64xf32>
    %6 = arith.truncf %5 : vector<128x64xf32> to vector<128x64xbf16>
    %c0_5 = arith.constant 0 : index
    %c0_6 = arith.constant 0 : index
    %7 = vector.load %arg4[%c0_5, %c0_6] : memref<128x64xbf16, #tpu.memory_space<vmem>>, vector<128x64xbf16>
    tpu.vector_store %arg4[%c0_5, %c0_6], %6 {strides = array<i32>} : memref<128x64xbf16, #tpu.memory_space<vmem>>, vector<128x64xbf16>,
    return
  }
  func.func @transform_0(%arg0: i32) -> (i32, i32) {
    %c0_i32 = arith.constant 0 : i32
    %c0_i32_0 = arith.constant 0 : i32
    return %arg0, %c0_i32 : i32, i32
  }
  func.func @transform_1(%arg0: i32) -> (i32, i32) {
    %c0_i32 = arith.constant 0 : i32
    %c0_i32_0 = arith.constant 0 : i32
    %c0_i32_1 = arith.constant 0 : i32
    return %c0_i32, %c0_i32_0 : i32, i32
  }
  func.func @transform_2(%arg0: i32) -> (i32, i32) {
    %c0_i32 = arith.constant 0 : i32
    %c0_i32_0 = arith.constant 0 : i32
    %c0_i32_1 = arith.constant 0 : i32
    return %c0_i32, %c0_i32_0 : i32, i32
  }
  func.func @transform_3(%arg0: i32) -> (i32, i32) {
    %c0_i32 = arith.constant 0 : i32
    %c0_i32_0 = arith.constant 0 : i32
    return %arg0, %c0_i32 : i32, i32
  }
}

module attributes {stable_mosaic.version = 11 : i64} {
  func.func @conv_gemm_stats_kernel(%arg0: i32, %arg1: memref<128x576xbf16, #tpu.memory_space<vmem>>, %arg2: memref<576x32xbf16, #tpu.memory_space<vmem>>, %arg3: memref<128x32xbf16, #tpu.memory_space<vmem>>, %arg4: memref<1x1x32xf32, #tpu.memory_space<vmem>>, %arg5: memref<1x1x32xf32, #tpu.memory_space<vmem>>) attributes {dimension_semantics = [#tpu.dimension_semantics<parallel>], iteration_bounds = array<i64: 1>, scalar_prefetch = 0 : i64, scratch_operands = 0 : i64, tpu.core_type = #tpu.core_type<tc>, window_params = [{transform_indices = @transform_0, window_bounds = array<i64: 128, 576>}, {pipeline_mode = #tpu.pipeline_mode<synchronous>, transform_indices = @transform_1, window_bounds = array<i64: 576, 32>}, {transform_indices = @transform_2, window_bounds = array<i64: 128, 32>}, {transform_indices = @transform_3, window_bounds = array<i64: 1, 1, 32>}, {transform_indices = @transform_4, window_bounds = array<i64: 1, 1, 32>}]} {
    %c0 = arith.constant 0 : index
    %c0_0 = arith.constant 0 : index
    %0 = vector.load %arg1[%c0, %c0_0] : memref<128x576xbf16, #tpu.memory_space<vmem>>, vector<128x576xbf16>
    %c0_1 = arith.constant 0 : index
    %c0_2 = arith.constant 0 : index
    %1 = vector.load %arg2[%c0_1, %c0_2] : memref<576x32xbf16, #tpu.memory_space<vmem>>, vector<576x32xbf16>
    %cst = arith.constant dense<0.000000e+00> : vector<128x32xf32>
    %2 = tpu.matmul %0, %1, %cst {dimension_numbers = #tpu.dot_dimension_numbers<[1], [0], [0], [1], [0, 0, 1, 1], [], []>} : vector<128x576xbf16>, vector<576x32xbf16>, vector<128x32xf32> -> vector<128x32xf32>
    %3 = arith.truncf %2 : vector<128x32xf32> to vector<128x32xbf16>
    %c0_3 = arith.constant 0 : index
    %c0_4 = arith.constant 0 : index
    %4 = vector.load %arg3[%c0_3, %c0_4] : memref<128x32xbf16, #tpu.memory_space<vmem>>, vector<128x32xbf16>
    tpu.vector_store %arg3[%c0_3, %c0_4], %3 {strides = array<i32>} : memref<128x32xbf16, #tpu.memory_space<vmem>>, vector<128x32xbf16>,
    %cst_5 = arith.constant dense<0.000000e+00> : vector<32xf32>
    %5 = vector.multi_reduction <add>, %2, %cst_5 [0] : vector<128x32xf32> to vector<32xf32>
    %6 = vector.shape_cast %5 : vector<32xf32> to vector<1x32xf32>
    %7 = vector.shape_cast %6 : vector<1x32xf32> to vector<1x1x32xf32>
    %c0_6 = arith.constant 0 : index
    %c0_7 = arith.constant 0 : index
    %c0_8 = arith.constant 0 : index
    %8 = vector.load %arg4[%c0_6, %c0_7, %c0_8] : memref<1x1x32xf32, #tpu.memory_space<vmem>>, vector<1x1x32xf32>
    tpu.vector_store %arg4[%c0_6, %c0_7, %c0_8], %7 {strides = array<i32>} : memref<1x1x32xf32, #tpu.memory_space<vmem>>, vector<1x1x32xf32>,
    %9 = arith.mulf %2, %2 : vector<128x32xf32>
    %cst_9 = arith.constant dense<0.000000e+00> : vector<32xf32>
    %10 = vector.multi_reduction <add>, %9, %cst_9 [0] : vector<128x32xf32> to vector<32xf32>
    %11 = vector.shape_cast %10 : vector<32xf32> to vector<1x32xf32>
    %12 = vector.shape_cast %11 : vector<1x32xf32> to vector<1x1x32xf32>
    %c0_10 = arith.constant 0 : index
    %c0_11 = arith.constant 0 : index
    %c0_12 = arith.constant 0 : index
    %13 = vector.load %arg5[%c0_10, %c0_11, %c0_12] : memref<1x1x32xf32, #tpu.memory_space<vmem>>, vector<1x1x32xf32>
    tpu.vector_store %arg5[%c0_10, %c0_11, %c0_12], %12 {strides = array<i32>} : memref<1x1x32xf32, #tpu.memory_space<vmem>>, vector<1x1x32xf32>,
    return
  }
  func.func @transform_0(%arg0: i32) -> (i32, i32) {
    %c0_i32 = arith.constant 0 : i32
    %c0_i32_0 = arith.constant 0 : i32
    return %arg0, %c0_i32 : i32, i32
  }
  func.func @transform_1(%arg0: i32) -> (i32, i32) {
    %c0_i32 = arith.constant 0 : i32
    %c0_i32_0 = arith.constant 0 : i32
    %c0_i32_1 = arith.constant 0 : i32
    return %c0_i32, %c0_i32_0 : i32, i32
  }
  func.func @transform_2(%arg0: i32) -> (i32, i32) {
    %c0_i32 = arith.constant 0 : i32
    %c0_i32_0 = arith.constant 0 : i32
    return %arg0, %c0_i32 : i32, i32
  }
  func.func @transform_3(%arg0: i32) -> (i32, i32, i32) {
    %c0_i32 = arith.constant 0 : i32
    %c0_i32_0 = arith.constant 0 : i32
    %c0_i32_1 = arith.constant 0 : i32
    return %arg0, %c0_i32, %c0_i32_0 : i32, i32, i32
  }
  func.func @transform_4(%arg0: i32) -> (i32, i32, i32) {
    %c0_i32 = arith.constant 0 : i32
    %c0_i32_0 = arith.constant 0 : i32
    %c0_i32_1 = arith.constant 0 : i32
    return %arg0, %c0_i32, %c0_i32_0 : i32, i32, i32
  }
}

module attributes {stable_mosaic.version = 11 : i64} {
  func.func @conv_gemm_stats_kernel(%arg0: i32, %arg1: memref<256x288xbf16, #tpu.memory_space<vmem>>, %arg2: memref<288x16xbf16, #tpu.memory_space<vmem>>, %arg3: memref<256x16xbf16, #tpu.memory_space<vmem>>, %arg4: memref<1x1x16xf32, #tpu.memory_space<vmem>>, %arg5: memref<1x1x16xf32, #tpu.memory_space<vmem>>) attributes {dimension_semantics = [#tpu.dimension_semantics<parallel>], iteration_bounds = array<i64: 2>, scalar_prefetch = 0 : i64, scratch_operands = 0 : i64, tpu.core_type = #tpu.core_type<tc>, window_params = [{transform_indices = @transform_0, window_bounds = array<i64: 256, 288>}, {pipeline_mode = #tpu.pipeline_mode<synchronous>, transform_indices = @transform_1, window_bounds = array<i64: 288, 16>}, {transform_indices = @transform_2, window_bounds = array<i64: 256, 16>}, {transform_indices = @transform_3, window_bounds = array<i64: 1, 1, 16>}, {transform_indices = @transform_4, window_bounds = array<i64: 1, 1, 16>}]} {
    %c0 = arith.constant 0 : index
    %c0_0 = arith.constant 0 : index
    %0 = vector.load %arg1[%c0, %c0_0] : memref<256x288xbf16, #tpu.memory_space<vmem>>, vector<256x288xbf16>
    %c0_1 = arith.constant 0 : index
    %c0_2 = arith.constant 0 : index
    %1 = vector.load %arg2[%c0_1, %c0_2] : memref<288x16xbf16, #tpu.memory_space<vmem>>, vector<288x16xbf16>
    %cst = arith.constant dense<0.000000e+00> : vector<256x16xf32>
    %2 = tpu.matmul %0, %1, %cst {dimension_numbers = #tpu.dot_dimension_numbers<[1], [0], [0], [1], [0, 0, 1, 1], [], []>} : vector<256x288xbf16>, vector<288x16xbf16>, vector<256x16xf32> -> vector<256x16xf32>
    %3 = arith.truncf %2 : vector<256x16xf32> to vector<256x16xbf16>
    %c0_3 = arith.constant 0 : index
    %c0_4 = arith.constant 0 : index
    %4 = vector.load %arg3[%c0_3, %c0_4] : memref<256x16xbf16, #tpu.memory_space<vmem>>, vector<256x16xbf16>
    tpu.vector_store %arg3[%c0_3, %c0_4], %3 {strides = array<i32>} : memref<256x16xbf16, #tpu.memory_space<vmem>>, vector<256x16xbf16>,
    %cst_5 = arith.constant dense<0.000000e+00> : vector<16xf32>
    %5 = vector.multi_reduction <add>, %2, %cst_5 [0] : vector<256x16xf32> to vector<16xf32>
    %6 = vector.shape_cast %5 : vector<16xf32> to vector<1x16xf32>
    %7 = vector.shape_cast %6 : vector<1x16xf32> to vector<1x1x16xf32>
    %c0_6 = arith.constant 0 : index
    %c0_7 = arith.constant 0 : index
    %c0_8 = arith.constant 0 : index
    %8 = vector.load %arg4[%c0_6, %c0_7, %c0_8] : memref<1x1x16xf32, #tpu.memory_space<vmem>>, vector<1x1x16xf32>
    tpu.vector_store %arg4[%c0_6, %c0_7, %c0_8], %7 {strides = array<i32>} : memref<1x1x16xf32, #tpu.memory_space<vmem>>, vector<1x1x16xf32>,
    %9 = arith.mulf %2, %2 : vector<256x16xf32>
    %cst_9 = arith.constant dense<0.000000e+00> : vector<16xf32>
    %10 = vector.multi_reduction <add>, %9, %cst_9 [0] : vector<256x16xf32> to vector<16xf32>
    %11 = vector.shape_cast %10 : vector<16xf32> to vector<1x16xf32>
    %12 = vector.shape_cast %11 : vector<1x16xf32> to vector<1x1x16xf32>
    %c0_10 = arith.constant 0 : index
    %c0_11 = arith.constant 0 : index
    %c0_12 = arith.constant 0 : index
    %13 = vector.load %arg5[%c0_10, %c0_11, %c0_12] : memref<1x1x16xf32, #tpu.memory_space<vmem>>, vector<1x1x16xf32>
    tpu.vector_store %arg5[%c0_10, %c0_11, %c0_12], %12 {strides = array<i32>} : memref<1x1x16xf32, #tpu.memory_space<vmem>>, vector<1x1x16xf32>,
    return
  }
  func.func @transform_0(%arg0: i32) -> (i32, i32) {
    %c0_i32 = arith.constant 0 : i32
    %c0_i32_0 = arith.constant 0 : i32
    return %arg0, %c0_i32 : i32, i32
  }
  func.func @transform_1(%arg0: i32) -> (i32, i32) {
    %c0_i32 = arith.constant 0 : i32
    %c0_i32_0 = arith.constant 0 : i32
    %c0_i32_1 = arith.constant 0 : i32
    return %c0_i32, %c0_i32_0 : i32, i32
  }
  func.func @transform_2(%arg0: i32) -> (i32, i32) {
    %c0_i32 = arith.constant 0 : i32
    %c0_i32_0 = arith.constant 0 : i32
    return %arg0, %c0_i32 : i32, i32
  }
  func.func @transform_3(%arg0: i32) -> (i32, i32, i32) {
    %c0_i32 = arith.constant 0 : i32
    %c0_i32_0 = arith.constant 0 : i32
    %c0_i32_1 = arith.constant 0 : i32
    return %arg0, %c0_i32, %c0_i32_0 : i32, i32, i32
  }
  func.func @transform_4(%arg0: i32) -> (i32, i32, i32) {
    %c0_i32 = arith.constant 0 : i32
    %c0_i32_0 = arith.constant 0 : i32
    %c0_i32_1 = arith.constant 0 : i32
    return %arg0, %c0_i32, %c0_i32_0 : i32, i32, i32
  }
}

module attributes {stable_mosaic.version = 11 : i64} {
  func.func @head_kernel(%arg0: i32, %arg1: memref<16x512xbf16, #tpu.memory_space<vmem>>, %arg2: memref<16x1xf32, #tpu.memory_space<vmem>>, %arg3: memref<1x1xf32, #tpu.memory_space<vmem>>, %arg4: memref<1x512xf32, #tpu.memory_space<vmem>>, %arg5: memref<1x512xf32, #tpu.memory_space<vmem>>) attributes {dimension_semantics = [#tpu.dimension_semantics<parallel>], iteration_bounds = array<i64: 1>, scalar_prefetch = 0 : i64, scratch_operands = 0 : i64, tpu.core_type = #tpu.core_type<tc>, window_params = [{transform_indices = @transform_0, window_bounds = array<i64: 16, 512>}, {pipeline_mode = #tpu.pipeline_mode<synchronous>, transform_indices = @transform_1, window_bounds = array<i64: 16, 1>}, {pipeline_mode = #tpu.pipeline_mode<synchronous>, transform_indices = @transform_2, window_bounds = array<i64: 1, 1>}, {transform_indices = @transform_3, window_bounds = array<i64: 1, 512>}, {transform_indices = @transform_4, window_bounds = array<i64: 1, 512>}]} {
    %c0 = arith.constant 0 : index
    %c0_0 = arith.constant 0 : index
    %0 = vector.load %arg1[%c0, %c0_0] : memref<16x512xbf16, #tpu.memory_space<vmem>>, vector<16x512xbf16>
    %1 = arith.extf %0 : vector<16x512xbf16> to vector<16x512xf32>
    %c0_1 = arith.constant 0 : index
    %c0_2 = arith.constant 0 : index
    %2 = vector.load %arg2[%c0_1, %c0_2] : memref<16x1xf32, #tpu.memory_space<vmem>>, vector<16x1xf32>
    %3 = vector.broadcast %2 : vector<16x1xf32> to vector<16x512xf32>
    %4 = arith.mulf %1, %3 : vector<16x512xf32>
    %cst = arith.constant dense<0.000000e+00> : vector<512xf32>
    %5 = vector.multi_reduction <add>, %4, %cst [0] : vector<16x512xf32> to vector<512xf32>
    %6 = vector.shape_cast %5 : vector<512xf32> to vector<1x512xf32>
    %c0_3 = arith.constant 0 : index
    %c0_4 = arith.constant 0 : index
    %7 = vector.load %arg4[%c0_3, %c0_4] : memref<1x512xf32, #tpu.memory_space<vmem>>, vector<1x512xf32>
    %8 = arith.addf %7, %6 : vector<1x512xf32>
    %c0_5 = arith.constant 0 : index
    %c0_6 = arith.constant 0 : index
    %9 = vector.load %arg3[%c0_5, %c0_6] : memref<1x1xf32, #tpu.memory_space<vmem>>, vector<1x1xf32>
    %10 = vector.broadcast %9 : vector<1x1xf32> to vector<1x512xf32>
    %11 = arith.addf %8, %10 : vector<1x512xf32>
    %c0_7 = arith.constant 0 : index
    %c0_8 = arith.constant 0 : index
    %12 = vector.load %arg5[%c0_7, %c0_8] : memref<1x512xf32, #tpu.memory_space<vmem>>, vector<1x512xf32>
    tpu.vector_store %arg5[%c0_7, %c0_8], %11 {strides = array<i32>} : memref<1x512xf32, #tpu.memory_space<vmem>>, vector<1x512xf32>,
    return
  }
  func.func @transform_0(%arg0: i32) -> (i32, i32) {
    %c0_i32 = arith.constant 0 : i32
    %c0_i32_0 = arith.constant 0 : i32
    return %c0_i32, %arg0 : i32, i32
  }
  func.func @transform_1(%arg0: i32) -> (i32, i32) {
    %c0_i32 = arith.constant 0 : i32
    %c0_i32_0 = arith.constant 0 : i32
    %c0_i32_1 = arith.constant 0 : i32
    return %c0_i32, %c0_i32_0 : i32, i32
  }
  func.func @transform_2(%arg0: i32) -> (i32, i32) {
    %c0_i32 = arith.constant 0 : i32
    %c0_i32_0 = arith.constant 0 : i32
    %c0_i32_1 = arith.constant 0 : i32
    return %c0_i32, %c0_i32_0 : i32, i32
  }
  func.func @transform_3(%arg0: i32) -> (i32, i32) {
    %c0_i32 = arith.constant 0 : i32
    %c0_i32_0 = arith.constant 0 : i32
    return %c0_i32, %arg0 : i32, i32
  }
  func.func @transform_4(%arg0: i32) -> (i32, i32) {
    %c0_i32 = arith.constant 0 : i32
    %c0_i32_0 = arith.constant 0 : i32
    return %c0_i32, %arg0 : i32, i32
  }
}

</mosaic_0001>

<bundles_post_ra>
// kernel: squeeze.41
= control target key start
LH: loop header
LB: loop body
LE: loop exit
PB: predicated region body
PF: predicated region fallthrough
CT: control target
= control target key end

     0   :  { %s88_s8 = smov 112   ;;  %s89_s11 = smov 80   ;;  %vm3_vm0 = vcmask 130048   ;;  %vm9_vm1 = vcmask 1048448   ;;  %vm15_vm2 = vcmask 917248   ;;  %vm21_vm3 = vcmask 786048   ;;  %s141_s0 = inlined_call_operand.vmem [shape: f32[2,16,16], index: 0, kind: input, shape index: {}]   ;;  %s142_s1 = inlined_call_operand.vmem [shape: f32[1,512], index: 1, kind: output, shape index: {}]  }
   0x1   :  { %v71_v0 = vld [vmem:[%s141_s0 + $0x7] ss:$8 sm:$0xf]   ;;  %v73_v1 = vld [vmem:[%s141_s0 + $0x5] ss:$8 sm:$0xf]  }
   0x2   :  { %7 = vrot.lane.b32.xlu0 %v71_v0, %s88_s8  ;;  %19 = vrot.lane.b32.xlu1 %v73_v1, %s89_s11  ;;  %v75_v2 = vld [vmem:[%s141_s0 + $0x3] ss:$8 sm:$0xf]   ;;  %s90_s14 = smov 48   ;;  %s91_s19 = smov 96   ;;  %vm27_vm4 = vcmask 654848  }
   0x3   :  { %31 = vrot.lane.b32.xlu2 %v75_v2, %s90_s14  ;;  %v72_v3 = vld [vmem:[%s141_s0 + $0x6] ss:$8 sm:$0xf]   ;;  %v74_v4 = vld [vmem:[%s141_s0 + $0x4] ss:$8 sm:$0xf]  }
   0x4   :  { %s92_s20 = smov 64   ;;  %v76_v5 = vld [vmem:[%s141_s0 + $0x2] ss:$8 sm:$0xf]   ;;  %s93_s23 = smov 32   ;;  %vm33_vm5 = vcmask 523648  }
   0x5   :  { %v77_v6 = vld [vmem:[%s141_s0 + $0x1] ss:$8 sm:$0xf]   ;;  %s94_s26 = smov 16   ;;  %vm39_vm6 = vcmask 392448   ;;  %vm45_vm7 = vcmask 261248  }
   0x6   :  { %v2_v7 = vld [vmem:[%s141_s0] ss:$8 sm:$0xf]  }
   0x7   :  { %4 = vst.msk [vmem:[#allocation0] ss:$8 sm:$0xf] %vm3_vm0, %v2_v7  }
   0xa   :  { %13 = vrot.lane.b32.xlu0 %v72_v3, %s91_s19  ;;  %25 = vrot.lane.b32.xlu1 %v74_v4, %s92_s20 }
   0xb   :  { %37 = vrot.lane.b32.xlu2 %v76_v5, %s93_s23 }
  0x12   :  { %43 = vrot.lane.b32.xlu0 %v77_v6, %s94_s26 }
  0x5d   :  { %v32_v8 = vpop.permute.xlu2 %31  }
  0x65   :  { %v38_v9 = vpop.permute.xlu2 %37  }
  0x74   :  { %v8_v10 = vpop.permute.xlu0 %7   ;;  %v20_v11 = vpop.permute.xlu1 %19  }
  0x75   :  { %10 = vst.msk [vmem:[#allocation0] ss:$8 sm:$0xf] %vm9_vm1, %v8_v10  }
  0x7c   :  { %v14_v12 = vpop.permute.xlu0 %13   ;;  %v26_v13 = vpop.permute.xlu1 %25  }
  0x7d   :  { %16 = vst.msk [vmem:[#allocation0] ss:$8 sm:$0xf] %vm15_vm2, %v14_v12  }
  0x7e   :  { %22 = vst.msk [vmem:[#allocation0] ss:$8 sm:$0xf] %vm21_vm3, %v20_v11  }
  0x7f   :  { %28 = vst.msk [vmem:[#allocation0] ss:$8 sm:$0xf] %vm27_vm4, %v26_v13  }
  0x80   :  { %34 = vst.msk [vmem:[#allocation0] ss:$8 sm:$0xf] %vm33_vm5, %v32_v8  }
  0x81   :  { %40 = vst.msk [vmem:[#allocation0] ss:$8 sm:$0xf] %vm39_vm6, %v38_v9  }
  0x84   :  { %v44_v14 = vpop.permute.xlu0 %43  }
  0x85   :  { %46 = vst.msk [vmem:[#allocation0] ss:$8 sm:$0xf] %vm45_vm7, %v44_v14  }
  0x8c   :  { %v49_v15 = vld [vmem:[#allocation0] sm:$0x1]  ;;  %v54_v16 = vld [vmem:[#allocation0 + $0x8] sm:$0x1]  ;;  %v60_v17 = vld [vmem:[#allocation0 + $0x10] sm:$0x1] }
  0x8d   :  { %52 = vst [vmem:[%s142_s1] sm:$0x1] %v49_v15  ;;  %v66_v18 = vld [vmem:[#allocation0 + $0x18] sm:$0x1] }
  0x8e   :  { %78 = vst [vmem:[%s142_s1 + $0x1] sm:$0x1] %v54_v16 }
  0x8f   :  { %79 = vst [vmem:[%s142_s1 + $0x2] sm:$0x1] %v60_v17 }
  0x90   :  { %80 = vst [vmem:[%s142_s1 + $0x3] sm:$0x1] %v66_v18 }

// kernel: unet_reg_forward.24
= control target key start
LH: loop header
LB: loop body
LE: loop exit
PB: predicated region body
PF: predicated region fallthrough
CT: control target
= control target key end

     0   :  { %s591_s12 = smov 0   ;;  %s773_s0 = inlined_call_operand.vmem [shape: bf16[512,16], index: 0, kind: input, shape index: {}]   ;;  %s774_s1 = inlined_call_operand.vmem [shape: f32[1,16], index: 1, kind: input, shape index: {}]   ;;  %s775_s2 = inlined_call_operand.vmem [shape: f32[1,16], index: 2, kind: input, shape index: {}]   ;;  %s776_s3 = inlined_call_operand.vmem [shape: bf16[512,16], index: 3, kind: output, shape index: {}]  }
   0x1 LB: > { %s463_s13 = sadd.s32 4294967295, %s569_s12   ;;  %p467_p0 = scmp.ge.s32.totalorder %s569_s12, 1  ;;  %s569_s12 = sphi %s591_s12, %s13_s12  }
   0x2   : > { %p138_p1 = scmp.lt.s32.totalorder %s569_s12, 3 }
   0x4   : > { %p139_p2 = pnand %p467_p0, %p138_p1 }
   0x5   : > { %s468_s14 = sshll.u32 (!%p139_p2), %s463_s13, 5 }
   0x6   : > { %142 = sbr.rel (%p139_p2) target bundleno = 63 (0x3f), region = 32  ;;  %p163_p3 = scmp.lt.s32.totalorder (!%p139_p2), %s468_s14, 63 }
   0xb   : > { %s778_s14 = smov (!%p163_p3, %s468_s14), 63  ;;  %v612_v0 = vld [vmem:[%s774_s1] ss:$0 sm:$0xff]  ;;  %vm374_vm0 = vcmask 125952  }
   0xc   : > { %s469_s15 = sshll.u32 %s778_s14, 2  ;;  %v620_v5 = vld [vmem:[%s775_s2] ss:$0 sm:$0xff] }
   0xd   : > { %s607_s18 = scalar_lea.vmem %s773_s0, %s469_s15  ;;  %s644_s25 = scalar_lea.vmem %s776_s3, %s469_s15 }
   0xe   : > { %v475_v1 = vld [vmem:[%s607_s18] sm:$0xff]   ;;  %v538_v2 = vld [vmem:[%s607_s18 + $0x8] sm:$0xff]   ;;  %v539_v3 = vld [vmem:[%s607_s18 + $0x10] sm:$0xff]  }
   0xf   : > { %v476_v4 = vunpack.c.l.bf16 %v475_v1  ;;  %v477_v6 = vunpack.c.h.bf16 %v475_v1  ;;  %v480_v7 = vunpack.c.l.bf16 %v538_v2  ;;  %v481_v8 = vunpack.c.h.bf16 %v538_v2  ;;  %v540_v9 = vld [vmem:[%s607_s18 + $0x18] sm:$0xff]   ;;  %v541_v38 = vld [vmem:[%s607_s18 + $0x20] sm:$0xff]   ;;  %v542_v39 = vld [vmem:[%s607_s18 + $0x28] sm:$0xff]  }
  0x10   : > { %v484_v10 = vunpack.c.l.bf16 %v539_v3  ;;  %v485_v11 = vunpack.c.h.bf16 %v539_v3  ;;  %v488_v12 = vunpack.c.l.bf16 %v540_v9  ;;  %v489_v13 = vunpack.c.h.bf16 %v540_v9  ;;  %v543_v44 = vld [vmem:[%s607_s18 + $0x30] sm:$0xff]   ;;  %v544_v45 = vld [vmem:[%s607_s18 + $0x38] sm:$0xff]  }
  0x11   : > { %v242_v14 = vmul.f32 %v612_v0, %v476_v4  ;;  %v243_v15 = vmul.f32 %v612_v0, %v477_v6  ;;  %v244_v16 = vmul.f32 %v612_v0, %v480_v7  ;;  %v245_v17 = vmul.f32 %v612_v0, %v481_v8 }
  0x12   : > { %v246_v18 = vmul.f32 %v612_v0, %v484_v10  ;;  %v247_v19 = vmul.f32 %v612_v0, %v485_v11  ;;  %v248_v20 = vmul.f32 %v612_v0, %v488_v12  ;;  %v249_v21 = vmul.f32 %v612_v0, %v489_v13  ;;  %v545_v12 = vld [vmem:[%s607_s18 + $0x40] sm:$0xff]   ;;  %v546_v13 = vld [vmem:[%s607_s18 + $0x48] sm:$0xff]  }
  0x13   : > { %v278_v22 = vadd.f32 %v620_v5, %v242_v14  ;;  %v279_v23 = vadd.f32 %v620_v5, %v243_v15  ;;  %v280_v24 = vadd.f32 %v620_v5, %v244_v16  ;;  %v281_v25 = vadd.f32 %v620_v5, %v245_v17 }
  0x14   : > { %v282_v26 = vadd.f32 %v620_v5, %v246_v18  ;;  %v283_v27 = vadd.f32 %v620_v5, %v247_v19  ;;  %v284_v28 = vadd.f32 %v620_v5, %v248_v20  ;;  %v285_v29 = vadd.f32 %v620_v5, %v249_v21 }
  0x15   : > { %v310_v30 = vmax.f32 %v278_v22, 0.0  ;;  %v311_v31 = vmax.f32 %v279_v23, 0.0  ;;  %v312_v32 = vmax.f32 %v280_v24, 0.0  ;;  %v313_v33 = vmax.f32 %v281_v25, 0.0 }
  0x16   : > { %v314_v34 = vmax.f32 %v282_v26, 0.0  ;;  %v315_v35 = vmax.f32 %v283_v27, 0.0  ;;  %v316_v36 = vmax.f32 %v284_v28, 0.0  ;;  %v317_v37 = vmax.f32 %v285_v29, 0.0  ;;  %v547_v26 = vld [vmem:[%s607_s18 + $0x50] sm:$0xff]   ;;  %v548_v27 = vld [vmem:[%s607_s18 + $0x58] sm:$0xff]  }
  0x17   : > { %v342_v40 = vpack.c.bf16 %v310_v30, %v310_v30  ;;  %v343_v41 = vpack.c.bf16 %v311_v31, %v311_v31  ;;  %v344_v42 = vpack.c.bf16 %v312_v32, %v312_v32  ;;  %v345_v43 = vpack.c.bf16 %v313_v33, %v313_v33 }
  0x18   : > { %v346_v46 = vpack.c.bf16 %v314_v34, %v314_v34  ;;  %v347_v47 = vpack.c.bf16 %v315_v35, %v315_v35  ;;  %v348_v48 = vpack.c.bf16 %v316_v36, %v316_v36  ;;  %v349_v49 = vpack.c.bf16 %v317_v37, %v317_v37 }
  0x19   : > { %375 = vst.msk [vmem:[%s644_s25] sm:$0xf] %vm374_vm0, %v342_v40  ;;  %v492_v50 = vunpack.c.l.bf16 %v541_v38  ;;  %v493_v51 = vunpack.c.h.bf16 %v541_v38  ;;  %v496_v52 = vunpack.c.l.bf16 %v542_v39  ;;  %v497_v53 = vunpack.c.h.bf16 %v542_v39 }
  0x1a   : > { %376 = vst.msk [vmem:[%s644_s25 + $0x4] sm:$0xf] %vm374_vm0, %v343_v41  ;;  %v500_v54 = vunpack.c.l.bf16 %v543_v44  ;;  %v501_v55 = vunpack.c.h.bf16 %v543_v44  ;;  %v504_v56 = vunpack.c.l.bf16 %v544_v45  ;;  %v505_v57 = vunpack.c.h.bf16 %v544_v45 }
  0x1b   : > { %377 = vst.msk [vmem:[%s644_s25 + $0x8] sm:$0xf] %vm374_vm0, %v344_v42  ;;  %v250_v58 = vmul.f32 %v612_v0, %v492_v50  ;;  %v251_v59 = vmul.f32 %v612_v0, %v493_v51  ;;  %v252_v60 = vmul.f32 %v612_v0, %v496_v52  ;;  %v253_v61 = vmul.f32 %v612_v0, %v497_v53 }
  0x1c   : > { %378 = vst.msk [vmem:[%s644_s25 + $0xc] sm:$0xf] %vm374_vm0, %v345_v43  ;;  %v254_v62 = vmul.f32 %v612_v0, %v500_v54  ;;  %v255_v63 = vmul.f32 %v612_v0, %v501_v55  ;;  %v256_v1 = vmul.f32 %v612_v0, %v504_v56  ;;  %v257_v2 = vmul.f32 %v612_v0, %v505_v57  ;;  %v549_v56 = vld [vmem:[%s607_s18 + $0x60] sm:$0xff]   ;;  %v550_v57 = vld [vmem:[%s607_s18 + $0x68] sm:$0xff]  }
  0x1d   : > { %379 = vst.msk [vmem:[%s644_s25 + $0x10] sm:$0xf] %vm374_vm0, %v346_v46  ;;  %v286_v3 = vadd.f32 %v620_v5, %v250_v58  ;;  %v287_v4 = vadd.f32 %v620_v5, %v251_v59  ;;  %v288_v6 = vadd.f32 %v620_v5, %v252_v60  ;;  %v289_v7 = vadd.f32 %v620_v5, %v253_v61 }
  0x1e   : > { %380 = vst.msk [vmem:[%s644_s25 + $0x14] sm:$0xf] %vm374_vm0, %v347_v47  ;;  %v290_v8 = vadd.f32 %v620_v5, %v254_v62  ;;  %v291_v9 = vadd.f32 %v620_v5, %v255_v63  ;;  %v292_v10 = vadd.f32 %v620_v5, %v256_v1  ;;  %v293_v11 = vadd.f32 %v620_v5, %v257_v2 }
  0x1f   : > { %381 = vst.msk [vmem:[%s644_s25 + $0x18] sm:$0xf] %vm374_vm0, %v348_v48  ;;  %v318_v14 = vmax.f32 %v286_v3, 0.0  ;;  %v319_v15 = vmax.f32 %v287_v4, 0.0  ;;  %v320_v16 = vmax.f32 %v288_v6, 0.0  ;;  %v321_v17 = vmax.f32 %v289_v7, 0.0 }
  0x20   : > { %382 = vst.msk [vmem:[%s644_s25 + $0x1c] sm:$0xf] %vm374_vm0, %v349_v49  ;;  %v322_v18 = vmax.f32 %v290_v8, 0.0  ;;  %v323_v19 = vmax.f32 %v291_v9, 0.0  ;;  %v324_v20 = vmax.f32 %v292_v10, 0.0  ;;  %v325_v21 = vmax.f32 %v293_v11, 0.0 }
  0x21   : > { %v350_v22 = vpack.c.bf16 %v318_v14, %v318_v14  ;;  %v351_v23 = vpack.c.bf16 %v319_v15, %v319_v15  ;;  %v352_v24 = vpack.c.bf16 %v320_v16, %v320_v16  ;;  %v353_v25 = vpack.c.bf16 %v321_v17, %v321_v17  ;;  %v551_v8 = vld [vmem:[%s607_s18 + $0x70] sm:$0xff]   ;;  %v552_v9 = vld [vmem:[%s607_s18 + $0x78] sm:$0xff]  }
  0x22   : > { %v354_v28 = vpack.c.bf16 %v322_v18, %v322_v18  ;;  %v355_v29 = vpack.c.bf16 %v323_v19, %v323_v19  ;;  %v356_v30 = vpack.c.bf16 %v324_v20, %v324_v20  ;;  %v357_v31 = vpack.c.bf16 %v325_v21, %v325_v21 }
  0x23   : > { %383 = vst.msk [vmem:[%s644_s25 + $0x20] sm:$0xf] %vm374_vm0, %v350_v22  ;;  %v508_v32 = vunpack.c.l.bf16 %v545_v12  ;;  %v509_v33 = vunpack.c.h.bf16 %v545_v12  ;;  %v512_v34 = vunpack.c.l.bf16 %v546_v13  ;;  %v513_v35 = vunpack.c.h.bf16 %v546_v13 }
  0x24   : > { %384 = vst.msk [vmem:[%s644_s25 + $0x24] sm:$0xf] %vm374_vm0, %v351_v23  ;;  %v516_v36 = vunpack.c.l.bf16 %v547_v26  ;;  %v517_v37 = vunpack.c.h.bf16 %v547_v26  ;;  %v520_v38 = vunpack.c.l.bf16 %v548_v27  ;;  %v521_v39 = vunpack.c.h.bf16 %v548_v27 }
  0x25   : > { %385 = vst.msk [vmem:[%s644_s25 + $0x28] sm:$0xf] %vm374_vm0, %v352_v24  ;;  %v258_v40 = vmul.f32 %v612_v0, %v508_v32  ;;  %v259_v41 = vmul.f32 %v612_v0, %v509_v33  ;;  %v260_v42 = vmul.f32 %v612_v0, %v512_v34  ;;  %v261_v43 = vmul.f32 %v612_v0, %v513_v35 }
  0x26   : > { %386 = vst.msk [vmem:[%s644_s25 + $0x2c] sm:$0xf] %vm374_vm0, %v353_v25  ;;  %v262_v44 = vmul.f32 %v612_v0, %v516_v36  ;;  %v263_v45 = vmul.f32 %v612_v0, %v517_v37  ;;  %v264_v46 = vmul.f32 %v612_v0, %v520_v38  ;;  %v265_v47 = vmul.f32 %v612_v0, %v521_v39 }
  0x27   : > { %387 = vst.msk [vmem:[%s644_s25 + $0x30] sm:$0xf] %vm374_vm0, %v354_v28  ;;  %v294_v48 = vadd.f32 %v620_v5, %v258_v40  ;;  %v295_v49 = vadd.f32 %v620_v5, %v259_v41  ;;  %v296_v50 = vadd.f32 %v620_v5, %v260_v42  ;;  %v297_v51 = vadd.f32 %v620_v5, %v261_v43 }
  0x28   : > { %388 = vst.msk [vmem:[%s644_s25 + $0x34] sm:$0xf] %vm374_vm0, %v355_v29  ;;  %v298_v52 = vadd.f32 %v620_v5, %v262_v44  ;;  %v299_v53 = vadd.f32 %v620_v5, %v263_v45  ;;  %v300_v54 = vadd.f32 %v620_v5, %v264_v46  ;;  %v301_v55 = vadd.f32 %v620_v5, %v265_v47 }
  0x29   : > { %389 = vst.msk [vmem:[%s644_s25 + $0x38] sm:$0xf] %vm374_vm0, %v356_v30  ;;  %v326_v58 = vmax.f32 %v294_v48, 0.0  ;;  %v327_v59 = vmax.f32 %v295_v49, 0.0  ;;  %v328_v60 = vmax.f32 %v296_v50, 0.0  ;;  %v329_v61 = vmax.f32 %v297_v51, 0.0 }
  0x2a   : > { %390 = vst.msk [vmem:[%s644_s25 + $0x3c] sm:$0xf] %vm374_vm0, %v357_v31  ;;  %v330_v62 = vmax.f32 %v298_v52, 0.0  ;;  %v331_v63 = vmax.f32 %v299_v53, 0.0  ;;  %v332_v1 = vmax.f32 %v300_v54, 0.0  ;;  %v333_v2 = vmax.f32 %v301_v55, 0.0 }
  0x2b   : > { %v358_v3 = vpack.c.bf16 %v326_v58, %v326_v58  ;;  %v359_v4 = vpack.c.bf16 %v327_v59, %v327_v59  ;;  %v360_v6 = vpack.c.bf16 %v328_v60, %v328_v60  ;;  %v361_v7 = vpack.c.bf16 %v329_v61, %v329_v61 }
  0x2c   : > { %v362_v10 = vpack.c.bf16 %v330_v62, %v330_v62  ;;  %v363_v11 = vpack.c.bf16 %v331_v63, %v331_v63  ;;  %v364_v12 = vpack.c.bf16 %v332_v1, %v332_v1  ;;  %v365_v13 = vpack.c.bf16 %v333_v2, %v333_v2 }
  0x2d   : > { %391 = vst.msk [vmem:[%s644_s25 + $0x40] sm:$0xf] %vm374_vm0, %v358_v3  ;;  %v524_v14 = vunpack.c.l.bf16 %v549_v56  ;;  %v525_v15 = vunpack.c.h.bf16 %v549_v56  ;;  %v528_v16 = vunpack.c.l.bf16 %v550_v57  ;;  %v529_v17 = vunpack.c.h.bf16 %v550_v57 }
  0x2e   : > { %392 = vst.msk [vmem:[%s644_s25 + $0x44] sm:$0xf] %vm374_vm0, %v359_v4  ;;  %v532_v18 = vunpack.c.l.bf16 %v551_v8  ;;  %v533_v19 = vunpack.c.h.bf16 %v551_v8  ;;  %v536_v20 = vunpack.c.l.bf16 %v552_v9  ;;  %v537_v21 = vunpack.c.h.bf16 %v552_v9 }
  0x2f   : > { %393 = vst.msk [vmem:[%s644_s25 + $0x48] sm:$0xf] %vm374_vm0, %v360_v6  ;;  %v266_v22 = vmul.f32 %v612_v0, %v524_v14  ;;  %v267_v23 = vmul.f32 %v612_v0, %v525_v15  ;;  %v268_v24 = vmul.f32 %v612_v0, %v528_v16  ;;  %v269_v25 = vmul.f32 %v612_v0, %v529_v17 }
  0x30   : > { %394 = vst.msk [vmem:[%s644_s25 + $0x4c] sm:$0xf] %vm374_vm0, %v361_v7  ;;  %v270_v26 = vmul.f32 %v612_v0, %v532_v18  ;;  %v271_v27 = vmul.f32 %v612_v0, %v533_v19  ;;  %v272_v28 = vmul.f32 %v612_v0, %v536_v20  ;;  %v273_v29 = vmul.f32 %v612_v0, %v537_v21 }
  0x31   : > { %395 = vst.msk [vmem:[%s644_s25 + $0x50] sm:$0xf] %vm374_vm0, %v362_v10  ;;  %v302_v30 = vadd.f32 %v620_v5, %v266_v22  ;;  %v303_v31 = vadd.f32 %v620_v5, %v267_v23  ;;  %v304_v32 = vadd.f32 %v620_v5, %v268_v24  ;;  %v305_v33 = vadd.f32 %v620_v5, %v269_v25 }
  0x32   : > { %396 = vst.msk [vmem:[%s644_s25 + $0x54] sm:$0xf] %vm374_vm0, %v363_v11  ;;  %v306_v34 = vadd.f32 %v620_v5, %v270_v26  ;;  %v307_v35 = vadd.f32 %v620_v5, %v271_v27  ;;  %v308_v36 = vadd.f32 %v620_v5, %v272_v28  ;;  %v309_v0 = vadd.f32 %v620_v5, %v273_v29 }
  0x33   : > { %397 = vst.msk [vmem:[%s644_s25 + $0x58] sm:$0xf] %vm374_vm0, %v364_v12  ;;  %v334_v37 = vmax.f32 %v302_v30, 0.0  ;;  %v335_v38 = vmax.f32 %v303_v31, 0.0  ;;  %v336_v39 = vmax.f32 %v304_v32, 0.0  ;;  %v337_v40 = vmax.f32 %v305_v33, 0.0 }
  0x34   : > { %398 = vst.msk [vmem:[%s644_s25 + $0x5c] sm:$0xf] %vm374_vm0, %v365_v13  ;;  %v338_v41 = vmax.f32 %v306_v34, 0.0  ;;  %v339_v42 = vmax.f32 %v307_v35, 0.0  ;;  %v340_v45 = vmax.f32 %v308_v36, 0.0  ;;  %v341_v47 = vmax.f32 %v309_v0, 0.0 }
  0x35   : > { %v366_v43 = vpack.c.bf16 %v334_v37, %v334_v37  ;;  %v367_v44 = vpack.c.bf16 %v335_v38, %v335_v38  ;;  %v368_v5 = vpack.c.bf16 %v336_v39, %v336_v39  ;;  %v369_v46 = vpack.c.bf16 %v337_v40, %v337_v40 }
  0x36   : > { %v370_v48 = vpack.c.bf16 %v338_v41, %v338_v41  ;;  %v371_v49 = vpack.c.bf16 %v339_v42, %v339_v42  ;;  %v372_v50 = vpack.c.bf16 %v340_v45, %v340_v45  ;;  %v373_v51 = vpack.c.bf16 %v341_v47, %v341_v47 }
  0x37   : > { %399 = vst.msk [vmem:[%s644_s25 + $0x60] sm:$0xf] %vm374_vm0, %v366_v43 }
  0x38   : > { %400 = vst.msk [vmem:[%s644_s25 + $0x64] sm:$0xf] %vm374_vm0, %v367_v44 }
  0x39   : > { %401 = vst.msk [vmem:[%s644_s25 + $0x68] sm:$0xf] %vm374_vm0, %v368_v5 }
  0x3a   : > { %402 = vst.msk [vmem:[%s644_s25 + $0x6c] sm:$0xf] %vm374_vm0, %v369_v46 }
  0x3b   : > { %403 = vst.msk [vmem:[%s644_s25 + $0x70] sm:$0xf] %vm374_vm0, %v370_v48 }
  0x3c   : > { %404 = vst.msk [vmem:[%s644_s25 + $0x74] sm:$0xf] %vm374_vm0, %v371_v49 }
  0x3d   : > { %405 = vst.msk [vmem:[%s644_s25 + $0x78] sm:$0xf] %vm374_vm0, %v372_v50 }
  0x3e   : > { %406 = vst.msk [vmem:[%s644_s25 + $0x7c] sm:$0xf] %vm374_vm0, %v373_v51 }
  0x3f PF: > { %s13_s12 = sadd.s32 1, %s569_s12  }
  0x40   : > { %p10_p4 = scmp.ge.s32.totalorder %s13_s12, 4  }
  0x42   :  { %12 = sbr.rel (!%p10_p4) target bundleno = 1 (0x1), region = 62 }

// kernel: unet_reg_forward.23
= control target key start
LH: loop header
LB: loop body
LE: loop exit
PB: predicated region body
PF: predicated region fallthrough
CT: control target
= control target key end

     0   :  { %s1005_s15 = smov 0   ;;  %s1381_s0 = inlined_call_operand.vmem [shape: bf16[512,36], index: 0, kind: input, shape index: {}]   ;;  %s1382_s1 = inlined_call_operand.vmem [shape: bf16[36,16], index: 1, kind: input, shape index: {}]   ;;  %s1383_s2 = inlined_call_operand.vmem [shape: bf16[512,16], index: 2, kind: output, shape index: {0}]   ;;  %s1384_s3 = inlined_call_operand.vmem [shape: f32[2,1,16], index: 3, kind: output, shape index: {1}]   ;;  %s1385_s4 = inlined_call_operand.vmem [shape: f32[2,1,16], index: 4, kind: output, shape index: {2}]  }
   0x1 LB: > { %s1011_s16 = sadd.s32 4294967295, %s978_s15   ;;  %p842_p0 = scmp.ge.s32.totalorder %s978_s15, 1  ;;  %s978_s15 = sphi %s1005_s15, %s15_s15  }
   0x2   : > { %p168_p1 = scmp.lt.s32.totalorder %s978_s15, 3 }
   0x4   : > { %p169_p2 = pnand %p842_p0, %p168_p1 }
   0x5   : > { %s843_s19 = sshll.u32 (!%p169_p2), %s1011_s16, 5  ;;  %p212_p4 = scmp.lt.s32.totalorder (!%p169_p2), %s1011_s16, 1 }
   0x6   : > { %172 = sbr.rel (%p169_p2) target bundleno = 276 (0x114), region = 28  ;;  %p201_p3 = scmp.lt.s32.totalorder (!%p169_p2), %s843_s19, 63 }
   0xb   : > { %v255_v0 = vld [vmem:[%s1382_s1 + $0x10] sm:$0x3]  ;;  %vm400_vm0 = vcmask 1041408   ;;  %s1387_s19 = smov (!%p201_p3, %s843_s19), 63  ;;  %v954_v4 = vld [vmem:[%s1382_s1 + $0x8] sm:$0xff]  ;;  %v953_v5 = vld [vmem:[%s1382_s1] sm:$0xff] }
   0xc   : > { %v345_v1 = vunpack.c.l.b16 %v255_v0  ;;  %s844_s22 = sshll.u32 %s1387_s19, 2  ;;  %vm351_vm1 = vcmask 293888   ;;  %vm525_vm2 = vcmask 125952   ;;  %vm558_vm3 = vcmask 130048   ;;  %s1389_s16 = smov (!%p212_p4, %s1011_s16), 1 }
   0xd   : > { %s1033_s27 = scalar_lea.vmem %s1381_s0, %s844_s22  ;;  %s1072_s30 = scalar_lea.vmem %s1383_s2, %s844_s22  ;;  %vm628_vm4 = vcmask 122880  }
   0xe   : > { %v348_v2 = vpack.c.b16 %v345_v1, %v345_v1  ;;  %v937_v6 = vld [vmem:[%s1033_s27] sm:$0xff]  ;;  %v938_v10 = vld [vmem:[%s1033_s27 + $0x8] sm:$0xff]  ;;  %v939_v14 = vld [vmem:[%s1033_s27 + $0x10] sm:$0xff]  ;;  %s214_s7 = scalar_lea.vmem %s1384_s3, %s1389_s16  ;;  %s217_s10 = scalar_lea.vmem %s1385_s4, %s1389_s16 }
   0xf   : > { %v941_v7 = vld [vmem:[%s1033_s27 + $0x20] sm:$0xff]  ;;  %v942_v11 = vld [vmem:[%s1033_s27 + $0x28] sm:$0xff]  ;;  %v943_v15 = vld [vmem:[%s1033_s27 + $0x30] sm:$0xff] }
  0x10   : > { %v402_v3 = vsel %vm400_vm0, %v348_v2, 0  ;;  %v945_v8 = vld [vmem:[%s1033_s27 + $0x40] sm:$0xff]  ;;  %v946_v12 = vld [vmem:[%s1033_s27 + $0x48] sm:$0xff]  ;;  %v947_v16 = vld [vmem:[%s1033_s27 + $0x50] sm:$0xff] }
  0x11   : > { %409 = vmatpush.bf16.msra.mxu0 %v402_v3  ;;  %955 = vmatpush.bf16.msra.mxu1 %v402_v3  ;;  %v949_v9 = vld [vmem:[%s1033_s27 + $0x60] sm:$0xff]  ;;  %v950_v13 = vld [vmem:[%s1033_s27 + $0x68] sm:$0xff]  ;;  %v951_v17 = vld [vmem:[%s1033_s27 + $0x70] sm:$0xff] }
  0x12   : > { %956 = vmatpush.bf16.msra.mxu2 %v402_v3  ;;  %957 = vmatpush.bf16.msra.mxu3 %v402_v3  ;;  %v940_v18 = vld [vmem:[%s1033_s27 + $0x18] sm:$0xff] }
  0x13   : > { %v944_v19 = vld [vmem:[%s1033_s27 + $0x38] sm:$0xff] }
  0x14   : > { %v948_v20 = vld [vmem:[%s1033_s27 + $0x58] sm:$0xff] }
  0x15   : > { %410 = vmatpush.bf16.msra.mxu0 %v954_v4  ;;  %958 = vmatpush.bf16.msra.mxu1 %v954_v4  ;;  %v952_v21 = vld [vmem:[%s1033_s27 + $0x78] sm:$0xff] }
  0x16   : > { %959 = vmatpush.bf16.msra.mxu2 %v954_v4  ;;  %960 = vmatpush.bf16.msra.mxu3 %v954_v4 }
  0x19   : > { %411 = vmatpush.bf16.msra.mxu0 %v953_v5  ;;  %961 = vmatpush.bf16.msra.mxu1 %v953_v5 }
  0x1a   : > { %962 = vmatpush.bf16.msra.mxu2 %v953_v5  ;;  %963 = vmatpush.bf16.msra.mxu3 %v953_v5 }
  0x1c   : > { %919 = vmatmul.msk.bf16.vlgmr.msra.gmra.mxu0 %vm351_vm1, %v937_v6  ;;  %923 = vmatmul.msk.bf16.vlgmr.msra.gmra.mxu1 %vm351_vm1, %v941_v7 }
  0x1d   : > { %927 = vmatmul.msk.bf16.vlgmr.msra.gmra.mxu2 %vm351_vm1, %v945_v8  ;;  %931 = vmatmul.msk.bf16.vlgmr.msra.gmra.mxu3 %vm351_vm1, %v949_v9 }
  0x2c   : > { %920 = vmatmul.msk.bf16.gmra.mxu0 %vm351_vm1, %v938_v10  ;;  %924 = vmatmul.msk.bf16.gmra.mxu1 %vm351_vm1, %v942_v11 }
  0x2d   : > { %928 = vmatmul.msk.bf16.gmra.mxu2 %vm351_vm1, %v946_v12  ;;  %932 = vmatmul.msk.bf16.gmra.mxu3 %vm351_vm1, %v950_v13 }
  0x3c   : > { %921 = vmatmul.msk.bf16.gmra.mxu0 %vm351_vm1, %v939_v14  ;;  %925 = vmatmul.msk.bf16.gmra.mxu1 %vm351_vm1, %v943_v15 }
  0x3d   : > { %929 = vmatmul.msk.bf16.gmra.mxu2 %vm351_vm1, %v947_v16  ;;  %933 = vmatmul.msk.bf16.gmra.mxu3 %vm351_vm1, %v951_v17 }
  0x4c   : > { %922 = vmatmul.msk.bf16.gmra.mxu0 %vm351_vm1, %v940_v18  ;;  %926 = vmatmul.msk.bf16.gmra.mxu1 %vm351_vm1, %v944_v19 }
  0x4d   : > { %930 = vmatmul.msk.bf16.gmra.mxu2 %vm351_vm1, %v948_v20  ;;  %934 = vmatmul.msk.bf16.gmra.mxu3 %vm351_vm1, %v952_v21 }
  0x99   : > { %v1074_v22 = vpop.f32.mrf.mxu0  ;;  %v1076_v23 = vpop.f32.mrf.mxu1 }
  0x9a   : > { %v493_v24 = vpack.c.bf16 %v1074_v22, %v1074_v22  ;;  %v501_v25 = vpack.c.bf16 %v1076_v23, %v1076_v23  ;;  %v630_v2 = vmul.f32 %v1074_v22, %v1074_v22  ;;  %v559_v6 = vsel %vm558_vm3, %v1074_v22, 0.0 }
  0x9c   : > { %526 = vst.msk [vmem:[%s1072_s30] sm:$0xf] %vm525_vm2, %v493_v24  ;;  %v662_v10 = vsel %vm558_vm3, %v630_v2, 0.0 }
  0x9d   : > { %534 = vst.msk [vmem:[%s1072_s30 + $0x20] sm:$0xf] %vm525_vm2, %v501_v25 }
  0xa0   : > { %v1086_v26 = vpop.f32.mrf.mxu2  ;;  %v1094_v32 = vpop.f32.mrf.mxu3 }
  0xa1   : > { %v415_v27 = vpop.f32.mrf.mxu0  ;;  %v1088_v28 = vpop.f32.mrf.mxu1  ;;  %v509_v29 = vpack.c.bf16 %v1086_v26, %v1086_v26  ;;  %v517_v33 = vpack.c.bf16 %v1094_v32, %v1094_v32 }
  0xa2   : > { %v494_v30 = vpack.c.bf16 %v415_v27, %v415_v27  ;;  %v502_v31 = vpack.c.bf16 %v1088_v28, %v1088_v28  ;;  %v631_v62 = vmul.f32 %v415_v27, %v415_v27  ;;  %v560_v3 = vsel %vm558_vm3, %v415_v27, 0.0 }
  0xa3   : > { %542 = vst.msk [vmem:[%s1072_s30 + $0x40] sm:$0xf] %vm525_vm2, %v509_v29  ;;  %v561_v9 = vadd.f32 %v560_v3, %v559_v6  ;;  %v574_v6 = vsel %vm558_vm3, %v1076_v23, 0.0 }
  0xa4   : > { %527 = vst.msk [vmem:[%s1072_s30 + $0x4] sm:$0xf] %vm525_vm2, %v494_v30  ;;  %v663_v7 = vsel %vm558_vm3, %v631_v62, 0.0 }
  0xa5   : > { %535 = vst.msk [vmem:[%s1072_s30 + $0x24] sm:$0xf] %vm525_vm2, %v502_v31  ;;  %v664_v15 = vadd.f32 %v663_v7, %v662_v10  ;;  %v639_v7 = vmul.f32 %v1088_v28, %v1088_v28 }
  0xa6   : > { %550 = vst.msk [vmem:[%s1072_s30 + $0x60] sm:$0xf] %vm525_vm2, %v517_v33 }
  0xa8   : > { %v1106_v34 = vpop.f32.mrf.mxu2  ;;  %v1114_v40 = vpop.f32.mrf.mxu3 }
  0xa9   : > { %v418_v35 = vpop.f32.mrf.mxu0  ;;  %v1108_v36 = vpop.f32.mrf.mxu1  ;;  %v510_v37 = vpack.c.bf16 %v1106_v34, %v1106_v34  ;;  %v518_v41 = vpack.c.bf16 %v1114_v40, %v1114_v40 }
  0xaa   : > { %v495_v38 = vpack.c.bf16 %v418_v35, %v418_v35  ;;  %v503_v39 = vpack.c.bf16 %v1108_v36, %v1108_v36  ;;  %v632_v4 = vmul.f32 %v418_v35, %v418_v35  ;;  %v562_v8 = vsel %vm558_vm3, %v418_v35, 0.0 }
  0xab   : > { %543 = vst.msk [vmem:[%s1072_s30 + $0x44] sm:$0xf] %vm525_vm2, %v510_v37  ;;  %v563_v16 = vadd.f32 %v562_v8, %v561_v9 }
  0xac   : > { %528 = vst.msk [vmem:[%s1072_s30 + $0x8] sm:$0xf] %vm525_vm2, %v495_v38  ;;  %v665_v11 = vsel %vm558_vm3, %v632_v4, 0.0 }
  0xad   : > { %536 = vst.msk [vmem:[%s1072_s30 + $0x28] sm:$0xf] %vm525_vm2, %v503_v39  ;;  %v666_v29 = vadd.f32 %v665_v11, %v664_v15 }
  0xae   : > { %551 = vst.msk [vmem:[%s1072_s30 + $0x64] sm:$0xf] %vm525_vm2, %v518_v41 }
  0xb0   : > { %v1126_v42 = vpop.f32.mrf.mxu2  ;;  %v1134_v48 = vpop.f32.mrf.mxu3 }
  0xb1   : > { %v420_v43 = vpop.f32.mrf.mxu0  ;;  %v1128_v44 = vpop.f32.mrf.mxu1  ;;  %v511_v45 = vpack.c.bf16 %v1126_v42, %v1126_v42  ;;  %v519_v56 = vpack.c.bf16 %v1134_v48, %v1134_v48 }
  0xb2   : > { %v496_v46 = vpack.c.bf16 %v420_v43, %v420_v43  ;;  %v504_v47 = vpack.c.bf16 %v1128_v44, %v1128_v44  ;;  %v633_v5 = vmul.f32 %v420_v43, %v420_v43  ;;  %v564_v12 = vsel %vm558_vm3, %v420_v43, 0.0 }
  0xb3   : > { %544 = vst.msk [vmem:[%s1072_s30 + $0x48] sm:$0xf] %vm525_vm2, %v511_v45  ;;  %v565_v30 = vadd.f32 %v564_v12, %v563_v16  ;;  %v576_v12 = vsel %vm558_vm3, %v1088_v28, 0.0  ;;  %v679_v16 = vsel %vm558_vm3, %v639_v7, 0.0 }
  0xb4   : > { %529 = vst.msk [vmem:[%s1072_s30 + $0xc] sm:$0xf] %vm525_vm2, %v496_v46  ;;  %v667_v17 = vsel %vm558_vm3, %v633_v5, 0.0 }
  0xb5   : > { %537 = vst.msk [vmem:[%s1072_s30 + $0x2c] sm:$0xf] %vm525_vm2, %v504_v47  ;;  %v668_v38 = vadd.f32 %v667_v17, %v666_v29  ;;  %v578_v17 = vsel %vm558_vm3, %v1108_v36, 0.0 }
  0xb6   : > { %552 = vst.msk [vmem:[%s1072_s30 + $0x68] sm:$0xf] %vm525_vm2, %v519_v56 }
  0xb8   : > { %v1142_v49 = vpop.f32.mrf.mxu2  ;;  %v1150_v55 = vpop.f32.mrf.mxu3 }
  0xb9   : > { %v423_v50 = vpop.f32.mrf.mxu0  ;;  %v1144_v51 = vpop.f32.mrf.mxu1  ;;  %v512_v52 = vpack.c.bf16 %v1142_v49, %v1142_v49  ;;  %v520_v57 = vpack.c.bf16 %v1150_v55, %v1150_v55 }
  0xba   : > { %v497_v53 = vpack.c.bf16 %v423_v50, %v423_v50  ;;  %v505_v54 = vpack.c.bf16 %v1144_v51, %v1144_v51  ;;  %v634_v13 = vmul.f32 %v423_v50, %v423_v50  ;;  %v566_v21 = vsel %vm558_vm3, %v423_v50, 0.0 }
  0xbb   : > { %545 = vst.msk [vmem:[%s1072_s30 + $0x4c] sm:$0xf] %vm525_vm2, %v512_v52  ;;  %v567_v39 = vadd.f32 %v566_v21, %v565_v30 }
  0xbc   : > { %530 = vst.msk [vmem:[%s1072_s30 + $0x10] sm:$0xf] %vm525_vm2, %v497_v53  ;;  %v669_v31 = vsel %vm558_vm3, %v634_v13, 0.0  ;;  %v638_v53 = vmul.f32 %v1076_v23, %v1076_v23  ;;  %v640_v13 = vmul.f32 %v1108_v36, %v1108_v36  ;;  %v642_v36 = vmul.f32 %v1144_v51, %v1144_v51 }
  0xbd   : > { %538 = vst.msk [vmem:[%s1072_s30 + $0x30] sm:$0xf] %vm525_vm2, %v505_v54  ;;  %v670_v46 = vadd.f32 %v669_v31, %v668_v38 }
  0xbe   : > { %553 = vst.msk [vmem:[%s1072_s30 + $0x6c] sm:$0xf] %vm525_vm2, %v520_v57  ;;  %v677_v11 = vsel %vm558_vm3, %v638_v53, 0.0 }
  0xc0   : > { %v1166_v58 = vpop.f32.mrf.mxu2  ;;  %v1174_v1 = vpop.f32.mrf.mxu3 }
  0xc1   : > { %v425_v59 = vpop.f32.mrf.mxu0  ;;  %v1168_v60 = vpop.f32.mrf.mxu1  ;;  %v513_v61 = vpack.c.bf16 %v1166_v58, %v1166_v58  ;;  %v521_v37 = vpack.c.bf16 %v1174_v1, %v1174_v1 }
  0xc2   : > { %v498_v63 = vpack.c.bf16 %v425_v59, %v425_v59  ;;  %v506_v0 = vpack.c.bf16 %v1168_v60, %v1168_v60  ;;  %v635_v22 = vmul.f32 %v425_v59, %v425_v59  ;;  %v568_v33 = vsel %vm558_vm3, %v425_v59, 0.0 }
  0xc3   : > { %546 = vst.msk [vmem:[%s1072_s30 + $0x50] sm:$0xf] %vm525_vm2, %v513_v61  ;;  %v569_v47 = vadd.f32 %v568_v33, %v567_v39  ;;  %v643_v38 = vmul.f32 %v1168_v60, %v1168_v60 }
  0xc4   : > { %531 = vst.msk [vmem:[%s1072_s30 + $0x14] sm:$0xf] %vm525_vm2, %v498_v63  ;;  %v671_v43 = vsel %vm558_vm3, %v635_v22, 0.0 }
  0xc5   : > { %539 = vst.msk [vmem:[%s1072_s30 + $0x34] sm:$0xf] %vm525_vm2, %v506_v0  ;;  %v672_v54 = vadd.f32 %v671_v43, %v670_v46  ;;  %v685_v43 = vsel %vm558_vm3, %v642_v36, 0.0 }
  0xc6   : > { %554 = vst.msk [vmem:[%s1072_s30 + $0x70] sm:$0xf] %vm525_vm2, %v521_v37 }
  0xc8   : > { %v1192_v14 = vpop.f32.mrf.mxu2  ;;  %v1202_v27 = vpop.f32.mrf.mxu3 }
  0xc9   : > { %v428_v18 = vpop.f32.mrf.mxu0  ;;  %v1195_v19 = vpop.f32.mrf.mxu1  ;;  %v514_v20 = vpack.c.bf16 %v1192_v14, %v1192_v14  ;;  %v522_v41 = vpack.c.bf16 %v1202_v27, %v1202_v27 }
  0xca   : > { %v499_v24 = vpack.c.bf16 %v428_v18, %v428_v18  ;;  %v507_v25 = vpack.c.bf16 %v1195_v19, %v1195_v19  ;;  %v636_v35 = vmul.f32 %v428_v18, %v428_v18  ;;  %v570_v45 = vsel %vm558_vm3, %v428_v18, 0.0 }
  0xcb   : > { %547 = vst.msk [vmem:[%s1072_s30 + $0x54] sm:$0xf] %vm525_vm2, %v514_v20  ;;  %v571_v56 = vadd.f32 %v570_v45, %v569_v47  ;;  %v641_v18 = vmul.f32 %v1128_v44, %v1128_v44  ;;  %v584_v45 = vsel %vm558_vm3, %v1168_v60, 0.0  ;;  %v644_v46 = vmul.f32 %v1195_v19, %v1195_v19 }
  0xcc   : > { %532 = vst.msk [vmem:[%s1072_s30 + $0x18] sm:$0xf] %vm525_vm2, %v499_v24  ;;  %v673_v50 = vsel %vm558_vm3, %v636_v35, 0.0  ;;  %v681_v24 = vsel %vm558_vm3, %v640_v13, 0.0  ;;  %v586_v53 = vsel %vm558_vm3, %v1195_v19, 0.0 }
  0xcd   : > { %540 = vst.msk [vmem:[%s1072_s30 + $0x38] sm:$0xf] %vm525_vm2, %v507_v25  ;;  %v674_v4 = vadd.f32 %v673_v50, %v672_v54  ;;  %v580_v25 = vsel %vm558_vm3, %v1128_v44, 0.0  ;;  %v683_v37 = vsel %vm558_vm3, %v641_v18, 0.0  ;;  %v582_v44 = vsel %vm558_vm3, %v1144_v51, 0.0 }
  0xce   : > { %555 = vst.msk [vmem:[%s1072_s30 + $0x74] sm:$0xf] %vm525_vm2, %v522_v41  ;;  %v687_v51 = vsel %vm558_vm3, %v643_v38, 0.0  ;;  %v654_v38 = vmul.f32 %v1094_v32, %v1094_v32 }
  0xd0   : > { %v1223_v52 = vpop.f32.mrf.mxu2  ;;  %v1230_v3 = vpop.f32.mrf.mxu3 }
  0xd1   : > { %v430_v57 = vpop.f32.mrf.mxu0  ;;  %v450_v59 = vpop.f32.mrf.mxu1  ;;  %v515_v61 = vpack.c.bf16 %v1223_v52, %v1223_v52  ;;  %v523_v29 = vpack.c.bf16 %v1230_v3, %v1230_v3  ;;  %v652_v36 = vmul.f32 %v1223_v52, %v1223_v52 }
  0xd2   : > { %v500_v62 = vpack.c.bf16 %v430_v57, %v430_v57  ;;  %v572_v63 = vsel %vm558_vm3, %v430_v57, 0.0  ;;  %v637_v0 = vmul.f32 %v430_v57, %v430_v57  ;;  %v508_v2 = vpack.c.bf16 %v450_v59, %v450_v59 }
  0xd3   : > { %v573_v5 = vadd.f32 %v572_v63, %v571_v56  ;;  %548 = vst.msk [vmem:[%s1072_s30 + $0x58] sm:$0xf] %vm525_vm2, %v515_v61  ;;  %v645_v54 = vmul.f32 %v450_v59, %v450_v59  ;;  %v646_v61 = vmul.f32 %v1086_v26, %v1086_v26  ;;  %v588_v60 = vsel %vm558_vm3, %v450_v59, 0.0 }
  0xd4   : > { %533 = vst.msk [vmem:[%s1072_s30 + $0x1c] sm:$0xf] %vm525_vm2, %v500_v62  ;;  %v675_v8 = vsel %vm558_vm3, %v637_v0, 0.0  ;;  %v689_v62 = vsel %vm558_vm3, %v644_v46, 0.0  ;;  %v648_v59 = vmul.f32 %v1126_v42, %v1126_v42 }
  0xd5   : > { %v575_v9 = vadd.f32 %v574_v6, %v573_v5  ;;  %v676_v10 = vadd.f32 %v675_v8, %v674_v4  ;;  %541 = vst.msk [vmem:[%s1072_s30 + $0x3c] sm:$0xf] %vm525_vm2, %v508_v2  ;;  %v590_v2 = vsel %vm558_vm3, %v1086_v26, 0.0  ;;  %v647_v4 = vmul.f32 %v1106_v34, %v1106_v34 }
  0xd6   : > { %556 = vst.msk [vmem:[%s1072_s30 + $0x78] sm:$0xf] %vm525_vm2, %v523_v29  ;;  %v691_v19 = vsel %vm558_vm3, %v645_v54, 0.0  ;;  %v693_v7 = vsel %vm558_vm3, %v646_v61, 0.0  ;;  %v592_v8 = vsel %vm558_vm3, %v1106_v34, 0.0  ;;  %v594_v26 = vsel %vm558_vm3, %v1126_v42, 0.0 }
  0xd7   : > { %v577_v23 = vadd.f32 %v576_v12, %v575_v9  ;;  %v678_v15 = vadd.f32 %v677_v11, %v676_v10  ;;  %v695_v11 = vsel %vm558_vm3, %v647_v4, 0.0  ;;  %v649_v12 = vmul.f32 %v1142_v49, %v1142_v49 }
  0xd8   : > { %v1253_v20 = vpop.f32.mrf.mxu2  ;;  %v1264_v30 = vpop.f32.mrf.mxu3  ;;  %v596_v34 = vsel %vm558_vm3, %v1142_v49, 0.0  ;;  %v598_v42 = vsel %vm558_vm3, %v1166_v58, 0.0  ;;  %v600_v49 = vsel %vm558_vm3, %v1192_v14, 0.0  ;;  %v657_v61 = vmul.f32 %v1150_v55, %v1150_v55 }
  0xd9   : > { %v579_v21 = vadd.f32 %v578_v17, %v577_v23  ;;  %v680_v22 = vadd.f32 %v679_v16, %v678_v15  ;;  %v516_v28 = vpack.c.bf16 %v1253_v20, %v1253_v20  ;;  %v524_v35 = vpack.c.bf16 %v1264_v30, %v1264_v30 }
  0xda   : > { %v697_v15 = vsel %vm558_vm3, %v648_v59, 0.0  ;;  %v650_v16 = vmul.f32 %v1166_v58, %v1166_v58  ;;  %v602_v58 = vsel %vm558_vm3, %v1223_v52, 0.0  ;;  %v655_v52 = vmul.f32 %v1114_v40, %v1114_v40 }
  0xdb   : > { %v682_v31 = vadd.f32 %v681_v24, %v680_v22  ;;  %v581_v33 = vadd.f32 %v580_v25, %v579_v21  ;;  %549 = vst.msk [vmem:[%s1072_s30 + $0x5c] sm:$0xf] %vm525_vm2, %v516_v28  ;;  %v699_v21 = vsel %vm558_vm3, %v649_v12, 0.0  ;;  %v651_v22 = vmul.f32 %v1192_v14, %v1192_v14 }
  0xdc   : > { %557 = vst.msk [vmem:[%s1072_s30 + $0x7c] sm:$0xf] %vm525_vm2, %v524_v35  ;;  %v701_v25 = vsel %vm558_vm3, %v650_v16, 0.0  ;;  %v653_v35 = vmul.f32 %v1253_v20, %v1253_v20  ;;  %v705_v14 = vsel %vm558_vm3, %v652_v36, 0.0  ;;  %v660_v59 = vmul.f32 %v1230_v3, %v1230_v3 }
  0xdd   : > { %v583_v39 = vadd.f32 %v582_v44, %v581_v33  ;;  %v684_v41 = vadd.f32 %v683_v37, %v682_v31  ;;  %v703_v33 = vsel %vm558_vm3, %v651_v22, 0.0 }
  0xde   : > { %v707_v46 = vsel %vm558_vm3, %v653_v35, 0.0 }
  0xdf   : > { %v585_v47 = vadd.f32 %v584_v45, %v583_v39  ;;  %v686_v50 = vadd.f32 %v685_v43, %v684_v41  ;;  %v604_v39 = vsel %vm558_vm3, %v1253_v20, 0.0  ;;  %v606_v45 = vsel %vm558_vm3, %v1094_v32, 0.0 }
  0xe0   : > { %v656_v20 = vmul.f32 %v1134_v48, %v1134_v48  ;;  %v610_v32 = vsel %vm558_vm3, %v1134_v48, 0.0  ;;  %v614_v48 = vsel %vm558_vm3, %v1174_v1, 0.0 }
  0xe1   : > { %v587_v56 = vadd.f32 %v586_v53, %v585_v47  ;;  %v688_v57 = vadd.f32 %v687_v51, %v686_v50  ;;  %v709_v51 = vsel %vm558_vm3, %v654_v38, 0.0  ;;  %v608_v53 = vsel %vm558_vm3, %v1114_v40, 0.0 }
  0xe2   : > { %v612_v40 = vsel %vm558_vm3, %v1150_v55, 0.0  ;;  %v616_v55 = vsel %vm558_vm3, %v1202_v27, 0.0 }
  0xe3   : > { %v690_v63 = vadd.f32 %v689_v62, %v688_v57  ;;  %v589_v0 = vadd.f32 %v588_v60, %v587_v56  ;;  %v711_v57 = vsel %vm558_vm3, %v655_v52, 0.0 }
  0xe5   : > { %v591_v5 = vadd.f32 %v590_v2, %v589_v0  ;;  %v692_v6 = vadd.f32 %v691_v19, %v690_v63  ;;  %v713_v63 = vsel %vm558_vm3, %v656_v20, 0.0  ;;  %v658_v0 = vmul.f32 %v1174_v1, %v1174_v1 }
  0xe6   : > { %v715_v19 = vsel %vm558_vm3, %v657_v61, 0.0  ;;  %v618_v1 = vsel %vm558_vm3, %v1230_v3, 0.0 }
  0xe7   : > { %v593_v9 = vadd.f32 %v592_v8, %v591_v5  ;;  %v694_v10 = vadd.f32 %v693_v7, %v692_v6  ;;  %v659_v5 = vmul.f32 %v1202_v27, %v1202_v27  ;;  %v717_v8 = vsel %vm558_vm3, %v658_v0, 0.0 }
  0xe8   : > { %v620_v27 = vsel %vm558_vm3, %v1264_v30, 0.0 }
  0xe9   : > { %v595_v13 = vadd.f32 %v594_v26, %v593_v9  ;;  %v696_v23 = vadd.f32 %v695_v11, %v694_v10  ;;  %v719_v11 = vsel %vm558_vm3, %v659_v5, 0.0  ;;  %v661_v26 = vmul.f32 %v1264_v30, %v1264_v30 }
  0xeb   : > { %v698_v17 = vadd.f32 %v697_v15, %v696_v23  ;;  %v597_v18 = vadd.f32 %v596_v34, %v595_v13  ;;  %v721_v23 = vsel %vm558_vm3, %v660_v59, 0.0  ;;  %v723_v16 = vsel %vm558_vm3, %v661_v26, 0.0 }
  0xed   : > { %v599_v28 = vadd.f32 %v598_v42, %v597_v18  ;;  %v700_v24 = vadd.f32 %v699_v21, %v698_v17 }
  0xef   : > { %v601_v29 = vadd.f32 %v600_v49, %v599_v28  ;;  %v702_v31 = vadd.f32 %v701_v25, %v700_v24 }
  0xf1   : > { %v704_v37 = vadd.f32 %v703_v33, %v702_v31  ;;  %v603_v44 = vadd.f32 %v602_v58, %v601_v29 }
  0xf3   : > { %v706_v41 = vadd.f32 %v705_v14, %v704_v37  ;;  %v605_v43 = vadd.f32 %v604_v39, %v603_v44 }
  0xf5   : > { %v607_v47 = vadd.f32 %v606_v45, %v605_v43  ;;  %v708_v50 = vadd.f32 %v707_v46, %v706_v41 }
  0xf7   : > { %v609_v54 = vadd.f32 %v608_v53, %v607_v47  ;;  %v710_v56 = vadd.f32 %v709_v51, %v708_v50 }
  0xf9   : > { %v611_v62 = vadd.f32 %v610_v32, %v609_v54  ;;  %v712_v60 = vadd.f32 %v711_v57, %v710_v56 }
  0xfb   : > { %v714_v2 = vadd.f32 %v713_v63, %v712_v60  ;;  %v613_v4 = vadd.f32 %v612_v40, %v611_v62 }
  0xfd   : > { %v615_v6 = vadd.f32 %v614_v48, %v613_v4  ;;  %v716_v7 = vadd.f32 %v715_v19, %v714_v2 }
  0xff   : > { %v617_v9 = vadd.f32 %v616_v55, %v615_v6  ;;  %v718_v10 = vadd.f32 %v717_v8, %v716_v7 }
 0x101   : > { %v720_v12 = vadd.f32 %v719_v11, %v718_v10  ;;  %v619_v13 = vadd.f32 %v618_v1, %v617_v9 }
 0x103   : > { %v722_v15 = vadd.f32 %v721_v23, %v720_v12  ;;  %v621_v34 = vadd.f32 %v620_v27, %v619_v13 }
 0x105   : > { %v622_v17 = vrot.slane %v621_v34, 4  ;;  %v724_v18 = vadd.f32 %v723_v16, %v722_v15 }
 0x107   : > { %v623_v21 = vadd.f32 %v622_v17, %v621_v34  ;;  %v725_v3 = vrot.slane %v724_v18, 4 }
 0x109   : > { %v624_v42 = vrot.slane %v623_v21, 2  ;;  %v726_v22 = vadd.f32 %v725_v3, %v724_v18 }
 0x10b   : > { %v625_v28 = vadd.f32 %v624_v42, %v623_v21  ;;  %v727_v24 = vrot.slane %v726_v22, 2 }
 0x10d   : > { %v626_v25 = vrot.slane %v625_v28, 1  ;;  %v728_v49 = vadd.f32 %v727_v24, %v726_v22 }
 0x10f   : > { %v627_v30 = vadd.f32 %v626_v25, %v625_v28  ;;  %v729_v36 = vrot.slane %v728_v49, 1 }
 0x111   : > { %629 = vst.msk [vmem:[%s214_s7] sm:$0x1] %vm628_vm4, %v627_v30  ;;  %v730_v29 = vadd.f32 %v729_v36, %v728_v49 }
 0x113   : > { %731 = vst.msk [vmem:[%s217_s10] sm:$0x1] %vm628_vm4, %v730_v29 }
 0x114 PF: > { %s15_s15 = sadd.s32 1, %s978_s15  }
 0x115   : > { %p12_p5 = scmp.ge.s32.totalorder %s15_s15, 4  }
 0x117   :  { %14 = sbr.rel (!%p12_p5) target bundleno = 1 (0x1), region = 82 }

// kernel: unet_reg_forward.25
= control target key start
LH: loop header
LB: loop body
LE: loop exit
PB: predicated region body
PF: predicated region fallthrough
CT: control target
= control target key end

     0   :  { %s1325_s15 = smov 0   ;;  %s1751_s0 = inlined_call_operand.vmem [shape: bf16[512,144], index: 0, kind: input, shape index: {}]   ;;  %s1752_s1 = inlined_call_operand.vmem [shape: bf16[144,16], index: 1, kind: input, shape index: {}]   ;;  %s1753_s2 = inlined_call_operand.vmem [shape: bf16[512,16], index: 2, kind: output, shape index: {0}]   ;;  %s1754_s3 = inlined_call_operand.vmem [shape: f32[2,1,16], index: 3, kind: output, shape index: {1}]   ;;  %s1755_s4 = inlined_call_operand.vmem [shape: f32[2,1,16], index: 4, kind: output, shape index: {2}]  }
   0x1 LB: > { %s1331_s16 = sadd.s32 4294967295, %s1298_s15   ;;  %p1045_p0 = scmp.ge.s32.totalorder %s1298_s15, 1  ;;  %s1298_s15 = sphi %s1325_s15, %s15_s15  }
   0x2   : > { %p169_p1 = scmp.lt.s32.totalorder %s1298_s15, 3 }
   0x4   : > { %p170_p2 = pnand %p1045_p0, %p169_p1 }
   0x5   : > { %s1046_s21 = sshll.u32 (!%p170_p2), %s1331_s16, 5  ;;  %p215_p4 = scmp.lt.s32.totalorder (!%p170_p2), %s1331_s16, 1 }
   0x6   : > { %173 = sbr.rel (%p170_p2) target bundleno = 341 (0x155), region = 28  ;;  %p203_p3 = scmp.lt.s32.totalorder (!%p170_p2), %s1046_s21, 63 }
   0xb   : > { %v1273_v0 = vld [vmem:[%s1752_s1 + $0x38] sm:$0xff]  ;;  %v1274_v1 = vld [vmem:[%s1752_s1 + $0x40] sm:$0xff]  ;;  %v1272_v2 = vld [vmem:[%s1752_s1 + $0x30] sm:$0xff]  ;;  %s1757_s21 = smov (!%p203_p3, %s1046_s21), 63  ;;  %vm470_vm0 = vcmask 130048   ;;  %vm729_vm1 = vcmask 125952  }
   0xc   : > { %519 = vmatpush.bf16.msra.mxu0 %v1273_v0  ;;  %615 = vmatpush.bf16.msra.mxu1 %v1274_v1  ;;  %s1233_s24 = sshll.u32 %s1757_s21, 3  ;;  %v1271_v3 = vld [vmem:[%s1752_s1 + $0x28] sm:$0xff]  ;;  %v1270_v7 = vld [vmem:[%s1752_s1 + $0x20] sm:$0xff]  ;;  %v1269_v8 = vld [vmem:[%s1752_s1 + $0x18] sm:$0xff]  ;;  %s1050_s14 = sshll.u32 %s1757_s21, 2  ;;  %vm831_vm2 = vcmask 122880  }
   0xd   : > { %1275 = vmatpush.bf16.msra.mxu2 %v1273_v0  ;;  %1283 = vmatpush.bf16.msra.mxu3 %v1274_v1  ;;  %s1351_s27 = scalar_lea.vmem %s1751_s0, %s1233_s24  ;;  %v1268_v9 = vld [vmem:[%s1752_s1 + $0x10] sm:$0xff]  ;;  %v1267_v13 = vld [vmem:[%s1752_s1 + $0x8] sm:$0xff]  ;;  %v1266_v14 = vld [vmem:[%s1752_s1] sm:$0xff]  ;;  %s1455_s19 = scalar_lea.vmem %s1753_s2, %s1050_s14 }
   0xe   : > { %v1234_v4 = vld [vmem:[%s1351_s27 + $0x4] sm:$0xf]  ;;  %v1055_v5 = vld [vmem:[%s1351_s27 + $0x8] sm:$0xf0]  ;;  %v1236_v10 = vld [vmem:[%s1351_s27 + $0x14] sm:$0xf] }
   0xf   : > { %v1058_v6 = vor.u32 %v1234_v4, %v1055_v5  ;;  %v1063_v11 = vld [vmem:[%s1351_s27 + $0x18] sm:$0xf0]  ;;  %v1053_v15 = vld [vmem:[%s1351_s27] sm:$0xf]  ;;  %v1235_v16 = vld [vmem:[%s1351_s27 + $0x4] sm:$0xf0] }
  0x10   : > { %520 = vmatpush.bf16.msra.mxu0 %v1272_v2  ;;  %v1066_v12 = vor.u32 %v1236_v10, %v1063_v11  ;;  %v1117_v17 = vld [vmem:[%s1351_s27 + $0x80] sm:$0xf]  ;;  %v1251_v18 = vld [vmem:[%s1351_s27 + $0x84] sm:$0xf0]  ;;  %v1054_v19 = vor.u32 %v1235_v16, %v1053_v15  ;;  %v1252_v21 = vld [vmem:[%s1351_s27 + $0x94] sm:$0xf] }
  0x11   : > { %1276 = vmatpush.bf16.msra.mxu2 %v1272_v2  ;;  %1215 = vmatmul.msk.bf16.vlgmr.msra.gmra.mxu1 %vm470_vm0, %v1058_v6  ;;  %v1118_v20 = vor.u32 %v1251_v18, %v1117_v17  ;;  %v1127_v22 = vld [vmem:[%s1351_s27 + $0x98] sm:$0xf0]  ;;  %v1238_v24 = vld [vmem:[%s1351_s27 + $0x24] sm:$0xf]  ;;  %v1071_v25 = vld [vmem:[%s1351_s27 + $0x28] sm:$0xf0] }
  0x12   : > { %v1130_v23 = vor.u32 %v1252_v21, %v1127_v22  ;;  %v1074_v26 = vor.u32 %v1238_v24, %v1071_v25  ;;  %v1061_v27 = vld [vmem:[%s1351_s27 + $0x10] sm:$0xf]  ;;  %v1237_v28 = vld [vmem:[%s1351_s27 + $0x14] sm:$0xf0]  ;;  %v1254_v33 = vld [vmem:[%s1351_s27 + $0xa4] sm:$0xf] }
  0x13   : > { %v1125_v29 = vld [vmem:[%s1351_s27 + $0x90] sm:$0xf]  ;;  %v1253_v30 = vld [vmem:[%s1351_s27 + $0x94] sm:$0xf0]  ;;  %v1062_v31 = vor.u32 %v1237_v28, %v1061_v27  ;;  %v1135_v34 = vld [vmem:[%s1351_s27 + $0xa8] sm:$0xf0] }
  0x14   : > { %521 = vmatpush.bf16.msra.mxu0 %v1271_v3  ;;  %1224 = vmatmul.msk.bf16.vlgmr.msra.gmra.mxu3 %vm470_vm0, %v1130_v23  ;;  %v1126_v32 = vor.u32 %v1253_v30, %v1125_v29  ;;  %v1138_v35 = vor.u32 %v1254_v33, %v1135_v34  ;;  %v1240_v36 = vld [vmem:[%s1351_s27 + $0x34] sm:$0xf]  ;;  %v1079_v37 = vld [vmem:[%s1351_s27 + $0x38] sm:$0xf0]  ;;  %v1069_v39 = vld [vmem:[%s1351_s27 + $0x20] sm:$0xf] }
  0x15   : > { %1277 = vmatpush.bf16.msra.mxu2 %v1271_v3  ;;  %v1082_v38 = vor.u32 %v1240_v36, %v1079_v37  ;;  %v1239_v40 = vld [vmem:[%s1351_s27 + $0x24] sm:$0xf0]  ;;  %v1133_v41 = vld [vmem:[%s1351_s27 + $0xa0] sm:$0xf]  ;;  %v1256_v45 = vld [vmem:[%s1351_s27 + $0xb4] sm:$0xf] }
  0x16   : > { %v1255_v42 = vld [vmem:[%s1351_s27 + $0xa4] sm:$0xf0]  ;;  %v1070_v43 = vor.u32 %v1239_v40, %v1069_v39  ;;  %v1143_v46 = vld [vmem:[%s1351_s27 + $0xb8] sm:$0xf0]  ;;  %v1242_v48 = vld [vmem:[%s1351_s27 + $0x44] sm:$0xf] }
  0x17   : > { %v1134_v44 = vor.u32 %v1255_v42, %v1133_v41  ;;  %v1146_v47 = vor.u32 %v1256_v45, %v1143_v46  ;;  %v1087_v49 = vld [vmem:[%s1351_s27 + $0x48] sm:$0xf0]  ;;  %v1077_v51 = vld [vmem:[%s1351_s27 + $0x30] sm:$0xf]  ;;  %v1241_v52 = vld [vmem:[%s1351_s27 + $0x34] sm:$0xf0] }
  0x18   : > { %522 = vmatpush.bf16.msra.mxu0 %v1270_v7  ;;  %v1090_v50 = vor.u32 %v1242_v48, %v1087_v49  ;;  %v1141_v53 = vld [vmem:[%s1351_s27 + $0xb0] sm:$0xf]  ;;  %v1257_v54 = vld [vmem:[%s1351_s27 + $0xb4] sm:$0xf0]  ;;  %v1078_v55 = vor.u32 %v1241_v52, %v1077_v51  ;;  %v1258_v57 = vld [vmem:[%s1351_s27 + $0xc4] sm:$0xf] }
  0x19   : > { %1278 = vmatpush.bf16.msra.mxu2 %v1270_v7  ;;  %v1142_v56 = vor.u32 %v1257_v54, %v1141_v53  ;;  %v1151_v58 = vld [vmem:[%s1351_s27 + $0xc8] sm:$0xf0]  ;;  %v1244_v60 = vld [vmem:[%s1351_s27 + $0x54] sm:$0xf]  ;;  %v1095_v61 = vld [vmem:[%s1351_s27 + $0x58] sm:$0xf0] }
  0x1a   : > { %v1154_v59 = vor.u32 %v1258_v57, %v1151_v58  ;;  %v1098_v62 = vor.u32 %v1244_v60, %v1095_v61  ;;  %v1085_v63 = vld [vmem:[%s1351_s27 + $0x40] sm:$0xf]  ;;  %v1243_v0 = vld [vmem:[%s1351_s27 + $0x44] sm:$0xf0]  ;;  %v1260_v5 = vld [vmem:[%s1351_s27 + $0xd4] sm:$0xf] }
  0x1b   : > { %v1149_v1 = vld [vmem:[%s1351_s27 + $0xc0] sm:$0xf]  ;;  %v1259_v2 = vld [vmem:[%s1351_s27 + $0xc4] sm:$0xf0]  ;;  %v1086_v3 = vor.u32 %v1243_v0, %v1085_v63  ;;  %v1159_v6 = vld [vmem:[%s1351_s27 + $0xd8] sm:$0xf0] }
  0x1c   : > { %523 = vmatpush.bf16.msra.mxu0 %v1269_v8  ;;  %v1150_v4 = vor.u32 %v1259_v2, %v1149_v1  ;;  %v1162_v7 = vor.u32 %v1260_v5, %v1159_v6  ;;  %v1093_v11 = vld [vmem:[%s1351_s27 + $0x50] sm:$0xf]  ;;  %v1262_v17 = vld [vmem:[%s1351_s27 + $0xe4] sm:$0xf]  ;;  %v1167_v18 = vld [vmem:[%s1351_s27 + $0xe8] sm:$0xf0] }
  0x1d   : > { %1279 = vmatpush.bf16.msra.mxu2 %v1269_v8  ;;  %v1246_v8 = vld [vmem:[%s1351_s27 + $0x64] sm:$0xf]  ;;  %v1111_v21 = vld [vmem:[%s1351_s27 + $0x78] sm:$0xf0]  ;;  %v1101_v23 = vld [vmem:[%s1351_s27 + $0x60] sm:$0xf] }
  0x1e   : > { %v1247_v24 = vld [vmem:[%s1351_s27 + $0x64] sm:$0xf0]  ;;  %v1165_v25 = vld [vmem:[%s1351_s27 + $0xe0] sm:$0xf]  ;;  %v1264_v29 = vld [vmem:[%s1351_s27 + $0xf4] sm:$0xf] }
  0x1f   : > { %v1102_v27 = vor.u32 %v1247_v24, %v1101_v23  ;;  %v1175_v30 = vld [vmem:[%s1351_s27 + $0xf8] sm:$0xf0]  ;;  %v1119_v33 = vld [vmem:[%s1351_s27 + $0x88] sm:$0xf0]  ;;  %v1109_v36 = vld [vmem:[%s1351_s27 + $0x70] sm:$0xf] }
  0x20   : > { %524 = vmatpush.bf16.msra.mxu0 %v1268_v9  ;;  %v1249_v37 = vld [vmem:[%s1351_s27 + $0x74] sm:$0xf0]  ;;  %s1759_s16 = smov (!%p215_p4, %s1331_s16), 1 }
  0x21   : > { %1280 = vmatpush.bf16.msra.mxu2 %v1268_v9  ;;  %1216 = vmatmul.msk.bf16.gmra.mxu1 %vm470_vm0, %v1066_v12  ;;  %v1103_v9 = vld [vmem:[%s1351_s27 + $0x68] sm:$0xf0]  ;;  %v1245_v12 = vld [vmem:[%s1351_s27 + $0x54] sm:$0xf0]  ;;  %v1110_v40 = vor.u32 %v1249_v37, %v1109_v36  ;;  %s217_s22 = scalar_lea.vmem %s1754_s3, %s1759_s16  ;;  %s220_s25 = scalar_lea.vmem %s1755_s4, %s1759_s16 }
  0x22   : > { %v1106_v10 = vor.u32 %v1246_v8, %v1103_v9  ;;  %v1094_v15 = vor.u32 %v1245_v12, %v1093_v11  ;;  %v1265_v39 = vld [vmem:[%s1351_s27 + $0xf4] sm:$0xf0] }
  0x24   : > { %525 = vmatpush.bf16.msra.mxu0 %v1267_v13  ;;  %1225 = vmatmul.msk.bf16.gmra.mxu3 %vm470_vm0, %v1138_v35 }
  0x25   : > { %1281 = vmatpush.bf16.msra.mxu2 %v1267_v13  ;;  %v1157_v13 = vld [vmem:[%s1351_s27 + $0xd0] sm:$0xf] }
  0x28   : > { %526 = vmatpush.bf16.msra.mxu0 %v1266_v14 }
  0x29   : > { %1282 = vmatpush.bf16.msra.mxu2 %v1266_v14  ;;  %v1261_v14 = vld [vmem:[%s1351_s27 + $0xd4] sm:$0xf0] }
  0x2a   : > { %v1158_v16 = vor.u32 %v1261_v14, %v1157_v13 }
  0x2b   : > { %527 = vmatmul.bf16.vlgmr.msra.gmra.mxu0 %v1054_v19  ;;  %v1170_v19 = vor.u32 %v1262_v17, %v1167_v18 }
  0x2c   : > { %567 = vmatmul.bf16.vlgmr.msra.gmra.mxu2 %v1118_v20  ;;  %v1248_v20 = vld [vmem:[%s1351_s27 + $0x74] sm:$0xf] }
  0x2d   : > { %v1114_v22 = vor.u32 %v1248_v20, %v1111_v21 }
  0x31   : > { %1217 = vmatmul.msk.bf16.gmra.mxu1 %vm470_vm0, %v1074_v26  ;;  %v1263_v26 = vld [vmem:[%s1351_s27 + $0xe4] sm:$0xf0] }
  0x32   : > { %v1166_v28 = vor.u32 %v1263_v26, %v1165_v25 }
  0x34   : > { %1226 = vmatmul.msk.bf16.gmra.mxu3 %vm470_vm0, %v1146_v47 }
  0x3b   : > { %532 = vmatmul.bf16.gmra.mxu0 %v1062_v31  ;;  %v1178_v31 = vor.u32 %v1264_v29, %v1175_v30 }
  0x3c   : > { %572 = vmatmul.bf16.gmra.mxu2 %v1126_v32  ;;  %v1250_v32 = vld [vmem:[%s1351_s27 + $0x84] sm:$0xf] }
  0x3d   : > { %v1122_v34 = vor.u32 %v1250_v32, %v1119_v33 }
  0x41   : > { %1218 = vmatmul.msk.bf16.gmra.mxu1 %vm470_vm0, %v1082_v38  ;;  %v1173_v38 = vld [vmem:[%s1351_s27 + $0xf0] sm:$0xf] }
  0x42   : > { %v1174_v41 = vor.u32 %v1265_v39, %v1173_v38 }
  0x44   : > { %1227 = vmatmul.msk.bf16.gmra.mxu3 %vm470_vm0, %v1154_v59 }
  0x4b   : > { %537 = vmatmul.bf16.gmra.mxu0 %v1070_v43 }
  0x4c   : > { %577 = vmatmul.bf16.gmra.mxu2 %v1134_v44 }
  0x51   : > { %1219 = vmatmul.msk.bf16.gmra.mxu1 %vm470_vm0, %v1090_v50 }
  0x54   : > { %1228 = vmatmul.msk.bf16.gmra.mxu3 %vm470_vm0, %v1162_v7 }
  0x5b   : > { %542 = vmatmul.bf16.gmra.mxu0 %v1078_v55 }
  0x5c   : > { %582 = vmatmul.bf16.gmra.mxu2 %v1142_v56 }
  0x61   : > { %1220 = vmatmul.msk.bf16.gmra.mxu1 %vm470_vm0, %v1098_v62 }
  0x64   : > { %1229 = vmatmul.msk.bf16.gmra.mxu3 %vm470_vm0, %v1170_v19 }
  0x6b   : > { %547 = vmatmul.bf16.gmra.mxu0 %v1086_v3 }
  0x6c   : > { %587 = vmatmul.bf16.gmra.mxu2 %v1150_v4 }
  0x71   : > { %1221 = vmatmul.msk.bf16.gmra.mxu1 %vm470_vm0, %v1106_v10 }
  0x74   : > { %1230 = vmatmul.msk.bf16.gmra.mxu3 %vm470_vm0, %v1178_v31 }
  0x7b   : > { %552 = vmatmul.bf16.gmra.mxu0 %v1094_v15 }
  0x7c   : > { %592 = vmatmul.bf16.gmra.mxu2 %v1158_v16 }
  0x81   : > { %1222 = vmatmul.msk.bf16.gmra.mxu1 %vm470_vm0, %v1114_v22 }
  0x8b   : > { %557 = vmatmul.bf16.gmra.mxu0 %v1102_v27 }
  0x8c   : > { %597 = vmatmul.bf16.gmra.mxu2 %v1166_v28 }
  0x8e   : > { %v617_v35 = vpop.f32.mrf.mxu1 }
  0x91   : > { %1223 = vmatmul.msk.bf16.gmra.mxu1 %vm470_vm0, %v1122_v34 }
  0x96   : > { %v619_v42 = vpop.f32.mrf.mxu1 }
  0x97   : > { %v662_v53 = vpop.f32.mrf.mxu3 }
  0x9b   : > { %562 = vmatmul.bf16.gmra.mxu0 %v1110_v40 }
  0x9c   : > { %602 = vmatmul.bf16.gmra.mxu2 %v1174_v41 }
  0x9e   : > { %v622_v43 = vpop.f32.mrf.mxu1 }
  0x9f   : > { %v664_v2 = vpop.f32.mrf.mxu3 }
  0xa6   : > { %v624_v46 = vpop.f32.mrf.mxu1 }
  0xa7   : > { %v667_v14 = vpop.f32.mrf.mxu3 }
  0xa8   : > { %v528_v44 = vpop.f32.mrf.mxu0 }
  0xa9   : > { %v618_v45 = vadd.f32 %v617_v35, %v528_v44 }
  0xab   : > { %v697_v47 = vpack.c.bf16 %v618_v45, %v618_v45  ;;  %v833_v50 = vmul.f32 %v618_v45, %v618_v45  ;;  %v762_v54 = vsel %vm470_vm0, %v618_v45, 0.0 }
  0xad   : > { %730 = vst.msk [vmem:[%s1455_s19] sm:$0xf] %vm729_vm1, %v697_v47  ;;  %v865_v59 = vsel %vm470_vm0, %v833_v50, 0.0 }
  0xae   : > { %v627_v52 = vpop.f32.mrf.mxu1 }
  0xaf   : > { %v1459_v48 = vpop.f32.mrf.mxu2  ;;  %v669_v27 = vpop.f32.mrf.mxu3 }
  0xb0   : > { %v530_v49 = vpop.f32.mrf.mxu0 }
  0xb1   : > { %v620_v51 = vadd.f32 %v619_v42, %v530_v49 }
  0xb3   : > { %v698_v55 = vpack.c.bf16 %v620_v51, %v620_v51  ;;  %v763_v56 = vsel %vm470_vm0, %v620_v51, 0.0  ;;  %v834_v57 = vmul.f32 %v620_v51, %v620_v51 }
  0xb4   : > { %v764_v58 = vadd.f32 %v763_v56, %v762_v54 }
  0xb5   : > { %731 = vst.msk [vmem:[%s1455_s19 + $0x4] sm:$0xf] %vm729_vm1, %v698_v55  ;;  %v866_v60 = vsel %vm470_vm0, %v834_v57, 0.0 }
  0xb6   : > { %v867_v61 = vadd.f32 %v866_v60, %v865_v59  ;;  %v629_v1 = vpop.f32.mrf.mxu1 }
  0xb7   : > { %v1467_v62 = vpop.f32.mrf.mxu2  ;;  %v672_v40 = vpop.f32.mrf.mxu3 }
  0xb8   : > { %v533_v63 = vpop.f32.mrf.mxu0 }
  0xb9   : > { %v623_v0 = vadd.f32 %v622_v43, %v533_v63 }
  0xbb   : > { %v699_v3 = vpack.c.bf16 %v623_v0, %v623_v0  ;;  %v765_v4 = vsel %vm470_vm0, %v623_v0, 0.0  ;;  %v835_v5 = vmul.f32 %v623_v0, %v623_v0 }
  0xbc   : > { %v766_v6 = vadd.f32 %v765_v4, %v764_v58 }
  0xbd   : > { %732 = vst.msk [vmem:[%s1455_s19 + $0x8] sm:$0xf] %vm729_vm1, %v699_v3  ;;  %v868_v7 = vsel %vm470_vm0, %v835_v5, 0.0 }
  0xbe   : > { %v869_v8 = vadd.f32 %v868_v7, %v867_v61  ;;  %v632_v13 = vpop.f32.mrf.mxu1 }
  0xbf   : > { %v573_v9 = vpop.f32.mrf.mxu2  ;;  %v674_v49 = vpop.f32.mrf.mxu3 }
  0xc0   : > { %v535_v10 = vpop.f32.mrf.mxu0  ;;  %v1473_v11 = vadd.f32 %v662_v53, %v573_v9 }
  0xc1   : > { %v625_v12 = vadd.f32 %v624_v46, %v535_v10 }
  0xc2   : > { %v715_v15 = vpack.c.bf16 %v1473_v11, %v1473_v11 }
  0xc3   : > { %v700_v16 = vpack.c.bf16 %v625_v12, %v625_v12  ;;  %v767_v17 = vsel %vm470_vm0, %v625_v12, 0.0  ;;  %v836_v18 = vmul.f32 %v625_v12, %v625_v12 }
  0xc4   : > { %v768_v19 = vadd.f32 %v767_v17, %v766_v6  ;;  %748 = vst.msk [vmem:[%s1455_s19 + $0x48] sm:$0xf] %vm729_vm1, %v715_v15 }
  0xc5   : > { %733 = vst.msk [vmem:[%s1455_s19 + $0xc] sm:$0xf] %vm729_vm1, %v700_v16  ;;  %v870_v20 = vsel %vm470_vm0, %v836_v18, 0.0 }
  0xc6   : > { %v871_v21 = vadd.f32 %v870_v20, %v869_v8  ;;  %v634_v26 = vpop.f32.mrf.mxu1 }
  0xc7   : > { %v575_v22 = vpop.f32.mrf.mxu2  ;;  %v677_v57 = vpop.f32.mrf.mxu3 }
  0xc8   : > { %v538_v23 = vpop.f32.mrf.mxu0  ;;  %v1483_v24 = vadd.f32 %v664_v2, %v575_v22 }
  0xc9   : > { %v628_v25 = vadd.f32 %v627_v52, %v538_v23 }
  0xca   : > { %v716_v28 = vpack.c.bf16 %v1483_v24, %v1483_v24 }
  0xcb   : > { %v701_v29 = vpack.c.bf16 %v628_v25, %v628_v25  ;;  %v769_v30 = vsel %vm470_vm0, %v628_v25, 0.0  ;;  %v837_v31 = vmul.f32 %v628_v25, %v628_v25 }
  0xcc   : > { %v1488_v32 = vadd.f32 %v769_v30, %v768_v19  ;;  %749 = vst.msk [vmem:[%s1455_s19 + $0x4c] sm:$0xf] %vm729_vm1, %v716_v28 }
  0xcd   : > { %734 = vst.msk [vmem:[%s1455_s19 + $0x10] sm:$0xf] %vm729_vm1, %v701_v29  ;;  %v872_v33 = vsel %vm470_vm0, %v837_v31, 0.0 }
  0xce   : > { %v1495_v34 = vadd.f32 %v872_v33, %v871_v21  ;;  %v637_v39 = vpop.f32.mrf.mxu1 }
  0xcf   : > { %v578_v35 = vpop.f32.mrf.mxu2  ;;  %v679_v2 = vpop.f32.mrf.mxu3 }
  0xd0   : > { %v540_v36 = vpop.f32.mrf.mxu0  ;;  %v1497_v37 = vadd.f32 %v667_v14, %v578_v35 }
  0xd1   : > { %v1499_v38 = vadd.f32 %v629_v1, %v540_v36 }
  0xd2   : > { %v717_v41 = vpack.c.bf16 %v1497_v37, %v1497_v37 }
  0xd3   : > { %v702_v42 = vpack.c.bf16 %v1499_v38, %v1499_v38 }
  0xd4   : > { %750 = vst.msk [vmem:[%s1455_s19 + $0x50] sm:$0xf] %vm729_vm1, %v717_v41  ;;  %v838_v41 = vmul.f32 %v1499_v38, %v1499_v38 }
  0xd5   : > { %735 = vst.msk [vmem:[%s1455_s19 + $0x14] sm:$0xf] %vm729_vm1, %v702_v42 }
  0xd6   : > { %v639_v47 = vpop.f32.mrf.mxu1 }
  0xd7   : > { %v580_v43 = vpop.f32.mrf.mxu2 }
  0xd8   : > { %v543_v44 = vpop.f32.mrf.mxu0  ;;  %v1509_v45 = vadd.f32 %v669_v27, %v580_v43  ;;  %v771_v43 = vsel %vm470_vm0, %v1499_v38, 0.0 }
  0xd9   : > { %v1511_v46 = vadd.f32 %v632_v13, %v543_v44  ;;  %v682_v13 = vpop.f32.mrf.mxu3 }
  0xda   : > { %v718_v50 = vpack.c.bf16 %v1509_v45, %v1509_v45 }
  0xdb   : > { %v703_v51 = vpack.c.bf16 %v1511_v46, %v1511_v46  ;;  %v839_v44 = vmul.f32 %v1511_v46, %v1511_v46 }
  0xdc   : > { %751 = vst.msk [vmem:[%s1455_s19 + $0x54] sm:$0xf] %vm729_vm1, %v718_v50 }
  0xdd   : > { %736 = vst.msk [vmem:[%s1455_s19 + $0x18] sm:$0xf] %vm729_vm1, %v703_v51  ;;  %v876_v38 = vsel %vm470_vm0, %v839_v44, 0.0 }
  0xde   : > { %v642_v56 = vpop.f32.mrf.mxu1 }
  0xdf   : > { %v583_v52 = vpop.f32.mrf.mxu2 }
  0xe0   : > { %v545_v53 = vpop.f32.mrf.mxu0  ;;  %v1521_v54 = vadd.f32 %v672_v40, %v583_v52  ;;  %v772_v52 = vadd.f32 %v771_v43, %v1488_v32 }
  0xe1   : > { %v1523_v55 = vadd.f32 %v634_v26, %v545_v53  ;;  %v684_v21 = vpop.f32.mrf.mxu3 }
  0xe2   : > { %v719_v58 = vpack.c.bf16 %v1521_v54, %v1521_v54 }
  0xe3   : > { %v704_v59 = vpack.c.bf16 %v1523_v55, %v1523_v55  ;;  %v840_v50 = vmul.f32 %v1523_v55, %v1523_v55 }
  0xe4   : > { %752 = vst.msk [vmem:[%s1455_s19 + $0x58] sm:$0xf] %vm729_vm1, %v719_v58 }
  0xe5   : > { %737 = vst.msk [vmem:[%s1455_s19 + $0x1c] sm:$0xf] %vm729_vm1, %v704_v59 }
  0xe6   : > { %v644_v1 = vpop.f32.mrf.mxu1 }
  0xe7   : > { %v585_v60 = vpop.f32.mrf.mxu2 }
  0xe8   : > { %v548_v61 = vpop.f32.mrf.mxu0  ;;  %v1533_v63 = vadd.f32 %v674_v49, %v585_v60  ;;  %v773_v49 = vsel %vm470_vm0, %v1511_v46, 0.0 }
  0xe9   : > { %v1535_v0 = vadd.f32 %v637_v39, %v548_v61  ;;  %v687_v31 = vpop.f32.mrf.mxu3 }
  0xea   : > { %v720_v3 = vpack.c.bf16 %v1533_v63, %v1533_v63 }
  0xeb   : > { %v705_v4 = vpack.c.bf16 %v1535_v0, %v1535_v0  ;;  %v841_v58 = vmul.f32 %v1535_v0, %v1535_v0 }
  0xec   : > { %753 = vst.msk [vmem:[%s1455_s19 + $0x5c] sm:$0xf] %vm729_vm1, %v720_v3  ;;  %v777_v3 = vsel %vm470_vm0, %v1535_v0, 0.0 }
  0xed   : > { %738 = vst.msk [vmem:[%s1455_s19 + $0x20] sm:$0xf] %vm729_vm1, %v705_v4 }
  0xee   : > { %v647_v9 = vpop.f32.mrf.mxu1 }
  0xef   : > { %v588_v5 = vpop.f32.mrf.mxu2 }
  0xf0   : > { %v550_v6 = vpop.f32.mrf.mxu0  ;;  %v1545_v7 = vadd.f32 %v677_v57, %v588_v5  ;;  %v775_v57 = vsel %vm470_vm0, %v1523_v55, 0.0  ;;  %v878_v55 = vsel %vm470_vm0, %v840_v50, 0.0 }
  0xf1   : > { %v1547_v8 = vadd.f32 %v639_v47, %v550_v6  ;;  %v874_v47 = vsel %vm470_vm0, %v838_v41, 0.0  ;;  %v689_v60 = vpop.f32.mrf.mxu3 }
  0xf2   : > { %v721_v10 = vpack.c.bf16 %v1545_v7, %v1545_v7  ;;  %v875_v61 = vadd.f32 %v874_v47, %v1495_v34 }
  0xf3   : > { %v706_v12 = vpack.c.bf16 %v1547_v8, %v1547_v8  ;;  %v842_v4 = vmul.f32 %v1547_v8, %v1547_v8 }
  0xf4   : > { %754 = vst.msk [vmem:[%s1455_s19 + $0x60] sm:$0xf] %vm729_vm1, %v721_v10  ;;  %v877_v6 = vadd.f32 %v876_v38, %v875_v61  ;;  %v779_v10 = vsel %vm470_vm0, %v1547_v8, 0.0 }
  0xf5   : > { %739 = vst.msk [vmem:[%s1455_s19 + $0x24] sm:$0xf] %vm729_vm1, %v706_v12 }
  0xf6   : > { %v649_v18 = vpop.f32.mrf.mxu1  ;;  %v879_v0 = vadd.f32 %v878_v55, %v877_v6 }
  0xf7   : > { %v590_v14 = vpop.f32.mrf.mxu2 }
  0xf8   : > { %v553_v15 = vpop.f32.mrf.mxu0  ;;  %v1557_v16 = vadd.f32 %v679_v2, %v590_v14  ;;  %v882_v14 = vsel %vm470_vm0, %v842_v4, 0.0 }
  0xf9   : > { %v643_v17 = vadd.f32 %v642_v56, %v553_v15 }
  0xfa   : > { %v722_v19 = vpack.c.bf16 %v1557_v16, %v1557_v16 }
  0xfb   : > { %v707_v20 = vpack.c.bf16 %v643_v17, %v643_v17  ;;  %v843_v12 = vmul.f32 %v643_v17, %v643_v17  ;;  %v781_v15 = vsel %vm470_vm0, %v643_v17, 0.0 }
  0xfc   : > { %755 = vst.msk [vmem:[%s1455_s19 + $0x64] sm:$0xf] %vm729_vm1, %v722_v19 }
  0xfd   : > { %740 = vst.msk [vmem:[%s1455_s19 + $0x28] sm:$0xf] %vm729_vm1, %v707_v20  ;;  %v884_v8 = vsel %vm470_vm0, %v843_v12, 0.0 }
  0xfe   : > { %v652_v27 = vpop.f32.mrf.mxu1 }
  0xff   : > { %v593_v22 = vpop.f32.mrf.mxu2 }
 0x100   : > { %v555_v23 = vpop.f32.mrf.mxu0  ;;  %v1565_v25 = vadd.f32 %v682_v13, %v593_v22 }
 0x101   : > { %v645_v26 = vadd.f32 %v644_v1, %v555_v23  ;;  %v774_v1 = vadd.f32 %v773_v49, %v772_v52 }
 0x102   : > { %v723_v28 = vpack.c.bf16 %v1565_v25, %v1565_v25 }
 0x103   : > { %v708_v29 = vpack.c.bf16 %v645_v26, %v645_v26 }
 0x104   : > { %756 = vst.msk [vmem:[%s1455_s19 + $0x68] sm:$0xf] %vm729_vm1, %v723_v28  ;;  %v783_v28 = vsel %vm470_vm0, %v645_v26, 0.0 }
 0x105   : > { %741 = vst.msk [vmem:[%s1455_s19 + $0x2c] sm:$0xf] %vm729_vm1, %v708_v29 }
 0x106   : > { %v1575_v39 = vpop.f32.mrf.mxu1 }
 0x107   : > { %v595_v30 = vpop.f32.mrf.mxu2 }
 0x108   : > { %v558_v33 = vpop.f32.mrf.mxu0  ;;  %v1573_v35 = vadd.f32 %v684_v21, %v595_v30 }
 0x109   : > { %v648_v36 = vadd.f32 %v647_v9, %v558_v33  ;;  %v776_v9 = vadd.f32 %v775_v57, %v774_v1 }
 0x10a   : > { %v724_v40 = vpack.c.bf16 %v1573_v35, %v1573_v35 }
 0x10b   : > { %v709_v42 = vpack.c.bf16 %v648_v36, %v648_v36  ;;  %v778_v13 = vadd.f32 %v777_v3, %v776_v9  ;;  %v845_v29 = vmul.f32 %v648_v36, %v648_v36  ;;  %v785_v43 = vsel %vm470_vm0, %v648_v36, 0.0 }
 0x10c   : > { %757 = vst.msk [vmem:[%s1455_s19 + $0x6c] sm:$0xf] %vm729_vm1, %v724_v40 }
 0x10d   : > { %742 = vst.msk [vmem:[%s1455_s19 + $0x30] sm:$0xf] %vm729_vm1, %v709_v42  ;;  %v780_v21 = vadd.f32 %v779_v10, %v778_v13 }
 0x10e   : > { %v657_v46 = vpop.f32.mrf.mxu1 }
 0x10f   : > { %v598_v51 = vpop.f32.mrf.mxu2  ;;  %v1604_v32 = vadd.f32 %v657_v46, %v1459_v48  ;;  %v880_v48 = vsel %vm470_vm0, %v841_v58, 0.0  ;;  %v782_v40 = vadd.f32 %v781_v15, %v780_v21 }
 0x110   : > { %v560_v53 = vpop.f32.mrf.mxu0  ;;  %v1595_v56 = vadd.f32 %v687_v31, %v598_v51  ;;  %v881_v20 = vadd.f32 %v880_v48, %v879_v0  ;;  %v888_v51 = vsel %vm470_vm0, %v845_v29, 0.0  ;;  %v852_v29 = vmul.f32 %v1483_v24, %v1483_v24 }
 0x111   : > { %v650_v59 = vadd.f32 %v649_v18, %v560_v53  ;;  %v713_v34 = vpack.c.bf16 %v1604_v32, %v1604_v32  ;;  %v844_v18 = vmul.f32 %v645_v26, %v645_v26  ;;  %v692_v26 = vpop.f32.mrf.mxu3  ;;  %v784_v50 = vadd.f32 %v783_v28, %v782_v40 }
 0x112   : > { %v725_v2 = vpack.c.bf16 %v1595_v56, %v1595_v56  ;;  %v883_v33 = vadd.f32 %v882_v14, %v881_v20  ;;  %v793_v12 = vsel %vm470_vm0, %v1604_v32, 0.0  ;;  %v797_v28 = vsel %vm470_vm0, %v1473_v11, 0.0 }
 0x113   : > { %v710_v5 = vpack.c.bf16 %v650_v59, %v650_v59  ;;  %746 = vst.msk [vmem:[%s1455_s19 + $0x40] sm:$0xf] %vm729_vm1, %v713_v34  ;;  %v886_v42 = vsel %vm470_vm0, %v844_v18, 0.0  ;;  %v846_v44 = vmul.f32 %v650_v59, %v650_v59  ;;  %v786_v38 = vadd.f32 %v785_v43, %v784_v50 }
 0x114   : > { %758 = vst.msk [vmem:[%s1455_s19 + $0x70] sm:$0xf] %vm729_vm1, %v725_v2  ;;  %v885_v49 = vadd.f32 %v884_v8, %v883_v33  ;;  %v851_v18 = vmul.f32 %v1473_v11, %v1473_v11 }
 0x115   : > { %743 = vst.msk [vmem:[%s1455_s19 + $0x34] sm:$0xf] %vm729_vm1, %v710_v5  ;;  %v890_v36 = vsel %vm470_vm0, %v846_v44, 0.0  ;;  %v849_v5 = vmul.f32 %v1604_v32, %v1604_v32  ;;  %v902_v44 = vsel %vm470_vm0, %v852_v29, 0.0 }
 0x116   : > { %v659_v31 = vpop.f32.mrf.mxu1  ;;  %v887_v53 = vadd.f32 %v886_v42, %v885_v49  ;;  %v853_v42 = vmul.f32 %v1497_v37, %v1497_v37 }
 0x117   : > { %v600_v19 = vpop.f32.mrf.mxu2  ;;  %v660_v17 = vadd.f32 %v659_v31, %v1467_v62  ;;  %v787_v62 = vsel %vm470_vm0, %v650_v59, 0.0 }
 0x118   : > { %v563_v22 = vpop.f32.mrf.mxu0  ;;  %v1626_v23 = vadd.f32 %v689_v60, %v600_v19  ;;  %v889_v46 = vadd.f32 %v888_v51, %v887_v53  ;;  %v788_v60 = vadd.f32 %v787_v62, %v786_v38  ;;  %v896_v19 = vsel %vm470_vm0, %v849_v5, 0.0 }
 0x119   : > { %v653_v30 = vadd.f32 %v652_v27, %v563_v22  ;;  %v714_v27 = vpack.c.bf16 %v660_v17, %v660_v17  ;;  %v694_v13 = vpop.f32.mrf.mxu3  ;;  %v795_v20 = vsel %vm470_vm0, %v660_v17, 0.0  ;;  %v855_v51 = vmul.f32 %v1521_v54, %v1521_v54 }
 0x11a   : > { %v726_v41 = vpack.c.bf16 %v1626_v23, %v1626_v23  ;;  %v891_v55 = vadd.f32 %v890_v36, %v889_v46  ;;  %v856_v38 = vmul.f32 %v1533_v63, %v1533_v63  ;;  %v857_v46 = vmul.f32 %v1545_v7, %v1545_v7 }
 0x11b   : > { %v711_v47 = vpack.c.bf16 %v653_v30, %v653_v30  ;;  %v847_v52 = vmul.f32 %v653_v30, %v653_v30  ;;  %747 = vst.msk [vmem:[%s1455_s19 + $0x44] sm:$0xf] %vm729_vm1, %v714_v27  ;;  %v789_v57 = vsel %vm470_vm0, %v653_v30, 0.0  ;;  %v904_v27 = vsel %vm470_vm0, %v853_v42, 0.0 }
 0x11c   : > { %759 = vst.msk [vmem:[%s1455_s19 + $0x74] sm:$0xf] %vm729_vm1, %v726_v41  ;;  %v790_v3 = vadd.f32 %v789_v57, %v788_v60  ;;  %v799_v41 = vsel %vm470_vm0, %v1483_v24, 0.0  ;;  %v803_v24 = vsel %vm470_vm0, %v1509_v45, 0.0  ;;  %v859_v5 = vmul.f32 %v1565_v25, %v1565_v25 }
 0x11d   : > { %744 = vst.msk [vmem:[%s1455_s19 + $0x38] sm:$0xf] %vm729_vm1, %v711_v47  ;;  %v892_v59 = vsel %vm470_vm0, %v847_v52, 0.0  ;;  %v801_v47 = vsel %vm470_vm0, %v1497_v37, 0.0  ;;  %v805_v37 = vsel %vm470_vm0, %v1521_v54, 0.0  ;;  %v809_v54 = vsel %vm470_vm0, %v1545_v7, 0.0 }
 0x11e   : > { %v893_v48 = vadd.f32 %v892_v59, %v891_v55  ;;  %v910_v59 = vsel %vm470_vm0, %v856_v38, 0.0  ;;  %v813_v7 = vsel %vm470_vm0, %v1565_v25, 0.0  ;;  %v817_v25 = vsel %vm470_vm0, %v1595_v56, 0.0 }
 0x11f   : > { %v603_v58 = vpop.f32.mrf.mxu2 }
 0x120   : > { %v565_v61 = vpop.f32.mrf.mxu0  ;;  %v1645_v1 = vadd.f32 %v692_v26, %v603_v58  ;;  %v854_v26 = vmul.f32 %v1509_v45, %v1509_v45  ;;  %v908_v58 = vsel %vm470_vm0, %v855_v51, 0.0  ;;  %v807_v45 = vsel %vm470_vm0, %v1533_v63, 0.0 }
 0x121   : > { %v655_v2 = vadd.f32 %v1575_v39, %v565_v61  ;;  %v850_v39 = vmul.f32 %v660_v17, %v660_v17  ;;  %v900_v17 = vsel %vm470_vm0, %v851_v18, 0.0  ;;  %v811_v63 = vsel %vm470_vm0, %v1557_v16, 0.0 }
 0x122   : > { %v727_v4 = vpack.c.bf16 %v1645_v1, %v1645_v1  ;;  %v906_v53 = vsel %vm470_vm0, %v854_v26, 0.0  ;;  %v862_v18 = vmul.f32 %v1626_v23, %v1626_v23 }
 0x123   : > { %v712_v6 = vpack.c.bf16 %v655_v2, %v655_v2  ;;  %v791_v9 = vsel %vm470_vm0, %v655_v2, 0.0  ;;  %v848_v34 = vmul.f32 %v655_v2, %v655_v2  ;;  %v898_v30 = vsel %vm470_vm0, %v850_v39, 0.0 }
 0x124   : > { %v792_v10 = vadd.f32 %v791_v9, %v790_v3  ;;  %760 = vst.msk [vmem:[%s1455_s19 + $0x78] sm:$0xf] %vm729_vm1, %v727_v4  ;;  %v858_v2 = vmul.f32 %v1557_v16, %v1557_v16  ;;  %v912_v4 = vsel %vm470_vm0, %v857_v46, 0.0  ;;  %v916_v39 = vsel %vm470_vm0, %v859_v5, 0.0 }
 0x125   : > { %745 = vst.msk [vmem:[%s1455_s19 + $0x3c] sm:$0xf] %vm729_vm1, %v712_v6  ;;  %v894_v0 = vsel %vm470_vm0, %v848_v34, 0.0  ;;  %v815_v16 = vsel %vm470_vm0, %v1573_v35, 0.0  ;;  %v922_v29 = vsel %vm470_vm0, %v862_v18, 0.0 }
 0x126   : > { %v794_v14 = vadd.f32 %v793_v12, %v792_v10  ;;  %v895_v15 = vadd.f32 %v894_v0, %v893_v48  ;;  %v914_v34 = vsel %vm470_vm0, %v858_v2, 0.0  ;;  %v860_v48 = vmul.f32 %v1573_v35, %v1573_v35 }
 0x127   : > { %v605_v21 = vpop.f32.mrf.mxu2  ;;  %v861_v0 = vmul.f32 %v1595_v56, %v1595_v56  ;;  %v819_v35 = vsel %vm470_vm0, %v1626_v23, 0.0  ;;  %v821_v56 = vsel %vm470_vm0, %v1645_v1, 0.0 }
 0x128   : > { %v796_v22 = vadd.f32 %v795_v20, %v794_v14  ;;  %v897_v8 = vadd.f32 %v896_v19, %v895_v15  ;;  %v1665_v32 = vadd.f32 %v694_v13, %v605_v21  ;;  %v918_v15 = vsel %vm470_vm0, %v860_v48, 0.0 }
 0x129   : > { %v920_v21 = vsel %vm470_vm0, %v861_v0, 0.0 }
 0x12a   : > { %v798_v31 = vadd.f32 %v797_v28, %v796_v22  ;;  %v899_v33 = vadd.f32 %v898_v30, %v897_v8  ;;  %v728_v40 = vpack.c.bf16 %v1665_v32, %v1665_v32  ;;  %v863_v22 = vmul.f32 %v1645_v1, %v1645_v1 }
 0x12b   : > { %v864_v30 = vmul.f32 %v1665_v32, %v1665_v32  ;;  %v823_v23 = vsel %vm470_vm0, %v1665_v32, 0.0 }
 0x12c   : > { %v800_v43 = vadd.f32 %v799_v41, %v798_v31  ;;  %v901_v11 = vadd.f32 %v900_v17, %v899_v33  ;;  %761 = vst.msk [vmem:[%s1455_s19 + $0x7c] sm:$0xf] %vm729_vm1, %v728_v40  ;;  %v924_v40 = vsel %vm470_vm0, %v863_v22, 0.0 }
 0x12d   : > { %v926_v42 = vsel %vm470_vm0, %v864_v30, 0.0 }
 0x12e   : > { %v802_v49 = vadd.f32 %v801_v47, %v800_v43  ;;  %v903_v50 = vadd.f32 %v902_v44, %v901_v11 }
 0x130   : > { %v804_v62 = vadd.f32 %v803_v24, %v802_v49  ;;  %v905_v52 = vadd.f32 %v904_v27, %v903_v50 }
 0x132   : > { %v907_v36 = vadd.f32 %v906_v53, %v905_v52  ;;  %v806_v57 = vadd.f32 %v805_v37, %v804_v62 }
 0x134   : > { %v808_v60 = vadd.f32 %v807_v45, %v806_v57  ;;  %v909_v61 = vadd.f32 %v908_v58, %v907_v36 }
 0x136   : > { %v810_v55 = vadd.f32 %v809_v54, %v808_v60  ;;  %v911_v3 = vadd.f32 %v910_v59, %v909_v61 }
 0x138   : > { %v812_v6 = vadd.f32 %v811_v63, %v810_v55  ;;  %v913_v9 = vadd.f32 %v912_v4, %v911_v3 }
 0x13a   : > { %v814_v10 = vadd.f32 %v813_v7, %v812_v6  ;;  %v915_v12 = vadd.f32 %v914_v34, %v913_v9 }
 0x13c   : > { %v816_v13 = vadd.f32 %v815_v16, %v814_v10  ;;  %v917_v14 = vadd.f32 %v916_v39, %v915_v12 }
 0x13e   : > { %v818_v19 = vadd.f32 %v817_v25, %v816_v13  ;;  %v919_v20 = vadd.f32 %v918_v15, %v917_v14 }
 0x140   : > { %v921_v8 = vadd.f32 %v920_v21, %v919_v20  ;;  %v820_v28 = vadd.f32 %v819_v35, %v818_v19 }
 0x142   : > { %v923_v31 = vadd.f32 %v922_v29, %v921_v8  ;;  %v822_v33 = vadd.f32 %v821_v56, %v820_v28 }
 0x144   : > { %v925_v17 = vadd.f32 %v924_v40, %v923_v31  ;;  %v824_v41 = vadd.f32 %v823_v23, %v822_v33 }
 0x146   : > { %v825_v43 = vrot.slane %v824_v41, 4  ;;  %v927_v11 = vadd.f32 %v926_v42, %v925_v17 }
 0x148   : > { %v826_v44 = vadd.f32 %v825_v43, %v824_v41  ;;  %v928_v1 = vrot.slane %v927_v11, 4 }
 0x14a   : > { %v827_v47 = vrot.slane %v826_v44, 2  ;;  %v929_v26 = vadd.f32 %v928_v1, %v927_v11 }
 0x14c   : > { %v828_v49 = vadd.f32 %v827_v47, %v826_v44  ;;  %v930_v50 = vrot.slane %v929_v26, 2 }
 0x14e   : > { %v829_v27 = vrot.slane %v828_v49, 1  ;;  %v931_v24 = vadd.f32 %v930_v50, %v929_v26 }
 0x150   : > { %v830_v32 = vadd.f32 %v829_v27, %v828_v49  ;;  %v932_v51 = vrot.slane %v931_v24, 1 }
 0x152   : > { %832 = vst.msk [vmem:[%s217_s22] sm:$0x1] %vm831_vm2, %v830_v32  ;;  %v933_v62 = vadd.f32 %v932_v51, %v931_v24 }
 0x154   : > { %934 = vst.msk [vmem:[%s220_s25] sm:$0x1] %vm831_vm2, %v933_v62 }
 0x155 PF: > { %s15_s15 = sadd.s32 1, %s1298_s15  }
 0x156   : > { %p12_p5 = scmp.ge.s32.totalorder %s15_s15, 4  }
 0x158   :  { %14 = sbr.rel (!%p12_p5) target bundleno = 1 (0x1), region = 82 }

// kernel: unet_reg_forward.27
= control target key start
LH: loop header
LB: loop body
LE: loop exit
PB: predicated region body
PF: predicated region fallthrough
CT: control target
= control target key end

     0   :  { %vm175_vm0 = vcmask 130048   ;;  %vm314_vm1 = vcmask 257024   ;;  %vm331_vm2 = vcmask 261120   ;;  %vm369_vm3 = vcmask 253952   ;;  %s875_s1 = inlined_call_operand.vmem [shape: bf16[144,32], index: 1, kind: input, shape index: {}]   ;;  %s876_s0 = inlined_call_operand.vmem [shape: bf16[128,144], index: 0, kind: input, shape index: {}]   ;;  %s877_s2 = inlined_call_operand.vmem [shape: bf16[128,32], index: 2, kind: output, shape index: {0}]   ;;  %s878_s3 = inlined_call_operand.vmem [shape: f32[1,1,32], index: 3, kind: output, shape index: {1}]   ;;  %s879_s4 = inlined_call_operand.vmem [shape: f32[1,1,32], index: 4, kind: output, shape index: {2}]  }
   0x1   :  { %v568_v0 = vld [vmem:[%s875_s1 + $0x38] sm:$0xff]  ;;  %v569_v1 = vld [vmem:[%s875_s1 + $0x40] sm:$0xff]  ;;  %v441_v3 = vld [vmem:[%s876_s0 + $0x8] sm:$0xf0] }
   0x2   :  { %v545_v2 = vld [vmem:[%s876_s0 + $0x4] sm:$0xf]  ;;  %200 = vmatpush.bf16.msra.mxu0 %v568_v0  ;;  %256 = vmatpush.bf16.msra.mxu1 %v569_v1  ;;  %v567_v5 = vld [vmem:[%s875_s1 + $0x30] sm:$0xff]  ;;  %v566_v6 = vld [vmem:[%s875_s1 + $0x28] sm:$0xff] }
   0x3   :  { %v444_v4 = vor.u32 %v545_v2, %v441_v3  ;;  %570 = vmatpush.bf16.msra.mxu2 %v568_v0  ;;  %578 = vmatpush.bf16.msra.mxu3 %v569_v1  ;;  %v565_v7 = vld [vmem:[%s875_s1 + $0x20] sm:$0xff]  ;;  %v564_v8 = vld [vmem:[%s875_s1 + $0x18] sm:$0xff]  ;;  %v547_v9 = vld [vmem:[%s876_s0 + $0x14] sm:$0xf] }
   0x4   :  { %v449_v10 = vld [vmem:[%s876_s0 + $0x18] sm:$0xf0]  ;;  %v555_v11 = vld [vmem:[%s876_s0 + $0x54] sm:$0xf]  ;;  %v562_v16 = vld [vmem:[%s875_s1 + $0x8] sm:$0xff] }
   0x5   :  { %537 = vmatmul.msk.bf16.vlgmr.msra.gmra.mxu1 %vm175_vm0, %v444_v4  ;;  %v452_v12 = vor.u32 %v547_v9, %v449_v10  ;;  %v481_v13 = vld [vmem:[%s876_s0 + $0x58] sm:$0xf0]  ;;  %v563_v14 = vld [vmem:[%s875_s1 + $0x10] sm:$0xff]  ;;  %v561_v17 = vld [vmem:[%s875_s1] sm:$0xff] }
   0x6   :  { %201 = vmatpush.bf16.msra.mxu0 %v567_v5  ;;  %v484_v15 = vor.u32 %v555_v11, %v481_v13  ;;  %v439_v18 = vld [vmem:[%s876_s0] sm:$0xf]  ;;  %v546_v19 = vld [vmem:[%s876_s0 + $0x4] sm:$0xf0]  ;;  %v549_v24 = vld [vmem:[%s876_s0 + $0x24] sm:$0xf] }
   0x7   :  { %571 = vmatpush.bf16.msra.mxu2 %v567_v5  ;;  %v471_v20 = vld [vmem:[%s876_s0 + $0x40] sm:$0xf]  ;;  %v554_v21 = vld [vmem:[%s876_s0 + $0x44] sm:$0xf0]  ;;  %v440_v22 = vor.u32 %v546_v19, %v439_v18  ;;  %v457_v25 = vld [vmem:[%s876_s0 + $0x28] sm:$0xf0] }
   0x8   :  { %542 = vmatmul.msk.bf16.vlgmr.msra.gmra.mxu3 %vm175_vm0, %v484_v15  ;;  %v472_v23 = vor.u32 %v554_v21, %v471_v20  ;;  %v557_v26 = vld [vmem:[%s876_s0 + $0x64] sm:$0xf]  ;;  %v460_v27 = vor.u32 %v549_v24, %v457_v25  ;;  %v489_v28 = vld [vmem:[%s876_s0 + $0x68] sm:$0xf0]  ;;  %v447_v30 = vld [vmem:[%s876_s0 + $0x10] sm:$0xf] }
   0x9   :  { %v492_v29 = vor.u32 %v557_v26, %v489_v28  ;;  %v548_v31 = vld [vmem:[%s876_s0 + $0x14] sm:$0xf0]  ;;  %v479_v32 = vld [vmem:[%s876_s0 + $0x50] sm:$0xf]  ;;  %v551_v36 = vld [vmem:[%s876_s0 + $0x34] sm:$0xf] }
   0xa   :  { %202 = vmatpush.bf16.msra.mxu0 %v566_v6  ;;  %v556_v33 = vld [vmem:[%s876_s0 + $0x54] sm:$0xf0]  ;;  %v448_v34 = vor.u32 %v548_v31, %v447_v30  ;;  %v465_v37 = vld [vmem:[%s876_s0 + $0x38] sm:$0xf0]  ;;  %v559_v38 = vld [vmem:[%s876_s0 + $0x74] sm:$0xf] }
   0xb   :  { %572 = vmatpush.bf16.msra.mxu2 %v566_v6  ;;  %v480_v35 = vor.u32 %v556_v33, %v479_v32  ;;  %v468_v39 = vor.u32 %v551_v36, %v465_v37  ;;  %v497_v40 = vld [vmem:[%s876_s0 + $0x78] sm:$0xf0]  ;;  %v455_v42 = vld [vmem:[%s876_s0 + $0x20] sm:$0xf]  ;;  %v550_v43 = vld [vmem:[%s876_s0 + $0x24] sm:$0xf0] }
   0xc   :  { %v500_v41 = vor.u32 %v559_v38, %v497_v40  ;;  %v487_v44 = vld [vmem:[%s876_s0 + $0x60] sm:$0xf]  ;;  %v558_v45 = vld [vmem:[%s876_s0 + $0x64] sm:$0xf0]  ;;  %v456_v46 = vor.u32 %v550_v43, %v455_v42  ;;  %v553_v48 = vld [vmem:[%s876_s0 + $0x44] sm:$0xf] }
   0xd   :  { %v488_v47 = vor.u32 %v558_v45, %v487_v44  ;;  %v473_v49 = vld [vmem:[%s876_s0 + $0x48] sm:$0xf0]  ;;  %v463_v51 = vld [vmem:[%s876_s0 + $0x30] sm:$0xf]  ;;  %v552_v52 = vld [vmem:[%s876_s0 + $0x34] sm:$0xf0] }
   0xe   :  { %203 = vmatpush.bf16.msra.mxu0 %v565_v7  ;;  %v476_v50 = vor.u32 %v553_v48, %v473_v49  ;;  %v495_v53 = vld [vmem:[%s876_s0 + $0x70] sm:$0xf]  ;;  %v560_v54 = vld [vmem:[%s876_s0 + $0x74] sm:$0xf0]  ;;  %v464_v55 = vor.u32 %v552_v52, %v463_v51 }
   0xf   :  { %573 = vmatpush.bf16.msra.mxu2 %v565_v7  ;;  %v496_v56 = vor.u32 %v560_v54, %v495_v53 }
  0x12   :  { %204 = vmatpush.bf16.msra.mxu0 %v564_v8 }
  0x13   :  { %574 = vmatpush.bf16.msra.mxu2 %v564_v8 }
  0x15   :  { %538 = vmatmul.msk.bf16.gmra.mxu1 %vm175_vm0, %v452_v12 }
  0x16   :  { %205 = vmatpush.bf16.msra.mxu0 %v563_v14 }
  0x17   :  { %575 = vmatpush.bf16.msra.mxu2 %v563_v14 }
  0x18   :  { %543 = vmatmul.msk.bf16.gmra.mxu3 %vm175_vm0, %v492_v29 }
  0x1a   :  { %206 = vmatpush.bf16.msra.mxu0 %v562_v16 }
  0x1b   :  { %576 = vmatpush.bf16.msra.mxu2 %v562_v16 }
  0x1e   :  { %207 = vmatpush.bf16.msra.mxu0 %v561_v17 }
  0x1f   :  { %577 = vmatpush.bf16.msra.mxu2 %v561_v17 }
  0x21   :  { %208 = vmatmul.bf16.vlgmr.msra.gmra.mxu0 %v440_v22 }
  0x22   :  { %228 = vmatmul.bf16.vlgmr.msra.gmra.mxu2 %v472_v23 }
  0x25   :  { %539 = vmatmul.msk.bf16.gmra.mxu1 %vm175_vm0, %v460_v27 }
  0x28   :  { %544 = vmatmul.msk.bf16.gmra.mxu3 %vm175_vm0, %v500_v41 }
  0x31   :  { %213 = vmatmul.bf16.gmra.mxu0 %v448_v34 }
  0x32   :  { %233 = vmatmul.bf16.gmra.mxu2 %v480_v35 }
  0x35   :  { %540 = vmatmul.msk.bf16.gmra.mxu1 %vm175_vm0, %v468_v39 }
  0x41   :  { %218 = vmatmul.bf16.gmra.mxu0 %v456_v46 }
  0x42   :  { %238 = vmatmul.bf16.gmra.mxu2 %v488_v47 }
  0x45   :  { %541 = vmatmul.msk.bf16.gmra.mxu1 %vm175_vm0, %v476_v50 }
  0x51   :  { %223 = vmatmul.bf16.gmra.mxu0 %v464_v55 }
  0x52   :  { %243 = vmatmul.bf16.gmra.mxu2 %v496_v56 }
  0x82   :  { %v258_v57 = vpop.f32.mrf.mxu1 }
  0x8a   :  { %v260_v58 = vpop.f32.mrf.mxu1 }
  0x8b   :  { %v283_v5 = vpop.f32.mrf.mxu3 }
  0x92   :  { %v263_v59 = vpop.f32.mrf.mxu1 }
  0x93   :  { %v285_v12 = vpop.f32.mrf.mxu3 }
  0x9a   :  { %v265_v60 = vpop.f32.mrf.mxu1 }
  0x9b   :  { %v288_v21 = vpop.f32.mrf.mxu3 }
  0x9e   :  { %v209_v61 = vpop.f32.mrf.mxu0 }
  0x9f   :  { %v259_v62 = vadd.f32 %v258_v57, %v209_v61 }
  0xa1   :  { %v298_v63 = vpack.c.bf16 %v259_v62, %v259_v62  ;;  %v371_v38 = vmul.f32 %v259_v62, %v259_v62  ;;  %v332_v43 = vsel %vm331_vm2, %v259_v62, 0.0 }
  0xa2   :  { %v268_v0 = vpop.f32.mrf.mxu1 }
  0xa3   :  { %315 = vst.msk [vmem:[%s877_s2] sm:$0xf] %vm314_vm1, %v298_v63  ;;  %v290_v34 = vpop.f32.mrf.mxu3  ;;  %v387_v49 = vsel %vm331_vm2, %v371_v38, 0.0 }
  0xa5   :  { %v229_v1 = vpop.f32.mrf.mxu2 }
  0xa6   :  { %v211_v2 = vpop.f32.mrf.mxu0 }
  0xa7   :  { %v261_v3 = vadd.f32 %v260_v58, %v211_v2 }
  0xa9   :  { %v299_v4 = vpack.c.bf16 %v261_v3, %v261_v3  ;;  %v372_v36 = vmul.f32 %v261_v3, %v261_v3  ;;  %v333_v40 = vsel %vm331_vm2, %v261_v3, 0.0 }
  0xaa   :  { %v270_v6 = vpop.f32.mrf.mxu1  ;;  %v334_v50 = vadd.f32 %v333_v40, %v332_v43 }
  0xab   :  { %316 = vst.msk [vmem:[%s877_s2 + $0x4] sm:$0xf] %vm314_vm1, %v299_v4  ;;  %v388_v44 = vsel %vm331_vm2, %v372_v36, 0.0 }
  0xac   :  { %v389_v57 = vadd.f32 %v388_v44, %v387_v49 }
  0xad   :  { %v231_v7 = vpop.f32.mrf.mxu2 }
  0xae   :  { %v214_v8 = vpop.f32.mrf.mxu0 }
  0xaf   :  { %v264_v9 = vadd.f32 %v263_v59, %v214_v8 }
  0xb1   :  { %v300_v10 = vpack.c.bf16 %v264_v9, %v264_v9  ;;  %v373_v41 = vmul.f32 %v264_v9, %v264_v9  ;;  %v335_v45 = vsel %vm331_vm2, %v264_v9, 0.0 }
  0xb2   :  { %v273_v11 = vpop.f32.mrf.mxu1  ;;  %v336_v58 = vadd.f32 %v335_v45, %v334_v50 }
  0xb3   :  { %317 = vst.msk [vmem:[%s877_s2 + $0x8] sm:$0xf] %vm314_vm1, %v300_v10  ;;  %v390_v53 = vsel %vm331_vm2, %v373_v41, 0.0 }
  0xb5   :  { %v234_v13 = vpop.f32.mrf.mxu2 }
  0xb6   :  { %v216_v14 = vpop.f32.mrf.mxu0  ;;  %v747_v15 = vadd.f32 %v283_v5, %v234_v13 }
  0xb7   :  { %v266_v16 = vadd.f32 %v265_v60, %v216_v14 }
  0xb8   :  { %v308_v17 = vpack.c.bf16 %v747_v15, %v747_v15  ;;  %v381_v36 = vmul.f32 %v747_v15, %v747_v15  ;;  %v351_v43 = vsel %vm331_vm2, %v747_v15, 0.0 }
  0xb9   :  { %v301_v18 = vpack.c.bf16 %v266_v16, %v266_v16  ;;  %v374_v46 = vmul.f32 %v266_v16, %v266_v16  ;;  %v337_v54 = vsel %vm331_vm2, %v266_v16, 0.0 }
  0xba   :  { %325 = vst.msk [vmem:[%s877_s2 + $0x28] sm:$0xf] %vm314_vm1, %v308_v17  ;;  %v755_v19 = vpop.f32.mrf.mxu1  ;;  %v338_v2 = vadd.f32 %v337_v54, %v336_v58  ;;  %v406_v49 = vsel %vm331_vm2, %v381_v36, 0.0 }
  0xbb   :  { %318 = vst.msk [vmem:[%s877_s2 + $0xc] sm:$0xf] %vm314_vm1, %v301_v18  ;;  %v392_v60 = vsel %vm331_vm2, %v374_v46, 0.0 }
  0xbd   :  { %v236_v20 = vpop.f32.mrf.mxu2 }
  0xbe   :  { %v219_v22 = vpop.f32.mrf.mxu0  ;;  %v761_v23 = vadd.f32 %v285_v12, %v236_v20 }
  0xbf   :  { %v269_v24 = vadd.f32 %v268_v0, %v219_v22  ;;  %v293_v0 = vpop.f32.mrf.mxu3 }
  0xc0   :  { %v309_v25 = vpack.c.bf16 %v761_v23, %v761_v23  ;;  %v382_v44 = vmul.f32 %v761_v23, %v761_v23 }
  0xc1   :  { %v302_v26 = vpack.c.bf16 %v269_v24, %v269_v24  ;;  %v375_v55 = vmul.f32 %v269_v24, %v269_v24  ;;  %v339_v61 = vsel %vm331_vm2, %v269_v24, 0.0 }
  0xc2   :  { %326 = vst.msk [vmem:[%s877_s2 + $0x2c] sm:$0xf] %vm314_vm1, %v309_v25  ;;  %v278_v27 = vpop.f32.mrf.mxu1  ;;  %v408_v15 = vsel %vm331_vm2, %v382_v44, 0.0 }
  0xc3   :  { %319 = vst.msk [vmem:[%s877_s2 + $0x10] sm:$0xf] %vm314_vm1, %v302_v26  ;;  %v773_v28 = vadd.f32 %v278_v27, %v229_v1  ;;  %v391_v1 = vadd.f32 %v390_v53, %v389_v57  ;;  %v394_v3 = vsel %vm331_vm2, %v375_v55, 0.0 }
  0xc5   :  { %v306_v29 = vpack.c.bf16 %v773_v28, %v773_v28  ;;  %v239_v30 = vpop.f32.mrf.mxu2  ;;  %v379_v22 = vmul.f32 %v773_v28, %v773_v28 }
  0xc6   :  { %v221_v31 = vpop.f32.mrf.mxu0  ;;  %v777_v32 = vadd.f32 %v288_v21, %v239_v30 }
  0xc7   :  { %323 = vst.msk [vmem:[%s877_s2 + $0x20] sm:$0xf] %vm314_vm1, %v306_v29  ;;  %v271_v33 = vadd.f32 %v270_v6, %v221_v31  ;;  %v393_v6 = vadd.f32 %v392_v60, %v391_v1 }
  0xc8   :  { %v310_v35 = vpack.c.bf16 %v777_v32, %v777_v32  ;;  %v383_v50 = vmul.f32 %v777_v32, %v777_v32  ;;  %v355_v54 = vsel %vm331_vm2, %v777_v32, 0.0 }
  0xc9   :  { %v303_v37 = vpack.c.bf16 %v271_v33, %v271_v33  ;;  %v376_v62 = vmul.f32 %v271_v33, %v271_v33  ;;  %v341_v4 = vsel %vm331_vm2, %v271_v33, 0.0  ;;  %v295_v33 = vpop.f32.mrf.mxu3 }
  0xca   :  { %327 = vst.msk [vmem:[%s877_s2 + $0x30] sm:$0xf] %vm314_vm1, %v310_v35  ;;  %v280_v39 = vpop.f32.mrf.mxu1  ;;  %v410_v57 = vsel %vm331_vm2, %v383_v50, 0.0 }
  0xcb   :  { %320 = vst.msk [vmem:[%s877_s2 + $0x14] sm:$0xf] %vm314_vm1, %v303_v37  ;;  %v281_v42 = vadd.f32 %v280_v39, %v231_v7  ;;  %v340_v7 = vadd.f32 %v339_v61, %v338_v2  ;;  %v396_v8 = vsel %vm331_vm2, %v376_v62, 0.0  ;;  %v402_v37 = vsel %vm331_vm2, %v379_v22, 0.0 }
  0xcd   :  { %v307_v47 = vpack.c.bf16 %v281_v42, %v281_v42  ;;  %v241_v48 = vpop.f32.mrf.mxu2  ;;  %v342_v12 = vadd.f32 %v341_v4, %v340_v7  ;;  %v380_v30 = vmul.f32 %v281_v42, %v281_v42  ;;  %v349_v38 = vsel %vm331_vm2, %v281_v42, 0.0 }
  0xce   :  { %v224_v51 = vpop.f32.mrf.mxu0  ;;  %v798_v52 = vadd.f32 %v290_v34, %v241_v48  ;;  %v353_v42 = vsel %vm331_vm2, %v761_v23, 0.0 }
  0xcf   :  { %324 = vst.msk [vmem:[%s877_s2 + $0x24] sm:$0xf] %vm314_vm1, %v307_v47  ;;  %v274_v56 = vadd.f32 %v273_v11, %v224_v51  ;;  %v395_v11 = vadd.f32 %v394_v3, %v393_v6  ;;  %v404_v45 = vsel %vm331_vm2, %v380_v30, 0.0 }
  0xd0   :  { %v311_v59 = vpack.c.bf16 %v798_v52, %v798_v52  ;;  %v384_v55 = vmul.f32 %v798_v52, %v798_v52  ;;  %v357_v58 = vsel %vm331_vm2, %v798_v52, 0.0 }
  0xd1   :  { %v304_v63 = vpack.c.bf16 %v274_v56, %v274_v56  ;;  %v377_v5 = vmul.f32 %v274_v56, %v274_v56  ;;  %v343_v9 = vsel %vm331_vm2, %v274_v56, 0.0  ;;  %v397_v18 = vadd.f32 %v396_v8, %v395_v11 }
  0xd2   :  { %328 = vst.msk [vmem:[%s877_s2 + $0x34] sm:$0xf] %vm314_vm1, %v311_v59  ;;  %v344_v20 = vadd.f32 %v343_v9, %v342_v12  ;;  %v412_v62 = vsel %vm331_vm2, %v384_v55, 0.0 }
  0xd3   :  { %321 = vst.msk [vmem:[%s877_s2 + $0x18] sm:$0xf] %vm314_vm1, %v304_v63  ;;  %v398_v16 = vsel %vm331_vm2, %v377_v5, 0.0 }
  0xd4   :  { %v399_v27 = vadd.f32 %v398_v16, %v397_v18 }
  0xd5   :  { %v244_v10 = vpop.f32.mrf.mxu2 }
  0xd6   :  { %v226_v13 = vpop.f32.mrf.mxu0  ;;  %v294_v14 = vadd.f32 %v293_v0, %v244_v10 }
  0xd7   :  { %v276_v17 = vadd.f32 %v755_v19, %v226_v13  ;;  %v347_v19 = vsel %vm331_vm2, %v773_v28, 0.0 }
  0xd8   :  { %v312_v21 = vpack.c.bf16 %v294_v14, %v294_v14  ;;  %v385_v59 = vmul.f32 %v294_v14, %v294_v14  ;;  %v359_v63 = vsel %vm331_vm2, %v294_v14, 0.0 }
  0xd9   :  { %v305_v24 = vpack.c.bf16 %v276_v17, %v276_v17  ;;  %v345_v25 = vsel %vm331_vm2, %v276_v17, 0.0  ;;  %v378_v26 = vmul.f32 %v276_v17, %v276_v17 }
  0xda   :  { %v346_v29 = vadd.f32 %v345_v25, %v344_v20  ;;  %329 = vst.msk [vmem:[%s877_s2 + $0x38] sm:$0xf] %vm314_vm1, %v312_v21  ;;  %v414_v2 = vsel %vm331_vm2, %v385_v59, 0.0 }
  0xdb   :  { %322 = vst.msk [vmem:[%s877_s2 + $0x1c] sm:$0xf] %vm314_vm1, %v305_v24  ;;  %v400_v31 = vsel %vm331_vm2, %v378_v26, 0.0 }
  0xdc   :  { %v348_v34 = vadd.f32 %v347_v19, %v346_v29  ;;  %v401_v35 = vadd.f32 %v400_v31, %v399_v27 }
  0xdd   :  { %v246_v39 = vpop.f32.mrf.mxu2 }
  0xde   :  { %v350_v28 = vadd.f32 %v349_v38, %v348_v34  ;;  %v403_v40 = vadd.f32 %v402_v37, %v401_v35  ;;  %v296_v41 = vadd.f32 %v295_v33, %v246_v39 }
  0xe0   :  { %v352_v46 = vadd.f32 %v351_v43, %v350_v28  ;;  %v405_v47 = vadd.f32 %v404_v45, %v403_v40  ;;  %v313_v48 = vpack.c.bf16 %v296_v41, %v296_v41  ;;  %v386_v0 = vmul.f32 %v296_v41, %v296_v41 }
  0xe1   :  { %v361_v3 = vsel %vm331_vm2, %v296_v41, 0.0 }
  0xe2   :  { %v407_v51 = vadd.f32 %v406_v49, %v405_v47  ;;  %v354_v53 = vadd.f32 %v353_v42, %v352_v46  ;;  %330 = vst.msk [vmem:[%s877_s2 + $0x3c] sm:$0xf] %vm314_vm1, %v313_v48  ;;  %v416_v6 = vsel %vm331_vm2, %v386_v0, 0.0 }
  0xe4   :  { %v356_v56 = vadd.f32 %v355_v54, %v354_v53  ;;  %v409_v23 = vadd.f32 %v408_v15, %v407_v51 }
  0xe6   :  { %v358_v60 = vadd.f32 %v357_v58, %v356_v56  ;;  %v411_v61 = vadd.f32 %v410_v57, %v409_v23 }
  0xe8   :  { %v360_v1 = vadd.f32 %v359_v63, %v358_v60  ;;  %v413_v32 = vadd.f32 %v412_v62, %v411_v61 }
  0xea   :  { %v415_v4 = vadd.f32 %v414_v2, %v413_v32  ;;  %v362_v5 = vadd.f32 %v361_v3, %v360_v1 }
  0xec   :  { %v363_v7 = vrot.slane %v362_v5, 4  ;;  %v417_v52 = vadd.f32 %v416_v6, %v415_v4 }
  0xee   :  { %v364_v8 = vadd.f32 %v363_v7, %v362_v5  ;;  %v418_v9 = vrot.slane %v417_v52, 4 }
  0xf0   :  { %v365_v10 = vrot.slane %v364_v8, 2  ;;  %v419_v11 = vadd.f32 %v418_v9, %v417_v52 }
  0xf2   :  { %v366_v12 = vadd.f32 %v365_v10, %v364_v8  ;;  %v420_v13 = vrot.slane %v419_v11, 2 }
  0xf4   :  { %v367_v14 = vrot.slane %v366_v12, 1  ;;  %v421_v16 = vadd.f32 %v420_v13, %v419_v11 }
  0xf6   :  { %v368_v17 = vadd.f32 %v367_v14, %v366_v12  ;;  %v422_v18 = vrot.slane %v421_v16, 1 }
  0xf8   :  { %370 = vst.msk [vmem:[%s878_s3] sm:$0x1] %vm369_vm3, %v368_v17  ;;  %v423_v20 = vadd.f32 %v422_v18, %v421_v16 }
  0xfa   :  { %424 = vst.msk [vmem:[%s879_s4] sm:$0x1] %vm369_vm3, %v423_v20 }

// kernel: unet_reg_forward.26
= control target key start
LH: loop header
LB: loop body
LE: loop exit
PB: predicated region body
PF: predicated region fallthrough
CT: control target
= control target key end

     0   :  { %s2438_s15 = smov 0   ;;  %s3758_s0 = inlined_call_operand.vmem [shape: bf16[16,2,8,2,16], index: 0, kind: input, shape index: {}]   ;;  %s3759_s1 = inlined_call_operand.vmem [shape: f32[1,16], index: 1, kind: input, shape index: {}]   ;;  %s3760_s2 = inlined_call_operand.vmem [shape: f32[1,16], index: 2, kind: input, shape index: {}]   ;;  %s3761_s3 = inlined_call_operand.vmem [shape: bf16[16,2,8,2,16], index: 3, kind: output, shape index: {0}]   ;;  %s3762_s4 = inlined_call_operand.vmem [shape: bf16[16,8,16], index: 4, kind: output, shape index: {1}]  }
   0x1 LB: > { %s2250_s16 = sadd.s32 4294967295, %s2411_s15   ;;  %p2254_p0 = scmp.ge.s32.totalorder %s2411_s15, 1  ;;  %s2411_s15 = sphi %s2438_s15, %s15_s15  }
   0x2   : > { %p166_p1 = scmp.lt.s32.totalorder %s2411_s15, 3 }
   0x4   : > { %p167_p2 = pnand %p2254_p0, %p166_p1 }
   0x6   : > { %170 = sbr.rel (%p167_p2) target bundleno = 329 (0x149), region = 32 }
   0xb   : > { %s2255_s17 = sshll.u32 %s2250_s16, 3  ;;  %v2459_v0 = vld [vmem:[%s3759_s1] ss:$0 sm:$0xff]  ;;  %vm991_vm0 = vcmask 122880   ;;  %vm2017_vm1 = vcmask 1041409   ;;  %vm2020_vm2 = vcmask 1042434  }
   0xc   : > { %p198_p3 = scmp.lt.s32.totalorder %s2255_s17, 15  ;;  %v2464_v1 = vld [vmem:[%s3760_s2] ss:$0 sm:$0xff]  ;;  %vm2023_vm3 = vcmask 1043459   ;;  %vm2026_vm4 = vcmask 1044484   ;;  %vm2029_vm5 = vcmask 1045509  }
   0xd   : > { %vm2032_vm6 = vcmask 1046534   ;;  %vm2035_vm7 = vcmask 1047559   ;;  %vm2151_vm8 = vcmask 125952  }
   0xe   : > { %s3941_s17 = smov (!%p198_p3, %s2255_s17), 15 }
   0xf   : > { %s2256_s18 = sshll.u32 %s3941_s17, 4  ;;  %s2260_s11 = sshll.u32 %s3941_s17, 2 }
  0x10   : > { %s2454_s21 = scalar_lea.vmem %s3758_s0, %s2256_s18  ;;  %s2494_s28 = scalar_lea.vmem %s3761_s3, %s2256_s18 }
  0x11   : > { %v215_v2 = vld [vmem:[%s2454_s21] sm:$0x1]  ;;  %v216_v3 = vld [vmem:[%s2454_s21 + $0x1] sm:$0x1]  ;;  %v217_v4 = vld [vmem:[%s2454_s21 + $0x2] sm:$0x1]  ;;  %s3570_s14 = scalar_lea.vmem %s3762_s4, %s2260_s11 }
  0x12   : > { %v343_v5 = vunpack.c.l.bf16 %v215_v2  ;;  %v344_v6 = vunpack.c.l.bf16 %v216_v3  ;;  %v345_v7 = vunpack.c.l.bf16 %v217_v4  ;;  %v218_v8 = vld [vmem:[%s2454_s21 + $0x3] sm:$0x1]  ;;  %v219_v9 = vld [vmem:[%s2454_s21 + $0x4] sm:$0x1]  ;;  %v220_v10 = vld [vmem:[%s2454_s21 + $0x5] sm:$0x1] }
  0x13   : > { %v346_v11 = vunpack.c.l.bf16 %v218_v8  ;;  %v347_v12 = vunpack.c.l.bf16 %v219_v9  ;;  %v348_v13 = vunpack.c.l.bf16 %v220_v10  ;;  %v221_v14 = vld [vmem:[%s2454_s21 + $0x6] sm:$0x1]  ;;  %v222_v15 = vld [vmem:[%s2454_s21 + $0x7] sm:$0x1]  ;;  %v223_v44 = vld [vmem:[%s2454_s21 + $0x8] sm:$0x1] }
  0x14   : > { %v475_v16 = vmul.f32 %v2459_v0, %v343_v5  ;;  %v476_v17 = vmul.f32 %v2459_v0, %v344_v6  ;;  %v477_v18 = vmul.f32 %v2459_v0, %v345_v7  ;;  %v349_v19 = vunpack.c.l.bf16 %v221_v14  ;;  %v224_v49 = vld [vmem:[%s2454_s21 + $0x9] sm:$0x1]  ;;  %v225_v50 = vld [vmem:[%s2454_s21 + $0xa] sm:$0x1]  ;;  %v226_v55 = vld [vmem:[%s2454_s21 + $0xb] sm:$0x1] }
  0x15   : > { %v478_v20 = vmul.f32 %v2459_v0, %v346_v11  ;;  %v479_v21 = vmul.f32 %v2459_v0, %v347_v12  ;;  %v480_v22 = vmul.f32 %v2459_v0, %v348_v13  ;;  %v350_v23 = vunpack.c.l.bf16 %v222_v15  ;;  %v227_v2 = vld [vmem:[%s2454_s21 + $0xc] sm:$0x1]  ;;  %v228_v7 = vld [vmem:[%s2454_s21 + $0xd] sm:$0x1]  ;;  %v229_v8 = vld [vmem:[%s2454_s21 + $0xe] sm:$0x1] }
  0x16   : > { %v607_v24 = vadd.f32 %v2464_v1, %v475_v16  ;;  %v608_v25 = vadd.f32 %v2464_v1, %v476_v17  ;;  %v609_v26 = vadd.f32 %v2464_v1, %v477_v18  ;;  %v481_v27 = vmul.f32 %v2459_v0, %v349_v19  ;;  %v230_v17 = vld [vmem:[%s2454_s21 + $0xf] sm:$0x1] }
  0x17   : > { %v610_v28 = vadd.f32 %v2464_v1, %v478_v20  ;;  %v611_v29 = vadd.f32 %v2464_v1, %v479_v21  ;;  %v612_v30 = vadd.f32 %v2464_v1, %v480_v22  ;;  %v482_v31 = vmul.f32 %v2459_v0, %v350_v23 }
  0x18   : > { %v735_v32 = vmax.f32 %v607_v24, 0.0  ;;  %v736_v33 = vmax.f32 %v608_v25, 0.0  ;;  %v737_v34 = vmax.f32 %v609_v26, 0.0  ;;  %v613_v35 = vadd.f32 %v2464_v1, %v481_v27 }
  0x19   : > { %v738_v36 = vmax.f32 %v610_v28, 0.0  ;;  %v739_v37 = vmax.f32 %v611_v29, 0.0  ;;  %v740_v38 = vmax.f32 %v612_v30, 0.0  ;;  %v614_v39 = vadd.f32 %v2464_v1, %v482_v31 }
  0x1a   : > { %v863_v40 = vpack.c.bf16 %v735_v32, %v735_v32  ;;  %v2261_v41 = vrot.slane %v735_v32, 9  ;;  %v864_v42 = vpack.c.bf16 %v736_v33, %v736_v33  ;;  %v2262_v43 = vrot.slane %v736_v33, 9 }
  0x1b   : > { %v865_v45 = vpack.c.bf16 %v737_v34, %v737_v34  ;;  %v2263_v46 = vrot.slane %v737_v34, 9  ;;  %v866_v47 = vpack.c.bf16 %v738_v36, %v738_v36  ;;  %v2264_v48 = vrot.slane %v738_v36, 9 }
  0x1c   : > { %992 = vst.msk [vmem:[%s2494_s28] sm:$0x1] %vm991_vm0, %v863_v40  ;;  %v2502_v51 = vmax.f32 %v735_v32, %v2261_v41  ;;  %v2504_v52 = vmax.f32 %v736_v33, %v2262_v43  ;;  %v867_v53 = vpack.c.bf16 %v739_v37, %v739_v37  ;;  %v2265_v54 = vrot.slane %v739_v37, 9 }
  0x1d   : > { %993 = vst.msk [vmem:[%s2494_s28 + $0x1] sm:$0x1] %vm991_vm0, %v864_v42  ;;  %v2509_v56 = vmax.f32 %v737_v34, %v2263_v46  ;;  %v2511_v57 = vmax.f32 %v738_v36, %v2264_v48  ;;  %v868_v58 = vpack.c.bf16 %v740_v38, %v740_v38  ;;  %v2266_v59 = vrot.slane %v740_v38, 9 }
  0x1e   : > { %994 = vst.msk [vmem:[%s2494_s28 + $0x2] sm:$0x1] %vm991_vm0, %v865_v45  ;;  %v2515_v60 = vmax.f32 %v739_v37, %v2265_v54  ;;  %v741_v61 = vmax.f32 %v613_v35, 0.0  ;;  %v2517_v62 = vmax.f32 %v614_v39, 0.0  ;;  %v351_v63 = vunpack.c.l.bf16 %v223_v44 }
  0x1f   : > { %995 = vst.msk [vmem:[%s2494_s28 + $0x3] sm:$0x1] %vm991_vm0, %v866_v47  ;;  %v2522_v3 = vmax.f32 %v740_v38, %v2266_v59  ;;  %v352_v4 = vunpack.c.l.bf16 %v224_v49  ;;  %v353_v5 = vunpack.c.l.bf16 %v225_v50  ;;  %v354_v6 = vunpack.c.l.bf16 %v226_v55 }
  0x20   : > { %996 = vst.msk [vmem:[%s2494_s28 + $0x4] sm:$0x1] %vm991_vm0, %v867_v53  ;;  %v869_v9 = vpack.c.bf16 %v741_v61, %v741_v61  ;;  %v2267_v10 = vrot.slane %v741_v61, 9  ;;  %v870_v11 = vpack.c.bf16 %v2517_v62, %v2517_v62  ;;  %v483_v13 = vmul.f32 %v2459_v0, %v351_v63 }
  0x21   : > { %997 = vst.msk [vmem:[%s2494_s28 + $0x5] sm:$0x1] %vm991_vm0, %v868_v58  ;;  %v484_v14 = vmul.f32 %v2459_v0, %v352_v4  ;;  %v485_v15 = vmul.f32 %v2459_v0, %v353_v5  ;;  %v486_v16 = vmul.f32 %v2459_v0, %v354_v6  ;;  %v355_v19 = vunpack.c.l.bf16 %v227_v2 }
  0x22   : > { %998 = vst.msk [vmem:[%s2494_s28 + $0x6] sm:$0x1] %vm991_vm0, %v869_v9  ;;  %v2540_v18 = vmax.f32 %v741_v61, %v2267_v10  ;;  %v356_v20 = vunpack.c.l.bf16 %v228_v7  ;;  %v357_v21 = vunpack.c.l.bf16 %v229_v8  ;;  %v615_v22 = vadd.f32 %v2464_v1, %v483_v13  ;;  %v231_v9 = vld [vmem:[%s2454_s21 + $0x10] sm:$0x1]  ;;  %v232_v13 = vld [vmem:[%s2454_s21 + $0x11] sm:$0x1] }
  0x23   : > { %999 = vst.msk [vmem:[%s2494_s28 + $0x7] sm:$0x1] %vm991_vm0, %v870_v11  ;;  %v616_v23 = vadd.f32 %v2464_v1, %v484_v14  ;;  %v617_v24 = vadd.f32 %v2464_v1, %v485_v15  ;;  %v618_v25 = vadd.f32 %v2464_v1, %v486_v16  ;;  %v487_v26 = vmul.f32 %v2459_v0, %v355_v19  ;;  %v233_v19 = vld [vmem:[%s2454_s21 + $0x12] sm:$0x1] }
  0x24   : > { %v488_v27 = vmul.f32 %v2459_v0, %v356_v20  ;;  %v489_v28 = vmul.f32 %v2459_v0, %v357_v21  ;;  %v358_v29 = vunpack.c.l.bf16 %v230_v17  ;;  %v743_v30 = vmax.f32 %v615_v22, 0.0 }
  0x25   : > { %v744_v31 = vmax.f32 %v616_v23, 0.0  ;;  %v745_v32 = vmax.f32 %v617_v24, 0.0  ;;  %v746_v33 = vmax.f32 %v618_v25, 0.0  ;;  %v619_v34 = vadd.f32 %v2464_v1, %v487_v26  ;;  %v234_v24 = vld [vmem:[%s2454_s21 + $0x13] sm:$0x1] }
  0x26   : > { %v620_v35 = vadd.f32 %v2464_v1, %v488_v27  ;;  %v621_v36 = vadd.f32 %v2464_v1, %v489_v28  ;;  %v490_v37 = vmul.f32 %v2459_v0, %v358_v29  ;;  %v871_v38 = vpack.c.bf16 %v743_v30, %v743_v30  ;;  %v235_v25 = vld [vmem:[%s2454_s21 + $0x14] sm:$0x1]  ;;  %v236_v26 = vld [vmem:[%s2454_s21 + $0x15] sm:$0x1]  ;;  %v276_v27 = vld [vmem:[%s2454_s21 + $0x3d] sm:$0x1] }
  0x27   : > { %v2325_v39 = vrot.slane %v743_v30, 9  ;;  %v872_v40 = vpack.c.bf16 %v744_v31, %v744_v31  ;;  %v2326_v41 = vrot.slane %v744_v31, 9  ;;  %v873_v42 = vpack.c.bf16 %v745_v32, %v745_v32  ;;  %v277_v29 = vld [vmem:[%s2454_s21 + $0x3e] sm:$0x1] }
  0x28   : > { %v2327_v43 = vrot.slane %v745_v32, 9  ;;  %v874_v44 = vpack.c.bf16 %v746_v33, %v746_v33  ;;  %v2328_v45 = vrot.slane %v746_v33, 9  ;;  %1000 = vst.msk [vmem:[%s2494_s28 + $0x8] sm:$0x1] %vm991_vm0, %v871_v38  ;;  %v747_v48 = vmax.f32 %v619_v34, 0.0 }
  0x29   : > { %v1696_v46 = vmax.f32 %v743_v30, %v2325_v39  ;;  %v1697_v47 = vmax.f32 %v744_v31, %v2326_v41  ;;  %v748_v49 = vmax.f32 %v620_v35, 0.0  ;;  %1001 = vst.msk [vmem:[%s2494_s28 + $0x9] sm:$0x1] %vm991_vm0, %v872_v40  ;;  %v749_v54 = vmax.f32 %v621_v36, 0.0  ;;  %v237_v30 = vld [vmem:[%s2454_s21 + $0x16] sm:$0x1] }
  0x2a   : > { %v1698_v50 = vmax.f32 %v745_v32, %v2327_v43  ;;  %v1699_v53 = vmax.f32 %v746_v33, %v2328_v45  ;;  %v622_v55 = vadd.f32 %v2464_v1, %v490_v37  ;;  %1002 = vst.msk [vmem:[%s2494_s28 + $0xa] sm:$0x1] %vm991_vm0, %v873_v42  ;;  %v875_v61 = vpack.c.bf16 %v747_v48, %v747_v48  ;;  %v238_v31 = vld [vmem:[%s2454_s21 + $0x17] sm:$0x1] }
  0x2b   : > { %v1760_v58 = vmax.f32 %v2502_v51, %v1696_v46  ;;  %v1761_v59 = vmax.f32 %v2504_v52, %v1697_v47  ;;  %v2329_v63 = vrot.slane %v747_v48, 9  ;;  %1003 = vst.msk [vmem:[%s2494_s28 + $0xb] sm:$0x1] %vm991_vm0, %v874_v44  ;;  %v876_v5 = vpack.c.bf16 %v748_v49, %v748_v49 }
  0x2c   : > { %v1762_v2 = vmax.f32 %v2509_v56, %v1698_v50  ;;  %v1763_v4 = vmax.f32 %v2511_v57, %v1699_v53  ;;  %v2330_v6 = vrot.slane %v748_v49, 9  ;;  %1004 = vst.msk [vmem:[%s2494_s28 + $0xc] sm:$0x1] %vm991_vm0, %v875_v61  ;;  %v877_v52 = vpack.c.bf16 %v749_v54, %v749_v54 }
  0x2d   : > { %v1824_v7 = vpack.c.bf16 %v1760_v58, %v1760_v58  ;;  %v1825_v8 = vpack.c.bf16 %v1761_v59, %v1761_v59  ;;  %v1700_v51 = vmax.f32 %v747_v48, %v2329_v63  ;;  %1005 = vst.msk [vmem:[%s2494_s28 + $0xd] sm:$0x1] %vm991_vm0, %v876_v5  ;;  %v2331_v57 = vrot.slane %v749_v54, 9 }
  0x2e   : > { %v1826_v10 = vpack.c.bf16 %v1762_v2, %v1762_v2  ;;  %v1827_v11 = vpack.c.bf16 %v1763_v4, %v1763_v4  ;;  %v2573_v56 = vmax.f32 %v748_v49, %v2330_v6  ;;  %1006 = vst.msk [vmem:[%s2494_s28 + $0xe] sm:$0x1] %vm991_vm0, %v877_v52  ;;  %v2585_v17 = vmax.f32 %v622_v55, 0.0 }
  0x2f   : > { %v2576_v14 = vunpack.c.l.b16 %v1824_v7  ;;  %v2578_v15 = vunpack.c.l.b16 %v1825_v8  ;;  %v2581_v16 = vmax.f32 %v2515_v60, %v1700_v51  ;;  %v2592_v22 = vmax.f32 %v749_v54, %v2331_v57 }
  0x30   : > { %v2588_v20 = vunpack.c.l.b16 %v1826_v10  ;;  %v2590_v21 = vunpack.c.l.b16 %v1827_v11  ;;  %v359_v23 = vunpack.c.l.bf16 %v231_v9  ;;  %v878_v28 = vpack.c.bf16 %v2585_v17, %v2585_v17  ;;  %v239_v11 = vld [vmem:[%s2454_s21 + $0x18] sm:$0x1] }
  0x31   : > { %v360_v35 = vunpack.c.l.bf16 %v232_v13  ;;  %v361_v36 = vunpack.c.l.bf16 %v233_v19  ;;  %v362_v37 = vunpack.c.l.bf16 %v234_v24  ;;  %v363_v38 = vunpack.c.l.bf16 %v235_v25  ;;  %v240_v24 = vld [vmem:[%s2454_s21 + $0x19] sm:$0x1]  ;;  %v241_v25 = vld [vmem:[%s2454_s21 + $0x1a] sm:$0x1] }
  0x32   : > { %v491_v34 = vmul.f32 %v2459_v0, %v359_v23  ;;  %1007 = vst.msk [vmem:[%s2494_s28 + $0xf] sm:$0x1] %vm991_vm0, %v878_v28  ;;  %v364_v39 = vunpack.c.l.bf16 %v236_v26  ;;  %v365_v42 = vunpack.c.l.bf16 %v237_v30  ;;  %v366_v43 = vunpack.c.l.bf16 %v238_v31 }
  0x33   : > { %v492_v41 = vmul.f32 %v2459_v0, %v360_v35  ;;  %v493_v44 = vmul.f32 %v2459_v0, %v361_v36  ;;  %v494_v45 = vmul.f32 %v2459_v0, %v362_v37  ;;  %v495_v46 = vmul.f32 %v2459_v0, %v363_v38 }
  0x34   : > { %v623_v40 = vadd.f32 %v2464_v1, %v491_v34  ;;  %v496_v47 = vmul.f32 %v2459_v0, %v364_v39  ;;  %v497_v50 = vmul.f32 %v2459_v0, %v365_v42  ;;  %v498_v53 = vmul.f32 %v2459_v0, %v366_v43  ;;  %v242_v34 = vld [vmem:[%s2454_s21 + $0x1b] sm:$0x1]  ;;  %v243_v39 = vld [vmem:[%s2454_s21 + $0x1c] sm:$0x1] }
  0x35   : > { %v624_v49 = vadd.f32 %v2464_v1, %v492_v41  ;;  %v625_v54 = vadd.f32 %v2464_v1, %v493_v44  ;;  %v626_v55 = vadd.f32 %v2464_v1, %v494_v45  ;;  %v627_v58 = vadd.f32 %v2464_v1, %v495_v46  ;;  %v244_v44 = vld [vmem:[%s2454_s21 + $0x1d] sm:$0x1] }
  0x36   : > { %v751_v48 = vmax.f32 %v623_v40, 0.0  ;;  %v628_v59 = vadd.f32 %v2464_v1, %v496_v47  ;;  %v629_v4 = vadd.f32 %v2464_v1, %v497_v50  ;;  %v630_v42 = vadd.f32 %v2464_v1, %v498_v53 }
  0x37   : > { %v752_v2 = vmax.f32 %v624_v49, 0.0  ;;  %v753_v5 = vmax.f32 %v625_v54, 0.0  ;;  %v754_v6 = vmax.f32 %v626_v55, 0.0  ;;  %v755_v7 = vmax.f32 %v627_v58, 0.0 }
  0x38   : > { %v879_v61 = vpack.c.bf16 %v751_v48, %v751_v48  ;;  %v2269_v63 = vrot.slane %v751_v48, 9  ;;  %v756_v8 = vmax.f32 %v628_v59, 0.0  ;;  %v757_v10 = vmax.f32 %v629_v4, 0.0 }
  0x39   : > { %v880_v52 = vpack.c.bf16 %v752_v2, %v752_v2  ;;  %v2270_v9 = vrot.slane %v752_v2, 9  ;;  %v881_v57 = vpack.c.bf16 %v753_v5, %v753_v5  ;;  %v2271_v13 = vrot.slane %v753_v5, 9 }
  0x3a   : > { %1008 = vst.msk [vmem:[%s2494_s28 + $0x10] sm:$0x1] %vm991_vm0, %v879_v61  ;;  %v2626_v51 = vmax.f32 %v751_v48, %v2269_v63  ;;  %v882_v19 = vpack.c.bf16 %v754_v6, %v754_v6  ;;  %v2272_v23 = vrot.slane %v754_v6, 9  ;;  %v883_v28 = vpack.c.bf16 %v755_v7, %v755_v7  ;;  %v245_v63 = vld [vmem:[%s2454_s21 + $0x1e] sm:$0x1] }
  0x3b   : > { %1009 = vst.msk [vmem:[%s2494_s28 + $0x11] sm:$0x1] %vm991_vm0, %v880_v52  ;;  %v2633_v26 = vmax.f32 %v752_v2, %v2270_v9  ;;  %v2273_v30 = vrot.slane %v755_v7, 9  ;;  %v884_v31 = vpack.c.bf16 %v756_v8, %v756_v8  ;;  %v2638_v35 = vmax.f32 %v753_v5, %v2271_v13  ;;  %v246_v2 = vld [vmem:[%s2454_s21 + $0x1f] sm:$0x1] }
  0x3c   : > { %1010 = vst.msk [vmem:[%s2494_s28 + $0x12] sm:$0x1] %vm991_vm0, %v881_v57  ;;  %v2640_v36 = vmax.f32 %v754_v6, %v2272_v23  ;;  %v2274_v37 = vrot.slane %v756_v8, 9  ;;  %v885_v38 = vpack.c.bf16 %v757_v10, %v757_v10  ;;  %v2275_v41 = vrot.slane %v757_v10, 9  ;;  %v275_v5 = vld [vmem:[%s2454_s21 + $0x3c] sm:$0x1] }
  0x3d   : > { %1011 = vst.msk [vmem:[%s2494_s28 + $0x13] sm:$0x1] %vm991_vm0, %v882_v19  ;;  %v2645_v40 = vmax.f32 %v755_v7, %v2273_v30  ;;  %v367_v43 = vunpack.c.l.bf16 %v239_v11  ;;  %v368_v46 = vunpack.c.l.bf16 %v240_v24  ;;  %v369_v47 = vunpack.c.l.bf16 %v241_v25 }
  0x3e   : > { %1012 = vst.msk [vmem:[%s2494_s28 + $0x14] sm:$0x1] %vm991_vm0, %v883_v28  ;;  %v2651_v45 = vmax.f32 %v756_v8, %v2274_v37  ;;  %v370_v48 = vunpack.c.l.bf16 %v242_v34  ;;  %v2655_v49 = vmax.f32 %v757_v10, %v2275_v41  ;;  %v2657_v50 = vmax.f32 %v630_v42, 0.0 }
  0x3f   : > { %1013 = vst.msk [vmem:[%s2494_s28 + $0x15] sm:$0x1] %vm991_vm0, %v884_v31  ;;  %v499_v54 = vmul.f32 %v2459_v0, %v367_v43  ;;  %v371_v53 = vunpack.c.l.bf16 %v243_v39  ;;  %v500_v55 = vmul.f32 %v2459_v0, %v368_v46  ;;  %v501_v58 = vmul.f32 %v2459_v0, %v369_v47 }
  0x40   : > { %1014 = vst.msk [vmem:[%s2494_s28 + $0x16] sm:$0x1] %vm991_vm0, %v885_v38  ;;  %v502_v59 = vmul.f32 %v2459_v0, %v370_v48  ;;  %v372_v61 = vunpack.c.l.bf16 %v244_v44  ;;  %v886_v4 = vpack.c.bf16 %v2657_v50, %v2657_v50  ;;  %v373_v13 = vunpack.c.l.bf16 %v245_v63 }
  0x41   : > { %v631_v6 = vadd.f32 %v2464_v1, %v499_v54  ;;  %v503_v7 = vmul.f32 %v2459_v0, %v371_v53  ;;  %v632_v8 = vadd.f32 %v2464_v1, %v500_v55  ;;  %v633_v52 = vadd.f32 %v2464_v1, %v501_v58 }
  0x42   : > { %v634_v9 = vadd.f32 %v2464_v1, %v502_v59  ;;  %v504_v10 = vmul.f32 %v2459_v0, %v372_v61  ;;  %1015 = vst.msk [vmem:[%s2494_s28 + $0x17] sm:$0x1] %vm991_vm0, %v886_v4  ;;  %v374_v19 = vunpack.c.l.bf16 %v246_v2  ;;  %v505_v37 = vmul.f32 %v2459_v0, %v373_v13  ;;  %v248_v13 = vld [vmem:[%s2454_s21 + $0x21] sm:$0x1] }
  0x43   : > { %v759_v11 = vmax.f32 %v631_v6, 0.0  ;;  %v635_v57 = vadd.f32 %v2464_v1, %v503_v7  ;;  %v760_v23 = vmax.f32 %v632_v8, 0.0  ;;  %v761_v24 = vmax.f32 %v633_v52, 0.0 }
  0x44   : > { %v762_v25 = vmax.f32 %v634_v9, 0.0  ;;  %v636_v28 = vadd.f32 %v2464_v1, %v504_v10  ;;  %v637_v61 = vadd.f32 %v2464_v1, %v505_v37  ;;  %v506_v63 = vmul.f32 %v2459_v0, %v374_v19  ;;  %v251_v37 = vld [vmem:[%s2454_s21 + $0x24] sm:$0x1] }
  0x45   : > { %v887_v30 = vpack.c.bf16 %v759_v11, %v759_v11  ;;  %v2333_v31 = vrot.slane %v759_v11, 9  ;;  %v763_v34 = vmax.f32 %v635_v57, 0.0  ;;  %v888_v38 = vpack.c.bf16 %v760_v23, %v760_v23  ;;  %v247_v57 = vld [vmem:[%s2454_s21 + $0x20] sm:$0x1] }
  0x46   : > { %v2334_v39 = vrot.slane %v760_v23, 9  ;;  %v889_v41 = vpack.c.bf16 %v761_v24, %v761_v24  ;;  %v2335_v42 = vrot.slane %v761_v24, 9  ;;  %v890_v44 = vpack.c.bf16 %v762_v25, %v762_v25 }
  0x47   : > { %1016 = vst.msk [vmem:[%s2494_s28 + $0x18] sm:$0x1] %vm991_vm0, %v887_v30  ;;  %v1704_v43 = vmax.f32 %v759_v11, %v2333_v31  ;;  %v2336_v46 = vrot.slane %v762_v25, 9  ;;  %v891_v47 = vpack.c.bf16 %v763_v34, %v763_v34  ;;  %v2337_v53 = vrot.slane %v763_v34, 9 }
  0x48   : > { %1017 = vst.msk [vmem:[%s2494_s28 + $0x19] sm:$0x1] %vm991_vm0, %v888_v38  ;;  %v1705_v48 = vmax.f32 %v760_v23, %v2334_v39  ;;  %v1706_v54 = vmax.f32 %v761_v24, %v2335_v42  ;;  %v764_v55 = vmax.f32 %v636_v28, 0.0  ;;  %v765_v9 = vmax.f32 %v637_v61, 0.0 }
  0x49   : > { %v1768_v58 = vmax.f32 %v2626_v51, %v1704_v43  ;;  %1018 = vst.msk [vmem:[%s2494_s28 + $0x1a] sm:$0x1] %vm991_vm0, %v889_v41  ;;  %v1707_v59 = vmax.f32 %v762_v25, %v2336_v46  ;;  %v1708_v6 = vmax.f32 %v763_v34, %v2337_v53  ;;  %v249_v25 = vld [vmem:[%s2454_s21 + $0x22] sm:$0x1]  ;;  %v250_v34 = vld [vmem:[%s2454_s21 + $0x23] sm:$0x1]  ;;  %v375_v41 = vunpack.c.l.bf16 %v247_v57 }
  0x4a   : > { %v1769_v2 = vmax.f32 %v2633_v26, %v1705_v48  ;;  %v1770_v4 = vmax.f32 %v2638_v35, %v1706_v54  ;;  %1019 = vst.msk [vmem:[%s2494_s28 + $0x1b] sm:$0x1] %vm991_vm0, %v890_v44  ;;  %v892_v7 = vpack.c.bf16 %v764_v55, %v764_v55  ;;  %v2338_v52 = vrot.slane %v764_v55, 9  ;;  %v252_v43 = vld [vmem:[%s2454_s21 + $0x25] sm:$0x1] }
  0x4b   : > { %v1832_v8 = vpack.c.bf16 %v1768_v58, %v1768_v58  ;;  %v1771_v51 = vmax.f32 %v2640_v36, %v1707_v59  ;;  %1020 = vst.msk [vmem:[%s2494_s28 + $0x1c] sm:$0x1] %vm991_vm0, %v891_v47  ;;  %v2698_v26 = vmax.f32 %v2645_v40, %v1708_v6  ;;  %v638_v35 = vadd.f32 %v2464_v1, %v506_v63  ;;  %v253_v54 = vld [vmem:[%s2454_s21 + $0x26] sm:$0x1]  ;;  %v254_v53 = vld [vmem:[%s2454_s21 + $0x27] sm:$0x1] }
  0x4c   : > { %v1833_v10 = vpack.c.bf16 %v1769_v2, %v1769_v2  ;;  %v1834_v11 = vpack.c.bf16 %v1770_v4, %v1770_v4  ;;  %1021 = vst.msk [vmem:[%s2494_s28 + $0x1d] sm:$0x1] %vm991_vm0, %v892_v7  ;;  %v2707_v23 = vmax.f32 %v764_v55, %v2338_v52  ;;  %v893_v24 = vpack.c.bf16 %v765_v9, %v765_v9  ;;  %v261_v44 = vld [vmem:[%s2454_s21 + $0x2e] sm:$0x1] }
  0x4d   : > { %v2705_v19 = vunpack.c.l.b16 %v1832_v8  ;;  %v1835_v36 = vpack.c.bf16 %v1771_v51, %v1771_v51  ;;  %v2339_v31 = vrot.slane %v765_v9, 9  ;;  %v2722_v39 = vmax.f32 %v638_v35, 0.0 }
  0x4e   : > { %v2710_v28 = vunpack.c.l.b16 %v1833_v10  ;;  %v2712_v40 = vunpack.c.l.b16 %v1834_v11  ;;  %1022 = vst.msk [vmem:[%s2494_s28 + $0x1e] sm:$0x1] %vm991_vm0, %v893_v24  ;;  %v376_v42 = vunpack.c.l.bf16 %v248_v13  ;;  %v377_v48 = vunpack.c.l.bf16 %v249_v25 }
  0x4f   : > { %v2718_v38 = vunpack.c.l.b16 %v1835_v36  ;;  %v2727_v47 = vmax.f32 %v765_v9, %v2339_v31  ;;  %v894_v58 = vpack.c.bf16 %v2722_v39, %v2722_v39  ;;  %v507_v61 = vmul.f32 %v2459_v0, %v375_v41 }
  0x50   : > { %v508_v63 = vmul.f32 %v2459_v0, %v376_v42  ;;  %v509_v2 = vmul.f32 %v2459_v0, %v377_v48  ;;  %v378_v4 = vunpack.c.l.bf16 %v250_v34  ;;  %v379_v6 = vunpack.c.l.bf16 %v251_v37 }
  0x51   : > { %1023 = vst.msk [vmem:[%s2494_s28 + $0x1f] sm:$0x1] %vm991_vm0, %v894_v58  ;;  %v639_v7 = vadd.f32 %v2464_v1, %v507_v61  ;;  %v380_v8 = vunpack.c.l.bf16 %v252_v43  ;;  %v381_v51 = vunpack.c.l.bf16 %v253_v54  ;;  %v382_v52 = vunpack.c.l.bf16 %v254_v53 }
  0x52   : > { %v640_v9 = vadd.f32 %v2464_v1, %v508_v63  ;;  %v641_v10 = vadd.f32 %v2464_v1, %v509_v2  ;;  %v510_v11 = vmul.f32 %v2459_v0, %v378_v4  ;;  %v511_v35 = vmul.f32 %v2459_v0, %v379_v6  ;;  %v255_v63 = vld [vmem:[%s2454_s21 + $0x28] sm:$0x1] }
  0x53   : > { %v767_v57 = vmax.f32 %v639_v7, 0.0  ;;  %v512_v13 = vmul.f32 %v2459_v0, %v380_v8  ;;  %v513_v36 = vmul.f32 %v2459_v0, %v381_v51  ;;  %v514_v24 = vmul.f32 %v2459_v0, %v382_v52 }
  0x54   : > { %v768_v25 = vmax.f32 %v640_v9, 0.0  ;;  %v769_v31 = vmax.f32 %v641_v10, 0.0  ;;  %v642_v34 = vadd.f32 %v2464_v1, %v510_v11  ;;  %v643_v37 = vadd.f32 %v2464_v1, %v511_v35  ;;  %v256_v10 = vld [vmem:[%s2454_s21 + $0x29] sm:$0x1] }
  0x55   : > { %v895_v41 = vpack.c.bf16 %v767_v57, %v767_v57  ;;  %v2277_v42 = vrot.slane %v767_v57, 9  ;;  %v644_v43 = vadd.f32 %v2464_v1, %v512_v13  ;;  %v645_v48 = vadd.f32 %v2464_v1, %v513_v36  ;;  %v257_v36 = vld [vmem:[%s2454_s21 + $0x2a] sm:$0x1] }
  0x56   : > { %v896_v54 = vpack.c.bf16 %v768_v25, %v768_v25  ;;  %v2278_v53 = vrot.slane %v768_v25, 9  ;;  %v897_v58 = vpack.c.bf16 %v769_v31, %v769_v31  ;;  %v2279_v61 = vrot.slane %v769_v31, 9 }
  0x57   : > { %1024 = vst.msk [vmem:[%s2494_s28 + $0x20] sm:$0x1] %vm991_vm0, %v895_v41  ;;  %v2755_v2 = vmax.f32 %v767_v57, %v2277_v42  ;;  %v770_v4 = vmax.f32 %v642_v34, 0.0  ;;  %v771_v6 = vmax.f32 %v643_v37, 0.0  ;;  %v772_v7 = vmax.f32 %v644_v43, 0.0 }
  0x58   : > { %1025 = vst.msk [vmem:[%s2494_s28 + $0x21] sm:$0x1] %vm991_vm0, %v896_v54  ;;  %v2759_v8 = vmax.f32 %v768_v25, %v2278_v53  ;;  %v2761_v51 = vmax.f32 %v769_v31, %v2279_v61  ;;  %v773_v52 = vmax.f32 %v645_v48, 0.0  ;;  %v646_v9 = vadd.f32 %v2464_v1, %v514_v24  ;;  %v258_v41 = vld [vmem:[%s2454_s21 + $0x2b] sm:$0x1] }
  0x59   : > { %1026 = vst.msk [vmem:[%s2494_s28 + $0x22] sm:$0x1] %vm991_vm0, %v897_v58  ;;  %v898_v11 = vpack.c.bf16 %v770_v4, %v770_v4  ;;  %v2280_v35 = vrot.slane %v770_v4, 9  ;;  %v899_v57 = vpack.c.bf16 %v771_v6, %v771_v6  ;;  %v2281_v13 = vrot.slane %v771_v6, 9  ;;  %v259_v42 = vld [vmem:[%s2454_s21 + $0x2c] sm:$0x1] }
  0x5a   : > { %v900_v34 = vpack.c.bf16 %v772_v7, %v772_v7  ;;  %v2282_v25 = vrot.slane %v772_v7, 9  ;;  %v901_v37 = vpack.c.bf16 %v773_v52, %v773_v52  ;;  %v2283_v31 = vrot.slane %v773_v52, 9  ;;  %v260_v53 = vld [vmem:[%s2454_s21 + $0x2d] sm:$0x1] }
  0x5b   : > { %1027 = vst.msk [vmem:[%s2494_s28 + $0x23] sm:$0x1] %vm991_vm0, %v898_v11  ;;  %v2772_v24 = vmax.f32 %v770_v4, %v2280_v35  ;;  %v2774_v43 = vmax.f32 %v771_v6, %v2281_v13  ;;  %v2776_v48 = vmax.f32 %v646_v9, 0.0  ;;  %v383_v54 = vunpack.c.l.bf16 %v255_v63  ;;  %v262_v11 = vld [vmem:[%s2454_s21 + $0x2f] sm:$0x1] }
  0x5c   : > { %1028 = vst.msk [vmem:[%s2494_s28 + $0x24] sm:$0x1] %vm991_vm0, %v899_v57  ;;  %v2781_v58 = vmax.f32 %v772_v7, %v2282_v25  ;;  %v2783_v61 = vmax.f32 %v773_v52, %v2283_v31  ;;  %v384_v55 = vunpack.c.l.bf16 %v256_v10  ;;  %v385_v46 = vunpack.c.l.bf16 %v257_v36 }
  0x5d   : > { %1029 = vst.msk [vmem:[%s2494_s28 + $0x25] sm:$0x1] %vm991_vm0, %v900_v34  ;;  %v902_v4 = vpack.c.bf16 %v2776_v48, %v2776_v48  ;;  %v515_v63 = vmul.f32 %v2459_v0, %v383_v54  ;;  %v386_v9 = vunpack.c.l.bf16 %v258_v41  ;;  %v387_v10 = vunpack.c.l.bf16 %v259_v42 }
  0x5e   : > { %1030 = vst.msk [vmem:[%s2494_s28 + $0x26] sm:$0x1] %vm991_vm0, %v901_v37  ;;  %v516_v7 = vmul.f32 %v2459_v0, %v384_v55  ;;  %v517_v52 = vmul.f32 %v2459_v0, %v385_v46  ;;  %v388_v35 = vunpack.c.l.bf16 %v260_v53  ;;  %v389_v36 = vunpack.c.l.bf16 %v261_v44 }
  0x5f   : > { %1031 = vst.msk [vmem:[%s2494_s28 + $0x27] sm:$0x1] %vm991_vm0, %v902_v4  ;;  %v647_v57 = vadd.f32 %v2464_v1, %v515_v63  ;;  %v518_v13 = vmul.f32 %v2459_v0, %v386_v9  ;;  %v390_v34 = vunpack.c.l.bf16 %v262_v11  ;;  %v519_v37 = vmul.f32 %v2459_v0, %v387_v10 }
  0x60   : > { %v648_v25 = vadd.f32 %v2464_v1, %v516_v7  ;;  %v649_v31 = vadd.f32 %v2464_v1, %v517_v52  ;;  %v520_v55 = vmul.f32 %v2459_v0, %v388_v35  ;;  %v521_v42 = vmul.f32 %v2459_v0, %v389_v36 }
  0x61   : > { %v775_v41 = vmax.f32 %v647_v57, 0.0  ;;  %v650_v46 = vadd.f32 %v2464_v1, %v518_v13  ;;  %v522_v54 = vmul.f32 %v2459_v0, %v390_v34  ;;  %v651_v44 = vadd.f32 %v2464_v1, %v519_v37 }
  0x62   : > { %v776_v53 = vmax.f32 %v648_v25, 0.0  ;;  %v777_v4 = vmax.f32 %v649_v31, 0.0  ;;  %v652_v11 = vadd.f32 %v2464_v1, %v520_v55  ;;  %v653_v52 = vadd.f32 %v2464_v1, %v521_v42 }
  0x63   : > { %v903_v63 = vpack.c.bf16 %v775_v41, %v775_v41  ;;  %v2341_v9 = vrot.slane %v775_v41, 9  ;;  %v778_v7 = vmax.f32 %v650_v46, 0.0  ;;  %v779_v31 = vmax.f32 %v651_v44, 0.0 }
  0x64   : > { %v904_v10 = vpack.c.bf16 %v776_v53, %v776_v53  ;;  %v2342_v35 = vrot.slane %v776_v53, 9  ;;  %v905_v57 = vpack.c.bf16 %v777_v4, %v777_v4  ;;  %v2343_v13 = vrot.slane %v777_v4, 9 }
  0x65   : > { %1032 = vst.msk [vmem:[%s2494_s28 + $0x28] sm:$0x1] %vm991_vm0, %v903_v63  ;;  %v1712_v36 = vmax.f32 %v775_v41, %v2341_v9  ;;  %v906_v34 = vpack.c.bf16 %v778_v7, %v778_v7  ;;  %v2344_v25 = vrot.slane %v778_v7, 9  ;;  %v780_v46 = vmax.f32 %v652_v11, 0.0 }
  0x66   : > { %1033 = vst.msk [vmem:[%s2494_s28 + $0x29] sm:$0x1] %vm991_vm0, %v904_v10  ;;  %v1713_v37 = vmax.f32 %v776_v53, %v2342_v35  ;;  %v1714_v55 = vmax.f32 %v777_v4, %v2343_v13  ;;  %v781_v6 = vmax.f32 %v653_v52, 0.0  ;;  %v907_v63 = vpack.c.bf16 %v779_v31, %v779_v31  ;;  %v263_v10 = vld [vmem:[%s2454_s21 + $0x30] sm:$0x1] }
  0x67   : > { %v1776_v42 = vmax.f32 %v2755_v2, %v1712_v36  ;;  %1034 = vst.msk [vmem:[%s2494_s28 + $0x2a] sm:$0x1] %vm991_vm0, %v905_v57  ;;  %v1715_v30 = vmax.f32 %v778_v7, %v2344_v25  ;;  %v2345_v41 = vrot.slane %v779_v31, 9  ;;  %v908_v53 = vpack.c.bf16 %v780_v46, %v780_v46  ;;  %v264_v13 = vld [vmem:[%s2454_s21 + $0x31] sm:$0x1] }
  0x68   : > { %v1777_v9 = vmax.f32 %v2759_v8, %v1713_v37  ;;  %v1778_v44 = vmax.f32 %v2761_v51, %v1714_v55  ;;  %1035 = vst.msk [vmem:[%s2494_s28 + $0x2b] sm:$0x1] %vm991_vm0, %v906_v34  ;;  %v2346_v4 = vrot.slane %v780_v46, 9  ;;  %v909_v7 = vpack.c.bf16 %v781_v6, %v781_v6  ;;  %v265_v25 = vld [vmem:[%s2454_s21 + $0x32] sm:$0x1] }
  0x69   : > { %v1840_v11 = vpack.c.bf16 %v1776_v42, %v1776_v42  ;;  %v1779_v52 = vmax.f32 %v2772_v24, %v1715_v30  ;;  %1036 = vst.msk [vmem:[%s2494_s28 + $0x2c] sm:$0x1] %vm991_vm0, %v907_v63  ;;  %v1716_v2 = vmax.f32 %v779_v31, %v2345_v41  ;;  %v2347_v57 = vrot.slane %v781_v6, 9  ;;  %v266_v42 = vld [vmem:[%s2454_s21 + $0x33] sm:$0x1] }
  0x6a   : > { %v1841_v35 = vpack.c.bf16 %v1777_v9, %v1777_v9  ;;  %v1842_v8 = vpack.c.bf16 %v1778_v44, %v1778_v44  ;;  %1037 = vst.msk [vmem:[%s2494_s28 + $0x2d] sm:$0x1] %vm991_vm0, %v908_v53  ;;  %v2828_v51 = vmax.f32 %v780_v46, %v2346_v4  ;;  %v654_v34 = vadd.f32 %v2464_v1, %v522_v54  ;;  %v267_v54 = vld [vmem:[%s2454_s21 + $0x34] sm:$0x1]  ;;  %v268_v44 = vld [vmem:[%s2454_s21 + $0x35] sm:$0x1] }
  0x6b   : > { %v2831_v36 = vunpack.c.l.b16 %v1840_v11  ;;  %v1843_v30 = vpack.c.bf16 %v1779_v52, %v1779_v52  ;;  %v2834_v24 = vmax.f32 %v2774_v43, %v1716_v2  ;;  %1038 = vst.msk [vmem:[%s2494_s28 + $0x2e] sm:$0x1] %vm991_vm0, %v909_v7  ;;  %v2844_v55 = vmax.f32 %v781_v6, %v2347_v57  ;;  %v269_v52 = vld [vmem:[%s2454_s21 + $0x36] sm:$0x1]  ;;  %v270_v2 = vld [vmem:[%s2454_s21 + $0x37] sm:$0x1] }
  0x6c   : > { %v2840_v31 = vunpack.c.l.b16 %v1841_v35  ;;  %v2842_v37 = vunpack.c.l.b16 %v1842_v8  ;;  %v391_v46 = vunpack.c.l.bf16 %v263_v10  ;;  %v2851_v41 = vmax.f32 %v654_v34, 0.0 }
  0x6d   : > { %v2847_v63 = vunpack.c.l.b16 %v1843_v30  ;;  %v392_v9 = vunpack.c.l.bf16 %v264_v13  ;;  %v393_v11 = vunpack.c.l.bf16 %v265_v25  ;;  %v394_v30 = vunpack.c.l.bf16 %v266_v42 }
  0x6e   : > { %3801 = vst [vmem:[#allocation2_spill] sm:$0xff] %v2842_v37  ;;  %v523_v6 = vmul.f32 %v2459_v0, %v391_v46  ;;  %v910_v10 = vpack.c.bf16 %v2851_v41, %v2851_v41  ;;  %v395_v34 = vunpack.c.l.bf16 %v267_v54  ;;  %v396_v46 = vunpack.c.l.bf16 %v268_v44 }
  0x6f   : > { %3802 = vst [vmem:[#allocation3_spill] sm:$0xff] %v2847_v63  ;;  %v524_v8 = vmul.f32 %v2459_v0, %v392_v9  ;;  %v525_v13 = vmul.f32 %v2459_v0, %v393_v11  ;;  %v397_v4 = vunpack.c.l.bf16 %v269_v52  ;;  %v398_v7 = vunpack.c.l.bf16 %v270_v2 }
  0x70   : > { %v655_v57 = vadd.f32 %v2464_v1, %v523_v6  ;;  %1039 = vst.msk [vmem:[%s2494_s28 + $0x2f] sm:$0x1] %vm991_vm0, %v910_v10  ;;  %v526_v35 = vmul.f32 %v2459_v0, %v394_v30  ;;  %v527_v9 = vmul.f32 %v2459_v0, %v395_v34  ;;  %v528_v11 = vmul.f32 %v2459_v0, %v396_v46  ;;  %v271_v34 = vld [vmem:[%s2454_s21 + $0x38] sm:$0x1] }
  0x71   : > { %v656_v25 = vadd.f32 %v2464_v1, %v524_v8  ;;  %v657_v43 = vadd.f32 %v2464_v1, %v525_v13  ;;  %v529_v42 = vmul.f32 %v2459_v0, %v397_v4  ;;  %v530_v54 = vmul.f32 %v2459_v0, %v398_v7  ;;  %v2879_v1 = vld [vmem:[%s3760_s2] ss:$0 sm:$0xff] }
  0x72   : > { %v783_v53 = vmax.f32 %v655_v57, 0.0  ;;  %v658_v10 = vadd.f32 %v2879_v1, %v526_v35  ;;  %v659_v4 = vadd.f32 %v2879_v1, %v527_v9  ;;  %v660_v13 = vadd.f32 %v2879_v1, %v528_v11  ;;  %v272_v11 = vld [vmem:[%s2454_s21 + $0x39] sm:$0x1] }
  0x73   : > { %v784_v6 = vmax.f32 %v656_v25, 0.0  ;;  %v785_v2 = vmax.f32 %v657_v43, 0.0  ;;  %v661_v9 = vadd.f32 %v2879_v1, %v529_v42  ;;  %v274_v42 = vld [vmem:[%s2454_s21 + $0x3b] sm:$0x1]  ;;  %v400_v32 = vunpack.c.l.bf16 %v272_v11 }
  0x74   : > { %v911_v44 = vpack.c.bf16 %v783_v53, %v783_v53  ;;  %v2285_v52 = vrot.slane %v783_v53, 9  ;;  %v786_v30 = vmax.f32 %v658_v10, 0.0  ;;  %v787_v25 = vmax.f32 %v659_v4, 0.0 }
  0x75   : > { %v912_v8 = vpack.c.bf16 %v784_v6, %v784_v6  ;;  %v2286_v57 = vrot.slane %v784_v6, 9  ;;  %v913_v43 = vpack.c.bf16 %v785_v2, %v785_v2  ;;  %v2287_v7 = vrot.slane %v785_v2, 9 }
  0x76   : > { %1040 = vst.msk [vmem:[%s2494_s28 + $0x30] sm:$0x1] %vm991_vm0, %v911_v44  ;;  %v2886_v0 = vmax.f32 %v783_v53, %v2285_v52  ;;  %v788_v46 = vmax.f32 %v660_v13, 0.0  ;;  %v914_v44 = vpack.c.bf16 %v786_v30, %v786_v30  ;;  %v2288_v52 = vrot.slane %v786_v30, 9 }
  0x77   : > { %1041 = vst.msk [vmem:[%s2494_s28 + $0x31] sm:$0x1] %vm991_vm0, %v912_v8  ;;  %v2891_v35 = vmax.f32 %v784_v6, %v2286_v57  ;;  %v2897_v53 = vmax.f32 %v785_v2, %v2287_v7  ;;  %v662_v10 = vadd.f32 %v2879_v1, %v530_v54  ;;  %v273_v8 = vld [vmem:[%s2454_s21 + $0x3a] sm:$0x1]  ;;  %v915_v59 = vpack.c.bf16 %v787_v25, %v787_v25 }
  0x78   : > { %1042 = vst.msk [vmem:[%s2494_s28 + $0x32] sm:$0x1] %vm991_vm0, %v913_v43  ;;  %v2289_v6 = vrot.slane %v787_v25, 9  ;;  %v916_v57 = vpack.c.bf16 %v788_v46, %v788_v46  ;;  %v2290_v4 = vrot.slane %v788_v46, 9  ;;  %v2904_v13 = vmax.f32 %v786_v30, %v2288_v52 }
  0x79   : > { %1043 = vst.msk [vmem:[%s2494_s28 + $0x33] sm:$0x1] %vm991_vm0, %v914_v44  ;;  %v789_v2 = vmax.f32 %v661_v9, 0.0  ;;  %v2906_v43 = vmax.f32 %v662_v10, 0.0  ;;  %v399_v7 = vunpack.c.l.bf16 %v271_v34  ;;  %v401_v60 = vunpack.c.l.bf16 %v273_v8  ;;  %v278_v10 = vld [vmem:[%s2454_s21 + $0x3f] sm:$0x1] }
  0x7a   : > { %1044 = vst.msk [vmem:[%s2494_s28 + $0x34] sm:$0x1] %vm991_vm0, %v915_v59  ;;  %v2911_v54 = vmax.f32 %v787_v25, %v2289_v6  ;;  %v2913_v33 = vmax.f32 %v788_v46, %v2290_v4  ;;  %v2925_v25 = vld [vmem:[%s3759_s1] ss:$0 sm:$0xff]  ;;  %v402_v52 = vunpack.c.l.bf16 %v274_v42  ;;  %v403_v6 = vunpack.c.l.bf16 %v275_v5 }
  0x7b   : > { %3803 = vst [vmem:[#allocation4_spill] sm:$0xff] %v2906_v43  ;;  %v917_v30 = vpack.c.bf16 %v789_v2, %v789_v2  ;;  %v2291_v9 = vrot.slane %v789_v2, 9  ;;  %v918_v34 = vpack.c.bf16 %v2906_v43, %v2906_v43  ;;  %v531_v46 = vmul.f32 %v2925_v25, %v399_v7 }
  0x7c   : > { %3804 = vst [vmem:[#allocation5_spill] sm:$0xff] %v2913_v33  ;;  %v532_v11 = vmul.f32 %v2925_v25, %v400_v32  ;;  %v533_v44 = vmul.f32 %v2925_v25, %v401_v60  ;;  %v405_v4 = vunpack.c.l.bf16 %v277_v29  ;;  %v534_v32 = vmul.f32 %v2925_v25, %v402_v52 }
  0x7d   : > { %1045 = vst.msk [vmem:[%s2494_s28 + $0x35] sm:$0x1] %vm991_vm0, %v916_v57  ;;  %v2933_v8 = vmax.f32 %v789_v2, %v2291_v9  ;;  %v404_v57 = vunpack.c.l.bf16 %v276_v27  ;;  %v663_v59 = vadd.f32 %v2879_v1, %v531_v46  ;;  %v535_v60 = vmul.f32 %v2925_v25, %v403_v6 }
  0x7e   : > { %1046 = vst.msk [vmem:[%s2494_s28 + $0x36] sm:$0x1] %vm991_vm0, %v917_v30  ;;  %v664_v12 = vadd.f32 %v2879_v1, %v532_v11  ;;  %v665_v7 = vadd.f32 %v2879_v1, %v533_v44  ;;  %v537_v2 = vmul.f32 %v2925_v25, %v405_v4  ;;  %v406_v30 = vunpack.c.l.bf16 %v278_v10 }
  0x7f   : > { %3805 = vst [vmem:[#allocation6_spill] sm:$0xff] %v2933_v8  ;;  %v536_v42 = vmul.f32 %v2925_v25, %v404_v57  ;;  %v791_v5 = vmax.f32 %v663_v59, 0.0  ;;  %v666_v9 = vadd.f32 %v2879_v1, %v534_v32 }
  0x80   : > { %1047 = vst.msk [vmem:[%s2494_s28 + $0x37] sm:$0x1] %vm991_vm0, %v918_v34  ;;  %v792_v27 = vmax.f32 %v664_v12, 0.0  ;;  %v793_v29 = vmax.f32 %v665_v7, 0.0  ;;  %v667_v34 = vadd.f32 %v2879_v1, %v535_v60  ;;  %v669_v11 = vadd.f32 %v2879_v1, %v537_v2 }
  0x81   : > { %v668_v46 = vadd.f32 %v2879_v1, %v536_v42  ;;  %v538_v44 = vmul.f32 %v2925_v25, %v406_v30  ;;  %v919_v52 = vpack.c.bf16 %v791_v5, %v791_v5  ;;  %v2349_v6 = vrot.slane %v791_v5, 9 }
  0x82   : > { %v920_v57 = vpack.c.bf16 %v792_v27, %v792_v27  ;;  %v2350_v4 = vrot.slane %v792_v27, 9  ;;  %v921_v10 = vpack.c.bf16 %v793_v29, %v793_v29  ;;  %v2351_v59 = vrot.slane %v793_v29, 9 }
  0x83   : > { %v794_v12 = vmax.f32 %v666_v9, 0.0  ;;  %v795_v7 = vmax.f32 %v667_v34, 0.0  ;;  %1048 = vst.msk [vmem:[%s2494_s28 + $0x38] sm:$0x1] %vm991_vm0, %v919_v52  ;;  %v1720_v32 = vmax.f32 %v791_v5, %v2349_v6  ;;  %v796_v42 = vmax.f32 %v668_v46, 0.0 }
  0x84   : > { %v1721_v60 = vmax.f32 %v792_v27, %v2350_v4  ;;  %v797_v8 = vmax.f32 %v669_v11, 0.0  ;;  %1049 = vst.msk [vmem:[%s2494_s28 + $0x39] sm:$0x1] %vm991_vm0, %v920_v57  ;;  %v1722_v2 = vmax.f32 %v793_v29, %v2351_v59  ;;  %v279_v57 = vld [vmem:[%s2454_s21 + $0x40] sm:$0x1] }
  0x85   : > { %v922_v30 = vpack.c.bf16 %v794_v12, %v794_v12  ;;  %v2352_v33 = vrot.slane %v794_v12, 9  ;;  %v923_v43 = vpack.c.bf16 %v795_v7, %v795_v7  ;;  %v1784_v63 = vmax.f32 %v2886_v0, %v1720_v32  ;;  %1050 = vst.msk [vmem:[%s2494_s28 + $0x3a] sm:$0x1] %vm991_vm0, %v921_v10  ;;  %v280_v59 = vld [vmem:[%s2454_s21 + $0x41] sm:$0x1] }
  0x86   : > { %v1785_v9 = vmax.f32 %v2891_v35, %v1721_v60  ;;  %v2353_v34 = vrot.slane %v795_v7, 9  ;;  %v924_v5 = vpack.c.bf16 %v796_v42, %v796_v42  ;;  %v1786_v27 = vmax.f32 %v2897_v53, %v1722_v2  ;;  %v282_v2 = vld [vmem:[%s2454_s21 + $0x43] sm:$0x1] }
  0x87   : > { %1051 = vst.msk [vmem:[%s2494_s28 + $0x3b] sm:$0x1] %vm991_vm0, %v922_v30  ;;  %v1723_v29 = vmax.f32 %v794_v12, %v2352_v33  ;;  %v2354_v46 = vrot.slane %v796_v42, 9  ;;  %v925_v11 = vpack.c.bf16 %v797_v8, %v797_v8  ;;  %v1848_v52 = vpack.c.bf16 %v1784_v63, %v1784_v63  ;;  %v281_v63 = vld [vmem:[%s2454_s21 + $0x42] sm:$0x1] }
  0x88   : > { %v1849_v6 = vpack.c.bf16 %v1785_v9, %v1785_v9  ;;  %1052 = vst.msk [vmem:[%s2494_s28 + $0x3c] sm:$0x1] %vm991_vm0, %v923_v43  ;;  %v1724_v0 = vmax.f32 %v795_v7, %v2353_v34  ;;  %v2355_v35 = vrot.slane %v797_v8, 9  ;;  %v1850_v4 = vpack.c.bf16 %v1786_v27, %v1786_v27  ;;  %v283_v30 = vld [vmem:[%s2454_s21 + $0x44] sm:$0x1] }
  0x89   : > { %v1787_v10 = vmax.f32 %v2904_v13, %v1723_v29  ;;  %1053 = vst.msk [vmem:[%s2494_s28 + $0x3d] sm:$0x1] %vm991_vm0, %v924_v5  ;;  %v2966_v53 = vmax.f32 %v796_v42, %v2354_v46  ;;  %v670_v33 = vadd.f32 %v2879_v1, %v538_v44  ;;  %v2971_v12 = vunpack.c.l.b16 %v1848_v52  ;;  %v284_v27 = vld [vmem:[%s2454_s21 + $0x45] sm:$0x1] }
  0x8a   : > { %v2973_v43 = vunpack.c.l.b16 %v1849_v6  ;;  %v2976_v7 = vmax.f32 %v2911_v54, %v1724_v0  ;;  %1054 = vst.msk [vmem:[%s2494_s28 + $0x3e] sm:$0x1] %vm991_vm0, %v925_v11  ;;  %v2980_v13 = vmax.f32 %v797_v8, %v2355_v35  ;;  %v2982_v32 = vunpack.c.l.b16 %v1850_v4  ;;  %v285_v8 = vld [vmem:[%s2454_s21 + $0x46] sm:$0x1]  ;;  %v286_v4 = vld [vmem:[%s2454_s21 + $0x47] sm:$0x1] }
  0x8b   : > { %3806 = vst [vmem:[#allocation7_spill] sm:$0xff] %v2966_v53  ;;  %v1851_v60 = vpack.c.bf16 %v1787_v10, %v1787_v10  ;;  %v2984_v42 = vmax.f32 %v670_v33, 0.0  ;;  %v407_v44 = vunpack.c.l.bf16 %v279_v57  ;;  %v408_v34 = vunpack.c.l.bf16 %v280_v59 }
  0x8c   : > { %3807 = vst [vmem:[#allocation8_spill] sm:$0xff] %v2971_v12  ;;  %v409_v5 = vunpack.c.l.bf16 %v281_v63  ;;  %v410_v57 = vunpack.c.l.bf16 %v282_v2  ;;  %v411_v33 = vunpack.c.l.bf16 %v283_v30  ;;  %v412_v59 = vunpack.c.l.bf16 %v284_v27  ;;  %v290_v12 = vld [vmem:[%s2454_s21 + $0x4b] sm:$0x1] }
  0x8d   : > { %3808 = vst [vmem:[#allocation9_spill] sm:$0xff] %v2973_v43  ;;  %v2994_v46 = vunpack.c.l.b16 %v1851_v60  ;;  %v926_v11 = vpack.c.bf16 %v2984_v42, %v2984_v42  ;;  %v539_v6 = vmul.f32 %v2925_v25, %v407_v44  ;;  %v540_v0 = vmul.f32 %v2925_v25, %v408_v34 }
  0x8e   : > { %3809 = vst [vmem:[#allocation10_spill] sm:$0xff] %v2976_v7  ;;  %v541_v35 = vmul.f32 %v2925_v25, %v409_v5  ;;  %v413_v63 = vunpack.c.l.bf16 %v285_v8  ;;  %v542_v44 = vmul.f32 %v2925_v25, %v410_v57  ;;  %v543_v34 = vmul.f32 %v2925_v25, %v411_v33 }
  0x8f   : > { %3810 = vst [vmem:[#allocation11_spill] sm:$0xff] %v2980_v13  ;;  %v671_v60 = vadd.f32 %v2879_v1, %v539_v6  ;;  %v672_v29 = vadd.f32 %v2879_v1, %v540_v0  ;;  %v544_v2 = vmul.f32 %v2925_v25, %v412_v59  ;;  %v414_v10 = vunpack.c.l.bf16 %v286_v4 }
  0x90   : > { %3811 = vst [vmem:[#allocation12_spill] sm:$0xff] %v2982_v32  ;;  %v673_v9 = vadd.f32 %v2879_v1, %v541_v35  ;;  %v545_v5 = vmul.f32 %v2925_v25, %v413_v63  ;;  %v674_v8 = vadd.f32 %v2879_v1, %v542_v44  ;;  %v675_v6 = vadd.f32 %v2879_v1, %v543_v34  ;;  %v288_v34 = vld [vmem:[%s2454_s21 + $0x49] sm:$0x1] }
  0x91   : > { %3812 = vst [vmem:[#allocation13_spill] sm:$0xff] %v2984_v42  ;;  %v800_v30 = vmax.f32 %v672_v29, 0.0  ;;  %v676_v0 = vadd.f32 %v2879_v1, %v544_v2  ;;  %v546_v57 = vmul.f32 %v2925_v25, %v414_v10  ;;  %v287_v29 = vld [vmem:[%s2454_s21 + $0x48] sm:$0x1]  ;;  %v416_v13 = vunpack.c.l.bf16 %v288_v34  ;;  %v293_v34 = vld [vmem:[%s2454_s21 + $0x4e] sm:$0x1] }
  0x92   : > { %3813 = vst [vmem:[#allocation14_spill] sm:$0xff] %v2994_v46  ;;  %v801_v27 = vmax.f32 %v673_v9, 0.0  ;;  %v677_v35 = vadd.f32 %v2879_v1, %v545_v5  ;;  %v802_v44 = vmax.f32 %v674_v8, 0.0  ;;  %v803_v54 = vmax.f32 %v675_v6, 0.0  ;;  %v289_v46 = vld [vmem:[%s2454_s21 + $0x4a] sm:$0x1] }
  0x93   : > { %1055 = vst.msk [vmem:[%s2494_s28 + $0x3f] sm:$0x1] %vm991_vm0, %v926_v11  ;;  %v799_v11 = vmax.f32 %v671_v60, 0.0  ;;  %v928_v4 = vpack.c.bf16 %v800_v30, %v800_v30  ;;  %v2294_v63 = vrot.slane %v800_v30, 9  ;;  %v804_v5 = vmax.f32 %v676_v0, 0.0 }
  0x94   : > { %v929_v60 = vpack.c.bf16 %v801_v27, %v801_v27  ;;  %v2295_v9 = vrot.slane %v801_v27, 9  ;;  %v805_v52 = vmax.f32 %v677_v35, 0.0  ;;  %v930_v43 = vpack.c.bf16 %v802_v44, %v802_v44  ;;  %v291_v0 = vld [vmem:[%s2454_s21 + $0x4c] sm:$0x1] }
  0x95   : > { %v927_v33 = vpack.c.bf16 %v799_v11, %v799_v11  ;;  %v2293_v59 = vrot.slane %v799_v11, 9  ;;  %v3024_v10 = vmax.f32 %v800_v30, %v2294_v63  ;;  %1057 = vst.msk [vmem:[%s2494_s28 + $0x41] sm:$0x1] %vm991_vm0, %v928_v4  ;;  %v2296_v8 = vrot.slane %v802_v44, 9 }
  0x96   : > { %v3029_v32 = vmax.f32 %v801_v27, %v2295_v9  ;;  %v931_v6 = vpack.c.bf16 %v803_v54, %v803_v54  ;;  %1058 = vst.msk [vmem:[%s2494_s28 + $0x42] sm:$0x1] %vm991_vm0, %v929_v60  ;;  %v932_v30 = vpack.c.bf16 %v804_v5, %v804_v5  ;;  %v2299_v27 = vrot.slane %v805_v52, 9  ;;  %v292_v9 = vld [vmem:[%s2454_s21 + $0x4d] sm:$0x1] }
  0x97   : > { %1056 = vst.msk [vmem:[%s2494_s28 + $0x40] sm:$0x1] %vm991_vm0, %v927_v33  ;;  %v3022_v2 = vmax.f32 %v799_v11, %v2293_v59  ;;  %v2297_v11 = vrot.slane %v803_v54, 9  ;;  %v2298_v33 = vrot.slane %v804_v5, 9  ;;  %v933_v59 = vpack.c.bf16 %v805_v52, %v805_v52 }
  0x98   : > { %1059 = vst.msk [vmem:[%s2494_s28 + $0x43] sm:$0x1] %vm991_vm0, %v930_v43  ;;  %v3037_v35 = vmax.f32 %v802_v44, %v2296_v8  ;;  %v678_v4 = vadd.f32 %v2879_v1, %v546_v57  ;;  %v415_v63 = vunpack.c.l.bf16 %v287_v29  ;;  %v417_v53 = vunpack.c.l.bf16 %v289_v46  ;;  %v294_v46 = vld [vmem:[%s2454_s21 + $0x4f] sm:$0x1] }
  0x99   : > { %1060 = vst.msk [vmem:[%s2494_s28 + $0x44] sm:$0x1] %vm991_vm0, %v931_v6  ;;  %v3043_v60 = vmax.f32 %v803_v54, %v2297_v11  ;;  %v3045_v7 = vmax.f32 %v804_v5, %v2298_v33  ;;  %v3049_v43 = vmax.f32 %v805_v52, %v2299_v27  ;;  %v418_v29 = vunpack.c.l.bf16 %v290_v12 }
  0x9a   : > { %1061 = vst.msk [vmem:[%s2494_s28 + $0x45] sm:$0x1] %vm991_vm0, %v932_v30  ;;  %v3051_v44 = vmax.f32 %v678_v4, 0.0  ;;  %v547_v57 = vmul.f32 %v2925_v25, %v415_v63  ;;  %v548_v8 = vmul.f32 %v2925_v25, %v416_v13  ;;  %v549_v54 = vmul.f32 %v2925_v25, %v417_v53 }
  0x9b   : > { %3814 = vst [vmem:[#allocation15_spill] sm:$0xff] %v3045_v7  ;;  %v419_v5 = vunpack.c.l.bf16 %v291_v0  ;;  %v420_v6 = vunpack.c.l.bf16 %v292_v9  ;;  %v550_v12 = vmul.f32 %v2925_v25, %v418_v29  ;;  %v421_v4 = vunpack.c.l.bf16 %v293_v34 }
  0x9c   : > { %3815 = vst [vmem:[#allocation16_spill] sm:$0xff] %v3049_v43  ;;  %v934_v52 = vpack.c.bf16 %v3051_v44, %v3051_v44  ;;  %v679_v30 = vadd.f32 %v2879_v1, %v547_v57  ;;  %v680_v33 = vadd.f32 %v2879_v1, %v548_v8  ;;  %v422_v63 = vunpack.c.l.bf16 %v294_v46 }
  0x9d   : > { %3816 = vst [vmem:[#allocation17_spill] sm:$0xff] %v3051_v44  ;;  %v551_v13 = vmul.f32 %v2925_v25, %v419_v5  ;;  %v552_v53 = vmul.f32 %v2925_v25, %v420_v6  ;;  %v682_v27 = vadd.f32 %v2879_v1, %v550_v12  ;;  %v553_v6 = vmul.f32 %v2925_v25, %v421_v4 }
  0x9e   : > { %1062 = vst.msk [vmem:[%s2494_s28 + $0x46] sm:$0x1] %vm991_vm0, %v933_v59  ;;  %v681_v59 = vadd.f32 %v2879_v1, %v549_v54  ;;  %v807_v0 = vmax.f32 %v679_v30, 0.0  ;;  %v808_v9 = vmax.f32 %v680_v33, 0.0 }
  0x9f   : > { %1063 = vst.msk [vmem:[%s2494_s28 + $0x47] sm:$0x1] %vm991_vm0, %v934_v52  ;;  %v683_v29 = vadd.f32 %v2879_v1, %v551_v13  ;;  %v684_v8 = vadd.f32 %v2879_v1, %v552_v53  ;;  %v810_v5 = vmax.f32 %v682_v27, 0.0  ;;  %v685_v27 = vadd.f32 %v2879_v1, %v553_v6 }
  0xa0   : > { %v809_v57 = vmax.f32 %v681_v59, 0.0  ;;  %v935_v54 = vpack.c.bf16 %v807_v0, %v807_v0  ;;  %v2357_v11 = vrot.slane %v807_v0, 9  ;;  %v936_v52 = vpack.c.bf16 %v808_v9, %v808_v9 }
  0xa1   : > { %v2358_v30 = vrot.slane %v808_v9, 9  ;;  %v938_v46 = vpack.c.bf16 %v810_v5, %v810_v5  ;;  %v2360_v12 = vrot.slane %v810_v5, 9  ;;  %v811_v33 = vmax.f32 %v683_v29, 0.0 }
  0xa2   : > { %v937_v43 = vpack.c.bf16 %v809_v57, %v809_v57  ;;  %v2359_v7 = vrot.slane %v809_v57, 9  ;;  %1064 = vst.msk [vmem:[%s2494_s28 + $0x48] sm:$0x1] %vm991_vm0, %v935_v54  ;;  %v1728_v34 = vmax.f32 %v807_v0, %v2357_v11  ;;  %v812_v53 = vmax.f32 %v684_v8, 0.0 }
  0xa3   : > { %1065 = vst.msk [vmem:[%s2494_s28 + $0x49] sm:$0x1] %vm991_vm0, %v936_v52  ;;  %v1729_v59 = vmax.f32 %v808_v9, %v2358_v30  ;;  %v1731_v44 = vmax.f32 %v810_v5, %v2360_v12  ;;  %v939_v54 = vpack.c.bf16 %v811_v33, %v811_v33  ;;  %v2361_v11 = vrot.slane %v811_v33, 9  ;;  %v295_v52 = vld [vmem:[%s2454_s21 + $0x50] sm:$0x1] }
  0xa4   : > { %v1730_v13 = vmax.f32 %v809_v57, %v2359_v7  ;;  %v1792_v4 = vmax.f32 %v3022_v2, %v1728_v34  ;;  %1066 = vst.msk [vmem:[%s2494_s28 + $0x4a] sm:$0x1] %vm991_vm0, %v937_v43  ;;  %v940_v7 = vpack.c.bf16 %v812_v53, %v812_v53  ;;  %v2362_v9 = vrot.slane %v812_v53, 9  ;;  %v296_v30 = vld [vmem:[%s2454_s21 + $0x51] sm:$0x1] }
  0xa5   : > { %v1793_v0 = vmax.f32 %v3024_v10, %v1729_v59  ;;  %1067 = vst.msk [vmem:[%s2494_s28 + $0x4b] sm:$0x1] %vm991_vm0, %v938_v46  ;;  %v1795_v8 = vmax.f32 %v3037_v35, %v1731_v44  ;;  %v1732_v2 = vmax.f32 %v811_v33, %v2361_v11  ;;  %v813_v43 = vmax.f32 %v685_v27, 0.0  ;;  %v299_v11 = vld [vmem:[%s2454_s21 + $0x54] sm:$0x1] }
  0xa6   : > { %v1794_v29 = vmax.f32 %v3029_v32, %v1730_v13  ;;  %v1856_v57 = vpack.c.bf16 %v1792_v4, %v1792_v4  ;;  %1068 = vst.msk [vmem:[%s2494_s28 + $0x4c] sm:$0x1] %vm991_vm0, %v939_v54  ;;  %v3092_v10 = vmax.f32 %v812_v53, %v2362_v9  ;;  %v554_v32 = vmul.f32 %v2925_v25, %v422_v63  ;;  %v297_v63 = vld [vmem:[%s2454_s21 + $0x52] sm:$0x1]  ;;  %v298_v54 = vld [vmem:[%s2454_s21 + $0x53] sm:$0x1] }
  0xa7   : > { %v1857_v5 = vpack.c.bf16 %v1793_v0, %v1793_v0  ;;  %1069 = vst.msk [vmem:[%s2494_s28 + $0x4d] sm:$0x1] %vm991_vm0, %v940_v7  ;;  %v1859_v35 = vpack.c.bf16 %v1795_v8, %v1795_v8  ;;  %v3100_v44 = vmax.f32 %v3043_v60, %v1732_v2  ;;  %v941_v46 = vpack.c.bf16 %v813_v43, %v813_v43 }
  0xa8   : > { %v1858_v6 = vpack.c.bf16 %v1794_v29, %v1794_v29  ;;  %3817 = vst [vmem:[#allocation18_spill] sm:$0xff] %v3092_v10  ;;  %v3097_v34 = vunpack.c.l.b16 %v1856_v57  ;;  %v2363_v59 = vrot.slane %v813_v43, 9  ;;  %v686_v13 = vadd.f32 %v2879_v1, %v554_v32  ;;  %v300_v57 = vld [vmem:[%s2454_s21 + $0x55] sm:$0x1]  ;;  %v301_v32 = vld [vmem:[%s2454_s21 + $0x56] sm:$0x1] }
  0xa9   : > { %3819 = vst [vmem:[#allocation20_spill] sm:$0xff] %v3100_v44  ;;  %v3102_v12 = vunpack.c.l.b16 %v1857_v5  ;;  %v3108_v53 = vunpack.c.l.b16 %v1859_v35  ;;  %v423_v60 = vunpack.c.l.bf16 %v295_v52  ;;  %v424_v4 = vunpack.c.l.bf16 %v296_v30  ;;  %v302_v52 = vld [vmem:[%s2454_s21 + $0x57] sm:$0x1]  ;;  %v310_v10 = vld [vmem:[%s2454_s21 + $0x5f] sm:$0x1] }
  0xaa   : > { %3818 = vst [vmem:[#allocation19_spill] sm:$0xff] %v3097_v34  ;;  %v3104_v33 = vunpack.c.l.b16 %v1858_v6  ;;  %v3118_v7 = vmax.f32 %v813_v43, %v2363_v59  ;;  %v3120_v9 = vmax.f32 %v686_v13, 0.0  ;;  %v425_v6 = vunpack.c.l.bf16 %v297_v63  ;;  %v307_v34 = vld [vmem:[%s2454_s21 + $0x5c] sm:$0x1] }
  0xab   : > { %3820 = vst [vmem:[#allocation21_spill] sm:$0xff] %v3102_v12  ;;  %v555_v2 = vmul.f32 %v2925_v25, %v423_v60  ;;  %v556_v5 = vmul.f32 %v2925_v25, %v424_v4  ;;  %v426_v43 = vunpack.c.l.bf16 %v298_v54  ;;  %v428_v29 = vunpack.c.l.bf16 %v300_v57 }
  0xac   : > { %3821 = vst [vmem:[#allocation22_spill] sm:$0xff] %v3104_v33  ;;  %v942_v30 = vpack.c.bf16 %v3120_v9, %v3120_v9  ;;  %v557_v8 = vmul.f32 %v2925_v25, %v425_v6  ;;  %v429_v4 = vunpack.c.l.bf16 %v301_v32  ;;  %v430_v0 = vunpack.c.l.bf16 %v302_v52 }
  0xad   : > { %3822 = vst [vmem:[#allocation23_spill] sm:$0xff] %v3108_v53  ;;  %v687_v59 = vadd.f32 %v2879_v1, %v555_v2  ;;  %v688_v13 = vadd.f32 %v2879_v1, %v556_v5  ;;  %v558_v63 = vmul.f32 %v2925_v25, %v426_v43  ;;  %v435_v42 = vunpack.c.l.bf16 %v307_v34 }
  0xae   : > { %1070 = vst.msk [vmem:[%s2494_s28 + $0x4e] sm:$0x1] %vm991_vm0, %v941_v46  ;;  %v427_v46 = vunpack.c.l.bf16 %v299_v11  ;;  %v689_v54 = vadd.f32 %v2879_v1, %v557_v8  ;;  %v560_v11 = vmul.f32 %v2925_v25, %v428_v29  ;;  %v561_v57 = vmul.f32 %v2925_v25, %v429_v4  ;;  %v303_v4 = vld [vmem:[%s2454_s21 + $0x58] sm:$0x1] }
  0xaf   : > { %3823 = vst [vmem:[#allocation24_spill] sm:$0xff] %v3118_v7  ;;  %v815_v27 = vmax.f32 %v687_v59, 0.0  ;;  %v816_v35 = vmax.f32 %v688_v13, 0.0  ;;  %v690_v2 = vadd.f32 %v2879_v1, %v558_v63  ;;  %v562_v6 = vmul.f32 %v2925_v25, %v430_v0 }
  0xb0   : > { %3824 = vst [vmem:[#allocation25_spill] sm:$0xff] %v3120_v9  ;;  %v559_v60 = vmul.f32 %v2925_v25, %v427_v46  ;;  %v817_v46 = vmax.f32 %v689_v54, 0.0  ;;  %v692_v29 = vadd.f32 %v2879_v1, %v560_v11  ;;  %v693_v0 = vadd.f32 %v2879_v1, %v561_v57  ;;  %v306_v57 = vld [vmem:[%s2454_s21 + $0x5b] sm:$0x1] }
  0xb1   : > { %1071 = vst.msk [vmem:[%s2494_s28 + $0x4f] sm:$0x1] %vm991_vm0, %v942_v30  ;;  %v943_v30 = vpack.c.bf16 %v815_v27, %v815_v27  ;;  %v2301_v32 = vrot.slane %v815_v27, 9  ;;  %v944_v52 = vpack.c.bf16 %v816_v35, %v816_v35  ;;  %v2302_v43 = vrot.slane %v816_v35, 9 }
  0xb2   : > { %v691_v5 = vadd.f32 %v2879_v1, %v559_v60  ;;  %v818_v8 = vmax.f32 %v690_v2, 0.0  ;;  %v694_v60 = vadd.f32 %v2879_v1, %v562_v6  ;;  %v945_v54 = vpack.c.bf16 %v817_v46, %v817_v46 }
  0xb3   : > { %1072 = vst.msk [vmem:[%s2494_s28 + $0x50] sm:$0x1] %vm991_vm0, %v943_v30  ;;  %v3147_v13 = vmax.f32 %v815_v27, %v2301_v32  ;;  %v3149_v63 = vmax.f32 %v816_v35, %v2302_v43  ;;  %v2303_v2 = vrot.slane %v817_v46, 9  ;;  %v304_v30 = vld [vmem:[%s2454_s21 + $0x59] sm:$0x1]  ;;  %v820_v43 = vmax.f32 %v692_v29, 0.0 }
  0xb4   : > { %v819_v59 = vmax.f32 %v691_v5, 0.0  ;;  %1073 = vst.msk [vmem:[%s2494_s28 + $0x51] sm:$0x1] %vm991_vm0, %v944_v52  ;;  %v946_v11 = vpack.c.bf16 %v818_v8, %v818_v8  ;;  %v2304_v5 = vrot.slane %v818_v8, 9  ;;  %v305_v27 = vld [vmem:[%s2454_s21 + $0x5a] sm:$0x1]  ;;  %v431_v12 = vunpack.c.l.bf16 %v303_v4 }
  0xb5   : > { %v821_v53 = vmax.f32 %v693_v0, 0.0  ;;  %1074 = vst.msk [vmem:[%s2494_s28 + $0x52] sm:$0x1] %vm991_vm0, %v945_v54  ;;  %v3161_v6 = vmax.f32 %v817_v46, %v2303_v2  ;;  %v3165_v33 = vmax.f32 %v694_v60, 0.0  ;;  %v948_v29 = vpack.c.bf16 %v820_v43, %v820_v43  ;;  %v308_v54 = vld [vmem:[%s2454_s21 + $0x5d] sm:$0x1] }
  0xb6   : > { %v947_v32 = vpack.c.bf16 %v819_v59, %v819_v59  ;;  %v2305_v35 = vrot.slane %v819_v59, 9  ;;  %v3163_v52 = vmax.f32 %v818_v8, %v2304_v5  ;;  %1075 = vst.msk [vmem:[%s2494_s28 + $0x53] sm:$0x1] %vm991_vm0, %v946_v11  ;;  %v2306_v0 = vrot.slane %v820_v43, 9  ;;  %v309_v2 = vld [vmem:[%s2454_s21 + $0x5e] sm:$0x1] }
  0xb7   : > { %v949_v7 = vpack.c.bf16 %v821_v53, %v821_v53  ;;  %v2307_v46 = vrot.slane %v821_v53, 9  ;;  %v950_v8 = vpack.c.bf16 %v3165_v33, %v3165_v33  ;;  %v563_v4 = vmul.f32 %v2925_v25, %v431_v12  ;;  %1077 = vst.msk [vmem:[%s2494_s28 + $0x55] sm:$0x1] %vm991_vm0, %v948_v29 }
  0xb8   : > { %v3170_v44 = vmax.f32 %v819_v59, %v2305_v35  ;;  %1076 = vst.msk [vmem:[%s2494_s28 + $0x54] sm:$0x1] %vm991_vm0, %v947_v32  ;;  %v3182_v59 = vmax.f32 %v820_v43, %v2306_v0  ;;  %v432_v11 = vunpack.c.l.bf16 %v304_v30  ;;  %v433_v5 = vunpack.c.l.bf16 %v305_v27 }
  0xb9   : > { %v434_v35 = vunpack.c.l.bf16 %v306_v57  ;;  %1078 = vst.msk [vmem:[%s2494_s28 + $0x56] sm:$0x1] %vm991_vm0, %v949_v7  ;;  %v3187_v32 = vmax.f32 %v821_v53, %v2307_v46  ;;  %v695_v9 = vadd.f32 %v2879_v1, %v563_v4  ;;  %v436_v37 = vunpack.c.l.bf16 %v308_v54 }
  0xba   : > { %3825 = vst [vmem:[#allocation26_spill] sm:$0xff] %v3182_v59  ;;  %v564_v12 = vmul.f32 %v2925_v25, %v432_v11  ;;  %v565_v29 = vmul.f32 %v2925_v25, %v433_v5  ;;  %v437_v30 = vunpack.c.l.bf16 %v309_v2  ;;  %v567_v57 = vmul.f32 %v2925_v25, %v435_v42 }
  0xbb   : > { %3826 = vst [vmem:[#allocation27_spill] sm:$0xff] %v3187_v32  ;;  %v566_v43 = vmul.f32 %v2925_v25, %v434_v35  ;;  %v823_v27 = vmax.f32 %v695_v9, 0.0  ;;  %v568_v53 = vmul.f32 %v2925_v25, %v436_v37  ;;  %v438_v7 = vunpack.c.l.bf16 %v310_v10 }
  0xbc   : > { %1079 = vst.msk [vmem:[%s2494_s28 + $0x57] sm:$0x1] %vm991_vm0, %v950_v8  ;;  %v696_v0 = vadd.f32 %v2879_v1, %v564_v12  ;;  %v697_v34 = vadd.f32 %v2879_v1, %v565_v29  ;;  %v569_v46 = vmul.f32 %v2925_v25, %v437_v30  ;;  %v699_v11 = vadd.f32 %v2879_v1, %v567_v57 }
  0xbd   : > { %v698_v54 = vadd.f32 %v2879_v1, %v566_v43  ;;  %v951_v8 = vpack.c.bf16 %v823_v27, %v823_v27  ;;  %v2365_v4 = vrot.slane %v823_v27, 9  ;;  %v700_v9 = vadd.f32 %v2879_v1, %v568_v53 }
  0xbe   : > { %v824_v2 = vmax.f32 %v696_v0, 0.0  ;;  %v825_v5 = vmax.f32 %v697_v34, 0.0  ;;  %v701_v37 = vadd.f32 %v2879_v1, %v569_v46  ;;  %v827_v35 = vmax.f32 %v699_v11, 0.0 }
  0xbf   : > { %v826_v42 = vmax.f32 %v698_v54, 0.0  ;;  %1080 = vst.msk [vmem:[%s2494_s28 + $0x58] sm:$0x1] %vm991_vm0, %v951_v8  ;;  %v1736_v10 = vmax.f32 %v823_v27, %v2365_v4  ;;  %v828_v12 = vmax.f32 %v700_v9, 0.0  ;;  %v570_v29 = vmul.f32 %v2925_v25, %v438_v7 }
  0xc0   : > { %v952_v43 = vpack.c.bf16 %v824_v2, %v824_v2  ;;  %v2366_v30 = vrot.slane %v824_v2, 9  ;;  %v953_v60 = vpack.c.bf16 %v825_v5, %v825_v5  ;;  %v2367_v57 = vrot.slane %v825_v5, 9 }
  0xc1   : > { %v1800_v53 = vmax.f32 %v3147_v13, %v1736_v10  ;;  %v954_v0 = vpack.c.bf16 %v826_v42, %v826_v42  ;;  %v2368_v34 = vrot.slane %v826_v42, 9  ;;  %v955_v54 = vpack.c.bf16 %v827_v35, %v827_v35 }
  0xc2   : > { %1081 = vst.msk [vmem:[%s2494_s28 + $0x59] sm:$0x1] %vm991_vm0, %v952_v43  ;;  %v1737_v27 = vmax.f32 %v824_v2, %v2366_v30  ;;  %v1738_v46 = vmax.f32 %v825_v5, %v2367_v57  ;;  %v2369_v8 = vrot.slane %v827_v35, 9  ;;  %v956_v4 = vpack.c.bf16 %v828_v12, %v828_v12  ;;  %v311_v5 = vld [vmem:[%s2454_s21 + $0x60] sm:$0x1] }
  0xc3   : > { %v1864_v7 = vpack.c.bf16 %v1800_v53, %v1800_v53  ;;  %1082 = vst.msk [vmem:[%s2494_s28 + $0x5a] sm:$0x1] %vm991_vm0, %v953_v60  ;;  %v1739_v11 = vmax.f32 %v826_v42, %v2368_v34  ;;  %v2370_v9 = vrot.slane %v828_v12, 9  ;;  %v829_v32 = vmax.f32 %v701_v37, 0.0  ;;  %v312_v30 = vld [vmem:[%s2454_s21 + $0x61] sm:$0x1] }
  0xc4   : > { %v1801_v13 = vmax.f32 %v3149_v63, %v1737_v27  ;;  %v1802_v10 = vmax.f32 %v3161_v6, %v1738_v46  ;;  %1083 = vst.msk [vmem:[%s2494_s28 + $0x5b] sm:$0x1] %vm991_vm0, %v954_v0  ;;  %v1740_v43 = vmax.f32 %v827_v35, %v2369_v8  ;;  %v702_v2 = vadd.f32 %v2879_v1, %v570_v29  ;;  %v313_v34 = vld [vmem:[%s2454_s21 + $0x62] sm:$0x1]  ;;  %v314_v8 = vld [vmem:[%s2454_s21 + $0x63] sm:$0x1] }
  0xc5   : > { %v3219_v57 = vunpack.c.l.b16 %v1864_v7  ;;  %v1803_v60 = vmax.f32 %v3163_v52, %v1739_v11  ;;  %1084 = vst.msk [vmem:[%s2494_s28 + $0x5c] sm:$0x1] %vm991_vm0, %v955_v54  ;;  %v3224_v42 = vmax.f32 %v828_v12, %v2370_v9  ;;  %v957_v63 = vpack.c.bf16 %v829_v32, %v829_v32 }
  0xc6   : > { %v1865_v6 = vpack.c.bf16 %v1801_v13, %v1801_v13  ;;  %v1866_v37 = vpack.c.bf16 %v1802_v10, %v1802_v10  ;;  %v3227_v35 = vmax.f32 %v3170_v44, %v1740_v43  ;;  %1085 = vst.msk [vmem:[%s2494_s28 + $0x5d] sm:$0x1] %vm991_vm0, %v956_v4  ;;  %v2371_v29 = vrot.slane %v829_v32, 9  ;;  %v315_v4 = vld [vmem:[%s2454_s21 + $0x64] sm:$0x1] }
  0xc7   : > { %3827 = vst [vmem:[#allocation28_spill] sm:$0xff] %v3219_v57  ;;  %v1867_v53 = vpack.c.bf16 %v1803_v60, %v1803_v60  ;;  %v3233_v52 = vmax.f32 %v702_v2, 0.0  ;;  %v439_v12 = vunpack.c.l.bf16 %v311_v5  ;;  %v440_v0 = vunpack.c.l.bf16 %v312_v30  ;;  %v316_v10 = vld [vmem:[%s2454_s21 + $0x65] sm:$0x1]  ;;  %v317_v43 = vld [vmem:[%s2454_s21 + $0x66] sm:$0x1] }
  0xc8   : > { %3828 = vst [vmem:[#allocation29_spill] sm:$0xff] %v3224_v42  ;;  %v3236_v54 = vunpack.c.l.b16 %v1865_v6  ;;  %v3238_v27 = vunpack.c.l.b16 %v1866_v37  ;;  %v3242_v46 = vmax.f32 %v829_v32, %v2371_v29  ;;  %v441_v30 = vunpack.c.l.bf16 %v313_v34  ;;  %v318_v60 = vld [vmem:[%s2454_s21 + $0x67] sm:$0x1] }
  0xc9   : > { %3829 = vst [vmem:[#allocation30_spill] sm:$0xff] %v3227_v35  ;;  %v3246_v7 = vunpack.c.l.b16 %v1867_v53  ;;  %v958_v11 = vpack.c.bf16 %v3233_v52, %v3233_v52  ;;  %v571_v13 = vmul.f32 %v2925_v25, %v439_v12  ;;  %v572_v32 = vmul.f32 %v2925_v25, %v440_v0  ;;  %v323_v35 = vld [vmem:[%s2454_s21 + $0x6c] sm:$0x1] }
  0xca   : > { %1086 = vst.msk [vmem:[%s2494_s28 + $0x5e] sm:$0x1] %vm991_vm0, %v957_v63  ;;  %v442_v37 = vunpack.c.l.bf16 %v314_v8  ;;  %v443_v29 = vunpack.c.l.bf16 %v315_v4  ;;  %v573_v12 = vmul.f32 %v2925_v25, %v441_v30  ;;  %v444_v44 = vunpack.c.l.bf16 %v316_v10 }
  0xcb   : > { %3830 = vst [vmem:[#allocation31_spill] sm:$0xff] %v3233_v52  ;;  %v703_v6 = vadd.f32 %v2879_v1, %v571_v13  ;;  %v704_v53 = vadd.f32 %v2879_v1, %v572_v32  ;;  %v445_v2 = vunpack.c.l.bf16 %v317_v43  ;;  %v446_v5 = vunpack.c.l.bf16 %v318_v60 }
  0xcc   : > { %3831 = vst [vmem:[#allocation32_spill] sm:$0xff] %v3236_v54  ;;  %v574_v0 = vmul.f32 %v2925_v25, %v442_v37  ;;  %v575_v34 = vmul.f32 %v2925_v25, %v443_v29  ;;  %v576_v8 = vmul.f32 %v2925_v25, %v444_v44 }
  0xcd   : > { %3832 = vst [vmem:[#allocation33_spill] sm:$0xff] %v3238_v27  ;;  %v831_v9 = vmax.f32 %v703_v6, 0.0  ;;  %v832_v63 = vmax.f32 %v704_v53, 0.0  ;;  %v577_v4 = vmul.f32 %v2925_v25, %v445_v2  ;;  %v578_v54 = vmul.f32 %v2925_v25, %v446_v5 }
  0xce   : > { %3833 = vst [vmem:[#allocation34_spill] sm:$0xff] %v3242_v46  ;;  %v706_v10 = vadd.f32 %v2879_v1, %v574_v0  ;;  %v707_v43 = vadd.f32 %v2879_v1, %v575_v34  ;;  %v708_v60 = vadd.f32 %v2879_v1, %v576_v8  ;;  %v319_v8 = vld [vmem:[%s2454_s21 + $0x68] sm:$0x1] }
  0xcf   : > { %3834 = vst [vmem:[#allocation35_spill] sm:$0xff] %v3246_v7  ;;  %v959_v13 = vpack.c.bf16 %v831_v9, %v831_v9  ;;  %v2309_v32 = vrot.slane %v831_v9, 9  ;;  %v960_v30 = vpack.c.bf16 %v832_v63, %v832_v63  ;;  %v2310_v6 = vrot.slane %v832_v63, 9 }
  0xd0   : > { %1087 = vst.msk [vmem:[%s2494_s28 + $0x5f] sm:$0x1] %vm991_vm0, %v958_v11  ;;  %v705_v11 = vadd.f32 %v2879_v1, %v573_v12  ;;  %v834_v44 = vmax.f32 %v706_v10, 0.0  ;;  %v835_v2 = vmax.f32 %v707_v43, 0.0  ;;  %v709_v53 = vadd.f32 %v2879_v1, %v577_v4  ;;  %v320_v10 = vld [vmem:[%s2454_s21 + $0x69] sm:$0x1] }
  0xd1   : > { %1088 = vst.msk [vmem:[%s2494_s28 + $0x60] sm:$0x1] %vm991_vm0, %v959_v13  ;;  %v3274_v29 = vmax.f32 %v831_v9, %v2309_v32  ;;  %v3279_v12 = vmax.f32 %v832_v63, %v2310_v6  ;;  %v321_v43 = vld [vmem:[%s2454_s21 + $0x6a] sm:$0x1]  ;;  %v322_v6 = vld [vmem:[%s2454_s21 + $0x6b] sm:$0x1]  ;;  %v447_v57 = vunpack.c.l.bf16 %v319_v8  ;;  %v448_v46 = vunpack.c.l.bf16 %v320_v10 }
  0xd2   : > { %v833_v37 = vmax.f32 %v705_v11, 0.0  ;;  %1089 = vst.msk [vmem:[%s2494_s28 + $0x61] sm:$0x1] %vm991_vm0, %v960_v30  ;;  %v836_v11 = vmax.f32 %v708_v60, 0.0  ;;  %v962_v7 = vpack.c.bf16 %v834_v44, %v834_v44  ;;  %v2312_v13 = vrot.slane %v834_v44, 9 }
  0xd3   : > { %v963_v9 = vpack.c.bf16 %v835_v2, %v835_v2  ;;  %v2313_v32 = vrot.slane %v835_v2, 9  ;;  %v837_v30 = vmax.f32 %v709_v53, 0.0  ;;  %v450_v8 = vunpack.c.l.bf16 %v322_v6 }
  0xd4   : > { %v961_v0 = vpack.c.bf16 %v833_v37, %v833_v37  ;;  %v2311_v34 = vrot.slane %v833_v37, 9  ;;  %v964_v63 = vpack.c.bf16 %v836_v11, %v836_v11  ;;  %v2314_v4 = vrot.slane %v836_v11, 9  ;;  %1091 = vst.msk [vmem:[%s2494_s28 + $0x63] sm:$0x1] %vm991_vm0, %v962_v7  ;;  %v3307_v7 = vld [vmem:[%s3760_s2] ss:$0 sm:$0xff] }
  0xd5   : > { %v3291_v60 = vmax.f32 %v834_v44, %v2312_v13  ;;  %v3293_v27 = vmax.f32 %v835_v2, %v2313_v32  ;;  %1092 = vst.msk [vmem:[%s2494_s28 + $0x64] sm:$0x1] %vm991_vm0, %v963_v9  ;;  %v2315_v53 = vrot.slane %v837_v30, 9  ;;  %v710_v5 = vadd.f32 %v3307_v7, %v578_v54  ;;  %v325_v13 = vld [vmem:[%s2454_s21 + $0x6e] sm:$0x1] }
  0xd6   : > { %1090 = vst.msk [vmem:[%s2494_s28 + $0x62] sm:$0x1] %vm991_vm0, %v961_v0  ;;  %v3286_v1 = vmax.f32 %v833_v37, %v2311_v34  ;;  %v324_v0 = vld [vmem:[%s2454_s21 + $0x6d] sm:$0x1]  ;;  %v3300_v37 = vmax.f32 %v836_v11, %v2314_v4  ;;  %v965_v34 = vpack.c.bf16 %v837_v30, %v837_v30  ;;  %v579_v44 = vmul.f32 %v2925_v25, %v447_v57 }
  0xd7   : > { %1093 = vst.msk [vmem:[%s2494_s28 + $0x65] sm:$0x1] %vm991_vm0, %v964_v63  ;;  %v449_v2 = vunpack.c.l.bf16 %v321_v43  ;;  %v3314_v11 = vmax.f32 %v837_v30, %v2315_v53  ;;  %v580_v9 = vmul.f32 %v2925_v25, %v448_v46  ;;  %v451_v32 = vunpack.c.l.bf16 %v323_v35 }
  0xd8   : > { %3835 = vst [vmem:[#allocation36_spill] sm:$0xff] %v3300_v37  ;;  %v452_v10 = vunpack.c.l.bf16 %v324_v0  ;;  %v3317_v63 = vmax.f32 %v710_v5, 0.0  ;;  %v711_v4 = vadd.f32 %v3307_v7, %v579_v44  ;;  %v582_v57 = vmul.f32 %v2925_v25, %v450_v8 }
  0xd9   : > { %1094 = vst.msk [vmem:[%s2494_s28 + $0x66] sm:$0x1] %vm991_vm0, %v965_v34  ;;  %v581_v54 = vmul.f32 %v2925_v25, %v449_v2  ;;  %v712_v43 = vadd.f32 %v3307_v7, %v580_v9  ;;  %v583_v6 = vmul.f32 %v2925_v25, %v451_v32  ;;  %v453_v34 = vunpack.c.l.bf16 %v325_v13 }
  0xda   : > { %3836 = vst [vmem:[#allocation37_spill] sm:$0xff] %v3314_v11  ;;  %v584_v30 = vmul.f32 %v2925_v25, %v452_v10  ;;  %v966_v35 = vpack.c.bf16 %v3317_v63, %v3317_v63  ;;  %v839_v0 = vmax.f32 %v711_v4, 0.0  ;;  %v714_v44 = vadd.f32 %v3307_v7, %v582_v57 }
  0xdb   : > { %3837 = vst [vmem:[#allocation38_spill] sm:$0xff] %v3317_v63  ;;  %v713_v53 = vadd.f32 %v3307_v7, %v581_v54  ;;  %v840_v5 = vmax.f32 %v712_v43, 0.0  ;;  %v715_v2 = vadd.f32 %v3307_v7, %v583_v6  ;;  %v585_v10 = vmul.f32 %v2925_v25, %v453_v34  ;;  %v326_v25 = vld [vmem:[%s2454_s21 + $0x6f] sm:$0x1] }
  0xdc   : > { %v716_v8 = vadd.f32 %v3307_v7, %v584_v30  ;;  %1095 = vst.msk [vmem:[%s2494_s28 + $0x67] sm:$0x1] %vm991_vm0, %v966_v35  ;;  %v967_v13 = vpack.c.bf16 %v839_v0, %v839_v0  ;;  %v2373_v9 = vrot.slane %v839_v0, 9  ;;  %v842_v54 = vmax.f32 %v714_v44, 0.0 }
  0xdd   : > { %v841_v32 = vmax.f32 %v713_v53, 0.0  ;;  %v968_v46 = vpack.c.bf16 %v840_v5, %v840_v5  ;;  %v2374_v4 = vrot.slane %v840_v5, 9  ;;  %v843_v43 = vmax.f32 %v715_v2, 0.0 }
  0xde   : > { %1096 = vst.msk [vmem:[%s2494_s28 + $0x68] sm:$0x1] %vm991_vm0, %v967_v13  ;;  %v1744_v57 = vmax.f32 %v839_v0, %v2373_v9  ;;  %v844_v30 = vmax.f32 %v716_v8, 0.0  ;;  %v970_v37 = vpack.c.bf16 %v842_v54, %v842_v54  ;;  %v2376_v53 = vrot.slane %v842_v54, 9 }
  0xdf   : > { %v969_v6 = vpack.c.bf16 %v841_v32, %v841_v32  ;;  %v2375_v11 = vrot.slane %v841_v32, 9  ;;  %1097 = vst.msk [vmem:[%s2494_s28 + $0x69] sm:$0x1] %vm991_vm0, %v968_v46  ;;  %v1745_v35 = vmax.f32 %v840_v5, %v2374_v4  ;;  %v971_v63 = vpack.c.bf16 %v843_v43, %v843_v43 }
  0xe0   : > { %v1808_v34 = vmax.f32 %v3274_v29, %v1744_v57  ;;  %v2377_v2 = vrot.slane %v843_v43, 9  ;;  %v972_v0 = vpack.c.bf16 %v844_v30, %v844_v30  ;;  %1099 = vst.msk [vmem:[%s2494_s28 + $0x6b] sm:$0x1] %vm991_vm0, %v970_v37  ;;  %v1747_v46 = vmax.f32 %v842_v54, %v2376_v53  ;;  %v327_v54 = vld [vmem:[%s2454_s21 + $0x70] sm:$0x1] }
  0xe1   : > { %1098 = vst.msk [vmem:[%s2494_s28 + $0x6a] sm:$0x1] %vm991_vm0, %v969_v6  ;;  %v1746_v44 = vmax.f32 %v841_v32, %v2375_v11  ;;  %v1809_v13 = vmax.f32 %v3279_v12, %v1745_v35  ;;  %v2378_v5 = vrot.slane %v844_v30, 9  ;;  %v717_v8 = vadd.f32 %v3307_v7, %v585_v10 }
  0xe2   : > { %v1872_v9 = vpack.c.bf16 %v1808_v34, %v1808_v34  ;;  %1100 = vst.msk [vmem:[%s2494_s28 + $0x6c] sm:$0x1] %vm991_vm0, %v971_v63  ;;  %v1748_v29 = vmax.f32 %v843_v43, %v2377_v2  ;;  %v454_v57 = vunpack.c.l.bf16 %v326_v25  ;;  %v1811_v32 = vmax.f32 %v3291_v60, %v1747_v46  ;;  %v3364_v63 = vld [vmem:[%s3759_s1] ss:$0 sm:$0xff]  ;;  %v328_v43 = vld [vmem:[%s2454_s21 + $0x71] sm:$0x1] }
  0xe3   : > { %v1810_v4 = vmax.f32 %v3286_v1, %v1746_v44  ;;  %v1873_v11 = vpack.c.bf16 %v1809_v13, %v1809_v13  ;;  %1101 = vst.msk [vmem:[%s2494_s28 + $0x6d] sm:$0x1] %vm991_vm0, %v972_v0  ;;  %v3353_v12 = vmax.f32 %v844_v30, %v2378_v5  ;;  %v845_v37 = vmax.f32 %v717_v8, 0.0  ;;  %v329_v34 = vld [vmem:[%s2454_s21 + $0x72] sm:$0x1] }
  0xe4   : > { %v3356_v10 = vunpack.c.l.b16 %v1872_v9  ;;  %v3359_v1 = vmax.f32 %v3293_v27, %v1748_v29  ;;  %v586_v60 = vmul.f32 %v3364_v63, %v454_v57  ;;  %v1875_v35 = vpack.c.bf16 %v1811_v32, %v1811_v32  ;;  %v330_v13 = vld [vmem:[%s2454_s21 + $0x73] sm:$0x1]  ;;  %v331_v46 = vld [vmem:[%s2454_s21 + $0x74] sm:$0x1]  ;;  %v333_v27 = vld [vmem:[%s2454_s21 + $0x76] sm:$0x1] }
  0xe5   : > { %3838 = vst [vmem:[#allocation39_spill] sm:$0xff] %v3353_v12  ;;  %v1874_v6 = vpack.c.bf16 %v1810_v4, %v1810_v4  ;;  %v3368_v30 = vunpack.c.l.b16 %v1873_v11  ;;  %v973_v53 = vpack.c.bf16 %v845_v37, %v845_v37  ;;  %v2379_v25 = vrot.slane %v845_v37, 9  ;;  %v339_v12 = vld [vmem:[%s2454_s21 + $0x7c] sm:$0x1] }
  0xe6   : > { %3839 = vst [vmem:[#allocation40_spill] sm:$0xff] %v3356_v10  ;;  %v718_v2 = vadd.f32 %v3307_v7, %v586_v60  ;;  %v455_v0 = vunpack.c.l.bf16 %v327_v54  ;;  %v3379_v8 = vunpack.c.l.b16 %v1875_v35  ;;  %v456_v4 = vunpack.c.l.bf16 %v328_v43  ;;  %v332_v54 = vld [vmem:[%s2454_s21 + $0x75] sm:$0x1] }
  0xe7   : > { %3840 = vst [vmem:[#allocation41_spill] sm:$0xff] %v3359_v1  ;;  %v3371_v44 = vunpack.c.l.b16 %v1874_v6  ;;  %v3383_v9 = vmax.f32 %v845_v37, %v2379_v25  ;;  %v457_v32 = vunpack.c.l.bf16 %v329_v34  ;;  %v458_v35 = vunpack.c.l.bf16 %v330_v13  ;;  %v337_v1 = vld [vmem:[%s2454_s21 + $0x7a] sm:$0x1] }
  0xe8   : > { %3841 = vst [vmem:[#allocation42_spill] sm:$0xff] %v3368_v30  ;;  %v3386_v57 = vmax.f32 %v718_v2, 0.0  ;;  %v587_v11 = vmul.f32 %v3364_v63, %v455_v0  ;;  %v588_v60 = vmul.f32 %v3364_v63, %v456_v4  ;;  %v459_v5 = vunpack.c.l.bf16 %v331_v46  ;;  %v336_v30 = vld [vmem:[%s2454_s21 + $0x79] sm:$0x1] }
  0xe9   : > { %3842 = vst [vmem:[#allocation43_spill] sm:$0xff] %v3371_v44  ;;  %v589_v2 = vmul.f32 %v3364_v63, %v457_v32  ;;  %v590_v0 = vmul.f32 %v3364_v63, %v458_v35  ;;  %v460_v4 = vunpack.c.l.bf16 %v332_v54  ;;  %v461_v29 = vunpack.c.l.bf16 %v333_v27 }
  0xea   : > { %3843 = vst [vmem:[#allocation44_spill] sm:$0xff] %v3379_v8  ;;  %v974_v37 = vpack.c.bf16 %v3386_v57, %v3386_v57  ;;  %v719_v25 = vadd.f32 %v3307_v7, %v587_v11  ;;  %v720_v34 = vadd.f32 %v3307_v7, %v588_v60  ;;  %v591_v6 = vmul.f32 %v3364_v63, %v459_v5 }
  0xeb   : > { %1102 = vst.msk [vmem:[%s2494_s28 + $0x6e] sm:$0x1] %vm991_vm0, %v973_v53  ;;  %v334_v53 = vld [vmem:[%s2454_s21 + $0x77] sm:$0x1]  ;;  %v721_v46 = vadd.f32 %v3307_v7, %v589_v2  ;;  %v722_v11 = vadd.f32 %v3307_v7, %v590_v0  ;;  %v592_v60 = vmul.f32 %v3364_v63, %v460_v4 }
  0xec   : > { %3844 = vst [vmem:[#allocation45_spill] sm:$0xff] %v3383_v9  ;;  %v847_v13 = vmax.f32 %v719_v25, 0.0  ;;  %v462_v43 = vunpack.c.l.bf16 %v334_v53  ;;  %v848_v8 = vmax.f32 %v720_v34, 0.0  ;;  %v723_v32 = vadd.f32 %v3307_v7, %v591_v6  ;;  %v335_v53 = vld [vmem:[%s2454_s21 + $0x78] sm:$0x1] }
  0xed   : > { %3845 = vst [vmem:[#allocation46_spill] sm:$0xff] %v3386_v57  ;;  %v849_v35 = vmax.f32 %v721_v46, 0.0  ;;  %v850_v44 = vmax.f32 %v722_v11, 0.0  ;;  %v724_v4 = vadd.f32 %v3307_v7, %v592_v60  ;;  %v338_v9 = vld [vmem:[%s2454_s21 + $0x7b] sm:$0x1] }
  0xee   : > { %1103 = vst.msk [vmem:[%s2494_s28 + $0x6f] sm:$0x1] %vm991_vm0, %v974_v37  ;;  %v975_v5 = vpack.c.bf16 %v847_v13, %v847_v13  ;;  %v2317_v54 = vrot.slane %v847_v13, 9  ;;  %v593_v37 = vmul.f32 %v3364_v63, %v461_v29  ;;  %v976_v25 = vpack.c.bf16 %v848_v8, %v848_v8 }
  0xef   : > { %v2318_v2 = vrot.slane %v848_v8, 9  ;;  %v851_v27 = vmax.f32 %v723_v32, 0.0  ;;  %v977_v6 = vpack.c.bf16 %v849_v35, %v849_v35  ;;  %v2319_v0 = vrot.slane %v849_v35, 9 }
  0xf0   : > { %1104 = vst.msk [vmem:[%s2494_s28 + $0x70] sm:$0x1] %vm991_vm0, %v975_v5  ;;  %v3412_v34 = vmax.f32 %v847_v13, %v2317_v54  ;;  %v978_v46 = vpack.c.bf16 %v850_v44, %v850_v44  ;;  %v2320_v11 = vrot.slane %v850_v44, 9  ;;  %v852_v54 = vmax.f32 %v724_v4, 0.0 }
  0xf1   : > { %1105 = vst.msk [vmem:[%s2494_s28 + $0x71] sm:$0x1] %vm991_vm0, %v976_v25  ;;  %v3418_v29 = vmax.f32 %v848_v8, %v2318_v2  ;;  %v979_v32 = vpack.c.bf16 %v851_v27, %v851_v27  ;;  %v3422_v5 = vmax.f32 %v849_v35, %v2319_v0  ;;  %v2321_v13 = vrot.slane %v851_v27, 9 }
  0xf2   : > { %1106 = vst.msk [vmem:[%s2494_s28 + $0x72] sm:$0x1] %vm991_vm0, %v977_v6  ;;  %v725_v10 = vadd.f32 %v3307_v7, %v593_v37  ;;  %v3428_v60 = vmax.f32 %v850_v44, %v2320_v11  ;;  %v594_v8 = vmul.f32 %v3364_v63, %v462_v43  ;;  %v463_v25 = vunpack.c.l.bf16 %v335_v53  ;;  %v340_v43 = vld [vmem:[%s2454_s21 + $0x7d] sm:$0x1] }
  0xf3   : > { %1107 = vst.msk [vmem:[%s2494_s28 + $0x73] sm:$0x1] %vm991_vm0, %v978_v46  ;;  %v464_v2 = vunpack.c.l.bf16 %v336_v30  ;;  %v3434_v35 = vmax.f32 %v851_v27, %v2321_v13  ;;  %v980_v6 = vpack.c.bf16 %v852_v54, %v852_v54  ;;  %v2322_v0 = vrot.slane %v852_v54, 9 }
  0xf4   : > { %1108 = vst.msk [vmem:[%s2494_s28 + $0x74] sm:$0x1] %vm991_vm0, %v979_v32  ;;  %v853_v37 = vmax.f32 %v725_v10, 0.0  ;;  %v726_v4 = vadd.f32 %v3307_v7, %v594_v8  ;;  %v595_v46 = vmul.f32 %v3364_v63, %v463_v25  ;;  %v465_v11 = vunpack.c.l.bf16 %v337_v1 }
  0xf5   : > { %v596_v44 = vmul.f32 %v3364_v63, %v464_v2  ;;  %1109 = vst.msk [vmem:[%s2494_s28 + $0x75] sm:$0x1] %vm991_vm0, %v980_v6  ;;  %v3443_v30 = vmax.f32 %v852_v54, %v2322_v0  ;;  %v466_v32 = vunpack.c.l.bf16 %v338_v9  ;;  %v467_v2 = vunpack.c.l.bf16 %v339_v12  ;;  %v342_v12 = vld [vmem:[%s2454_s21 + $0x7f] sm:$0x1] }
  0xf6   : > { %v981_v53 = vpack.c.bf16 %v853_v37, %v853_v37  ;;  %v2323_v27 = vrot.slane %v853_v37, 9  ;;  %v3445_v13 = vmax.f32 %v726_v4, 0.0  ;;  %v727_v10 = vadd.f32 %v3307_v7, %v595_v46 }
  0xf7   : > { %3846 = vst [vmem:[#allocation47_spill] sm:$0xff] %v3443_v30  ;;  %v728_v8 = vadd.f32 %v3307_v7, %v596_v44  ;;  %v597_v25 = vmul.f32 %v3364_v63, %v465_v11  ;;  %v598_v54 = vmul.f32 %v3364_v63, %v466_v32  ;;  %v468_v6 = vunpack.c.l.bf16 %v340_v43 }
  0xf8   : > { %3847 = vst [vmem:[#allocation48_spill] sm:$0xff] %v3445_v13  ;;  %v3452_v1 = vmax.f32 %v853_v37, %v2323_v27  ;;  %v982_v9 = vpack.c.bf16 %v3445_v13, %v3445_v13  ;;  %v855_v4 = vmax.f32 %v727_v10, 0.0  ;;  %v341_v27 = vld [vmem:[%s2454_s21 + $0x7e] sm:$0x1]  ;;  %v470_v13 = vunpack.c.l.bf16 %v342_v12 }
  0xf9   : > { %1110 = vst.msk [vmem:[%s2494_s28 + $0x76] sm:$0x1] %vm991_vm0, %v981_v53  ;;  %v856_v46 = vmax.f32 %v728_v8, 0.0  ;;  %v729_v44 = vadd.f32 %v3307_v7, %v597_v25  ;;  %v730_v11 = vadd.f32 %v3307_v7, %v598_v54  ;;  %v599_v53 = vmul.f32 %v3364_v63, %v467_v2 }
  0xfa   : > { %3848 = vst [vmem:[#allocation49_spill] sm:$0xff] %v3452_v1  ;;  %v600_v37 = vmul.f32 %v3364_v63, %v468_v6  ;;  %v983_v43 = vpack.c.bf16 %v855_v4, %v855_v4  ;;  %v2381_v32 = vrot.slane %v855_v4, 9  ;;  %v469_v6 = vunpack.c.l.bf16 %v341_v27 }
  0xfb   : > { %1111 = vst.msk [vmem:[%s2494_s28 + $0x77] sm:$0x1] %vm991_vm0, %v982_v9  ;;  %v984_v1 = vpack.c.bf16 %v856_v46, %v856_v46  ;;  %v2382_v0 = vrot.slane %v856_v46, 9  ;;  %v857_v10 = vmax.f32 %v729_v44, 0.0  ;;  %v858_v8 = vmax.f32 %v730_v11, 0.0 }
  0xfc   : > { %v731_v30 = vadd.f32 %v3307_v7, %v599_v53  ;;  %v732_v25 = vadd.f32 %v3307_v7, %v600_v37  ;;  %1112 = vst.msk [vmem:[%s2494_s28 + $0x78] sm:$0x1] %vm991_vm0, %v983_v43  ;;  %v1752_v54 = vmax.f32 %v855_v4, %v2381_v32 }
  0xfd   : > { %v1753_v2 = vmax.f32 %v856_v46, %v2382_v0  ;;  %1113 = vst.msk [vmem:[%s2494_s28 + $0x79] sm:$0x1] %vm991_vm0, %v984_v1  ;;  %v985_v9 = vpack.c.bf16 %v857_v10, %v857_v10  ;;  %v2383_v57 = vrot.slane %v857_v10, 9  ;;  %v986_v59 = vpack.c.bf16 %v858_v8, %v858_v8 }
  0xfe   : > { %v2384_v42 = vrot.slane %v858_v8, 9  ;;  %v1816_v44 = vmax.f32 %v3412_v34, %v1752_v54  ;;  %v859_v53 = vmax.f32 %v731_v30, 0.0  ;;  %v860_v52 = vmax.f32 %v732_v25, 0.0 }
  0xff   : > { %v1817_v11 = vmax.f32 %v3418_v29, %v1753_v2  ;;  %1114 = vst.msk [vmem:[%s2494_s28 + $0x7a] sm:$0x1] %vm991_vm0, %v985_v9  ;;  %v1754_v4 = vmax.f32 %v857_v10, %v2383_v57  ;;  %v601_v46 = vmul.f32 %v3364_v63, %v469_v6  ;;  %v602_v1 = vmul.f32 %v3364_v63, %v470_v13 }
 0x100   : > { %v1755_v0 = vmax.f32 %v858_v8, %v2384_v42  ;;  %v1880_v37 = vpack.c.bf16 %v1816_v44, %v1816_v44  ;;  %1115 = vst.msk [vmem:[%s2494_s28 + $0x7b] sm:$0x1] %vm991_vm0, %v986_v59  ;;  %v987_v12 = vpack.c.bf16 %v859_v53, %v859_v53  ;;  %v2385_v34 = vrot.slane %v859_v53, 9 }
 0x101   : > { %v1881_v27 = vpack.c.bf16 %v1817_v11, %v1817_v11  ;;  %v1818_v29 = vmax.f32 %v3422_v5, %v1754_v4  ;;  %v988_v43 = vpack.c.bf16 %v860_v52, %v860_v52  ;;  %v2386_v32 = vrot.slane %v860_v52, 9 }
 0x102   : > { %v1819_v30 = vmax.f32 %v3428_v60, %v1755_v0  ;;  %v3482_v25 = vunpack.c.l.b16 %v1880_v37  ;;  %1116 = vst.msk [vmem:[%s2494_s28 + $0x7c] sm:$0x1] %vm991_vm0, %v987_v12  ;;  %v1756_v63 = vmax.f32 %v859_v53, %v2385_v34  ;;  %v733_v57 = vadd.f32 %v3307_v7, %v601_v46 }
 0x103   : > { %v3484_v42 = vunpack.c.l.b16 %v1881_v27  ;;  %v1882_v13 = vpack.c.bf16 %v1818_v29, %v1818_v29  ;;  %1117 = vst.msk [vmem:[%s2494_s28 + $0x7d] sm:$0x1] %vm991_vm0, %v988_v43  ;;  %v3491_v59 = vmax.f32 %v860_v52, %v2386_v32  ;;  %v734_v5 = vadd.f32 %v3307_v7, %v602_v1 }
 0x104   : > { %v1883_v10 = vpack.c.bf16 %v1819_v30, %v1819_v30  ;;  %v3496_v8 = vmax.f32 %v3434_v35, %v1756_v63  ;;  %v861_v54 = vmax.f32 %v733_v57, 0.0  ;;  %v3849_v2 = vrot.slane %v2517_v62, 9 }
 0x105   : > { %v2121_v60 = vrot.slane %v3484_v42, 7  ;;  %v3501_v9 = vunpack.c.l.b16 %v1882_v13  ;;  %v3505_v52 = vmax.f32 %v734_v5, 0.0  ;;  %v3850_v7 = vrot.slane %v2585_v17, 9 }
 0x106   : > { %v1383_v6 = vmax.f32 %v2517_v62, %v3849_v2  ;;  %v3503_v44 = vunpack.c.l.b16 %v1883_v10  ;;  %v1884_v35 = vpack.c.bf16 %v3496_v8, %v3496_v8  ;;  %v989_v53 = vpack.c.bf16 %v861_v54, %v861_v54 }
 0x107   : > { %v1703_v11 = vmax.f32 %v2585_v17, %v3850_v7  ;;  %v2387_v4 = vrot.slane %v861_v54, 9  ;;  %v1765_v0 = vmax.f32 %v2522_v3, %v2573_v56  ;;  %v2123_v62 = vrot.slane %v3501_v9, 6 }
 0x108   : > { %v2125_v46 = vrot.slane %v3503_v44, 5  ;;  %v990_v1 = vpack.c.bf16 %v3505_v52, %v3505_v52  ;;  %v2388_v37 = vrot.slane %v3505_v52, 9  ;;  %1118 = vst.msk [vmem:[%s2494_s28 + $0x7e] sm:$0x1] %vm991_vm0, %v989_v53  ;;  %v1766_v27 = vmax.f32 %v2540_v18, %v2592_v22 }
 0x109   : > { %v3521_v17 = vmax.f32 %v861_v54, %v2387_v4  ;;  %v1767_v12 = vmax.f32 %v1383_v6, %v1703_v11  ;;  %v1829_v34 = vpack.c.bf16 %v1765_v0, %v1765_v0  ;;  %v3851_v3 = vpack.c.bf16 %v2581_v16, %v2581_v16 }
 0x10a   : > { %1119 = vst.msk [vmem:[%s2494_s28 + $0x7f] sm:$0x1] %vm991_vm0, %v990_v1  ;;  %v1830_v29 = vpack.c.bf16 %v1766_v27, %v1766_v27  ;;  %v3852_v32 = vrot.slane %v2578_v15, 7  ;;  %v3853_v22 = vrot.slane %v2588_v20, 6  ;;  %v3854_v10 = vrot.slane %v2590_v21, 5 }
 0x10b   : > { %v1956_v56 = vunpack.c.l.b16 %v3851_v3  ;;  %v1831_v30 = vpack.c.bf16 %v1767_v12, %v1767_v12  ;;  %v1957_v43 = vunpack.c.l.b16 %v1829_v34  ;;  %v3855_v6 = vrot.slane %v2657_v50, 9 }
 0x10c   : > { %v2018_v18 = vsel %vm2017_vm1, %v3852_v32, %v2576_v14  ;;  %v1958_v16 = vunpack.c.l.b16 %v1830_v29  ;;  %v3856_v11 = vrot.slane %v2722_v39, 9  ;;  %v1773_v53 = vmax.f32 %v2651_v45, %v2707_v23 }
 0x10d   : > { %v2021_v63 = vsel %vm2020_vm2, %v3853_v22, %v2018_v18  ;;  %v2025_v57 = vrot.slane %v1956_v56, 4  ;;  %v1959_v13 = vunpack.c.l.b16 %v1831_v30  ;;  %v2028_v54 = vrot.slane %v1957_v43, 3 }
 0x10e   : > { %v2024_v5 = vsel %vm2023_vm3, %v3854_v10, %v2021_v63  ;;  %v2031_v15 = vrot.slane %v1958_v16, 2  ;;  %v1391_v7 = vmax.f32 %v2657_v50, %v3855_v6  ;;  %v1711_v21 = vmax.f32 %v2722_v39, %v3856_v11 }
 0x10f   : > { %v2027_v2 = vsel %vm2026_vm4, %v2025_v57, %v2024_v5  ;;  %v2034_v20 = vrot.slane %v1959_v13, 1  ;;  %v1774_v4 = vmax.f32 %v2655_v49, %v2727_v47  ;;  %v3857_v0 = vpack.c.bf16 %v2698_v26, %v2698_v26 }
 0x110   : > { %v2030_v14 = vsel %vm2029_vm5, %v2028_v54, %v2027_v2  ;;  %v3858_v12 = vrot.slane %v2710_v28, 7  ;;  %v3859_v34 = vrot.slane %v2776_v48, 9  ;;  %v3860_v45 = vrot.slane %v2851_v41, 9 }
 0x111   : > { %v1964_v1 = vunpack.c.l.b16 %v3857_v0  ;;  %v2033_v27 = vsel %vm2032_vm6, %v2031_v15, %v2030_v14  ;;  %v1775_v26 = vmax.f32 %v1391_v7, %v1711_v21  ;;  %v1837_v28 = vpack.c.bf16 %v1773_v53, %v1773_v53  ;;  %v3867_v53 = vld [vmem:[#allocation3_spill] sm:$0xff] }
 0x112   : > { %v2038_v50 = vsel %vm2017_vm1, %v3858_v12, %v2705_v19  ;;  %v1399_v39 = vmax.f32 %v2776_v48, %v3859_v34  ;;  %v1719_v23 = vmax.f32 %v2851_v41, %v3860_v45  ;;  %v2036_v49 = vsel %vm2035_vm7, %v2034_v20, %v2033_v27  ;;  %v3869_v27 = vld [vmem:[#allocation4_spill] sm:$0xff] }
 0x113   : > { %v1838_v47 = vpack.c.bf16 %v1774_v4, %v1774_v4  ;;  %v2135_v19 = vpack.c.b16 %v2036_v49, %v2036_v49  ;;  %v3861_v3 = vrot.slane %v2712_v40, 6  ;;  %v2043_v56 = vrot.slane %v1964_v1, 4 }
 0x114   : > { %v1781_v41 = vmax.f32 %v2781_v58, %v2828_v51  ;;  %v1839_v29 = vpack.c.bf16 %v1775_v26, %v1775_v26  ;;  %v1965_v30 = vunpack.c.l.b16 %v1837_v28  ;;  %v3862_v32 = vrot.slane %v2718_v38, 5 }
 0x115   : > { %v2040_v48 = vsel %vm2020_vm2, %v3861_v3, %v2038_v50  ;;  %v1966_v43 = vunpack.c.l.b16 %v1838_v47  ;;  %2152 = vst.msk [vmem:[%s3570_s14] sm:$0xf] %vm2151_vm8, %v2135_v19  ;;  %v1782_v40 = vmax.f32 %v2783_v61, %v2844_v55  ;;  %v1783_v63 = vmax.f32 %v1399_v39, %v1719_v23  ;;  %v3865_v55 = vld [vmem:[#allocation2_spill] sm:$0xff]  ;;  %v3871_v23 = vld [vmem:[#allocation13_spill] sm:$0xff]  ;;  %v3873_v47 = vld [vmem:[#allocation7_spill] sm:$0xff] }
 0x116   : > { %v2042_v18 = vsel %vm2023_vm3, %v3862_v32, %v2040_v48  ;;  %v1845_v57 = vpack.c.bf16 %v1781_v41, %v1781_v41  ;;  %v1967_v16 = vunpack.c.l.b16 %v1839_v29  ;;  %v2045_v13 = vrot.slane %v1965_v30, 3  ;;  %v3874_v19 = vld [vmem:[#allocation5_spill] sm:$0xff]  ;;  %v3875_v48 = vld [vmem:[#allocation11_spill] sm:$0xff]  ;;  %v3877_v29 = vld [vmem:[#allocation10_spill] sm:$0xff] }
 0x117   : > { %v2044_v22 = vsel %vm2026_vm4, %v2043_v56, %v2042_v18  ;;  %v2047_v10 = vrot.slane %v1966_v43, 2  ;;  %v3863_v58 = vpack.c.bf16 %v2834_v24, %v2834_v24  ;;  %v1846_v5 = vpack.c.bf16 %v1782_v40, %v1782_v40  ;;  %v3876_v56 = vld [vmem:[#allocation6_spill] sm:$0xff]  ;;  %v3880_v40 = vld [vmem:[#allocation9_spill] sm:$0xff] }
 0x118   : > { %v1847_v38 = vpack.c.bf16 %v1783_v63, %v1783_v63  ;;  %v1973_v54 = vunpack.c.l.b16 %v1845_v57  ;;  %v3864_v2 = vrot.slane %v2840_v31, 7  ;;  %v2046_v15 = vsel %vm2029_vm5, %v2045_v13, %v2044_v22  ;;  %v3879_v22 = vld [vmem:[#allocation8_spill] sm:$0xff] }
 0x119   : > { %v1972_v51 = vunpack.c.l.b16 %v3863_v58  ;;  %v2049_v61 = vrot.slane %v1967_v16, 1  ;;  %v3866_v20 = vrot.slane %v3865_v55, 6  ;;  %v2048_v11 = vsel %vm2032_vm6, %v2047_v10, %v2046_v15  ;;  %v3882_v16 = vld [vmem:[#allocation17_spill] sm:$0xff] }
 0x11a   : > { %v2052_v14 = vsel %vm2017_vm1, %v3864_v2, %v2831_v36  ;;  %v1974_v24 = vunpack.c.l.b16 %v1846_v5  ;;  %v1975_v21 = vunpack.c.l.b16 %v1847_v38  ;;  %v3868_v4 = vrot.slane %v3867_v53, 5  ;;  %v3884_v38 = vld [vmem:[#allocation12_spill] sm:$0xff] }
 0x11b   : > { %v2054_v6 = vsel %vm2020_vm2, %v3866_v20, %v2052_v14  ;;  %v2057_v7 = vrot.slane %v1972_v51, 4  ;;  %v2050_v31 = vsel %vm2035_vm7, %v2049_v61, %v2048_v11  ;;  %v2059_v1 = vrot.slane %v1973_v54, 3  ;;  %v3886_v61 = vld [vmem:[#allocation14_spill] sm:$0xff] }
 0x11c   : > { %v2056_v0 = vsel %vm2023_vm3, %v3868_v4, %v2054_v6  ;;  %v3870_v12 = vrot.slane %v3869_v27, 9  ;;  %v2136_v34 = vpack.c.b16 %v2050_v31, %v2050_v31  ;;  %v2061_v39 = vrot.slane %v1974_v24, 2  ;;  %v3888_v24 = vld [vmem:[#allocation25_spill] sm:$0xff]  ;;  %v3890_v4 = vld [vmem:[#allocation18_spill] sm:$0xff] }
 0x11d   : > { %v2058_v36 = vsel %vm2026_vm4, %v2057_v7, %v2056_v0  ;;  %v2063_v45 = vrot.slane %v1975_v21, 1  ;;  %v3872_v49 = vrot.slane %v3871_v23, 9  ;;  %v1789_v3 = vmax.f32 %v3874_v19, %v3873_v47  ;;  %v3891_v0 = vld [vmem:[#allocation15_spill] sm:$0xff] }
 0x11e   : > { %v1407_v50 = vmax.f32 %v3869_v27, %v3870_v12  ;;  %v2060_v28 = vsel %vm2029_vm5, %v2059_v1, %v2058_v36  ;;  %v1790_v41 = vmax.f32 %v3876_v56, %v3875_v48  ;;  %v3878_v30 = vpack.c.bf16 %v3877_v29, %v3877_v29  ;;  %2153 = vst.msk [vmem:[%s3570_s14 + $0x4] sm:$0xf] %vm2151_vm8, %v2136_v34  ;;  %v3892_v27 = vld [vmem:[#allocation24_spill] sm:$0xff]  ;;  %v3897_v48 = vld [vmem:[#allocation21_spill] sm:$0xff] }
 0x11f   : > { %v1727_v26 = vmax.f32 %v3871_v23, %v3872_v49  ;;  %v2062_v32 = vsel %vm2032_vm6, %v2061_v39, %v2060_v28  ;;  %v3881_v63 = vrot.slane %v3880_v40, 7  ;;  %v3883_v13 = vrot.slane %v3882_v16, 9  ;;  %v3893_v12 = vld [vmem:[#allocation16_spill] sm:$0xff] }
 0x120   : > { %v1980_v43 = vunpack.c.l.b16 %v3878_v30  ;;  %v2064_v58 = vsel %vm2035_vm7, %v2063_v45, %v2062_v32  ;;  %v1853_v51 = vpack.c.bf16 %v1789_v3, %v1789_v3  ;;  %v1854_v5 = vpack.c.bf16 %v1790_v41, %v1790_v41  ;;  %v3894_v34 = vld [vmem:[#allocation20_spill] sm:$0xff]  ;;  %v3896_v3 = vld [vmem:[#allocation19_spill] sm:$0xff] }
 0x121   : > { %v1791_v18 = vmax.f32 %v1407_v50, %v1727_v26  ;;  %v2066_v57 = vsel %vm2017_vm1, %v3881_v63, %v3879_v22  ;;  %v1415_v10 = vmax.f32 %v3882_v16, %v3883_v13  ;;  %v3885_v54 = vrot.slane %v3884_v38, 6  ;;  %v3901_v16 = vld [vmem:[#allocation23_spill] sm:$0xff] }
 0x122   : > { %v2137_v14 = vpack.c.b16 %v2064_v58, %v2064_v58  ;;  %v3887_v55 = vrot.slane %v3886_v61, 5  ;;  %v2071_v6 = vrot.slane %v1980_v43, 4  ;;  %v1981_v7 = vunpack.c.l.b16 %v1853_v51  ;;  %v3904_v61 = vld [vmem:[#allocation31_spill] sm:$0xff] }
 0x123   : > { %v2068_v2 = vsel %vm2020_vm2, %v3885_v54, %v2066_v57  ;;  %v1855_v15 = vpack.c.bf16 %v1791_v18, %v1791_v18  ;;  %v1982_v11 = vunpack.c.l.b16 %v1854_v5  ;;  %v3889_v21 = vrot.slane %v3888_v24, 9  ;;  %v3899_v18 = vld [vmem:[#allocation22_spill] sm:$0xff] }
 0x124   : > { %v2070_v20 = vsel %vm2023_vm3, %v3887_v55, %v2068_v2  ;;  %v1797_v31 = vmax.f32 %v3891_v0, %v3890_v4  ;;  %2154 = vst.msk [vmem:[%s3570_s14 + $0x8] sm:$0xf] %vm2151_vm8, %v2137_v14  ;;  %v1798_v50 = vmax.f32 %v3893_v12, %v3892_v27  ;;  %v3895_v39 = vpack.c.bf16 %v3894_v34, %v3894_v34  ;;  %v3910_v0 = vld [vmem:[#allocation30_spill] sm:$0xff]  ;;  %v3913_v34 = vld [vmem:[#allocation32_spill] sm:$0xff] }
 0x125   : > { %v1735_v53 = vmax.f32 %v3888_v24, %v3889_v21  ;;  %v1983_v36 = vunpack.c.l.b16 %v1855_v15  ;;  %v2072_v1 = vsel %vm2026_vm4, %v2071_v6, %v2070_v20  ;;  %v2073_v23 = vrot.slane %v1981_v7, 3  ;;  %v3906_v6 = vld [vmem:[#allocation29_spill] sm:$0xff]  ;;  %v3907_v7 = vld [vmem:[#allocation26_spill] sm:$0xff] }
 0x126   : > { %v1988_v45 = vunpack.c.l.b16 %v3895_v39  ;;  %v2075_v49 = vrot.slane %v1982_v11, 2  ;;  %v1861_v28 = vpack.c.bf16 %v1797_v31, %v1797_v31  ;;  %v1862_v19 = vpack.c.bf16 %v1798_v50, %v1798_v50  ;;  %v3912_v50 = vld [vmem:[#allocation28_spill] sm:$0xff] }
 0x127   : > { %v1799_v26 = vmax.f32 %v1415_v10, %v1735_v53  ;;  %v2077_v47 = vrot.slane %v1983_v36, 1  ;;  %v3898_v56 = vrot.slane %v3897_v48, 7  ;;  %v2074_v30 = vsel %vm2029_vm5, %v2073_v23, %v2072_v1  ;;  %v3908_v53 = vld [vmem:[#allocation34_spill] sm:$0xff] }
 0x128   : > { %v2085_v29 = vrot.slane %v1988_v45, 4  ;;  %v1989_v32 = vunpack.c.l.b16 %v1861_v28  ;;  %v3900_v22 = vrot.slane %v3899_v18, 6  ;;  %v2076_v63 = vsel %vm2032_vm6, %v2075_v49, %v2074_v30  ;;  %v3919_v18 = vld [vmem:[#allocation38_spill] sm:$0xff] }
 0x129   : > { %v2080_v41 = vsel %vm2017_vm1, %v3898_v56, %v3896_v3  ;;  %v1863_v43 = vpack.c.bf16 %v1799_v26, %v1799_v26  ;;  %v1990_v57 = vunpack.c.l.b16 %v1862_v19  ;;  %v3902_v13 = vrot.slane %v3901_v16, 5  ;;  %v3915_v26 = vld [vmem:[#allocation33_spill] sm:$0xff] }
 0x12a   : > { %v2082_v40 = vsel %vm2020_vm2, %v3900_v22, %v2080_v41  ;;  %v3903_v58 = vrot.slane %v3165_v33, 9  ;;  %v2078_v5 = vsel %vm2035_vm7, %v2077_v47, %v2076_v63  ;;  %v2087_v2 = vrot.slane %v1989_v32, 3  ;;  %v3917_v41 = vld [vmem:[#allocation35_spill] sm:$0xff]  ;;  %v3921_v63 = vld [vmem:[#allocation46_spill] sm:$0xff] }
 0x12b   : > { %v2084_v10 = vsel %vm2023_vm3, %v3902_v13, %v2082_v40  ;;  %v1991_v38 = vunpack.c.l.b16 %v1863_v43  ;;  %v2138_v14 = vpack.c.b16 %v2078_v5, %v2078_v5  ;;  %v2089_v15 = vrot.slane %v1990_v57, 2 }
 0x12c   : > { %v1423_v51 = vmax.f32 %v3165_v33, %v3903_v58  ;;  %v2086_v54 = vsel %vm2026_vm4, %v2085_v29, %v2084_v10  ;;  %v3905_v55 = vrot.slane %v3904_v61, 9  ;;  %v1805_v11 = vmax.f32 %v3907_v7, %v3906_v6  ;;  %v3909_v33 = vld [vmem:[#allocation27_spill] sm:$0xff]  ;;  %v3929_v6 = vld [vmem:[#allocation40_spill] sm:$0xff]  ;;  %v3930_v7 = vld [vmem:[#allocation42_spill] sm:$0xff] }
 0x12d   : > { %v2088_v24 = vsel %vm2029_vm5, %v2087_v2, %v2086_v54  ;;  %v2091_v21 = vrot.slane %v1991_v38, 1  ;;  %v1806_v4 = vmax.f32 %v3909_v33, %v3908_v53  ;;  %v3911_v31 = vpack.c.bf16 %v3910_v0, %v3910_v0  ;;  %2155 = vst.msk [vmem:[%s3570_s14 + $0xc] sm:$0xf] %vm2151_vm8, %v2138_v14  ;;  %v3923_v58 = vld [vmem:[#allocation39_spill] sm:$0xff]  ;;  %v3925_v38 = vld [vmem:[#allocation45_spill] sm:$0xff] }
 0x12e   : > { %v1743_v20 = vmax.f32 %v3904_v61, %v3905_v55  ;;  %v2090_v1 = vsel %vm2032_vm6, %v2089_v15, %v2088_v24  ;;  %v1869_v12 = vpack.c.bf16 %v1805_v11, %v1805_v11  ;;  %v3914_v39 = vrot.slane %v3913_v34, 7  ;;  %v3926_v54 = vld [vmem:[#allocation37_spill] sm:$0xff] }
 0x12f   : > { %v1996_v36 = vunpack.c.l.b16 %v3911_v31  ;;  %v2092_v23 = vsel %vm2035_vm7, %v2091_v21, %v2090_v1  ;;  %v1870_v49 = vpack.c.bf16 %v1806_v4, %v1806_v4  ;;  %v3916_v28 = vrot.slane %v3915_v26, 6  ;;  %v3927_v61 = vld [vmem:[#allocation41_spill] sm:$0xff] }
 0x130   : > { %v1807_v27 = vmax.f32 %v1423_v51, %v1743_v20  ;;  %v2094_v45 = vsel %vm2017_vm1, %v3914_v39, %v3912_v50  ;;  %v2139_v3 = vpack.c.b16 %v2092_v23, %v2092_v23  ;;  %v1997_v56 = vunpack.c.l.b16 %v1869_v12  ;;  %v3924_v51 = vld [vmem:[#allocation36_spill] sm:$0xff] }
 0x131   : > { %v2096_v47 = vsel %vm2020_vm2, %v3916_v28, %v2094_v45  ;;  %v2099_v19 = vrot.slane %v1996_v36, 4  ;;  %v3918_v29 = vrot.slane %v3917_v41, 5  ;;  %v1998_v43 = vunpack.c.l.b16 %v1870_v49  ;;  %v3932_v36 = vld [vmem:[#allocation43_spill] sm:$0xff]  ;;  %v3934_v45 = vld [vmem:[#allocation44_spill] sm:$0xff] }
 0x132   : > { %v1871_v48 = vpack.c.bf16 %v1807_v27, %v1807_v27  ;;  %v3920_v22 = vrot.slane %v3919_v18, 9  ;;  %v3922_v57 = vrot.slane %v3921_v63, 9  ;;  %2156 = vst.msk [vmem:[%s3570_s14 + $0x10] sm:$0xf] %vm2151_vm8, %v2139_v3  ;;  %v2101_v10 = vrot.slane %v1997_v56, 3 }
 0x133   : > { %v2098_v30 = vsel %vm2023_vm3, %v3918_v29, %v2096_v47  ;;  %v1813_v5 = vmax.f32 %v3924_v51, %v3923_v58  ;;  %v1814_v2 = vmax.f32 %v3926_v54, %v3925_v38  ;;  %v2103_v14 = vrot.slane %v1998_v43, 2 }
 0x134   : > { %v2100_v32 = vsel %vm2026_vm4, %v2099_v19, %v2098_v30  ;;  %v1431_v40 = vmax.f32 %v3919_v18, %v3920_v22  ;;  %v1751_v16 = vmax.f32 %v3921_v63, %v3922_v57  ;;  %v1999_v13 = vunpack.c.l.b16 %v1871_v48  ;;  %v3936_v19 = vld [vmem:[#allocation48_spill] sm:$0xff]  ;;  %v3938_v30 = vld [vmem:[#allocation47_spill] sm:$0xff]  ;;  %v3939_v18 = vld [vmem:[#allocation49_spill] sm:$0xff] }
 0x135   : > { %v3928_v55 = vpack.c.bf16 %v3927_v61, %v3927_v61  ;;  %v3931_v11 = vrot.slane %v3930_v7, 7  ;;  %v2102_v21 = vsel %vm2029_vm5, %v2101_v10, %v2100_v32  ;;  %v1877_v33 = vpack.c.bf16 %v1813_v5, %v1813_v5 }
 0x136   : > { %v1815_v15 = vmax.f32 %v1431_v40, %v1751_v16  ;;  %v2105_v53 = vrot.slane %v1999_v13, 1  ;;  %v1878_v4 = vpack.c.bf16 %v1814_v2, %v1814_v2  ;;  %v2104_v0 = vsel %vm2032_vm6, %v2103_v14, %v2102_v21 }
 0x137   : > { %v2004_v20 = vunpack.c.l.b16 %v3928_v55  ;;  %v2108_v24 = vsel %vm2017_vm1, %v3931_v11, %v3929_v6  ;;  %v3933_v1 = vrot.slane %v3932_v36, 6  ;;  %v2005_v34 = vunpack.c.l.b16 %v1877_v33 }
 0x138   : > { %v1879_v31 = vpack.c.bf16 %v1815_v15, %v1815_v15  ;;  %v2106_v50 = vsel %vm2035_vm7, %v2105_v53, %v2104_v0  ;;  %v2006_v39 = vunpack.c.l.b16 %v1878_v4  ;;  %v3935_v23 = vrot.slane %v3934_v45, 5 }
 0x139   : > { %v2110_v27 = vsel %vm2020_vm2, %v3933_v1, %v2108_v24  ;;  %v2113_v12 = vrot.slane %v2004_v20, 4  ;;  %v2140_v26 = vpack.c.b16 %v2106_v50, %v2106_v50  ;;  %v3937_v3 = vrot.slane %v3936_v19, 9 }
 0x13a   : > { %v2112_v49 = vsel %vm2023_vm3, %v3935_v23, %v2110_v27  ;;  %v2007_v28 = vunpack.c.l.b16 %v1879_v31  ;;  %v2115_v56 = vrot.slane %v2005_v34, 3  ;;  %v2117_v41 = vrot.slane %v2006_v39, 2 }
 0x13b   : > { %v2114_v47 = vsel %vm2026_vm4, %v2113_v12, %v2112_v49  ;;  %v1439_v48 = vmax.f32 %v3936_v19, %v3937_v3  ;;  %v1759_v29 = vmax.f32 %v3505_v52, %v2388_v37  ;;  %v1821_v43 = vmax.f32 %v3938_v30, %v3491_v59  ;;  %2157 = vst.msk [vmem:[%s3570_s14 + $0x14] sm:$0xf] %vm2151_vm8, %v2140_v26 }
 0x13c   : > { %v2119_v32 = vrot.slane %v2007_v28, 1  ;;  %v1822_v22 = vmax.f32 %v3939_v18, %v3521_v17  ;;  %v2012_v40 = vunpack.c.l.b16 %v1884_v35  ;;  %v2122_v63 = vsel %vm2017_vm1, %v2121_v60, %v3482_v25 }
 0x13d   : > { %v2116_v52 = vsel %vm2029_vm5, %v2115_v56, %v2114_v47  ;;  %v1823_v37 = vmax.f32 %v1439_v48, %v1759_v29  ;;  %v1885_v59 = vpack.c.bf16 %v1821_v43, %v1821_v43  ;;  %v2124_v57 = vsel %vm2020_vm2, %v2123_v62, %v2122_v63 }
 0x13e   : > { %v2118_v17 = vsel %vm2032_vm6, %v2117_v41, %v2116_v52  ;;  %v1886_v16 = vpack.c.bf16 %v1822_v22, %v1822_v22  ;;  %v2126_v8 = vsel %vm2023_vm3, %v2125_v46, %v2124_v57  ;;  %v2127_v35 = vrot.slane %v2012_v40, 4 }
 0x13f   : > { %v2120_v25 = vsel %vm2035_vm7, %v2119_v32, %v2118_v17  ;;  %v1887_v42 = vpack.c.bf16 %v1823_v37, %v1823_v37  ;;  %v2013_v60 = vunpack.c.l.b16 %v1885_v59 }
 0x140   : > { %v2141_v13 = vpack.c.b16 %v2120_v25, %v2120_v25  ;;  %v2014_v10 = vunpack.c.l.b16 %v1886_v16  ;;  %v2128_v58 = vsel %vm2026_vm4, %v2127_v35, %v2126_v8 }
 0x141   : > { %v2015_v9 = vunpack.c.l.b16 %v1887_v42  ;;  %v2129_v51 = vrot.slane %v2013_v60, 3 }
 0x142   : > { %2158 = vst.msk [vmem:[%s3570_s14 + $0x18] sm:$0xf] %vm2151_vm8, %v2141_v13  ;;  %v2131_v62 = vrot.slane %v2014_v10, 2 }
 0x143   : > { %v2130_v5 = vsel %vm2029_vm5, %v2129_v51, %v2128_v58  ;;  %v2133_v44 = vrot.slane %v2015_v9, 1 }
 0x144   : > { %v2132_v46 = vsel %vm2032_vm6, %v2131_v62, %v2130_v5 }
 0x145   : > { %v2134_v38 = vsel %vm2035_vm7, %v2133_v44, %v2132_v46 }
 0x146   : > { %v2142_v54 = vpack.c.b16 %v2134_v38, %v2134_v38 }
 0x148   : > { %2159 = vst.msk [vmem:[%s3570_s14 + $0x1c] sm:$0xf] %vm2151_vm8, %v2142_v54 }
 0x149 PF: > { %s15_s15 = sadd.s32 1, %s2411_s15  }
 0x14a   : > { %p12_p4 = scmp.ge.s32.totalorder %s15_s15, 4  }
 0x14c   :  { %14 = sbr.rel (!%p12_p4) target bundleno = 1 (0x1), region = 74 }

// kernel: unet_reg_forward.28
= control target key start
LH: loop header
LB: loop body
LE: loop exit
PB: predicated region body
PF: predicated region fallthrough
CT: control target
= control target key end

     0   :  { %vm118_vm0 = vcmask 257024   ;;  %s330_s0 = inlined_call_operand.vmem [shape: bf16[128,32], index: 0, kind: input, shape index: {}]   ;;  %s331_s1 = inlined_call_operand.vmem [shape: f32[1,32], index: 1, kind: input, shape index: {}]   ;;  %s332_s2 = inlined_call_operand.vmem [shape: f32[1,32], index: 2, kind: input, shape index: {}]   ;;  %s333_s3 = inlined_call_operand.vmem [shape: bf16[128,32], index: 3, kind: output, shape index: {}]  }
   0x1   :  { %v140_v0 = vld [vmem:[%s330_s0] sm:$0xff]   ;;  %v171_v5 = vld [vmem:[%s330_s0 + $0x8] sm:$0xff]   ;;  %v172_v8 = vld [vmem:[%s330_s0 + $0x10] sm:$0xff]  }
   0x2   :  { %v206_v1 = vld [vmem:[%s331_s1] ss:$0 sm:$0xff]  ;;  %v141_v2 = vunpack.c.l.bf16 %v140_v0  ;;  %v142_v4 = vunpack.c.h.bf16 %v140_v0  ;;  %v145_v6 = vunpack.c.l.bf16 %v171_v5  ;;  %v146_v7 = vunpack.c.h.bf16 %v171_v5  ;;  %v173_v9 = vld [vmem:[%s330_s0 + $0x18] sm:$0xff]   ;;  %v175_v39 = vld [vmem:[%s330_s0 + $0x28] sm:$0xff]  }
   0x3   :  { %v211_v3 = vld [vmem:[%s332_s2] ss:$0 sm:$0xff]  ;;  %v149_v12 = vunpack.c.l.bf16 %v172_v8  ;;  %v150_v13 = vunpack.c.h.bf16 %v172_v8  ;;  %v153_v16 = vunpack.c.l.bf16 %v173_v9  ;;  %v154_v17 = vunpack.c.h.bf16 %v173_v9  ;;  %v176_v44 = vld [vmem:[%s330_s0 + $0x30] sm:$0xff]   ;;  %v177_v49 = vld [vmem:[%s330_s0 + $0x38] sm:$0xff]  }
   0x4   :  { %v50_v10 = vmul.f32 %v206_v1, %v141_v2  ;;  %v51_v11 = vmul.f32 %v206_v1, %v142_v4  ;;  %v52_v14 = vmul.f32 %v206_v1, %v145_v6  ;;  %v53_v15 = vmul.f32 %v206_v1, %v146_v7  ;;  %v174_v34 = vld [vmem:[%s330_s0 + $0x20] sm:$0xff]  }
   0x5   :  { %v54_v20 = vmul.f32 %v206_v1, %v149_v12  ;;  %v55_v21 = vmul.f32 %v206_v1, %v150_v13  ;;  %v56_v24 = vmul.f32 %v206_v1, %v153_v16  ;;  %v57_v25 = vmul.f32 %v206_v1, %v154_v17 }
   0x6   :  { %v70_v18 = vadd.f32 %v211_v3, %v50_v10  ;;  %v71_v19 = vadd.f32 %v211_v3, %v51_v11  ;;  %v72_v22 = vadd.f32 %v211_v3, %v52_v14  ;;  %v73_v23 = vadd.f32 %v211_v3, %v53_v15 }
   0x7   :  { %v74_v28 = vadd.f32 %v211_v3, %v54_v20  ;;  %v75_v29 = vadd.f32 %v211_v3, %v55_v21  ;;  %v76_v32 = vadd.f32 %v211_v3, %v56_v24  ;;  %v77_v33 = vadd.f32 %v211_v3, %v57_v25 }
   0x8   :  { %v86_v26 = vmax.f32 %v70_v18, 0.0  ;;  %v87_v27 = vmax.f32 %v71_v19, 0.0  ;;  %v88_v30 = vmax.f32 %v72_v22, 0.0  ;;  %v89_v31 = vmax.f32 %v73_v23, 0.0 }
   0x9   :  { %v90_v37 = vmax.f32 %v74_v28, 0.0  ;;  %v91_v38 = vmax.f32 %v75_v29, 0.0  ;;  %v92_v42 = vmax.f32 %v76_v32, 0.0  ;;  %v93_v43 = vmax.f32 %v77_v33, 0.0 }
   0xa   :  { %v102_v35 = vpack.c.bf16 %v86_v26, %v86_v26  ;;  %v103_v36 = vpack.c.bf16 %v87_v27, %v87_v27  ;;  %v104_v40 = vpack.c.bf16 %v88_v30, %v88_v30  ;;  %v105_v41 = vpack.c.bf16 %v89_v31, %v89_v31 }
   0xb   :  { %v106_v45 = vpack.c.bf16 %v90_v37, %v90_v37  ;;  %v107_v46 = vpack.c.bf16 %v91_v38, %v91_v38  ;;  %v157_v47 = vunpack.c.l.bf16 %v174_v34  ;;  %v158_v48 = vunpack.c.h.bf16 %v174_v34 }
   0xc   :  { %119 = vst.msk [vmem:[%s333_s3] sm:$0xf] %vm118_vm0, %v102_v35  ;;  %v108_v50 = vpack.c.bf16 %v92_v42, %v92_v42  ;;  %v109_v51 = vpack.c.bf16 %v93_v43, %v93_v43  ;;  %v161_v52 = vunpack.c.l.bf16 %v175_v39  ;;  %v162_v53 = vunpack.c.h.bf16 %v175_v39 }
   0xd   :  { %120 = vst.msk [vmem:[%s333_s3 + $0x4] sm:$0xf] %vm118_vm0, %v103_v36  ;;  %v58_v54 = vmul.f32 %v206_v1, %v157_v47  ;;  %v59_v55 = vmul.f32 %v206_v1, %v158_v48  ;;  %v165_v56 = vunpack.c.l.bf16 %v176_v44  ;;  %v166_v57 = vunpack.c.h.bf16 %v176_v44 }
   0xe   :  { %121 = vst.msk [vmem:[%s333_s3 + $0x8] sm:$0xf] %vm118_vm0, %v104_v40  ;;  %v60_v58 = vmul.f32 %v206_v1, %v161_v52  ;;  %v61_v59 = vmul.f32 %v206_v1, %v162_v53  ;;  %v169_v60 = vunpack.c.l.bf16 %v177_v49  ;;  %v170_v61 = vunpack.c.h.bf16 %v177_v49 }
   0xf   :  { %122 = vst.msk [vmem:[%s333_s3 + $0xc] sm:$0xf] %vm118_vm0, %v105_v41  ;;  %v78_v62 = vadd.f32 %v211_v3, %v58_v54  ;;  %v79_v63 = vadd.f32 %v211_v3, %v59_v55  ;;  %v62_v0 = vmul.f32 %v206_v1, %v165_v56  ;;  %v63_v2 = vmul.f32 %v206_v1, %v166_v57 }
  0x10   :  { %123 = vst.msk [vmem:[%s333_s3 + $0x10] sm:$0xf] %vm118_vm0, %v106_v45  ;;  %v80_v4 = vadd.f32 %v211_v3, %v60_v58  ;;  %v81_v5 = vadd.f32 %v211_v3, %v61_v59  ;;  %v64_v6 = vmul.f32 %v206_v1, %v169_v60  ;;  %v65_v7 = vmul.f32 %v206_v1, %v170_v61 }
  0x11   :  { %124 = vst.msk [vmem:[%s333_s3 + $0x14] sm:$0xf] %vm118_vm0, %v107_v46  ;;  %v94_v8 = vmax.f32 %v78_v62, 0.0  ;;  %v95_v9 = vmax.f32 %v79_v63, 0.0  ;;  %v82_v10 = vadd.f32 %v211_v3, %v62_v0  ;;  %v83_v11 = vadd.f32 %v211_v3, %v63_v2 }
  0x12   :  { %125 = vst.msk [vmem:[%s333_s3 + $0x18] sm:$0xf] %vm118_vm0, %v108_v50  ;;  %v96_v12 = vmax.f32 %v80_v4, 0.0  ;;  %v97_v13 = vmax.f32 %v81_v5, 0.0  ;;  %v84_v1 = vadd.f32 %v211_v3, %v64_v6  ;;  %v85_v14 = vadd.f32 %v211_v3, %v65_v7 }
  0x13   :  { %126 = vst.msk [vmem:[%s333_s3 + $0x1c] sm:$0xf] %vm118_vm0, %v109_v51  ;;  %v110_v15 = vpack.c.bf16 %v94_v8, %v94_v8  ;;  %v111_v16 = vpack.c.bf16 %v95_v9, %v95_v9  ;;  %v98_v17 = vmax.f32 %v82_v10, 0.0  ;;  %v99_v18 = vmax.f32 %v83_v11, 0.0 }
  0x14   :  { %v112_v19 = vpack.c.bf16 %v96_v12, %v96_v12  ;;  %v113_v20 = vpack.c.bf16 %v97_v13, %v97_v13  ;;  %v100_v21 = vmax.f32 %v84_v1, 0.0  ;;  %v101_v22 = vmax.f32 %v85_v14, 0.0 }
  0x15   :  { %127 = vst.msk [vmem:[%s333_s3 + $0x20] sm:$0xf] %vm118_vm0, %v110_v15  ;;  %v114_v23 = vpack.c.bf16 %v98_v17, %v98_v17  ;;  %v115_v3 = vpack.c.bf16 %v99_v18, %v99_v18 }
  0x16   :  { %128 = vst.msk [vmem:[%s333_s3 + $0x24] sm:$0xf] %vm118_vm0, %v111_v16  ;;  %v116_v24 = vpack.c.bf16 %v100_v21, %v100_v21  ;;  %v117_v25 = vpack.c.bf16 %v101_v22, %v101_v22 }
  0x17   :  { %129 = vst.msk [vmem:[%s333_s3 + $0x28] sm:$0xf] %vm118_vm0, %v112_v19 }
  0x18   :  { %130 = vst.msk [vmem:[%s333_s3 + $0x2c] sm:$0xf] %vm118_vm0, %v113_v20 }
  0x19   :  { %131 = vst.msk [vmem:[%s333_s3 + $0x30] sm:$0xf] %vm118_vm0, %v114_v23 }
  0x1a   :  { %132 = vst.msk [vmem:[%s333_s3 + $0x34] sm:$0xf] %vm118_vm0, %v115_v3 }
  0x1b   :  { %133 = vst.msk [vmem:[%s333_s3 + $0x38] sm:$0xf] %vm118_vm0, %v116_v24 }
  0x1c   :  { %134 = vst.msk [vmem:[%s333_s3 + $0x3c] sm:$0xf] %vm118_vm0, %v117_v25 }

// kernel: unet_reg_forward.29
= control target key start
LH: loop header
LB: loop body
LE: loop exit
PB: predicated region body
PF: predicated region fallthrough
CT: control target
= control target key end

     0   :  { %vm311_vm0 = vcmask 261120   ;;  %vm499_vm1 = vcmask 257024   ;;  %vm553_vm2 = vcmask 253952   ;;  %s1206_s1 = inlined_call_operand.vmem [shape: bf16[288,32], index: 1, kind: input, shape index: {}]   ;;  %s1207_s0 = inlined_call_operand.vmem [shape: bf16[128,288], index: 0, kind: input, shape index: {}]   ;;  %s1208_s2 = inlined_call_operand.vmem [shape: bf16[128,32], index: 2, kind: output, shape index: {0}]   ;;  %s1209_s3 = inlined_call_operand.vmem [shape: f32[1,1,32], index: 3, kind: output, shape index: {1}]   ;;  %s1210_s4 = inlined_call_operand.vmem [shape: f32[1,1,32], index: 4, kind: output, shape index: {2}]  }
   0x1   :  { %v828_v0 = vld [vmem:[%s1206_s1 + $0x38] sm:$0xff]  ;;  %v838_v2 = vld [vmem:[%s1206_s1 + $0x88] sm:$0xff]  ;;  %v827_v3 = vld [vmem:[%s1206_s1 + $0x30] sm:$0xff] }
   0x2   :  { %v836_v1 = vld [vmem:[%s1206_s1 + $0x78] sm:$0xff]  ;;  %336 = vmatpush.bf16.msra.mxu0 %v828_v0  ;;  %839 = vmatpush.bf16.msra.mxu3 %v828_v0  ;;  %v835_v4 = vld [vmem:[%s1206_s1 + $0x70] sm:$0xff]  ;;  %v837_v5 = vld [vmem:[%s1206_s1 + $0x80] sm:$0xff] }
   0x3   :  { %385 = vmatpush.bf16.msra.mxu1 %v836_v1  ;;  %440 = vmatpush.bf16.msra.mxu2 %v838_v2  ;;  %v631_v6 = vld [vmem:[%s1207_s0 + $0x8] sm:$0xf]  ;;  %v799_v7 = vld [vmem:[%s1207_s0 + $0x10] sm:$0xf0]  ;;  %v825_v11 = vld [vmem:[%s1206_s1 + $0x20] sm:$0xff] }
   0x4   :  { %v632_v8 = vor.u32 %v799_v7, %v631_v6  ;;  %v826_v9 = vld [vmem:[%s1206_s1 + $0x28] sm:$0xff]  ;;  %v833_v12 = vld [vmem:[%s1206_s1 + $0x60] sm:$0xff]  ;;  %v824_v13 = vld [vmem:[%s1206_s1 + $0x18] sm:$0xff] }
   0x5   :  { %v834_v10 = vld [vmem:[%s1206_s1 + $0x68] sm:$0xff]  ;;  %v832_v14 = vld [vmem:[%s1206_s1 + $0x58] sm:$0xff]  ;;  %v823_v15 = vld [vmem:[%s1206_s1 + $0x10] sm:$0xff] }
   0x6   :  { %337 = vmatpush.bf16.msra.mxu0 %v827_v3  ;;  %840 = vmatpush.bf16.msra.mxu3 %v827_v3  ;;  %v831_v16 = vld [vmem:[%s1206_s1 + $0x50] sm:$0xff]  ;;  %v643_v17 = vld [vmem:[%s1207_s0 + $0x20] sm:$0xf]  ;;  %v802_v18 = vld [vmem:[%s1207_s0 + $0x28] sm:$0xf0] }
   0x7   :  { %386 = vmatpush.bf16.msra.mxu1 %v835_v4  ;;  %441 = vmatpush.bf16.msra.mxu2 %v837_v5  ;;  %v644_v19 = vor.u32 %v802_v18, %v643_v17  ;;  %v822_v20 = vld [vmem:[%s1206_s1 + $0x8] sm:$0xff]  ;;  %v821_v22 = vld [vmem:[%s1206_s1] sm:$0xff]  ;;  %v695_v26 = vld [vmem:[%s1207_s0 + $0x90] sm:$0xf] }
   0x8   :  { %v830_v21 = vld [vmem:[%s1206_s1 + $0x48] sm:$0xff]  ;;  %v829_v23 = vld [vmem:[%s1206_s1 + $0x40] sm:$0xff]  ;;  %v816_v27 = vld [vmem:[%s1207_s0 + $0x98] sm:$0xf0] }
   0x9   :  { %v623_v24 = vld [vmem:[%s1207_s0] sm:$0xf]  ;;  %v798_v25 = vld [vmem:[%s1207_s0 + $0x8] sm:$0xf0]  ;;  %v797_v28 = vld [vmem:[%s1207_s0 + $0x4] sm:$0xf]  ;;  %v696_v31 = vor.u32 %v816_v27, %v695_v26 }
   0xa   :  { %789 = vmatmul.msk.bf16.vlgmr.msra.gmra.mxu2 %vm311_vm0, %v632_v8  ;;  %338 = vmatpush.bf16.msra.mxu0 %v826_v9  ;;  %v625_v29 = vld [vmem:[%s1207_s0 + $0xc] sm:$0xf0]  ;;  %v624_v30 = vor.u32 %v798_v25, %v623_v24  ;;  %v655_v33 = vld [vmem:[%s1207_s0 + $0x38] sm:$0xf]  ;;  %v805_v34 = vld [vmem:[%s1207_s0 + $0x40] sm:$0xf0] }
   0xb   :  { %841 = vmatpush.bf16.msra.mxu3 %v826_v9  ;;  %387 = vmatpush.bf16.msra.mxu1 %v834_v10  ;;  %v628_v32 = vor.u32 %v797_v28, %v625_v29  ;;  %v656_v35 = vor.u32 %v805_v34, %v655_v33  ;;  %v635_v36 = vld [vmem:[%s1207_s0 + $0x18] sm:$0xf]  ;;  %v801_v37 = vld [vmem:[%s1207_s0 + $0x20] sm:$0xf0]  ;;  %v707_v38 = vld [vmem:[%s1207_s0 + $0xa8] sm:$0xf] }
   0xc   :  { %v819_v39 = vld [vmem:[%s1207_s0 + $0xb0] sm:$0xf0]  ;;  %v800_v40 = vld [vmem:[%s1207_s0 + $0x1c] sm:$0xf]  ;;  %v637_v41 = vld [vmem:[%s1207_s0 + $0x24] sm:$0xf0]  ;;  %v636_v42 = vor.u32 %v801_v37, %v635_v36 }
   0xd   :  { %v708_v43 = vor.u32 %v819_v39, %v707_v38  ;;  %v640_v44 = vor.u32 %v800_v40, %v637_v41  ;;  %v667_v45 = vld [vmem:[%s1207_s0 + $0x50] sm:$0xf]  ;;  %v808_v46 = vld [vmem:[%s1207_s0 + $0x58] sm:$0xf0]  ;;  %v803_v50 = vld [vmem:[%s1207_s0 + $0x34] sm:$0xf] }
   0xe   :  { %339 = vmatpush.bf16.msra.mxu0 %v825_v11  ;;  %v668_v47 = vor.u32 %v808_v46, %v667_v45  ;;  %v647_v48 = vld [vmem:[%s1207_s0 + $0x30] sm:$0xf]  ;;  %v804_v49 = vld [vmem:[%s1207_s0 + $0x38] sm:$0xf0]  ;;  %v649_v51 = vld [vmem:[%s1207_s0 + $0x3c] sm:$0xf0] }
   0xf   :  { %842 = vmatpush.bf16.msra.mxu3 %v825_v11  ;;  %388 = vmatpush.bf16.msra.mxu1 %v833_v12  ;;  %v815_v52 = vld [vmem:[%s1207_s0 + $0x94] sm:$0xf]  ;;  %v697_v53 = vld [vmem:[%s1207_s0 + $0x9c] sm:$0xf0]  ;;  %v648_v54 = vor.u32 %v804_v49, %v647_v48  ;;  %v652_v55 = vor.u32 %v803_v50, %v649_v51  ;;  %v679_v57 = vld [vmem:[%s1207_s0 + $0x68] sm:$0xf] }
  0x10   :  { %v700_v56 = vor.u32 %v815_v52, %v697_v53  ;;  %v811_v58 = vld [vmem:[%s1207_s0 + $0x70] sm:$0xf0]  ;;  %v659_v60 = vld [vmem:[%s1207_s0 + $0x48] sm:$0xf]  ;;  %v806_v62 = vld [vmem:[%s1207_s0 + $0x4c] sm:$0xf] }
  0x11   :  { %v680_v59 = vor.u32 %v811_v58, %v679_v57  ;;  %v807_v61 = vld [vmem:[%s1207_s0 + $0x50] sm:$0xf0]  ;;  %v661_v63 = vld [vmem:[%s1207_s0 + $0x54] sm:$0xf0]  ;;  %v818_v0 = vld [vmem:[%s1207_s0 + $0xac] sm:$0xf] }
  0x12   :  { %340 = vmatpush.bf16.msra.mxu0 %v824_v13  ;;  %v660_v2 = vor.u32 %v807_v61, %v659_v60  ;;  %v664_v3 = vor.u32 %v806_v62, %v661_v63  ;;  %v691_v5 = vld [vmem:[%s1207_s0 + $0x80] sm:$0xf]  ;;  %v814_v6 = vld [vmem:[%s1207_s0 + $0x88] sm:$0xf0]  ;;  %v673_v11 = vld [vmem:[%s1207_s0 + $0x6c] sm:$0xf0] }
  0x13   :  { %843 = vmatpush.bf16.msra.mxu3 %v824_v13  ;;  %389 = vmatpush.bf16.msra.mxu1 %v832_v14  ;;  %v692_v7 = vor.u32 %v814_v6, %v691_v5  ;;  %v671_v8 = vld [vmem:[%s1207_s0 + $0x60] sm:$0xf]  ;;  %v810_v9 = vld [vmem:[%s1207_s0 + $0x68] sm:$0xf0]  ;;  %v683_v17 = vld [vmem:[%s1207_s0 + $0x78] sm:$0xf] }
  0x14   :  { %v813_v18 = vld [vmem:[%s1207_s0 + $0x80] sm:$0xf0]  ;;  %v820_v24 = vld [vmem:[%s1207_s0 + $0xb8] sm:$0xf0] }
  0x16   :  { %341 = vmatpush.bf16.msra.mxu0 %v823_v15 }
  0x17   :  { %844 = vmatpush.bf16.msra.mxu3 %v823_v15  ;;  %390 = vmatpush.bf16.msra.mxu1 %v831_v16  ;;  %v817_v15 = vld [vmem:[%s1207_s0 + $0xa0] sm:$0xf0] }
  0x1a   :  { %790 = vmatmul.msk.bf16.gmra.mxu2 %vm311_vm0, %v644_v19  ;;  %342 = vmatpush.bf16.msra.mxu0 %v822_v20  ;;  %v812_v19 = vld [vmem:[%s1207_s0 + $0x7c] sm:$0xf] }
  0x1b   :  { %845 = vmatpush.bf16.msra.mxu3 %v822_v20  ;;  %391 = vmatpush.bf16.msra.mxu1 %v830_v21  ;;  %v685_v20 = vld [vmem:[%s1207_s0 + $0x84] sm:$0xf0] }
  0x1e   :  { %343 = vmatpush.bf16.msra.mxu0 %v821_v22 }
  0x1f   :  { %846 = vmatpush.bf16.msra.mxu3 %v821_v22  ;;  %392 = vmatpush.bf16.msra.mxu1 %v829_v23  ;;  %v688_v22 = vor.u32 %v812_v19, %v685_v20 }
  0x21   :  { %344 = vmatmul.bf16.vlgmr.msra.gmra.mxu0 %v624_v30 }
  0x22   :  { %374 = vmatmul.bf16.vlgmr.msra.gmra.mxu3 %v696_v31  ;;  %393 = vmatmul.bf16.vlgmr.msra.gmra.mxu1 %v628_v32 }
  0x23   :  { %847 = vmatpush.bf16.msrb.mxu3 %v836_v1  ;;  %v709_v1 = vld [vmem:[%s1207_s0 + $0xb4] sm:$0xf0] }
  0x27   :  { %848 = vmatpush.bf16.msrb.mxu3 %v835_v4  ;;  %v712_v4 = vor.u32 %v818_v0, %v709_v1 }
  0x2a   :  { %791 = vmatmul.msk.bf16.gmra.mxu2 %vm311_vm0, %v656_v35 }
  0x2b   :  { %849 = vmatpush.bf16.msrb.mxu3 %v834_v10  ;;  %v809_v10 = vld [vmem:[%s1207_s0 + $0x64] sm:$0xf] }
  0x2c   :  { %v676_v13 = vor.u32 %v809_v10, %v673_v11 }
  0x2f   :  { %850 = vmatpush.bf16.msrb.mxu3 %v833_v12  ;;  %v672_v12 = vor.u32 %v810_v9, %v671_v8 }
  0x31   :  { %349 = vmatmul.bf16.gmra.mxu0 %v636_v42 }
  0x32   :  { %379 = vmatmul.bf16.gmra.mxu3 %v708_v43  ;;  %398 = vmatmul.bf16.gmra.mxu1 %v640_v44 }
  0x33   :  { %851 = vmatpush.bf16.msrb.mxu3 %v832_v14  ;;  %v703_v14 = vld [vmem:[%s1207_s0 + $0x98] sm:$0xf] }
  0x37   :  { %852 = vmatpush.bf16.msrb.mxu3 %v831_v16  ;;  %v704_v16 = vor.u32 %v817_v15, %v703_v14 }
  0x3a   :  { %792 = vmatmul.msk.bf16.gmra.mxu2 %vm311_vm0, %v668_v47 }
  0x3b   :  { %853 = vmatpush.bf16.msrb.mxu3 %v830_v21  ;;  %v684_v21 = vor.u32 %v813_v18, %v683_v17 }
  0x3f   :  { %854 = vmatpush.bf16.msrb.mxu3 %v829_v23  ;;  %v715_v23 = vld [vmem:[%s1207_s0 + $0xb0] sm:$0xf] }
  0x40   :  { %v716_v25 = vor.u32 %v820_v24, %v715_v23 }
  0x41   :  { %354 = vmatmul.bf16.gmra.mxu0 %v648_v54 }
  0x42   :  { %403 = vmatmul.bf16.gmra.mxu1 %v652_v55  ;;  %423 = vmatmul.bf16.vlgmr.msrb.gmra.mxu3 %v700_v56 }
  0x4a   :  { %793 = vmatmul.msk.bf16.gmra.mxu2 %vm311_vm0, %v680_v59 }
  0x51   :  { %359 = vmatmul.bf16.gmra.mxu0 %v660_v2 }
  0x52   :  { %408 = vmatmul.bf16.gmra.mxu1 %v664_v3  ;;  %428 = vmatmul.bf16.gmra.mxu3 %v712_v4 }
  0x5a   :  { %794 = vmatmul.msk.bf16.gmra.mxu2 %vm311_vm0, %v692_v7 }
  0x61   :  { %364 = vmatmul.bf16.gmra.mxu0 %v672_v12 }
  0x62   :  { %413 = vmatmul.bf16.gmra.mxu1 %v676_v13 }
  0x6a   :  { %795 = vmatmul.msk.bf16.gmra.mxu2 %vm311_vm0, %v704_v16 }
  0x71   :  { %369 = vmatmul.bf16.gmra.mxu0 %v684_v21 }
  0x72   :  { %418 = vmatmul.bf16.gmra.mxu1 %v688_v22 }
  0x7a   :  { %796 = vmatmul.msk.bf16.gmra.mxu2 %vm311_vm0, %v716_v25 }
  0x8d   :  { %v443_v26 = vpop.f32.mrf.mxu2 }
  0x95   :  { %v445_v27 = vpop.f32.mrf.mxu2 }
  0x9d   :  { %v448_v28 = vpop.f32.mrf.mxu2 }
  0x9e   :  { %v345_v29 = vpop.f32.mrf.mxu0 }
  0x9f   :  { %v394_v30 = vpop.f32.mrf.mxu1 }
  0xa0   :  { %v395_v31 = vadd.f32 %v394_v30, %v345_v29 }
  0xa2   :  { %v444_v32 = vadd.f32 %v443_v26, %v395_v31 }
  0xa4   :  { %v483_v33 = vpack.c.bf16 %v444_v32, %v444_v32  ;;  %v555_v38 = vmul.f32 %v444_v32, %v444_v32  ;;  %v516_v40 = vsel %vm311_vm0, %v444_v32, 0.0 }
  0xa5   :  { %v450_v34 = vpop.f32.mrf.mxu2  ;;  %v375_v59 = vpop.f32.mrf.mxu3 }
  0xa6   :  { %500 = vst.msk [vmem:[%s1208_s2] sm:$0xf] %vm499_vm1, %v483_v33  ;;  %v347_v35 = vpop.f32.mrf.mxu0  ;;  %v571_v46 = vsel %vm311_vm0, %v555_v38, 0.0 }
  0xa7   :  { %v396_v36 = vpop.f32.mrf.mxu1 }
  0xa8   :  { %v397_v37 = vadd.f32 %v396_v36, %v347_v35 }
  0xaa   :  { %v446_v39 = vadd.f32 %v445_v27, %v397_v37 }
  0xac   :  { %v484_v41 = vpack.c.bf16 %v446_v39, %v446_v39  ;;  %v517_v42 = vsel %vm311_vm0, %v446_v39, 0.0  ;;  %v556_v43 = vmul.f32 %v446_v39, %v446_v39 }
  0xad   :  { %v1092_v44 = vadd.f32 %v517_v42, %v516_v40  ;;  %v453_v45 = vpop.f32.mrf.mxu2  ;;  %v1110_v3 = vpop.f32.mrf.mxu3 }
  0xae   :  { %501 = vst.msk [vmem:[%s1208_s2 + $0x4] sm:$0xf] %vm499_vm1, %v484_v41  ;;  %v572_v47 = vsel %vm311_vm0, %v556_v43, 0.0  ;;  %v350_v48 = vpop.f32.mrf.mxu0 }
  0xaf   :  { %v1100_v49 = vadd.f32 %v572_v47, %v571_v46  ;;  %v399_v50 = vpop.f32.mrf.mxu1 }
  0xb0   :  { %v400_v51 = vadd.f32 %v399_v50, %v350_v48 }
  0xb2   :  { %v449_v52 = vadd.f32 %v448_v28, %v400_v51 }
  0xb4   :  { %v485_v53 = vpack.c.bf16 %v449_v52, %v449_v52  ;;  %v557_v32 = vmul.f32 %v449_v52, %v449_v52  ;;  %v519_v35 = vsel %vm311_vm0, %v449_v52, 0.0 }
  0xb5   :  { %v455_v54 = vpop.f32.mrf.mxu2  ;;  %v1120_v12 = vpop.f32.mrf.mxu3  ;;  %v520_v42 = vadd.f32 %v519_v35, %v1092_v44 }
  0xb6   :  { %502 = vst.msk [vmem:[%s1208_s2 + $0x8] sm:$0xf] %vm499_vm1, %v485_v53  ;;  %v352_v55 = vpop.f32.mrf.mxu0  ;;  %v574_v38 = vsel %vm311_vm0, %v557_v32, 0.0 }
  0xb7   :  { %v401_v56 = vpop.f32.mrf.mxu1  ;;  %v575_v50 = vadd.f32 %v574_v38, %v1100_v49 }
  0xb8   :  { %v402_v57 = vadd.f32 %v401_v56, %v352_v55 }
  0xba   :  { %v451_v58 = vadd.f32 %v450_v34, %v402_v57 }
  0xbc   :  { %v486_v60 = vpack.c.bf16 %v451_v58, %v451_v58  ;;  %v558_v36 = vmul.f32 %v451_v58, %v451_v58  ;;  %v521_v39 = vsel %vm311_vm0, %v451_v58, 0.0 }
  0xbd   :  { %v458_v61 = vpop.f32.mrf.mxu2  ;;  %v1126_v21 = vpop.f32.mrf.mxu3  ;;  %v522_v51 = vadd.f32 %v521_v39, %v520_v42 }
  0xbe   :  { %503 = vst.msk [vmem:[%s1208_s2 + $0xc] sm:$0xf] %vm499_vm1, %v486_v60  ;;  %v355_v62 = vpop.f32.mrf.mxu0 }
  0xbf   :  { %v404_v63 = vpop.f32.mrf.mxu1 }
  0xc0   :  { %v405_v0 = vadd.f32 %v404_v63, %v355_v62 }
  0xc2   :  { %v454_v1 = vadd.f32 %v453_v45, %v405_v0  ;;  %v576_v45 = vsel %vm311_vm0, %v558_v36, 0.0 }
  0xc3   :  { %v577_v58 = vadd.f32 %v576_v45, %v575_v50 }
  0xc4   :  { %v487_v2 = vpack.c.bf16 %v454_v1, %v454_v1  ;;  %v559_v40 = vmul.f32 %v454_v1, %v454_v1  ;;  %v523_v46 = vsel %vm311_vm0, %v454_v1, 0.0 }
  0xc5   :  { %v460_v4 = vpop.f32.mrf.mxu2  ;;  %v424_v29 = vpop.f32.mrf.mxu3 }
  0xc6   :  { %504 = vst.msk [vmem:[%s1208_s2 + $0x10] sm:$0xf] %vm499_vm1, %v487_v2  ;;  %v357_v5 = vpop.f32.mrf.mxu0  ;;  %v425_v47 = vadd.f32 %v424_v29, %v375_v59  ;;  %v524_v59 = vadd.f32 %v523_v46, %v522_v51 }
  0xc7   :  { %v406_v6 = vpop.f32.mrf.mxu1 }
  0xc8   :  { %v407_v7 = vadd.f32 %v406_v6, %v357_v5 }
  0xca   :  { %v456_v8 = vadd.f32 %v455_v54, %v407_v7  ;;  %v578_v54 = vsel %vm311_vm0, %v559_v40, 0.0 }
  0xcb   :  { %v579_v1 = vadd.f32 %v578_v54, %v577_v58 }
  0xcc   :  { %v488_v9 = vpack.c.bf16 %v456_v8, %v456_v8  ;;  %v560_v43 = vmul.f32 %v456_v8, %v456_v8  ;;  %v525_v55 = vsel %vm311_vm0, %v456_v8, 0.0 }
  0xcd   :  { %v463_v10 = vpop.f32.mrf.mxu2  ;;  %v426_v52 = vpop.f32.mrf.mxu3  ;;  %v526_v2 = vadd.f32 %v525_v55, %v524_v59 }
  0xce   :  { %505 = vst.msk [vmem:[%s1208_s2 + $0x14] sm:$0xf] %vm499_vm1, %v488_v9  ;;  %v360_v11 = vpop.f32.mrf.mxu0  ;;  %v580_v60 = vsel %vm311_vm0, %v560_v43, 0.0  ;;  %v427_v9 = vadd.f32 %v426_v52, %v1110_v3 }
  0xcf   :  { %v409_v13 = vpop.f32.mrf.mxu1  ;;  %v581_v8 = vadd.f32 %v580_v60, %v579_v1 }
  0xd0   :  { %v410_v14 = vadd.f32 %v409_v13, %v360_v11 }
  0xd2   :  { %v459_v15 = vadd.f32 %v458_v61, %v410_v14 }
  0xd4   :  { %v489_v16 = vpack.c.bf16 %v459_v15, %v459_v15  ;;  %v561_v56 = vmul.f32 %v459_v15, %v459_v15  ;;  %v527_v61 = vsel %vm311_vm0, %v459_v15, 0.0 }
  0xd5   :  { %v465_v17 = vpop.f32.mrf.mxu2 }
  0xd6   :  { %506 = vst.msk [vmem:[%s1208_s2 + $0x18] sm:$0xf] %vm499_vm1, %v489_v16  ;;  %v362_v18 = vpop.f32.mrf.mxu0 }
  0xd7   :  { %v411_v19 = vpop.f32.mrf.mxu1 }
  0xd8   :  { %v412_v20 = vadd.f32 %v411_v19, %v362_v18 }
  0xda   :  { %v461_v22 = vadd.f32 %v460_v4, %v412_v20  ;;  %v582_v4 = vsel %vm311_vm0, %v561_v56, 0.0 }
  0xdb   :  { %v583_v16 = vadd.f32 %v582_v4, %v581_v8 }
  0xdc   :  { %v490_v23 = vpack.c.bf16 %v461_v22, %v461_v22  ;;  %v562_v62 = vmul.f32 %v461_v22, %v461_v22  ;;  %v529_v5 = vsel %vm311_vm0, %v461_v22, 0.0 }
  0xdd   :  { %v468_v24 = vpop.f32.mrf.mxu2 }
  0xde   :  { %507 = vst.msk [vmem:[%s1208_s2 + $0x1c] sm:$0xf] %vm499_vm1, %v490_v23  ;;  %v365_v25 = vpop.f32.mrf.mxu0  ;;  %v584_v11 = vsel %vm311_vm0, %v562_v62, 0.0 }
  0xdf   :  { %v414_v26 = vpop.f32.mrf.mxu1 }
  0xe0   :  { %v415_v27 = vadd.f32 %v414_v26, %v365_v25  ;;  %v585_v25 = vadd.f32 %v584_v11, %v583_v16 }
  0xe2   :  { %v464_v28 = vadd.f32 %v463_v10, %v415_v27  ;;  %v528_v10 = vadd.f32 %v527_v61, %v526_v2 }
  0xe4   :  { %v491_v30 = vpack.c.bf16 %v464_v28, %v464_v28  ;;  %v563_v6 = vmul.f32 %v464_v28, %v464_v28  ;;  %v531_v13 = vsel %vm311_vm0, %v464_v28, 0.0 }
  0xe5   :  { %v1132_v31 = vpop.f32.mrf.mxu2 }
  0xe6   :  { %508 = vst.msk [vmem:[%s1208_s2 + $0x20] sm:$0xf] %vm499_vm1, %v491_v30  ;;  %v367_v33 = vpop.f32.mrf.mxu0  ;;  %v586_v19 = vsel %vm311_vm0, %v563_v6, 0.0 }
  0xe7   :  { %v416_v34 = vpop.f32.mrf.mxu1 }
  0xe8   :  { %v417_v37 = vadd.f32 %v416_v34, %v367_v33  ;;  %v587_v33 = vadd.f32 %v586_v19, %v585_v25 }
  0xea   :  { %v466_v41 = vadd.f32 %v465_v17, %v417_v37  ;;  %v530_v17 = vadd.f32 %v529_v5, %v528_v10 }
  0xec   :  { %v492_v48 = vpack.c.bf16 %v466_v41, %v466_v41  ;;  %v564_v14 = vmul.f32 %v466_v41, %v466_v41  ;;  %v533_v20 = vsel %vm311_vm0, %v466_v41, 0.0  ;;  %v532_v26 = vadd.f32 %v531_v13, %v530_v17 }
  0xed   :  { %v473_v53 = vpop.f32.mrf.mxu2 }
  0xee   :  { %509 = vst.msk [vmem:[%s1208_s2 + $0x24] sm:$0xf] %vm499_vm1, %v492_v48  ;;  %v474_v44 = vadd.f32 %v473_v53, %v425_v47  ;;  %v370_v57 = vpop.f32.mrf.mxu0  ;;  %v588_v28 = vsel %vm311_vm0, %v564_v14, 0.0  ;;  %v534_v34 = vadd.f32 %v533_v20, %v532_v26 }
  0xef   :  { %v419_v49 = vpop.f32.mrf.mxu1  ;;  %v589_v38 = vadd.f32 %v588_v28, %v587_v33 }
  0xf0   :  { %v495_v63 = vpack.c.bf16 %v474_v44, %v474_v44  ;;  %v420_v0 = vadd.f32 %v419_v49, %v370_v57  ;;  %v567_v40 = vmul.f32 %v474_v44, %v474_v44  ;;  %v539_v48 = vsel %vm311_vm0, %v474_v44, 0.0 }
  0xf2   :  { %512 = vst.msk [vmem:[%s1208_s2 + $0x30] sm:$0xf] %vm499_vm1, %v495_v63  ;;  %v469_v7 = vadd.f32 %v468_v24, %v420_v0  ;;  %v429_v24 = vpop.f32.mrf.mxu3  ;;  %v594_v52 = vsel %vm311_vm0, %v567_v40, 0.0 }
  0xf3   :  { %v430_v37 = vadd.f32 %v429_v24, %v1120_v12 }
  0xf4   :  { %v493_v15 = vpack.c.bf16 %v469_v7, %v469_v7  ;;  %v565_v3 = vmul.f32 %v469_v7, %v469_v7  ;;  %v535_v29 = vsel %vm311_vm0, %v469_v7, 0.0 }
  0xf5   :  { %v475_v18 = vpop.f32.mrf.mxu2  ;;  %v536_v39 = vadd.f32 %v535_v29, %v534_v34 }
  0xf6   :  { %510 = vst.msk [vmem:[%s1208_s2 + $0x28] sm:$0xf] %vm499_vm1, %v493_v15  ;;  %v476_v22 = vadd.f32 %v475_v18, %v427_v9  ;;  %v372_v23 = vpop.f32.mrf.mxu0  ;;  %v590_v35 = vsel %vm311_vm0, %v565_v3, 0.0 }
  0xf7   :  { %v421_v27 = vpop.f32.mrf.mxu1  ;;  %v591_v45 = vadd.f32 %v590_v35, %v589_v38 }
  0xf8   :  { %v496_v30 = vpack.c.bf16 %v476_v22, %v476_v22  ;;  %v422_v32 = vadd.f32 %v421_v27, %v372_v23  ;;  %v568_v53 = vmul.f32 %v476_v22, %v476_v22  ;;  %v541_v57 = vsel %vm311_vm0, %v476_v22, 0.0 }
  0xfa   :  { %513 = vst.msk [vmem:[%s1208_s2 + $0x34] sm:$0xf] %vm499_vm1, %v496_v30  ;;  %v471_v36 = vadd.f32 %v1132_v31, %v422_v32  ;;  %v431_v55 = vpop.f32.mrf.mxu3  ;;  %v596_v59 = vsel %vm311_vm0, %v568_v53, 0.0 }
  0xfb   :  { %v432_v58 = vadd.f32 %v431_v55, %v1126_v21 }
  0xfc   :  { %v494_v41 = vpack.c.bf16 %v471_v36, %v471_v36  ;;  %v537_v42 = vsel %vm311_vm0, %v471_v36, 0.0  ;;  %v566_v43 = vmul.f32 %v471_v36, %v471_v36 }
  0xfd   :  { %v538_v46 = vadd.f32 %v537_v42, %v536_v39  ;;  %v478_v47 = vpop.f32.mrf.mxu2 }
  0xfe   :  { %511 = vst.msk [vmem:[%s1208_s2 + $0x2c] sm:$0xf] %vm499_vm1, %v494_v41  ;;  %v592_v31 = vsel %vm311_vm0, %v566_v43, 0.0  ;;  %v479_v12 = vadd.f32 %v478_v47, %v430_v37 }
  0xff   :  { %v593_v50 = vadd.f32 %v592_v31, %v591_v45  ;;  %v540_v51 = vadd.f32 %v539_v48, %v538_v46 }
 0x100   :  { %v497_v54 = vpack.c.bf16 %v479_v12, %v479_v12  ;;  %v569_v60 = vmul.f32 %v479_v12, %v479_v12  ;;  %v543_v62 = vsel %vm311_vm0, %v479_v12, 0.0 }
 0x101   :  { %v595_v56 = vadd.f32 %v594_v52, %v593_v50  ;;  %v542_v44 = vadd.f32 %v541_v57, %v540_v51 }
 0x102   :  { %514 = vst.msk [vmem:[%s1208_s2 + $0x38] sm:$0xf] %vm499_vm1, %v497_v54  ;;  %v598_v1 = vsel %vm311_vm0, %v569_v60, 0.0 }
 0x103   :  { %v597_v49 = vadd.f32 %v596_v59, %v595_v56  ;;  %v544_v0 = vadd.f32 %v543_v62, %v542_v44 }
 0x105   :  { %v480_v61 = vpop.f32.mrf.mxu2  ;;  %v599_v6 = vadd.f32 %v598_v1, %v597_v49 }
 0x106   :  { %v481_v63 = vadd.f32 %v480_v61, %v432_v58 }
 0x108   :  { %v498_v2 = vpack.c.bf16 %v481_v63, %v481_v63  ;;  %v545_v4 = vsel %vm311_vm0, %v481_v63, 0.0  ;;  %v570_v5 = vmul.f32 %v481_v63, %v481_v63 }
 0x109   :  { %v546_v7 = vadd.f32 %v545_v4, %v544_v0 }
 0x10a   :  { %515 = vst.msk [vmem:[%s1208_s2 + $0x3c] sm:$0xf] %vm499_vm1, %v498_v2  ;;  %v600_v21 = vsel %vm311_vm0, %v570_v5, 0.0 }
 0x10b   :  { %v547_v8 = vrot.slane %v546_v7, 4  ;;  %v601_v9 = vadd.f32 %v600_v21, %v599_v6 }
 0x10d   :  { %v548_v10 = vadd.f32 %v547_v8, %v546_v7  ;;  %v602_v11 = vrot.slane %v601_v9, 4 }
 0x10f   :  { %v549_v13 = vrot.slane %v548_v10, 2  ;;  %v603_v14 = vadd.f32 %v602_v11, %v601_v9 }
 0x111   :  { %v550_v15 = vadd.f32 %v549_v13, %v548_v10  ;;  %v604_v16 = vrot.slane %v603_v14, 2 }
 0x113   :  { %v551_v17 = vrot.slane %v550_v15, 1  ;;  %v605_v18 = vadd.f32 %v604_v16, %v603_v14 }
 0x115   :  { %v552_v19 = vadd.f32 %v551_v17, %v550_v15  ;;  %v606_v20 = vrot.slane %v605_v18, 1 }
 0x117   :  { %554 = vst.msk [vmem:[%s1209_s3] sm:$0x1] %vm553_vm2, %v552_v19  ;;  %v607_v3 = vadd.f32 %v606_v20, %v605_v18 }
 0x119   :  { %608 = vst.msk [vmem:[%s1210_s4] sm:$0x1] %vm553_vm2, %v607_v3 }

// kernel: unet_reg_forward.32
= control target key start
LH: loop header
LB: loop body
LE: loop exit
PB: predicated region body
PF: predicated region fallthrough
CT: control target
= control target key end

     0   :  { %vm46_vm0 = vcmask 519168   ;;  %s110_s0 = inlined_call_operand.vmem [shape: bf16[32,64], index: 0, kind: input, shape index: {}]   ;;  %s111_s1 = inlined_call_operand.vmem [shape: f32[1,64], index: 1, kind: input, shape index: {}]   ;;  %s112_s2 = inlined_call_operand.vmem [shape: f32[1,64], index: 2, kind: input, shape index: {}]   ;;  %s113_s3 = inlined_call_operand.vmem [shape: bf16[32,64], index: 3, kind: output, shape index: {}]  }
   0x1   :  { %v56_v0 = vld [vmem:[%s110_s0] sm:$0xff]   ;;  %v63_v5 = vld [vmem:[%s110_s0 + $0x8] sm:$0xff]  }
   0x2   :  { %v64_v1 = vld [vmem:[%s111_s1] ss:$0 sm:$0xff]  ;;  %v57_v2 = vunpack.c.l.bf16 %v56_v0  ;;  %v58_v4 = vunpack.c.h.bf16 %v56_v0  ;;  %v61_v6 = vunpack.c.l.bf16 %v63_v5  ;;  %v62_v7 = vunpack.c.h.bf16 %v63_v5 }
   0x3   :  { %v65_v3 = vld [vmem:[%s112_s2] ss:$0 sm:$0xff] }
   0x4   :  { %v26_v8 = vmul.f32 %v64_v1, %v57_v2  ;;  %v27_v9 = vmul.f32 %v64_v1, %v58_v4  ;;  %v28_v10 = vmul.f32 %v64_v1, %v61_v6  ;;  %v29_v11 = vmul.f32 %v64_v1, %v62_v7 }
   0x6   :  { %v34_v12 = vadd.f32 %v65_v3, %v26_v8  ;;  %v35_v13 = vadd.f32 %v65_v3, %v27_v9  ;;  %v36_v14 = vadd.f32 %v65_v3, %v28_v10  ;;  %v37_v15 = vadd.f32 %v65_v3, %v29_v11 }
   0x8   :  { %v38_v16 = vmax.f32 %v34_v12, 0.0  ;;  %v39_v17 = vmax.f32 %v35_v13, 0.0  ;;  %v40_v18 = vmax.f32 %v36_v14, 0.0  ;;  %v41_v19 = vmax.f32 %v37_v15, 0.0 }
   0xa   :  { %v42_v20 = vpack.c.bf16 %v38_v16, %v38_v16  ;;  %v43_v21 = vpack.c.bf16 %v39_v17, %v39_v17  ;;  %v44_v22 = vpack.c.bf16 %v40_v18, %v40_v18  ;;  %v45_v23 = vpack.c.bf16 %v41_v19, %v41_v19 }
   0xc   :  { %47 = vst.msk [vmem:[%s113_s3] sm:$0xf] %vm46_vm0, %v42_v20 }
   0xd   :  { %48 = vst.msk [vmem:[%s113_s3 + $0x4] sm:$0xf] %vm46_vm0, %v43_v21 }
   0xe   :  { %49 = vst.msk [vmem:[%s113_s3 + $0x8] sm:$0xf] %vm46_vm0, %v44_v22 }
   0xf   :  { %50 = vst.msk [vmem:[%s113_s3 + $0xc] sm:$0xf] %vm46_vm0, %v45_v23 }

// kernel: unet_reg_forward.30
= control target key start
LH: loop header
LB: loop body
LE: loop exit
PB: predicated region body
PF: predicated region fallthrough
CT: control target
= control target key end

     0   :  { %vm921_vm0 = vcmask 1041408   ;;  %vm1150_vm1 = vcmask 1041409   ;;  %vm1153_vm2 = vcmask 1042434   ;;  %vm1156_vm3 = vcmask 1043459   ;;  %s2492_s0 = inlined_call_operand.vmem [shape: bf16[8,2,4,2,32], index: 0, kind: input, shape index: {}]   ;;  %s2493_s1 = inlined_call_operand.vmem [shape: f32[1,32], index: 1, kind: input, shape index: {}]   ;;  %s2494_s2 = inlined_call_operand.vmem [shape: f32[1,32], index: 2, kind: input, shape index: {}]   ;;  %s2495_s4 = inlined_call_operand.vmem [shape: bf16[8,4,32], index: 4, kind: output, shape index: {1}]   ;;  %s2496_s3 = inlined_call_operand.vmem [shape: bf16[8,2,4,2,32], index: 3, kind: output, shape index: {0}]  }
   0x1   :  { %v17_v0 = vld [vmem:[%s2492_s0 + $0x1] sm:$0x1]  ;;  %v21_v1 = vld [vmem:[%s2492_s0 + $0x5] sm:$0x1]  ;;  %v1367_v4 = vld [vmem:[%s2493_s1] ss:$0 sm:$0xff] }
   0x2   :  { %v81_v2 = vunpack.c.l.bf16 %v17_v0  ;;  %v85_v3 = vunpack.c.l.bf16 %v21_v1  ;;  %v1372_v5 = vld [vmem:[%s2494_s2] ss:$0 sm:$0xff]  ;;  %v18_v6 = vld [vmem:[%s2492_s0 + $0x2] sm:$0x1]  ;;  %v22_v7 = vld [vmem:[%s2492_s0 + $0x6] sm:$0x1] }
   0x3   :  { %v16_v8 = vld [vmem:[%s2492_s0] sm:$0x1]  ;;  %v82_v11 = vunpack.c.l.bf16 %v18_v6  ;;  %v86_v12 = vunpack.c.l.bf16 %v22_v7  ;;  %v20_v13 = vld [vmem:[%s2492_s0 + $0x4] sm:$0x1]  ;;  %v19_v14 = vld [vmem:[%s2492_s0 + $0x3] sm:$0x1] }
   0x4   :  { %v149_v9 = vmul.f32 %v1367_v4, %v81_v2  ;;  %v153_v10 = vmul.f32 %v1367_v4, %v85_v3  ;;  %v23_v15 = vld [vmem:[%s2492_s0 + $0x7] sm:$0x1]  ;;  %v80_v16 = vunpack.c.l.bf16 %v16_v8  ;;  %v84_v17 = vunpack.c.l.bf16 %v20_v13  ;;  %v25_v44 = vld [vmem:[%s2492_s0 + $0x9] sm:$0x1]  ;;  %v29_v53 = vld [vmem:[%s2492_s0 + $0xd] sm:$0x1] }
   0x5   :  { %v83_v18 = vunpack.c.l.bf16 %v19_v14  ;;  %v87_v19 = vunpack.c.l.bf16 %v23_v15  ;;  %v150_v22 = vmul.f32 %v1367_v4, %v82_v11  ;;  %v154_v23 = vmul.f32 %v1367_v4, %v86_v12  ;;  %v26_v58 = vld [vmem:[%s2492_s0 + $0xa] sm:$0x1]  ;;  %v30_v59 = vld [vmem:[%s2492_s0 + $0xe] sm:$0x1] }
   0x6   :  { %v217_v20 = vadd.f32 %v1372_v5, %v149_v9  ;;  %v221_v21 = vadd.f32 %v1372_v5, %v153_v10  ;;  %v148_v24 = vmul.f32 %v1367_v4, %v80_v16  ;;  %v152_v25 = vmul.f32 %v1367_v4, %v84_v17 }
   0x7   :  { %v151_v26 = vmul.f32 %v1367_v4, %v83_v18  ;;  %v155_v27 = vmul.f32 %v1367_v4, %v87_v19  ;;  %v218_v30 = vadd.f32 %v1372_v5, %v150_v22  ;;  %v222_v31 = vadd.f32 %v1372_v5, %v154_v23  ;;  %v24_v18 = vld [vmem:[%s2492_s0 + $0x8] sm:$0x1] }
   0x8   :  { %v1402_v28 = vmax.f32 %v217_v20, 0.0  ;;  %v1404_v29 = vmax.f32 %v221_v21, 0.0  ;;  %v216_v32 = vadd.f32 %v1372_v5, %v148_v24  ;;  %v220_v33 = vadd.f32 %v1372_v5, %v152_v25 }
   0x9   :  { %v219_v34 = vadd.f32 %v1372_v5, %v151_v26  ;;  %v223_v35 = vadd.f32 %v1372_v5, %v155_v27  ;;  %v1414_v38 = vmax.f32 %v218_v30, 0.0  ;;  %v1416_v39 = vmax.f32 %v222_v31, 0.0  ;;  %v28_v27 = vld [vmem:[%s2492_s0 + $0xc] sm:$0x1] }
   0xa   :  { %v1266_v36 = vrot.slane %v1402_v28, 9  ;;  %v1298_v37 = vrot.slane %v1404_v29, 9  ;;  %v1418_v40 = vmax.f32 %v216_v32, 0.0  ;;  %v1420_v41 = vmax.f32 %v220_v33, 0.0 }
   0xb   :  { %v1422_v42 = vmax.f32 %v219_v34, 0.0  ;;  %v1424_v43 = vmax.f32 %v223_v35, 0.0  ;;  %v1267_v47 = vrot.slane %v1414_v38, 9  ;;  %v1299_v48 = vrot.slane %v1416_v39, 9  ;;  %v27_v34 = vld [vmem:[%s2492_s0 + $0xb] sm:$0x1] }
   0xc   :  { %v602_v45 = vmax.f32 %v1402_v28, %v1266_v36  ;;  %v762_v46 = vmax.f32 %v1404_v29, %v1298_v37  ;;  %v1265_v49 = vrot.slane %v1418_v40, 9  ;;  %v1297_v50 = vrot.slane %v1420_v41, 9  ;;  %v31_v35 = vld [vmem:[%s2492_s0 + $0xf] sm:$0x1] }
   0xd   :  { %v1268_v51 = vrot.slane %v1422_v42, 9  ;;  %v1300_v52 = vrot.slane %v1424_v43, 9  ;;  %v603_v55 = vmax.f32 %v1414_v38, %v1267_v47  ;;  %v763_v56 = vmax.f32 %v1416_v39, %v1299_v48 }
   0xe   :  { %v794_v54 = vmax.f32 %v602_v45, %v762_v46  ;;  %v89_v57 = vunpack.c.l.bf16 %v25_v44  ;;  %v601_v60 = vmax.f32 %v1418_v40, %v1265_v49  ;;  %v761_v61 = vmax.f32 %v1420_v41, %v1297_v50  ;;  %v33_v46 = vld [vmem:[%s2492_s0 + $0x11] sm:$0x1] }
   0xf   :  { %v604_v62 = vmax.f32 %v1422_v42, %v1268_v51  ;;  %v764_v63 = vmax.f32 %v1424_v43, %v1300_v52  ;;  %v795_v1 = vmax.f32 %v603_v55, %v763_v56  ;;  %v93_v2 = vunpack.c.l.bf16 %v29_v53  ;;  %v37_v55 = vld [vmem:[%s2492_s0 + $0x15] sm:$0x1] }
  0x10   :  { %v826_v0 = vpack.c.bf16 %v794_v54, %v794_v54  ;;  %v157_v3 = vmul.f32 %v1367_v4, %v89_v57  ;;  %v793_v6 = vmax.f32 %v601_v60, %v761_v61  ;;  %v90_v8 = vunpack.c.l.bf16 %v26_v58 }
  0x11   :  { %v796_v7 = vmax.f32 %v604_v62, %v764_v63  ;;  %v94_v9 = vunpack.c.l.bf16 %v30_v59  ;;  %v827_v11 = vpack.c.bf16 %v795_v1, %v795_v1  ;;  %v161_v12 = vmul.f32 %v1367_v4, %v93_v2 }
  0x12   :  { %v890_v10 = vrot.slane %v826_v0, 2  ;;  %v225_v13 = vadd.f32 %v1372_v5, %v157_v3  ;;  %v825_v14 = vpack.c.bf16 %v793_v6, %v793_v6  ;;  %v158_v16 = vmul.f32 %v1367_v4, %v90_v8 }
  0x13   :  { %v828_v15 = vpack.c.bf16 %v796_v7, %v796_v7  ;;  %v162_v17 = vmul.f32 %v1367_v4, %v94_v9  ;;  %v891_v20 = vrot.slane %v827_v11, 2  ;;  %v229_v21 = vadd.f32 %v1372_v5, %v161_v12 }
  0x14   :  { %v927_v19 = vsel %vm921_vm0, %v826_v0, %v890_v10  ;;  %v1462_v22 = vmax.f32 %v225_v13, 0.0  ;;  %v889_v23 = vrot.slane %v825_v14, 2  ;;  %v226_v25 = vadd.f32 %v1372_v5, %v158_v16 }
  0x15   :  { %1022 = vst [vmem:[#allocation1 + $0x10] ss:$2 sm:$0xff] %v927_v19  ;;  %v892_v24 = vrot.slane %v828_v15, 2  ;;  %v230_v26 = vadd.f32 %v1372_v5, %v162_v17  ;;  %v930_v30 = vsel %vm921_vm0, %v827_v11, %v891_v20  ;;  %v1470_v31 = vmax.f32 %v229_v21, 0.0 }
  0x16   :  { %v1270_v32 = vrot.slane %v1462_v22, 9  ;;  %v88_v33 = vunpack.c.l.bf16 %v24_v18  ;;  %1026 = vst [vmem:[#allocation1 + $0x20] ss:$2 sm:$0xff] %v930_v30  ;;  %v924_v36 = vsel %vm921_vm0, %v825_v14, %v889_v23  ;;  %v1481_v44 = vmax.f32 %v226_v25, 0.0  ;;  %v34_v14 = vld [vmem:[%s2492_s0 + $0x12] sm:$0x1] }
  0x17   :  { %v933_v37 = vsel %vm921_vm0, %v828_v15, %v892_v24  ;;  %v1483_v45 = vmax.f32 %v230_v26, 0.0  ;;  %1018 = vst [vmem:[#allocation1] ss:$2 sm:$0xff] %v924_v36  ;;  %v1302_v48 = vrot.slane %v1470_v31, 9  ;;  %v92_v49 = vunpack.c.l.bf16 %v28_v27 }
  0x18   :  { %v606_v47 = vmax.f32 %v1462_v22, %v1270_v32  ;;  %v156_v50 = vmul.f32 %v1367_v4, %v88_v33  ;;  %1030 = vst [vmem:[#allocation1 + $0x30] ss:$2 sm:$0xff] %v933_v37  ;;  %v1271_v51 = vrot.slane %v1481_v44, 9  ;;  %v91_v53 = vunpack.c.l.bf16 %v27_v34  ;;  %v38_v33 = vld [vmem:[%s2492_s0 + $0x16] sm:$0x1] }
  0x19   :  { %v1303_v52 = vrot.slane %v1483_v45, 9  ;;  %v95_v54 = vunpack.c.l.bf16 %v31_v35  ;;  %v766_v56 = vmax.f32 %v1470_v31, %v1302_v48  ;;  %v160_v57 = vmul.f32 %v1367_v4, %v92_v49 }
  0x1a   :  { %v224_v58 = vadd.f32 %v1372_v5, %v156_v50  ;;  %v97_v59 = vunpack.c.l.bf16 %v33_v46  ;;  %v607_v60 = vmax.f32 %v1481_v44, %v1271_v51  ;;  %v159_v62 = vmul.f32 %v1367_v4, %v91_v53  ;;  %v32_v46 = vld [vmem:[%s2492_s0 + $0x10] sm:$0x1] }
  0x1b   :  { %v767_v61 = vmax.f32 %v1483_v45, %v1303_v52  ;;  %v163_v63 = vmul.f32 %v1367_v4, %v95_v54  ;;  %v798_v0 = vmax.f32 %v606_v47, %v766_v56  ;;  %v228_v1 = vadd.f32 %v1372_v5, %v160_v57  ;;  %v36_v47 = vld [vmem:[%s2492_s0 + $0x14] sm:$0x1]  ;;  %v35_v56 = vld [vmem:[%s2492_s0 + $0x13] sm:$0x1] }
  0x1c   :  { %v1504_v2 = vmax.f32 %v224_v58, 0.0  ;;  %v101_v3 = vunpack.c.l.bf16 %v37_v55  ;;  %v227_v7 = vadd.f32 %v1372_v5, %v159_v62  ;;  %v165_v9 = vmul.f32 %v1367_v4, %v97_v59  ;;  %v1516_v15 = vld.sshfl [vmem:[#allocation1 + $0x10] sm:$0xff pattern:$0x75643120] }
  0x1d   :  { %v799_v6 = vmax.f32 %v607_v60, %v767_v61  ;;  %v231_v8 = vadd.f32 %v1372_v5, %v163_v63  ;;  %v830_v10 = vpack.c.bf16 %v798_v0, %v798_v0  ;;  %v1509_v11 = vmax.f32 %v228_v1, 0.0  ;;  %v1523_v21 = vld.sshfl [vmem:[#allocation1 + $0x20] sm:$0xff pattern:$0x75643120]  ;;  %v39_v1 = vld [vmem:[%s2492_s0 + $0x17] sm:$0x1] }
  0x1e   :  { %v1269_v12 = vrot.slane %v1504_v2, 9  ;;  %v169_v13 = vmul.f32 %v1367_v4, %v101_v3  ;;  %v1518_v17 = vmax.f32 %v227_v7, 0.0  ;;  %v233_v19 = vadd.f32 %v1372_v5, %v165_v9 }
  0x1f   :  { %v831_v16 = vpack.c.bf16 %v799_v6, %v799_v6  ;;  %v1520_v18 = vmax.f32 %v231_v8, 0.0  ;;  %v894_v20 = vrot.slane %v830_v10, 2  ;;  %v1301_v24 = vrot.slane %v1509_v11, 9 }
  0x20   :  { %v605_v23 = vmax.f32 %v1504_v2, %v1269_v12  ;;  %v237_v25 = vadd.f32 %v1372_v5, %v169_v13  ;;  %v1272_v27 = vrot.slane %v1518_v17, 9  ;;  %v1530_v32 = vmax.f32 %v233_v19, 0.0  ;;  %v1031_v19 = vld.sshfl [vmem:[#allocation1 + $0x30] sm:$0xff pattern:$0x75643120] }
  0x21   :  { %v895_v26 = vrot.slane %v831_v16, 2  ;;  %v1304_v30 = vrot.slane %v1520_v18, 9  ;;  %v939_v34 = vsel %vm921_vm0, %v830_v10, %v894_v20  ;;  %v765_v35 = vmax.f32 %v1509_v11, %v1301_v24  ;;  %v1019_v10 = vld.sshfl [vmem:[#allocation1] sm:$0xff pattern:$0x75643120] }
  0x22   :  { %v1537_v36 = vmax.f32 %v237_v25, 0.0  ;;  %v98_v37 = vunpack.c.l.bf16 %v34_v14  ;;  %1036 = vst [vmem:[#allocation1 + $0x10] ss:$2 sm:$0xff] %v939_v34  ;;  %v608_v49 = vmax.f32 %v1518_v17, %v1272_v27  ;;  %v1274_v51 = vrot.slane %v1530_v32, 9 }
  0x23   :  { %v942_v48 = vsel %vm921_vm0, %v831_v16, %v895_v26  ;;  %v768_v50 = vmax.f32 %v1520_v18, %v1304_v30  ;;  %v797_v52 = vmax.f32 %v605_v23, %v765_v35  ;;  %v102_v54 = vunpack.c.l.bf16 %v38_v33 }
  0x24   :  { %1039 = vst [vmem:[#allocation1 + $0x20] ss:$2 sm:$0xff] %v942_v48  ;;  %v1306_v53 = vrot.slane %v1537_v36, 9  ;;  %v166_v55 = vmul.f32 %v1367_v4, %v98_v37  ;;  %v610_v58 = vmax.f32 %v1530_v32, %v1274_v51  ;;  %v96_v59 = vunpack.c.l.bf16 %v32_v46 }
  0x25   :  { %v800_v57 = vmax.f32 %v608_v49, %v768_v50  ;;  %v100_v60 = vunpack.c.l.bf16 %v36_v47  ;;  %v829_v61 = vpack.c.bf16 %v797_v52, %v797_v52  ;;  %v170_v63 = vmul.f32 %v1367_v4, %v102_v54 }
  0x26   :  { %v770_v62 = vmax.f32 %v1537_v36, %v1306_v53  ;;  %v234_v0 = vadd.f32 %v1372_v5, %v166_v55  ;;  %v164_v6 = vmul.f32 %v1367_v4, %v96_v59  ;;  %v99_v8 = vunpack.c.l.bf16 %v35_v56 }
  0x27   :  { %v832_v3 = vpack.c.bf16 %v800_v57, %v800_v57  ;;  %v168_v7 = vmul.f32 %v1367_v4, %v100_v60  ;;  %v893_v9 = vrot.slane %v829_v61, 2  ;;  %v238_v13 = vadd.f32 %v1372_v5, %v170_v63 }
  0x28   :  { %v802_v12 = vmax.f32 %v610_v58, %v770_v62  ;;  %v1564_v14 = vmax.f32 %v234_v0, 0.0  ;;  %v232_v20 = vadd.f32 %v1372_v5, %v164_v6  ;;  %v103_v24 = vunpack.c.l.bf16 %v39_v1 }
  0x29   :  { %v896_v16 = vrot.slane %v832_v3, 2  ;;  %v236_v23 = vadd.f32 %v1372_v5, %v168_v7  ;;  %v936_v25 = vsel %vm921_vm0, %v829_v61, %v893_v9  ;;  %v1569_v27 = vmax.f32 %v238_v13, 0.0  ;;  %v1573_v34 = vld.sshfl [vmem:[#allocation1 + $0x10] sm:$0xff pattern:$0x75643120] }
  0x2a   :  { %v834_v26 = vpack.c.bf16 %v802_v12, %v802_v12  ;;  %v1275_v30 = vrot.slane %v1564_v14, 9  ;;  %1033 = vst [vmem:[#allocation1] ss:$2 sm:$0xff] %v936_v25  ;;  %v1575_v35 = vmax.f32 %v232_v20, 0.0  ;;  %v167_v37 = vmul.f32 %v1367_v4, %v99_v8  ;;  %v45_v12 = vld [vmem:[%s2492_s0 + $0x1d] sm:$0x1] }
  0x2b   :  { %v945_v33 = vsel %vm921_vm0, %v832_v3, %v896_v16  ;;  %v171_v46 = vmul.f32 %v1367_v4, %v103_v24  ;;  %v1307_v49 = vrot.slane %v1569_v27, 9  ;;  %v1581_v50 = vmax.f32 %v236_v23, 0.0  ;;  %v42_v23 = vld [vmem:[%s2492_s0 + $0x1a] sm:$0x1]  ;;  %v46_v24 = vld [vmem:[%s2492_s0 + $0x1e] sm:$0x1] }
  0x2c   :  { %1042 = vst [vmem:[#allocation1 + $0x30] ss:$2 sm:$0xff] %v945_v33  ;;  %v898_v47 = vrot.slane %v834_v26, 2  ;;  %v611_v48 = vmax.f32 %v1564_v14, %v1275_v30  ;;  %v1273_v51 = vrot.slane %v1575_v35, 9  ;;  %v235_v52 = vadd.f32 %v1372_v5, %v167_v37 }
  0x2d   :  { %v239_v53 = vadd.f32 %v1372_v5, %v171_v46  ;;  %v1117_v54 = vunpack.c.l.b16 %v1019_v10  ;;  %v771_v56 = vmax.f32 %v1569_v27, %v1307_v49  ;;  %v1305_v57 = vrot.slane %v1581_v50, 9 }
  0x2e   :  { %v951_v55 = vsel %vm921_vm0, %v834_v26, %v898_v47  ;;  %v1118_v58 = vunpack.c.l.b16 %v1516_v15  ;;  %v609_v59 = vmax.f32 %v1575_v35, %v1273_v51  ;;  %v1591_v60 = vmax.f32 %v235_v52, 0.0  ;;  %v1615_v26 = vld.sshfl [vmem:[#allocation1 + $0x20] sm:$0xff pattern:$0x75643120] }
  0x2f   :  { %1048 = vst [vmem:[#allocation1 + $0x10] ss:$2 sm:$0xff] %v951_v55  ;;  %v1593_v61 = vmax.f32 %v239_v53, 0.0  ;;  %v1119_v62 = vunpack.c.l.b16 %v1523_v21  ;;  %v803_v63 = vmax.f32 %v611_v48, %v771_v56  ;;  %v769_v0 = vmax.f32 %v1581_v50, %v1305_v57  ;;  %v41_v21 = vld [vmem:[%s2492_s0 + $0x19] sm:$0x1] }
  0x30   :  { %v1120_v1 = vunpack.c.l.b16 %v1031_v19  ;;  %v1149_v3 = vrot.slane %v1118_v58, 7  ;;  %v1276_v6 = vrot.slane %v1591_v60, 9  ;;  %vm1248_vm4 = vcmask 254976   ;;  %v40_v48 = vld [vmem:[%s2492_s0 + $0x18] sm:$0x1] }
  0x31   :  { %v1308_v7 = vrot.slane %v1593_v61, 9  ;;  %v1152_v15 = vrot.slane %v1119_v62, 6  ;;  %v835_v8 = vpack.c.bf16 %v803_v63, %v803_v63  ;;  %v801_v9 = vmax.f32 %v609_v59, %v769_v0  ;;  %v1622_v52 = vld.sshfl [vmem:[#allocation1] sm:$0xff pattern:$0x75643120] }
  0x32   :  { %v1151_v10 = vsel %vm1150_vm1, %v1149_v3, %v1117_v54  ;;  %v612_v13 = vmax.f32 %v1591_v60, %v1276_v6  ;;  %v1155_v20 = vrot.slane %v1120_v1, 5  ;;  %v105_v46 = vunpack.c.l.bf16 %v41_v21  ;;  %v44_v59 = vld [vmem:[%s2492_s0 + $0x1c] sm:$0x1]  ;;  %v43_v3 = vld [vmem:[%s2492_s0 + $0x1b] sm:$0x1] }
  0x33   :  { %v772_v16 = vmax.f32 %v1593_v61, %v1308_v7  ;;  %v1154_v19 = vsel %vm1153_vm2, %v1152_v15, %v1151_v10  ;;  %v899_v25 = vrot.slane %v835_v8, 2  ;;  %v833_v30 = vpack.c.bf16 %v801_v9, %v801_v9  ;;  %v1043_v7 = vld.sshfl [vmem:[#allocation1 + $0x30] sm:$0xff pattern:$0x75643120] }
  0x34   :  { %v1157_v37 = vsel %vm1156_vm3, %v1155_v20, %v1154_v19  ;;  %v109_v47 = vunpack.c.l.bf16 %v45_v12  ;;  %v106_v54 = vunpack.c.l.bf16 %v42_v23  ;;  %v173_v56 = vmul.f32 %v1367_v4, %v105_v46 }
  0x35   :  { %v804_v33 = vmax.f32 %v612_v13, %v772_v16  ;;  %v954_v49 = vsel %vm921_vm0, %v835_v8, %v899_v25  ;;  %v897_v51 = vrot.slane %v833_v30, 2  ;;  %v1200_v53 = vpack.c.b16 %v1157_v37, %v1157_v37  ;;  %v47_v16 = vld [vmem:[%s2492_s0 + $0x1f] sm:$0x1] }
  0x36   :  { %1051 = vst [vmem:[#allocation1 + $0x20] ss:$2 sm:$0xff] %v954_v49  ;;  %v177_v57 = vmul.f32 %v1367_v4, %v109_v47  ;;  %v110_v58 = vunpack.c.l.bf16 %v46_v24  ;;  %v174_v0 = vmul.f32 %v1367_v4, %v106_v54  ;;  %v104_v1 = vunpack.c.l.bf16 %v40_v48 }
  0x37   :  { %v836_v55 = vpack.c.bf16 %v804_v33, %v804_v33  ;;  %v948_v62 = vsel %vm921_vm0, %v833_v30, %v897_v51  ;;  %v1208_v63 = vrot.slane %v1200_v53, 2  ;;  %v241_v15 = vadd.f32 %v1372_v5, %v173_v56 }
  0x38   :  { %1045 = vst [vmem:[#allocation1] ss:$2 sm:$0xff] %v948_v62  ;;  %v245_v8 = vadd.f32 %v1372_v5, %v177_v57  ;;  %v178_v9 = vmul.f32 %v1367_v4, %v110_v58  ;;  %v242_v21 = vadd.f32 %v1372_v5, %v174_v0  ;;  %v108_v12 = vunpack.c.l.bf16 %v44_v59 }
  0x39   :  { %v900_v6 = vrot.slane %v836_v55, 2  ;;  %v1218_v10 = vsel %vm921_vm0, %v1200_v53, %v1208_v63  ;;  %v172_v13 = vmul.f32 %v1367_v4, %v104_v1  ;;  %v1648_v20 = vmax.f32 %v241_v15, 0.0 }
  0x3a   :  { %1249 = vst.msk [vmem:[%s2495_s4] sm:$0x3] %vm1248_vm4, %v1218_v10  ;;  %v1650_v23 = vmax.f32 %v245_v8, 0.0  ;;  %v246_v24 = vadd.f32 %v1372_v5, %v178_v9  ;;  %v1653_v25 = vmax.f32 %v242_v21, 0.0  ;;  %v176_v30 = vmul.f32 %v1367_v4, %v108_v12 }
  0x3b   :  { %v957_v19 = vsel %vm921_vm0, %v836_v55, %v900_v6  ;;  %v240_v33 = vadd.f32 %v1372_v5, %v172_v13  ;;  %v107_v37 = vunpack.c.l.bf16 %v43_v3  ;;  %v1278_v46 = vrot.slane %v1648_v20, 9 }
  0x3c   :  { %1054 = vst [vmem:[#allocation1 + $0x30] ss:$2 sm:$0xff] %v957_v19  ;;  %v1310_v47 = vrot.slane %v1650_v23, 9  ;;  %v1659_v48 = vmax.f32 %v246_v24, 0.0  ;;  %v111_v49 = vunpack.c.l.bf16 %v47_v16  ;;  %v1279_v51 = vrot.slane %v1653_v25, 9 }
  0x3d   :  { %v244_v53 = vadd.f32 %v1372_v5, %v176_v30  ;;  %v1663_v54 = vmax.f32 %v240_v33, 0.0  ;;  %v175_v55 = vmul.f32 %v1367_v4, %v107_v37  ;;  %v614_v56 = vmax.f32 %v1648_v20, %v1278_v46  ;;  %v49_v46 = vld [vmem:[%s2492_s0 + $0x21] sm:$0x1] }
  0x3e   :  { %v774_v57 = vmax.f32 %v1650_v23, %v1310_v47  ;;  %v1311_v58 = vrot.slane %v1659_v48, 9  ;;  %v179_v59 = vmul.f32 %v1367_v4, %v111_v49  ;;  %v615_v62 = vmax.f32 %v1653_v25, %v1279_v51  ;;  %v1694_v49 = vld.sshfl [vmem:[#allocation1 + $0x10] sm:$0xff pattern:$0x75643120] }
  0x3f   :  { %v1671_v63 = vmax.f32 %v244_v53, 0.0  ;;  %v1277_v0 = vrot.slane %v1663_v54, 9  ;;  %v243_v1 = vadd.f32 %v1372_v5, %v175_v55  ;;  %v1121_v8 = vunpack.c.l.b16 %v1622_v52 }
  0x40   :  { %v806_v3 = vmax.f32 %v614_v56, %v774_v57  ;;  %v775_v6 = vmax.f32 %v1659_v48, %v1311_v58  ;;  %v247_v15 = vadd.f32 %v1372_v5, %v179_v59  ;;  %v1122_v12 = vunpack.c.l.b16 %v1573_v34  ;;  %v53_v34 = vld [vmem:[%s2492_s0 + $0x25] sm:$0x1]  ;;  %v50_v58 = vld [vmem:[%s2492_s0 + $0x22] sm:$0x1] }
  0x41   :  { %v613_v9 = vmax.f32 %v1663_v54, %v1277_v0  ;;  %v1309_v10 = vrot.slane %v1671_v63, 9  ;;  %v1680_v21 = vmax.f32 %v243_v1, 0.0  ;;  %v1123_v24 = vunpack.c.l.b16 %v1615_v26  ;;  %v1703_v0 = vld.sshfl [vmem:[#allocation1 + $0x20] sm:$0xff pattern:$0x75643120] }
  0x42   :  { %v838_v13 = vpack.c.bf16 %v806_v3, %v806_v3  ;;  %v807_v16 = vmax.f32 %v615_v62, %v775_v6  ;;  %v1683_v19 = vmax.f32 %v247_v15, 0.0  ;;  %v1124_v37 = vunpack.c.l.b16 %v1043_v7  ;;  %v54_v6 = vld [vmem:[%s2492_s0 + $0x26] sm:$0x1] }
  0x43   :  { %v773_v30 = vmax.f32 %v1671_v63, %v1309_v10  ;;  %v1280_v33 = vrot.slane %v1680_v21, 9  ;;  %v1158_v52 = vrot.slane %v1122_v12, 7  ;;  %v1160_v53 = vrot.slane %v1123_v24, 6  ;;  %v48_v12 = vld [vmem:[%s2492_s0 + $0x20] sm:$0x1] }
  0x44   :  { %v902_v47 = vrot.slane %v838_v13, 2  ;;  %v839_v51 = vpack.c.bf16 %v807_v16, %v807_v16  ;;  %v1312_v26 = vrot.slane %v1683_v19, 9  ;;  %v1162_v57 = vrot.slane %v1124_v37, 5 }
  0x45   :  { %v805_v55 = vmax.f32 %v613_v9, %v773_v30  ;;  %v616_v56 = vmax.f32 %v1680_v21, %v1280_v33  ;;  %v1159_v7 = vsel %vm1150_vm1, %v1158_v52, %v1121_v8  ;;  %v113_v9 = vunpack.c.l.bf16 %v49_v46  ;;  %v52_v33 = vld [vmem:[%s2492_s0 + $0x24] sm:$0x1] }
  0x46   :  { %v963_v59 = vsel %vm921_vm0, %v838_v13, %v902_v47  ;;  %v903_v62 = vrot.slane %v839_v51, 2  ;;  %v776_v1 = vmax.f32 %v1683_v19, %v1312_v26  ;;  %v1161_v3 = vsel %vm1153_vm2, %v1160_v53, %v1159_v7  ;;  %v1718_v52 = vld.sshfl [vmem:[#allocation1] sm:$0xff pattern:$0x75643120] }
  0x47   :  { %1060 = vst [vmem:[#allocation1 + $0x10] ss:$2 sm:$0xff] %v963_v59  ;;  %v837_v15 = vpack.c.bf16 %v805_v55, %v805_v55  ;;  %v1163_v8 = vsel %vm1156_vm3, %v1162_v57, %v1161_v3  ;;  %v117_v10 = vunpack.c.l.bf16 %v53_v34  ;;  %v114_v30 = vunpack.c.l.bf16 %v50_v58  ;;  %v51_v59 = vld [vmem:[%s2492_s0 + $0x23] sm:$0x1] }
  0x48   :  { %v966_v13 = vsel %vm921_vm0, %v839_v51, %v903_v62  ;;  %v808_v16 = vmax.f32 %v616_v56, %v776_v1  ;;  %v1201_v24 = vpack.c.b16 %v1163_v8, %v1163_v8  ;;  %v181_v46 = vmul.f32 %v1367_v4, %v113_v9  ;;  %v1730_v1 = vld.sshfl [vmem:[#allocation1 + $0x30] sm:$0xff pattern:$0x75643120] }
  0x49   :  { %1063 = vst [vmem:[#allocation1 + $0x20] ss:$2 sm:$0xff] %v966_v13  ;;  %v901_v37 = vrot.slane %v837_v15, 2  ;;  %v185_v34 = vmul.f32 %v1367_v4, %v117_v10  ;;  %v118_v47 = vunpack.c.l.bf16 %v54_v6  ;;  %v182_v51 = vmul.f32 %v1367_v4, %v114_v30  ;;  %v55_v13 = vld [vmem:[%s2492_s0 + $0x27] sm:$0x1] }
  0x4a   :  { %v840_v26 = vpack.c.bf16 %v808_v16, %v808_v16  ;;  %v1209_v53 = vrot.slane %v1201_v24, 2  ;;  %v112_v55 = vunpack.c.l.bf16 %v48_v12  ;;  %v249_v7 = vadd.f32 %v1372_v5, %v181_v46 }
  0x4b   :  { %v960_v56 = vsel %vm921_vm0, %v837_v15, %v901_v37  ;;  %v253_v57 = vadd.f32 %v1372_v5, %v185_v34  ;;  %v186_v58 = vmul.f32 %v1367_v4, %v118_v47  ;;  %v250_v6 = vadd.f32 %v1372_v5, %v182_v51 }
  0x4c   :  { %1057 = vst [vmem:[#allocation1] ss:$2 sm:$0xff] %v960_v56  ;;  %v904_v62 = vrot.slane %v840_v26, 2  ;;  %v1221_v3 = vsel %vm921_vm0, %v1201_v24, %v1209_v53  ;;  %v116_v8 = vunpack.c.l.bf16 %v52_v33  ;;  %v1738_v15 = vmax.f32 %v249_v7, 0.0 }
  0x4d   :  { %1250 = vst.msk [vmem:[%s2495_s4 + $0x2] sm:$0x3] %vm1248_vm4, %v1221_v3  ;;  %v1740_v9 = vmax.f32 %v253_v57, 0.0  ;;  %v254_v10 = vadd.f32 %v1372_v5, %v186_v58  ;;  %v180_v12 = vmul.f32 %v1367_v4, %v112_v55  ;;  %v1748_v30 = vmax.f32 %v250_v6, 0.0 }
  0x4e   :  { %v969_v16 = vsel %vm921_vm0, %v840_v26, %v904_v62  ;;  %v1061_v24 = vld.sshfl [vmem:[#allocation1 + $0x10] sm:$0xff pattern:$0x75643120]  ;;  %v184_v33 = vmul.f32 %v1367_v4, %v116_v8  ;;  %v115_v37 = vunpack.c.l.bf16 %v51_v59  ;;  %v1282_v46 = vrot.slane %v1738_v15, 9 }
  0x4f   :  { %2524 = vst [vmem:[#allocation2_spill] sm:$0xff] %v1740_v9  ;;  %v1314_v34 = vrot.slane %v1740_v9, 9  ;;  %v1130_v47 = vunpack.c.l.b16 %v1061_v24  ;;  %v1753_v53 = vmax.f32 %v254_v10, 0.0  ;;  %v1283_v51 = vrot.slane %v1748_v30, 9 }
  0x50   :  { %2525 = vst [vmem:[#allocation3_spill] sm:$0xff] %v1748_v30  ;;  %v248_v55 = vadd.f32 %v1372_v5, %v180_v12  ;;  %v252_v26 = vadd.f32 %v1372_v5, %v184_v33  ;;  %v119_v56 = vunpack.c.l.bf16 %v55_v13  ;;  %v618_v7 = vmax.f32 %v1738_v15, %v1282_v46 }
  0x51   :  { %1066 = vst [vmem:[#allocation1 + $0x30] ss:$2 sm:$0xff] %v969_v16  ;;  %v778_v57 = vmax.f32 %v1740_v9, %v1314_v34  ;;  %v1760_v58 = vrot.slane %v1130_v47, 7  ;;  %v1315_v59 = vrot.slane %v1753_v53, 9  ;;  %v619_v62 = vmax.f32 %v1748_v30, %v1283_v51 }
  0x52   :  { %2526 = vst [vmem:[#allocation4_spill] sm:$0xff] %v1753_v53  ;;  %v1764_v3 = vmax.f32 %v248_v55, 0.0  ;;  %v1766_v6 = vmax.f32 %v252_v26, 0.0  ;;  %v183_v8 = vmul.f32 %v1367_v4, %v115_v37  ;;  %v187_v16 = vmul.f32 %v1367_v4, %v119_v56 }
  0x53   :  { %v810_v10 = vmax.f32 %v618_v7, %v778_v57  ;;  %v779_v12 = vmax.f32 %v1753_v53, %v1315_v59  ;;  %v1770_v13 = vld.sshfl [vmem:[#allocation1] sm:$0xff pattern:$0x75643120]  ;;  %v1125_v24 = vunpack.c.l.b16 %v1718_v52  ;;  %v1126_v26 = vunpack.c.l.b16 %v1694_v49  ;;  %v61_v49 = vld [vmem:[%s2492_s0 + $0x2d] sm:$0x1] }
  0x54   :  { %2527 = vst [vmem:[#allocation5_spill] sm:$0xff] %v1766_v6  ;;  %v1281_v33 = vrot.slane %v1764_v3, 9  ;;  %v1313_v46 = vrot.slane %v1766_v6, 9  ;;  %v251_v47 = vadd.f32 %v1372_v5, %v183_v8  ;;  %v255_v37 = vadd.f32 %v1372_v5, %v187_v16 }
  0x55   :  { %v842_v51 = vpack.c.bf16 %v810_v10, %v810_v10  ;;  %v811_v55 = vmax.f32 %v619_v62, %v779_v12  ;;  %v1127_v52 = vunpack.c.l.b16 %v1703_v0  ;;  %v1128_v8 = vunpack.c.l.b16 %v1730_v1  ;;  %v57_v62 = vld [vmem:[%s2492_s0 + $0x29] sm:$0x1]  ;;  %v58_v0 = vld [vmem:[%s2492_s0 + $0x2a] sm:$0x1] }
  0x56   :  { %v617_v7 = vmax.f32 %v1764_v3, %v1281_v33  ;;  %v777_v56 = vmax.f32 %v1766_v6, %v1313_v46  ;;  %v1782_v57 = vmax.f32 %v251_v47, 0.0  ;;  %v1785_v9 = vmax.f32 %v255_v37, 0.0  ;;  %v1799_v47 = vld.sshfl [vmem:[#allocation1 + $0x20] sm:$0xff pattern:$0x75643120] }
  0x57   :  { %v906_v59 = vrot.slane %v842_v51, 2  ;;  %v843_v53 = vpack.c.bf16 %v811_v55, %v811_v55  ;;  %v1164_v16 = vrot.slane %v1126_v26, 7  ;;  %v1166_v33 = vrot.slane %v1127_v52, 6  ;;  %v62_v52 = vld [vmem:[%s2492_s0 + $0x2e] sm:$0x1] }
  0x58   :  { %2528 = vst [vmem:[#allocation6_spill] sm:$0xff] %v1782_v57  ;;  %v809_v10 = vmax.f32 %v617_v7, %v777_v56  ;;  %v1284_v12 = vrot.slane %v1782_v57, 9  ;;  %v1316_v55 = vrot.slane %v1785_v9, 9  ;;  %v1168_v37 = vrot.slane %v1128_v8, 5  ;;  %v56_v8 = vld [vmem:[%s2492_s0 + $0x28] sm:$0x1] }
  0x59   :  { %2529 = vst [vmem:[#allocation7_spill] sm:$0xff] %v1785_v9  ;;  %v975_v46 = vsel %vm921_vm0, %v842_v51, %v906_v59  ;;  %v907_v1 = vrot.slane %v843_v53, 2  ;;  %v1165_v56 = vsel %vm1150_vm1, %v1164_v16, %v1125_v24  ;;  %v121_v26 = vunpack.c.l.bf16 %v57_v62 }
  0x5a   :  { %1072 = vst [vmem:[#allocation1 + $0x10] ss:$2 sm:$0xff] %v975_v46  ;;  %v841_v34 = vpack.c.bf16 %v809_v10, %v809_v10  ;;  %v620_v7 = vmax.f32 %v1782_v57, %v1284_v12  ;;  %v780_v51 = vmax.f32 %v1785_v9, %v1316_v55  ;;  %v1167_v59 = vsel %vm1153_vm2, %v1166_v33, %v1165_v56 }
  0x5b   :  { %v978_v6 = vsel %vm921_vm0, %v843_v53, %v907_v1  ;;  %v125_v30 = vunpack.c.l.bf16 %v61_v49  ;;  %v1169_v24 = vsel %vm1156_vm3, %v1168_v37, %v1167_v59  ;;  %v189_v62 = vmul.f32 %v1367_v4, %v121_v26  ;;  %v60_v49 = vld [vmem:[%s2492_s0 + $0x2c] sm:$0x1] }
  0x5c   :  { %1075 = vst [vmem:[#allocation1 + $0x20] ss:$2 sm:$0xff] %v978_v6  ;;  %v905_v10 = vrot.slane %v841_v34, 2  ;;  %v122_v12 = vunpack.c.l.bf16 %v58_v0  ;;  %v812_v16 = vmax.f32 %v620_v7, %v780_v51  ;;  %v1202_v46 = vpack.c.b16 %v1169_v24, %v1169_v24 }
  0x5d   :  { %v193_v53 = vmul.f32 %v1367_v4, %v125_v30  ;;  %v126_v1 = vunpack.c.l.bf16 %v62_v52  ;;  %v257_v55 = vadd.f32 %v1372_v5, %v189_v62  ;;  %v120_v56 = vunpack.c.l.bf16 %v56_v8  ;;  %v1067_v30 = vld.sshfl [vmem:[#allocation1 + $0x30] sm:$0xff pattern:$0x75643120] }
  0x5e   :  { %v972_v33 = vsel %vm921_vm0, %v841_v34, %v905_v10  ;;  %v190_v6 = vmul.f32 %v1367_v4, %v122_v12  ;;  %v844_v37 = vpack.c.bf16 %v812_v16, %v812_v16  ;;  %v1210_v26 = vrot.slane %v1202_v46, 2  ;;  %v59_v10 = vld [vmem:[%s2492_s0 + $0x2b] sm:$0x1] }
  0x5f   :  { %1069 = vst [vmem:[#allocation1] ss:$2 sm:$0xff] %v972_v33  ;;  %v261_v0 = vadd.f32 %v1372_v5, %v193_v53  ;;  %v194_v7 = vmul.f32 %v1367_v4, %v126_v1  ;;  %v1824_v52 = vmax.f32 %v257_v55, 0.0  ;;  %v124_v59 = vunpack.c.l.bf16 %v60_v49 }
  0x60   :  { %v258_v51 = vadd.f32 %v1372_v5, %v190_v6  ;;  %v188_v34 = vmul.f32 %v1367_v4, %v120_v56  ;;  %v908_v8 = vrot.slane %v844_v37, 2  ;;  %v1224_v24 = vsel %vm921_vm0, %v1202_v46, %v1210_v26  ;;  %v63_v46 = vld [vmem:[%s2492_s0 + $0x2f] sm:$0x1] }
  0x61   :  { %2530 = vst [vmem:[#allocation8_spill] sm:$0xff] %v1824_v52  ;;  %v1832_v62 = vmax.f32 %v261_v0, 0.0  ;;  %v1834_v12 = vld.sshfl [vmem:[#allocation1 + $0x10] sm:$0xff pattern:$0x75643120]  ;;  %v262_v16 = vadd.f32 %v1372_v5, %v194_v7  ;;  %v1286_v53 = vrot.slane %v1824_v52, 9  ;;  %v192_v33 = vmul.f32 %v1367_v4, %v124_v59 }
  0x62   :  { %1251 = vst.msk [vmem:[%s2495_s4 + $0x4] sm:$0x3] %vm1248_vm4, %v1224_v24  ;;  %v1843_v49 = vmax.f32 %v258_v51, 0.0  ;;  %v981_v55 = vsel %vm921_vm0, %v844_v37, %v908_v8  ;;  %v256_v26 = vadd.f32 %v1372_v5, %v188_v34  ;;  %v123_v59 = vunpack.c.l.bf16 %v59_v10 }
  0x63   :  { %2531 = vst [vmem:[#allocation9_spill] sm:$0xff] %v1832_v62  ;;  %v1318_v6 = vrot.slane %v1832_v62, 9  ;;  %v1851_v56 = vmax.f32 %v262_v16, 0.0  ;;  %v622_v0 = vmax.f32 %v1824_v52, %v1286_v53  ;;  %v260_v51 = vadd.f32 %v1372_v5, %v192_v33 }
  0x64   :  { %2532 = vst [vmem:[#allocation10_spill] sm:$0xff] %v1843_v49  ;;  %v1287_v7 = vrot.slane %v1843_v49, 9  ;;  %v1859_v9 = vmax.f32 %v256_v26, 0.0  ;;  %v127_v37 = vunpack.c.l.bf16 %v63_v46  ;;  %v191_v34 = vmul.f32 %v1367_v4, %v123_v59 }
  0x65   :  { %2533 = vst [vmem:[#allocation11_spill] sm:$0xff] %v1851_v56  ;;  %v782_v24 = vmax.f32 %v1832_v62, %v1318_v6  ;;  %v1319_v1 = vrot.slane %v1851_v56, 9  ;;  %v1862_v16 = vmax.f32 %v260_v51, 0.0  ;;  %v1131_v53 = vunpack.c.l.b16 %v1799_v47  ;;  %v65_v47 = vld [vmem:[%s2492_s0 + $0x31] sm:$0x1] }
  0x66   :  { %1078 = vst [vmem:[#allocation1 + $0x30] ss:$2 sm:$0xff] %v981_v55  ;;  %v623_v8 = vmax.f32 %v1843_v49, %v1287_v7  ;;  %v1285_v10 = vrot.slane %v1859_v9, 9  ;;  %v195_v33 = vmul.f32 %v1367_v4, %v127_v37  ;;  %v259_v26 = vadd.f32 %v1372_v5, %v191_v34 }
  0x67   :  { %2534 = vst [vmem:[#allocation12_spill] sm:$0xff] %v1859_v9  ;;  %v814_v55 = vmax.f32 %v622_v0, %v782_v24  ;;  %v783_v52 = vmax.f32 %v1851_v56, %v1319_v1  ;;  %v1317_v6 = vrot.slane %v1862_v16, 9  ;;  %v1132_v46 = vunpack.c.l.b16 %v1067_v30  ;;  %v69_v24 = vld [vmem:[%s2492_s0 + $0x35] sm:$0x1] }
  0x68   :  { %2535 = vst [vmem:[#allocation13_spill] sm:$0xff] %v1862_v16  ;;  %v2536_v7 = vunpack.c.l.b16 %v1770_v13  ;;  %v621_v59 = vmax.f32 %v1859_v9, %v1285_v10  ;;  %v263_v4 = vadd.f32 %v1372_v5, %v195_v33  ;;  %v1884_v13 = vmax.f32 %v259_v26, 0.0  ;;  %v66_v33 = vld [vmem:[%s2492_s0 + $0x32] sm:$0x1] }
  0x69   :  { %v846_v0 = vpack.c.bf16 %v814_v55, %v814_v55  ;;  %v815_v1 = vmax.f32 %v623_v8, %v783_v52  ;;  %v781_v30 = vmax.f32 %v1862_v16, %v1317_v6  ;;  %v1172_v37 = vrot.slane %v1131_v53, 6  ;;  %v70_v53 = vld [vmem:[%s2492_s0 + $0x36] sm:$0x1] }
  0x6a   :  { %v1171_v51 = vsel %vm1150_vm1, %v1760_v58, %v2536_v7  ;;  %2537 = vst [vmem:[#allocation14_spill] sm:$0xff] %v1884_v13  ;;  %v1174_v58 = vrot.slane %v1132_v46, 5  ;;  %v1886_v56 = vmax.f32 %v263_v4, 0.0  ;;  %v129_v55 = vunpack.c.l.bf16 %v65_v47  ;;  %v1897_v46 = vld.sshfl [vmem:[#allocation1 + $0x20] sm:$0xff pattern:$0x75643120] }
  0x6b   :  { %v910_v34 = vrot.slane %v846_v0, 2  ;;  %v847_v7 = vpack.c.bf16 %v815_v1, %v815_v1  ;;  %v813_v52 = vmax.f32 %v621_v59, %v781_v30  ;;  %v1288_v8 = vrot.slane %v1884_v13, 9 }
  0x6c   :  { %2538 = vst [vmem:[#allocation15_spill] sm:$0xff] %v1886_v56  ;;  %v1173_v5 = vsel %vm1153_vm2, %v1172_v37, %v1171_v51  ;;  %v133_v10 = vunpack.c.l.bf16 %v69_v24  ;;  %v1320_v47 = vrot.slane %v1886_v56, 9  ;;  %v1905_v24 = vld [vmem:[%s2493_s1] ss:$0 sm:$0xff]  ;;  %v134_v62 = vunpack.c.l.bf16 %v70_v53 }
  0x6d   :  { %v987_v6 = vsel %vm921_vm0, %v846_v0, %v910_v34  ;;  %v911_v26 = vrot.slane %v847_v7, 2  ;;  %v1175_v1 = vsel %vm1156_vm3, %v1174_v58, %v1173_v5  ;;  %v845_v51 = vpack.c.bf16 %v813_v52, %v813_v52  ;;  %v64_v0 = vld [vmem:[%s2492_s0 + $0x30] sm:$0x1]  ;;  %v1912_v34 = vld.sshfl [vmem:[#allocation1] sm:$0xff pattern:$0x75643120] }
  0x6e   :  { %1084 = vst [vmem:[#allocation1 + $0x10] ss:$2 sm:$0xff] %v987_v6  ;;  %v624_v59 = vmax.f32 %v1884_v13, %v1288_v8  ;;  %v1203_v4 = vpack.c.b16 %v1175_v1, %v1175_v1  ;;  %v197_v30 = vmul.f32 %v1905_v24, %v129_v55  ;;  %v784_v58 = vmax.f32 %v1886_v56, %v1320_v47  ;;  %v1919_v55 = vld [vmem:[%s2494_s2] ss:$0 sm:$0xff] }
  0x6f   :  { %v990_v37 = vsel %vm921_vm0, %v847_v7, %v911_v26  ;;  %v201_v52 = vmul.f32 %v1905_v24, %v133_v10  ;;  %v130_v8 = vunpack.c.l.bf16 %v66_v33  ;;  %v909_v5 = vrot.slane %v845_v51, 2  ;;  %v68_v7 = vld [vmem:[%s2492_s0 + $0x34] sm:$0x1] }
  0x70   :  { %1087 = vst [vmem:[#allocation1 + $0x20] ss:$2 sm:$0xff] %v990_v37  ;;  %v1211_v6 = vrot.slane %v1203_v4, 2  ;;  %v265_v1 = vadd.f32 %v1919_v55, %v197_v30  ;;  %v816_v26 = vmax.f32 %v624_v59, %v784_v58  ;;  %v128_v33 = vunpack.c.l.bf16 %v64_v0  ;;  %v67_v37 = vld [vmem:[%s2492_s0 + $0x33] sm:$0x1] }
  0x71   :  { %v269_v47 = vadd.f32 %v1919_v55, %v201_v52  ;;  %v198_v10 = vmul.f32 %v1905_v24, %v130_v8  ;;  %v984_v56 = vsel %vm921_vm0, %v845_v51, %v909_v5  ;;  %v202_v53 = vmul.f32 %v1905_v24, %v134_v62  ;;  %v71_v0 = vld [vmem:[%s2492_s0 + $0x37] sm:$0x1] }
  0x72   :  { %v1227_v16 = vsel %vm921_vm0, %v1203_v4, %v1211_v6  ;;  %v1932_v30 = vmax.f32 %v265_v1, 0.0  ;;  %1081 = vst [vmem:[#allocation1] ss:$2 sm:$0xff] %v984_v56  ;;  %v848_v13 = vpack.c.bf16 %v816_v26, %v816_v26  ;;  %v132_v52 = vunpack.c.l.bf16 %v68_v7  ;;  %v1079_v5 = vld.sshfl [vmem:[#allocation1 + $0x30] sm:$0xff pattern:$0x75643120] }
  0x73   :  { %v1935_v59 = vmax.f32 %v269_v47, 0.0  ;;  %v266_v58 = vadd.f32 %v1919_v55, %v198_v10  ;;  %1252 = vst.msk [vmem:[%s2495_s4 + $0x6] sm:$0x3] %vm1248_vm4, %v1227_v16  ;;  %v270_v62 = vadd.f32 %v1919_v55, %v202_v53  ;;  %v196_v56 = vmul.f32 %v1905_v24, %v128_v33 }
  0x74   :  { %2539 = vst [vmem:[#allocation16_spill] sm:$0xff] %v1932_v30  ;;  %v1290_v51 = vrot.slane %v1932_v30, 9  ;;  %v131_v4 = vunpack.c.l.bf16 %v67_v37  ;;  %v912_v8 = vrot.slane %v848_v13, 2  ;;  %v200_v7 = vmul.f32 %v1905_v24, %v132_v52 }
  0x75   :  { %2540 = vst [vmem:[#allocation17_spill] sm:$0xff] %v1935_v59  ;;  %v1322_v6 = vrot.slane %v1935_v59, 9  ;;  %v1949_v1 = vmax.f32 %v266_v58, 0.0  ;;  %v1953_v47 = vmax.f32 %v270_v62, 0.0  ;;  %v264_v16 = vadd.f32 %v1919_v55, %v196_v56 }
  0x76   :  { %v626_v26 = vmax.f32 %v1932_v30, %v1290_v51  ;;  %v135_v10 = vunpack.c.l.bf16 %v71_v0  ;;  %v993_v53 = vsel %vm921_vm0, %v848_v13, %v912_v8  ;;  %v268_v49 = vadd.f32 %v1919_v55, %v200_v7 }
  0x77   :  { %2541 = vst [vmem:[#allocation18_spill] sm:$0xff] %v1949_v1  ;;  %v786_v33 = vmax.f32 %v1935_v59, %v1322_v6  ;;  %v1291_v37 = vrot.slane %v1949_v1, 9  ;;  %v1323_v58 = vrot.slane %v1953_v47, 9  ;;  %v1961_v9 = vmax.f32 %v264_v16, 0.0 }
  0x78   :  { %2542 = vst [vmem:[#allocation19_spill] sm:$0xff] %v1953_v47  ;;  %v199_v52 = vmul.f32 %v1905_v24, %v131_v4  ;;  %v203_v51 = vmul.f32 %v1905_v24, %v135_v10  ;;  %v1966_v56 = vmax.f32 %v268_v49, 0.0  ;;  %v1133_v13 = vunpack.c.l.b16 %v1912_v34 }
  0x79   :  { %1090 = vst [vmem:[#allocation1 + $0x30] ss:$2 sm:$0xff] %v993_v53  ;;  %v818_v62 = vmax.f32 %v626_v26, %v786_v33  ;;  %v627_v0 = vmax.f32 %v1949_v1, %v1291_v37  ;;  %v787_v8 = vmax.f32 %v1953_v47, %v1323_v58  ;;  %v1289_v6 = vrot.slane %v1961_v9, 9  ;;  %v73_v58 = vld [vmem:[%s2492_s0 + $0x39] sm:$0x1] }
  0x7a   :  { %2543 = vst [vmem:[#allocation20_spill] sm:$0xff] %v1961_v9  ;;  %v267_v7 = vadd.f32 %v1919_v55, %v199_v52  ;;  %v271_v16 = vadd.f32 %v1919_v55, %v203_v51  ;;  %v1321_v4 = vrot.slane %v1966_v56, 9  ;;  %v1135_v10 = vunpack.c.l.b16 %v1897_v46  ;;  %v1983_v47 = vld.sshfl [vmem:[#allocation1 + $0x10] sm:$0xff pattern:$0x75643120] }
  0x7b   :  { %2544 = vst [vmem:[#allocation21_spill] sm:$0xff] %v1966_v56  ;;  %v850_v53 = vpack.c.bf16 %v818_v62, %v818_v62  ;;  %v1136_v26 = vunpack.c.l.b16 %v1079_v5  ;;  %v819_v33 = vmax.f32 %v627_v0, %v787_v8  ;;  %v625_v49 = vmax.f32 %v1961_v9, %v1289_v6 }
  0x7c   :  { %v1976_v37 = vmax.f32 %v267_v7, 0.0  ;;  %v1978_v34 = vmax.f32 %v271_v16, 0.0  ;;  %v785_v51 = vmax.f32 %v1966_v56, %v1321_v4  ;;  %v2546_v62 = vunpack.c.l.b16 %v1834_v12  ;;  %v77_v16 = vld [vmem:[%s2492_s0 + $0x3d] sm:$0x1]  ;;  %v74_v12 = vld [vmem:[%s2492_s0 + $0x3a] sm:$0x1] }
  0x7d   :  { %v914_v52 = vrot.slane %v850_v53, 2  ;;  %v1178_v5 = vrot.slane %v1135_v10, 6  ;;  %v851_v0 = vpack.c.bf16 %v819_v33, %v819_v33  ;;  %v1180_v7 = vrot.slane %v1136_v26, 5  ;;  %v78_v10 = vld [vmem:[%s2492_s0 + $0x3e] sm:$0x1] }
  0x7e   :  { %2545 = vst [vmem:[#allocation22_spill] sm:$0xff] %v1978_v34  ;;  %v1176_v46 = vrot.slane %v2546_v62, 7  ;;  %v1292_v8 = vrot.slane %v1976_v37, 9  ;;  %v1324_v6 = vrot.slane %v1978_v34, 9  ;;  %v817_v1 = vmax.f32 %v625_v49, %v785_v51 }
  0x7f   :  { %v999_v59 = vsel %vm921_vm0, %v850_v53, %v914_v52  ;;  %v137_v4 = vunpack.c.l.bf16 %v73_v58  ;;  %v915_v26 = vrot.slane %v851_v0, 2  ;;  %v2001_v33 = vld.sshfl [vmem:[#allocation1 + $0x20] sm:$0xff pattern:$0x75643120]  ;;  %v141_v52 = vunpack.c.l.bf16 %v77_v16 }
  0x80   :  { %v1177_v30 = vsel %vm1150_vm1, %v1176_v46, %v1133_v13  ;;  %1096 = vst [vmem:[#allocation1 + $0x10] ss:$2 sm:$0xff] %v999_v59  ;;  %v628_v62 = vmax.f32 %v1976_v37, %v1292_v8  ;;  %v788_v53 = vmax.f32 %v1978_v34, %v1324_v6  ;;  %v849_v13 = vpack.c.bf16 %v817_v1, %v817_v1  ;;  %v72_v46 = vld [vmem:[%s2492_s0 + $0x38] sm:$0x1]  ;;  %v76_v8 = vld [vmem:[%s2492_s0 + $0x3c] sm:$0x1] }
  0x81   :  { %v1179_v49 = vsel %vm1153_vm2, %v1178_v5, %v1177_v30  ;;  %v205_v51 = vmul.f32 %v1905_v24, %v137_v4  ;;  %v1002_v59 = vsel %vm921_vm0, %v851_v0, %v915_v26  ;;  %v138_v57 = vunpack.c.l.bf16 %v74_v12  ;;  %v2015_v1 = vld.sshfl [vmem:[#allocation1] sm:$0xff pattern:$0x75643120] }
  0x82   :  { %v1181_v58 = vsel %vm1156_vm3, %v1180_v7, %v1179_v49  ;;  %v820_v56 = vmax.f32 %v628_v62, %v788_v53  ;;  %1099 = vst [vmem:[#allocation1 + $0x20] ss:$2 sm:$0xff] %v1002_v59  ;;  %v913_v30 = vrot.slane %v849_v13, 2  ;;  %v209_v5 = vmul.f32 %v1905_v24, %v141_v52 }
  0x83   :  { %v1204_v9 = vpack.c.b16 %v1181_v58, %v1181_v58  ;;  %v273_v6 = vadd.f32 %v1919_v55, %v205_v51  ;;  %v142_v7 = vunpack.c.l.bf16 %v78_v10  ;;  %v206_v0 = vmul.f32 %v1905_v24, %v138_v57  ;;  %v75_v58 = vld [vmem:[%s2492_s0 + $0x3b] sm:$0x1]  ;;  %v1091_v10 = vld.sshfl [vmem:[#allocation1 + $0x30] sm:$0xff pattern:$0x75643120] }
  0x84   :  { %v852_v16 = vpack.c.bf16 %v820_v56, %v820_v56  ;;  %v136_v26 = vunpack.c.l.bf16 %v72_v46  ;;  %v996_v12 = vsel %vm921_vm0, %v849_v13, %v913_v30  ;;  %v277_v62 = vadd.f32 %v1919_v55, %v209_v5 }
  0x85   :  { %v1212_v4 = vrot.slane %v1204_v9, 2  ;;  %v2022_v53 = vmax.f32 %v273_v6, 0.0  ;;  %v210_v49 = vmul.f32 %v1905_v24, %v142_v7  ;;  %1093 = vst [vmem:[#allocation1] ss:$2 sm:$0xff] %v996_v12  ;;  %v274_v57 = vadd.f32 %v1919_v55, %v206_v0 }
  0x86   :  { %v916_v52 = vrot.slane %v852_v16, 2  ;;  %v140_v51 = vunpack.c.l.bf16 %v76_v8  ;;  %v2034_v13 = vmax.f32 %v277_v62, 0.0  ;;  %v204_v30 = vmul.f32 %v1905_v24, %v136_v26 }
  0x87   :  { %2547 = vst [vmem:[#allocation23_spill] sm:$0xff] %v2022_v53  ;;  %v1230_v56 = vsel %vm921_vm0, %v1204_v9, %v1212_v4  ;;  %v1294_v46 = vrot.slane %v2022_v53, 9  ;;  %v278_v59 = vadd.f32 %v1919_v55, %v210_v49  ;;  %v79_v9 = vld [vmem:[%s2492_s0 + $0x3f] sm:$0x1]  ;;  %v2043_v8 = vmax.f32 %v274_v57, 0.0 }
  0x88   :  { %1253 = vst.msk [vmem:[%s2495_s4 + $0x8] sm:$0x3] %vm1248_vm4, %v1230_v56  ;;  %v1005_v5 = vsel %vm921_vm0, %v852_v16, %v916_v52  ;;  %v208_v6 = vmul.f32 %v1905_v24, %v140_v51  ;;  %v139_v7 = vunpack.c.l.bf16 %v75_v58  ;;  %v1326_v0 = vrot.slane %v2034_v13, 9 }
  0x89   :  { %2548 = vst [vmem:[#allocation24_spill] sm:$0xff] %v2034_v13  ;;  %v630_v4 = vmax.f32 %v2022_v53, %v1294_v46  ;;  %v2048_v12 = vmax.f32 %v278_v59, 0.0  ;;  %v272_v26 = vadd.f32 %v1919_v55, %v204_v30  ;;  %v1295_v62 = vrot.slane %v2043_v8, 9 }
  0x8a   :  { %2549 = vst [vmem:[#allocation25_spill] sm:$0xff] %v2043_v8  ;;  %v276_v49 = vadd.f32 %v1919_v55, %v208_v6  ;;  %v143_v56 = vunpack.c.l.bf16 %v79_v9  ;;  %v207_v16 = vmul.f32 %v1905_v24, %v139_v7  ;;  %v790_v52 = vmax.f32 %v2034_v13, %v1326_v0 }
  0x8b   :  { %1102 = vst [vmem:[#allocation1 + $0x30] ss:$2 sm:$0xff] %v1005_v5  ;;  %v1327_v58 = vrot.slane %v2048_v12, 9  ;;  %v2056_v57 = vmax.f32 %v272_v26, 0.0  ;;  %v1137_v51 = vunpack.c.l.b16 %v2015_v1  ;;  %v631_v46 = vmax.f32 %v2043_v8, %v1295_v62 }
  0x8c   :  { %2550 = vst [vmem:[#allocation26_spill] sm:$0xff] %v2048_v12  ;;  %v2060_v59 = vmax.f32 %v276_v49, 0.0  ;;  %v211_v30 = vmul.f32 %v1905_v24, %v143_v56  ;;  %v275_v5 = vadd.f32 %v1919_v55, %v207_v16  ;;  %v822_v6 = vmax.f32 %v630_v4, %v790_v52  ;;  %v1097_v8 = vld.sshfl [vmem:[#allocation1 + $0x10] sm:$0xff pattern:$0x75643120] }
  0x8d   :  { %v791_v9 = vmax.f32 %v2048_v12, %v1327_v58  ;;  %v1293_v7 = vrot.slane %v2056_v57, 9  ;;  %v1138_v0 = vunpack.c.l.b16 %v1983_v47  ;;  %v1139_v62 = vunpack.c.l.b16 %v2001_v33  ;;  %v1094_v52 = vld.sshfl [vmem:[#allocation1] sm:$0xff pattern:$0x75643120] }
  0x8e   :  { %2551 = vst [vmem:[#allocation27_spill] sm:$0xff] %v2060_v59  ;;  %v1325_v26 = vrot.slane %v2060_v59, 9  ;;  %v279_v13 = vadd.f32 %v1919_v55, %v211_v30  ;;  %v2069_v1 = vmax.f32 %v275_v5, 0.0  ;;  %v854_v49 = vpack.c.bf16 %v822_v6, %v822_v6  ;;  %v1100_v30 = vld.sshfl [vmem:[#allocation1 + $0x20] sm:$0xff pattern:$0x75643120] }
  0x8f   :  { %v823_v24 = vmax.f32 %v631_v46, %v791_v9  ;;  %v629_v56 = vmax.f32 %v2056_v57, %v1293_v7  ;;  %v1140_v4 = vunpack.c.l.b16 %v1091_v10  ;;  %v1182_v12 = vrot.slane %v1138_v0, 7 }
  0x90   :  { %2552 = vst [vmem:[#allocation28_spill] sm:$0xff] %v2069_v1  ;;  %v789_v16 = vmax.f32 %v2060_v59, %v1325_v26  ;;  %v2074_v58 = vmax.f32 %v279_v13, 0.0  ;;  %v1296_v47 = vrot.slane %v2069_v1, 9  ;;  %v918_v53 = vrot.slane %v854_v49, 2 }
  0x91   :  { %v855_v55 = vpack.c.bf16 %v823_v24, %v823_v24  ;;  %v1184_v5 = vrot.slane %v1139_v62, 6  ;;  %v1186_v34 = vrot.slane %v1140_v4, 5  ;;  %v1183_v10 = vsel %vm1150_vm1, %v1182_v12, %v1137_v51 }
  0x92   :  { %v821_v33 = vmax.f32 %v629_v56, %v789_v16  ;;  %v632_v6 = vmax.f32 %v2069_v1, %v1296_v47  ;;  %v1328_v46 = vrot.slane %v2074_v58, 9  ;;  %v1103_v9 = vld.sshfl [vmem:[#allocation1 + $0x30] sm:$0xff pattern:$0x75643120]  ;;  %v1011_v7 = vsel %vm921_vm0, %v854_v49, %v918_v53 }
  0x93   :  { %v919_v13 = vrot.slane %v855_v55, 2  ;;  %v1185_v26 = vsel %vm1153_vm2, %v1184_v5, %v1183_v10  ;;  %v1141_v59 = vunpack.c.l.b16 %v1094_v52  ;;  %1108 = vst [vmem:[#allocation1 + $0x10] ss:$2 sm:$0xff] %v1011_v7  ;;  %v1142_v56 = vunpack.c.l.b16 %v1097_v8 }
  0x94   :  { %v853_v0 = vpack.c.bf16 %v821_v33, %v821_v33  ;;  %v792_v24 = vmax.f32 %v2074_v58, %v1328_v46  ;;  %v1187_v62 = vsel %vm1156_vm3, %v1186_v34, %v1185_v26  ;;  %v1143_v47 = vunpack.c.l.b16 %v1100_v30 }
  0x95   :  { %v1014_v4 = vsel %vm921_vm0, %v855_v55, %v919_v13  ;;  %v1205_v16 = vpack.c.b16 %v1187_v62, %v1187_v62  ;;  %v1144_v1 = vunpack.c.l.b16 %v1103_v9  ;;  %v1188_v53 = vrot.slane %v1142_v56, 7  ;;  %v2556_v56 = vld [vmem:[#allocation2_spill] sm:$0xff] }
  0x96   :  { %1111 = vst [vmem:[#allocation1 + $0x20] ss:$2 sm:$0xff] %v1014_v4  ;;  %v917_v12 = vrot.slane %v853_v0, 2  ;;  %v824_v51 = vmax.f32 %v632_v6, %v792_v24  ;;  %v344_v49 = vpack.c.bf16 %v1418_v40, %v1418_v40  ;;  %v1190_v5 = vrot.slane %v1143_v47, 6  ;;  %v2557_v47 = vld [vmem:[#allocation4_spill] sm:$0xff] }
  0x97   :  { %v1213_v52 = vrot.slane %v1205_v16, 2  ;;  %v1192_v33 = vrot.slane %v1144_v1, 5  ;;  %vm408_vm5 = vcmask 253952   ;;  %v1189_v8 = vsel %vm1150_vm1, %v1188_v53, %v1141_v59 }
  0x98   :  { %v1008_v46 = vsel %vm921_vm0, %v853_v0, %v917_v12  ;;  %v856_v34 = vpack.c.bf16 %v824_v51, %v824_v51  ;;  %409 = vst.msk [vmem:[%s2496_s3] sm:$0x1] %vm408_vm5, %v344_v49  ;;  %v345_v55 = vpack.c.bf16 %v1402_v28, %v1402_v28  ;;  %v1191_v30 = vsel %vm1153_vm2, %v1190_v5, %v1189_v8  ;;  %v2558_v51 = vld [vmem:[#allocation7_spill] sm:$0xff]  ;;  %v2559_v49 = vld [vmem:[#allocation12_spill] sm:$0xff] }
  0x99   :  { %1105 = vst [vmem:[#allocation1] ss:$2 sm:$0xff] %v1008_v46  ;;  %v1233_v40 = vsel %vm921_vm0, %v1205_v16, %v1213_v52  ;;  %v346_v1 = vpack.c.bf16 %v1414_v38, %v1414_v38  ;;  %v1193_v59 = vsel %vm1156_vm3, %v1192_v33, %v1191_v30  ;;  %v347_v9 = vpack.c.bf16 %v1422_v42, %v1422_v42  ;;  %v2560_v46 = vld [vmem:[#allocation8_spill] sm:$0xff]  ;;  %v2562_v30 = vld [vmem:[#allocation14_spill] sm:$0xff] }
  0x9a   :  { %v920_v6 = vrot.slane %v856_v34, 2  ;;  %1254 = vst.msk [vmem:[%s2495_s4 + $0xa] sm:$0x3] %vm1248_vm4, %v1233_v40  ;;  %v1206_v28 = vpack.c.b16 %v1193_v59, %v1193_v59  ;;  %v348_v38 = vpack.c.bf16 %v1420_v41, %v1420_v41  ;;  %v349_v42 = vpack.c.bf16 %v1404_v29, %v1404_v29  ;;  %v1109_v16 = vld.sshfl [vmem:[#allocation1 + $0x10] sm:$0xff pattern:$0x75643120] }
  0x9b   :  { %410 = vst.msk [vmem:[%s2496_s3 + $0x1] sm:$0x1] %vm408_vm5, %v345_v55  ;;  %v350_v41 = vpack.c.bf16 %v1416_v39, %v1416_v39  ;;  %v351_v26 = vpack.c.bf16 %v1424_v43, %v1424_v43  ;;  %v352_v29 = vpack.c.bf16 %v1504_v2, %v1504_v2  ;;  %v353_v39 = vpack.c.bf16 %v1462_v22, %v1462_v22  ;;  %v2561_v55 = vld [vmem:[#allocation10_spill] sm:$0xff] }
  0x9c   :  { %v1017_v10 = vsel %vm921_vm0, %v856_v34, %v920_v6  ;;  %411 = vst.msk [vmem:[%s2496_s3 + $0x2] sm:$0x1] %vm408_vm5, %v346_v1  ;;  %v1214_v7 = vrot.slane %v1206_v28, 2  ;;  %v354_v43 = vpack.c.bf16 %v1481_v44, %v1481_v44  ;;  %v355_v2 = vpack.c.bf16 %v1518_v17, %v1518_v17 }
  0x9d   :  { %1114 = vst [vmem:[#allocation1 + $0x30] ss:$2 sm:$0xff] %v1017_v10  ;;  %v356_v22 = vpack.c.bf16 %v1509_v11, %v1509_v11  ;;  %v357_v44 = vpack.c.bf16 %v1470_v31, %v1470_v31  ;;  %v358_v17 = vpack.c.bf16 %v1483_v45, %v1483_v45  ;;  %v359_v11 = vpack.c.bf16 %v1520_v18, %v1520_v18  ;;  %v1112_v5 = vld.sshfl [vmem:[#allocation1 + $0x20] sm:$0xff pattern:$0x75643120] }
  0x9e   :  { %412 = vst.msk [vmem:[%s2496_s3 + $0x3] sm:$0x1] %vm408_vm5, %v347_v9  ;;  %v1236_v13 = vsel %vm921_vm0, %v1206_v28, %v1214_v7  ;;  %v360_v31 = vpack.c.bf16 %v1575_v35, %v1575_v35  ;;  %v361_v45 = vpack.c.bf16 %v1530_v32, %v1530_v32  ;;  %v362_v18 = vpack.c.bf16 %v1564_v14, %v1564_v14  ;;  %v2563_v9 = vld [vmem:[#allocation13_spill] sm:$0xff] }
  0x9f   :  { %413 = vst.msk [vmem:[%s2496_s3 + $0x4] sm:$0x1] %vm408_vm5, %v348_v38  ;;  %v363_v35 = vpack.c.bf16 %v1591_v60, %v1591_v60  ;;  %v364_v32 = vpack.c.bf16 %v1581_v50, %v1581_v50  ;;  %v365_v14 = vpack.c.bf16 %v1537_v36, %v1537_v36  ;;  %v366_v60 = vpack.c.bf16 %v1569_v27, %v1569_v27  ;;  %v2564_v7 = vld [vmem:[#allocation9_spill] sm:$0xff] }
  0xa0   :  { %1255 = vst.msk [vmem:[%s2495_s4 + $0xc] sm:$0x3] %vm1248_vm4, %v1236_v13  ;;  %v367_v50 = vpack.c.bf16 %v1593_v61, %v1593_v61  ;;  %v368_v36 = vpack.c.bf16 %v1663_v54, %v1663_v54  ;;  %v369_v27 = vpack.c.bf16 %v1648_v20, %v1648_v20  ;;  %v370_v61 = vpack.c.bf16 %v1653_v25, %v1653_v25  ;;  %v1106_v8 = vld.sshfl [vmem:[#allocation1] sm:$0xff pattern:$0x75643120] }
  0xa1   :  { %414 = vst.msk [vmem:[%s2496_s3 + $0x5] sm:$0x1] %vm408_vm5, %v349_v42  ;;  %v371_v54 = vpack.c.bf16 %v1680_v21, %v1680_v21  ;;  %v372_v20 = vpack.c.bf16 %v1671_v63, %v1671_v63  ;;  %v373_v25 = vpack.c.bf16 %v1650_v23, %v1650_v23  ;;  %v374_v21 = vpack.c.bf16 %v1659_v48, %v1659_v48 }
  0xa2   :  { %415 = vst.msk [vmem:[%s2496_s3 + $0x6] sm:$0x1] %vm408_vm5, %v350_v41  ;;  %v375_v63 = vpack.c.bf16 %v1683_v19, %v1683_v19  ;;  %v376_v23 = vpack.c.bf16 %v1764_v3, %v1764_v3  ;;  %v377_v48 = vpack.c.bf16 %v1738_v15, %v1738_v15  ;;  %v2553_v19 = vld [vmem:[#allocation3_spill] sm:$0xff]  ;;  %v2554_v3 = vld [vmem:[#allocation6_spill] sm:$0xff]  ;;  %v2555_v15 = vld [vmem:[#allocation5_spill] sm:$0xff]  ;;  %v381_v4 = vpack.c.bf16 %v2556_v56, %v2556_v56 }
  0xa3   :  { %416 = vst.msk [vmem:[%s2496_s3 + $0x7] sm:$0x1] %vm408_vm5, %v351_v26  ;;  %v378_v0 = vpack.c.bf16 %v2553_v19, %v2553_v19  ;;  %v379_v24 = vpack.c.bf16 %v2554_v3, %v2554_v3  ;;  %v380_v62 = vpack.c.bf16 %v2555_v15, %v2555_v15  ;;  %v382_v12 = vpack.c.bf16 %v2557_v47, %v2557_v47  ;;  %v2565_v41 = vld [vmem:[#allocation11_spill] sm:$0xff]  ;;  %v2578_v15 = vld [vmem:[#allocation24_spill] sm:$0xff] }
  0xa4   :  { %417 = vst.msk [vmem:[%s2496_s3 + $0x8] sm:$0x1] %vm408_vm5, %v352_v29  ;;  %v383_v53 = vpack.c.bf16 %v2558_v51, %v2558_v51  ;;  %v384_v52 = vpack.c.bf16 %v2559_v49, %v2559_v49  ;;  %v1146_v33 = vunpack.c.l.b16 %v1109_v16  ;;  %v385_v34 = vpack.c.bf16 %v2560_v46, %v2560_v46  ;;  %v1115_v6 = vld.sshfl [vmem:[#allocation1 + $0x30] sm:$0xff pattern:$0x75643120] }
  0xa5   :  { %418 = vst.msk [vmem:[%s2496_s3 + $0x9] sm:$0x1] %vm408_vm5, %v353_v39  ;;  %v386_v40 = vpack.c.bf16 %v2561_v55, %v2561_v55  ;;  %v387_v1 = vpack.c.bf16 %v2562_v30, %v2562_v30  ;;  %v1147_v59 = vunpack.c.l.b16 %v1112_v5  ;;  %v388_v28 = vpack.c.bf16 %v2563_v9, %v2563_v9  ;;  %v2566_v29 = vld [vmem:[#allocation15_spill] sm:$0xff] }
  0xa6   :  { %419 = vst.msk [vmem:[%s2496_s3 + $0xa] sm:$0x1] %vm408_vm5, %v354_v43  ;;  %v1145_v38 = vunpack.c.l.b16 %v1106_v8  ;;  %v1194_v10 = vrot.slane %v1146_v33, 7  ;;  %v389_v42 = vpack.c.bf16 %v2564_v7, %v2564_v7  ;;  %v390_v13 = vpack.c.bf16 %v2565_v41, %v2565_v41  ;;  %v2577_v3 = vld [vmem:[#allocation27_spill] sm:$0xff] }
  0xa7   :  { %420 = vst.msk [vmem:[%s2496_s3 + $0xb] sm:$0x1] %vm408_vm5, %v355_v2  ;;  %v1148_v26 = vunpack.c.l.b16 %v1115_v6  ;;  %v391_v39 = vpack.c.bf16 %v2566_v29, %v2566_v29  ;;  %v1196_v43 = vrot.slane %v1147_v59, 6  ;;  %v2567_v2 = vld [vmem:[#allocation20_spill] sm:$0xff]  ;;  %v407_v47 = vpack.c.bf16 %v2074_v58, %v2074_v58 }
  0xa8   :  { %421 = vst.msk [vmem:[%s2496_s3 + $0xc] sm:$0x1] %vm408_vm5, %v356_v22  ;;  %v392_v22 = vpack.c.bf16 %v2567_v2, %v2567_v2 }
  0xa9   :  { %422 = vst.msk [vmem:[%s2496_s3 + $0xd] sm:$0x1] %vm408_vm5, %v357_v44  ;;  %v1195_v44 = vsel %vm1150_vm1, %v1194_v10, %v1145_v38 }
  0xaa   :  { %423 = vst.msk [vmem:[%s2496_s3 + $0xe] sm:$0x1] %vm408_vm5, %v358_v17  ;;  %v2568_v17 = vld [vmem:[#allocation16_spill] sm:$0xff] }
  0xab   :  { %424 = vst.msk [vmem:[%s2496_s3 + $0xf] sm:$0x1] %vm408_vm5, %v359_v11  ;;  %v393_v11 = vpack.c.bf16 %v2568_v17, %v2568_v17 }
  0xac   :  { %425 = vst.msk [vmem:[%s2496_s3 + $0x10] sm:$0x1] %vm408_vm5, %v360_v31  ;;  %v2569_v31 = vld [vmem:[#allocation18_spill] sm:$0xff] }
  0xad   :  { %426 = vst.msk [vmem:[%s2496_s3 + $0x11] sm:$0x1] %vm408_vm5, %v361_v45  ;;  %v394_v45 = vpack.c.bf16 %v2569_v31, %v2569_v31 }
  0xae   :  { %427 = vst.msk [vmem:[%s2496_s3 + $0x12] sm:$0x1] %vm408_vm5, %v362_v18  ;;  %v1198_v18 = vrot.slane %v1148_v26, 5 }
  0xaf   :  { %428 = vst.msk [vmem:[%s2496_s3 + $0x13] sm:$0x1] %vm408_vm5, %v363_v35  ;;  %v395_v35 = vpack.c.bf16 %v1976_v37, %v1976_v37  ;;  %v2572_v37 = vld [vmem:[#allocation19_spill] sm:$0xff] }
  0xb0   :  { %429 = vst.msk [vmem:[%s2496_s3 + $0x14] sm:$0x1] %vm408_vm5, %v364_v32  ;;  %v1197_v32 = vsel %vm1153_vm2, %v1196_v43, %v1195_v44 }
  0xb1   :  { %430 = vst.msk [vmem:[%s2496_s3 + $0x15] sm:$0x1] %vm408_vm5, %v365_v14  ;;  %v2570_v14 = vld [vmem:[#allocation21_spill] sm:$0xff] }
  0xb2   :  { %431 = vst.msk [vmem:[%s2496_s3 + $0x16] sm:$0x1] %vm408_vm5, %v366_v60  ;;  %v396_v60 = vpack.c.bf16 %v2570_v14, %v2570_v14 }
  0xb3   :  { %432 = vst.msk [vmem:[%s2496_s3 + $0x17] sm:$0x1] %vm408_vm5, %v367_v50  ;;  %v2571_v50 = vld [vmem:[#allocation17_spill] sm:$0xff] }
  0xb4   :  { %433 = vst.msk [vmem:[%s2496_s3 + $0x18] sm:$0x1] %vm408_vm5, %v368_v36  ;;  %v397_v36 = vpack.c.bf16 %v2571_v50, %v2571_v50 }
  0xb5   :  { %434 = vst.msk [vmem:[%s2496_s3 + $0x19] sm:$0x1] %vm408_vm5, %v369_v27  ;;  %v398_v27 = vpack.c.bf16 %v2572_v37, %v2572_v37 }
  0xb6   :  { %435 = vst.msk [vmem:[%s2496_s3 + $0x1a] sm:$0x1] %vm408_vm5, %v370_v61  ;;  %v1199_v61 = vsel %vm1156_vm3, %v1198_v18, %v1197_v32 }
  0xb7   :  { %436 = vst.msk [vmem:[%s2496_s3 + $0x1b] sm:$0x1] %vm408_vm5, %v371_v54  ;;  %v2573_v54 = vld [vmem:[#allocation22_spill] sm:$0xff] }
  0xb8   :  { %437 = vst.msk [vmem:[%s2496_s3 + $0x1c] sm:$0x1] %vm408_vm5, %v372_v20  ;;  %v399_v20 = vpack.c.bf16 %v2573_v54, %v2573_v54 }
  0xb9   :  { %438 = vst.msk [vmem:[%s2496_s3 + $0x1d] sm:$0x1] %vm408_vm5, %v373_v25  ;;  %v400_v25 = vpack.c.bf16 %v2056_v57, %v2056_v57  ;;  %v2576_v57 = vld [vmem:[#allocation28_spill] sm:$0xff] }
  0xba   :  { %439 = vst.msk [vmem:[%s2496_s3 + $0x1e] sm:$0x1] %vm408_vm5, %v374_v21  ;;  %v2574_v21 = vld [vmem:[#allocation23_spill] sm:$0xff] }
  0xbb   :  { %440 = vst.msk [vmem:[%s2496_s3 + $0x1f] sm:$0x1] %vm408_vm5, %v375_v63  ;;  %v401_v63 = vpack.c.bf16 %v2574_v21, %v2574_v21 }
  0xbc   :  { %441 = vst.msk [vmem:[%s2496_s3 + $0x20] sm:$0x1] %vm408_vm5, %v376_v23  ;;  %v1207_v23 = vpack.c.b16 %v1199_v61, %v1199_v61 }
  0xbd   :  { %442 = vst.msk [vmem:[%s2496_s3 + $0x21] sm:$0x1] %vm408_vm5, %v377_v48  ;;  %v2575_v48 = vld [vmem:[#allocation25_spill] sm:$0xff] }
  0xbe   :  { %443 = vst.msk [vmem:[%s2496_s3 + $0x22] sm:$0x1] %vm408_vm5, %v378_v0  ;;  %v402_v19 = vpack.c.bf16 %v2575_v48, %v2575_v48  ;;  %v403_v0 = vpack.c.bf16 %v2576_v57, %v2576_v57  ;;  %v1215_v56 = vrot.slane %v1207_v23, 2 }
  0xbf   :  { %444 = vst.msk [vmem:[%s2496_s3 + $0x23] sm:$0x1] %vm408_vm5, %v379_v24  ;;  %v404_v24 = vpack.c.bf16 %v2577_v3, %v2577_v3 }
  0xc0   :  { %445 = vst.msk [vmem:[%s2496_s3 + $0x24] sm:$0x1] %vm408_vm5, %v380_v62  ;;  %v405_v62 = vpack.c.bf16 %v2578_v15, %v2578_v15 }
  0xc1   :  { %446 = vst.msk [vmem:[%s2496_s3 + $0x25] sm:$0x1] %vm408_vm5, %v381_v4  ;;  %v2579_v4 = vld [vmem:[#allocation26_spill] sm:$0xff] }
  0xc2   :  { %447 = vst.msk [vmem:[%s2496_s3 + $0x26] sm:$0x1] %vm408_vm5, %v382_v12  ;;  %v406_v16 = vpack.c.bf16 %v2579_v4, %v2579_v4  ;;  %v1239_v12 = vsel %vm921_vm0, %v1207_v23, %v1215_v56 }
  0xc3   :  { %448 = vst.msk [vmem:[%s2496_s3 + $0x27] sm:$0x1] %vm408_vm5, %v383_v53 }
  0xc4   :  { %449 = vst.msk [vmem:[%s2496_s3 + $0x28] sm:$0x1] %vm408_vm5, %v384_v52 }
  0xc5   :  { %450 = vst.msk [vmem:[%s2496_s3 + $0x29] sm:$0x1] %vm408_vm5, %v385_v34 }
  0xc6   :  { %451 = vst.msk [vmem:[%s2496_s3 + $0x2a] sm:$0x1] %vm408_vm5, %v386_v40 }
  0xc7   :  { %452 = vst.msk [vmem:[%s2496_s3 + $0x2b] sm:$0x1] %vm408_vm5, %v387_v1 }
  0xc8   :  { %453 = vst.msk [vmem:[%s2496_s3 + $0x2c] sm:$0x1] %vm408_vm5, %v388_v28 }
  0xc9   :  { %454 = vst.msk [vmem:[%s2496_s3 + $0x2d] sm:$0x1] %vm408_vm5, %v389_v42 }
  0xca   :  { %455 = vst.msk [vmem:[%s2496_s3 + $0x2e] sm:$0x1] %vm408_vm5, %v390_v13 }
  0xcb   :  { %456 = vst.msk [vmem:[%s2496_s3 + $0x2f] sm:$0x1] %vm408_vm5, %v391_v39 }
  0xcc   :  { %457 = vst.msk [vmem:[%s2496_s3 + $0x30] sm:$0x1] %vm408_vm5, %v392_v22 }
  0xcd   :  { %458 = vst.msk [vmem:[%s2496_s3 + $0x31] sm:$0x1] %vm408_vm5, %v393_v11 }
  0xce   :  { %459 = vst.msk [vmem:[%s2496_s3 + $0x32] sm:$0x1] %vm408_vm5, %v394_v45 }
  0xcf   :  { %460 = vst.msk [vmem:[%s2496_s3 + $0x33] sm:$0x1] %vm408_vm5, %v395_v35 }
  0xd0   :  { %461 = vst.msk [vmem:[%s2496_s3 + $0x34] sm:$0x1] %vm408_vm5, %v396_v60 }
  0xd1   :  { %462 = vst.msk [vmem:[%s2496_s3 + $0x35] sm:$0x1] %vm408_vm5, %v397_v36 }
  0xd2   :  { %463 = vst.msk [vmem:[%s2496_s3 + $0x36] sm:$0x1] %vm408_vm5, %v398_v27 }
  0xd3   :  { %464 = vst.msk [vmem:[%s2496_s3 + $0x37] sm:$0x1] %vm408_vm5, %v399_v20 }
  0xd4   :  { %465 = vst.msk [vmem:[%s2496_s3 + $0x38] sm:$0x1] %vm408_vm5, %v400_v25 }
  0xd5   :  { %466 = vst.msk [vmem:[%s2496_s3 + $0x39] sm:$0x1] %vm408_vm5, %v401_v63 }
  0xd6   :  { %467 = vst.msk [vmem:[%s2496_s3 + $0x3a] sm:$0x1] %vm408_vm5, %v402_v19 }
  0xd7   :  { %468 = vst.msk [vmem:[%s2496_s3 + $0x3b] sm:$0x1] %vm408_vm5, %v403_v0 }
  0xd8   :  { %469 = vst.msk [vmem:[%s2496_s3 + $0x3c] sm:$0x1] %vm408_vm5, %v404_v24 }
  0xd9   :  { %470 = vst.msk [vmem:[%s2496_s3 + $0x3d] sm:$0x1] %vm408_vm5, %v405_v62 }
  0xda   :  { %471 = vst.msk [vmem:[%s2496_s3 + $0x3e] sm:$0x1] %vm408_vm5, %v406_v16 }
  0xdb   :  { %472 = vst.msk [vmem:[%s2496_s3 + $0x3f] sm:$0x1] %vm408_vm5, %v407_v47 }
  0xdc   :  { %1256 = vst.msk [vmem:[%s2495_s4 + $0xe] sm:$0x3] %vm1248_vm4, %v1239_v12 }

// kernel: unet_reg_forward.31
= control target key start
LH: loop header
LB: loop body
LE: loop exit
PB: predicated region body
PF: predicated region fallthrough
CT: control target
= control target key end

     0   :  { %vm197_vm0 = vcmask 261120   ;;  %vm265_vm1 = vcmask 519168   ;;  %vm270_vm2 = vcmask 523264   ;;  %vm284_vm3 = vcmask 516096   ;;  %s593_s1 = inlined_call_operand.vmem [shape: bf16[288,64], index: 1, kind: input, shape index: {}]   ;;  %s594_s0 = inlined_call_operand.vmem [shape: bf16[32,288], index: 0, kind: input, shape index: {}]   ;;  %s595_s2 = inlined_call_operand.vmem [shape: bf16[32,64], index: 2, kind: output, shape index: {0}]   ;;  %s596_s3 = inlined_call_operand.vmem [shape: f32[1,1,64], index: 3, kind: output, shape index: {1}]   ;;  %s597_s4 = inlined_call_operand.vmem [shape: f32[1,1,64], index: 4, kind: output, shape index: {2}]  }
   0x1   :  { %v427_v0 = vld [vmem:[%s593_s1 + $0x38] sm:$0xff]  ;;  %v426_v2 = vld [vmem:[%s593_s1 + $0x30] sm:$0xff]  ;;  %v437_v4 = vld [vmem:[%s593_s1 + $0x88] sm:$0xff] }
   0x2   :  { %v435_v1 = vld [vmem:[%s593_s1 + $0x78] sm:$0xff]  ;;  %204 = vmatpush.bf16.msra.mxu0 %v427_v0  ;;  %v434_v3 = vld [vmem:[%s593_s1 + $0x70] sm:$0xff]  ;;  %438 = vmatpush.bf16.msra.mxu3 %v427_v0  ;;  %v436_v5 = vld [vmem:[%s593_s1 + $0x80] sm:$0xff] }
   0x3   :  { %223 = vmatpush.bf16.msra.mxu1 %v435_v1  ;;  %248 = vmatpush.bf16.msra.mxu2 %v437_v4  ;;  %v326_v6 = vld [vmem:[%s594_s0 + $0x8] sm:$0xf]  ;;  %v416_v7 = vld [vmem:[%s594_s0 + $0x10] sm:$0xf0]  ;;  %v424_v11 = vld [vmem:[%s593_s1 + $0x20] sm:$0xff] }
   0x4   :  { %v425_v8 = vld [vmem:[%s593_s1 + $0x28] sm:$0xff]  ;;  %v327_v10 = vor.u32 %v416_v7, %v326_v6  ;;  %v432_v12 = vld [vmem:[%s593_s1 + $0x60] sm:$0xff]  ;;  %v423_v13 = vld [vmem:[%s593_s1 + $0x18] sm:$0xff] }
   0x5   :  { %v433_v9 = vld [vmem:[%s593_s1 + $0x68] sm:$0xff]  ;;  %v431_v14 = vld [vmem:[%s593_s1 + $0x58] sm:$0xff]  ;;  %v422_v15 = vld [vmem:[%s593_s1 + $0x10] sm:$0xff] }
   0x6   :  { %205 = vmatpush.bf16.msra.mxu0 %v426_v2  ;;  %439 = vmatpush.bf16.msra.mxu3 %v426_v2  ;;  %v430_v16 = vld [vmem:[%s593_s1 + $0x50] sm:$0xff]  ;;  %v338_v17 = vld [vmem:[%s594_s0 + $0x20] sm:$0xf]  ;;  %v419_v18 = vld [vmem:[%s594_s0 + $0x28] sm:$0xf0] }
   0x7   :  { %224 = vmatpush.bf16.msra.mxu1 %v434_v3  ;;  %249 = vmatpush.bf16.msra.mxu2 %v436_v5  ;;  %v421_v19 = vld [vmem:[%s593_s1 + $0x8] sm:$0xff]  ;;  %v339_v21 = vor.u32 %v419_v18, %v338_v17  ;;  %v420_v22 = vld [vmem:[%s593_s1] sm:$0xff]  ;;  %v320_v27 = vld [vmem:[%s594_s0 + $0xc] sm:$0xf0] }
   0x8   :  { %v429_v20 = vld [vmem:[%s593_s1 + $0x48] sm:$0xff]  ;;  %v428_v23 = vld [vmem:[%s593_s1 + $0x40] sm:$0xff]  ;;  %v330_v28 = vld [vmem:[%s594_s0 + $0x18] sm:$0xf] }
   0x9   :  { %v318_v24 = vld [vmem:[%s594_s0] sm:$0xf]  ;;  %v415_v25 = vld [vmem:[%s594_s0 + $0x8] sm:$0xf0]  ;;  %v414_v26 = vld [vmem:[%s594_s0 + $0x4] sm:$0xf] }
   0xa   :  { %206 = vmatpush.bf16.msra.mxu0 %v425_v8  ;;  %440 = vmatpush.bf16.msra.mxu3 %v425_v8  ;;  %v418_v29 = vld [vmem:[%s594_s0 + $0x20] sm:$0xf0]  ;;  %v319_v30 = vor.u32 %v415_v25, %v318_v24  ;;  %v323_v31 = vor.u32 %v414_v26, %v320_v27  ;;  %v417_v33 = vld [vmem:[%s594_s0 + $0x1c] sm:$0xf]  ;;  %v332_v34 = vld [vmem:[%s594_s0 + $0x24] sm:$0xf0] }
   0xb   :  { %225 = vmatpush.bf16.msra.mxu1 %v433_v9  ;;  %412 = vmatmul.msk.bf16.vlgmr.msra.gmra.mxu2 %vm197_vm0, %v327_v10  ;;  %v331_v32 = vor.u32 %v418_v29, %v330_v28  ;;  %v335_v35 = vor.u32 %v417_v33, %v332_v34 }
   0xe   :  { %207 = vmatpush.bf16.msra.mxu0 %v424_v11  ;;  %441 = vmatpush.bf16.msra.mxu3 %v424_v11 }
   0xf   :  { %226 = vmatpush.bf16.msra.mxu1 %v432_v12 }
  0x12   :  { %208 = vmatpush.bf16.msra.mxu0 %v423_v13  ;;  %442 = vmatpush.bf16.msra.mxu3 %v423_v13 }
  0x13   :  { %227 = vmatpush.bf16.msra.mxu1 %v431_v14 }
  0x16   :  { %209 = vmatpush.bf16.msra.mxu0 %v422_v15  ;;  %443 = vmatpush.bf16.msra.mxu3 %v422_v15 }
  0x17   :  { %228 = vmatpush.bf16.msra.mxu1 %v430_v16 }
  0x1a   :  { %210 = vmatpush.bf16.msra.mxu0 %v421_v19  ;;  %444 = vmatpush.bf16.msra.mxu3 %v421_v19 }
  0x1b   :  { %229 = vmatpush.bf16.msra.mxu1 %v429_v20  ;;  %413 = vmatmul.msk.bf16.gmra.mxu2 %vm197_vm0, %v339_v21 }
  0x1e   :  { %211 = vmatpush.bf16.msra.mxu0 %v420_v22  ;;  %445 = vmatpush.bf16.msra.mxu3 %v420_v22 }
  0x1f   :  { %230 = vmatpush.bf16.msra.mxu1 %v428_v23 }
  0x21   :  { %212 = vmatmul.bf16.vlgmr.msra.gmra.mxu0 %v319_v30  ;;  %217 = vmatmul.bf16.vlgmr.msra.gmra.mxu3 %v331_v32 }
  0x22   :  { %231 = vmatmul.bf16.vlgmr.msra.gmra.mxu1 %v323_v31 }
  0x32   :  { %236 = vmatmul.bf16.gmra.mxu1 %v335_v35 }
  0x8e   :  { %v251_v36 = vpop.f32.mrf.mxu2 }
  0x96   :  { %v253_v42 = vpop.f32.mrf.mxu2 }
  0x9e   :  { %v213_v37 = vpop.f32.mrf.mxu0  ;;  %v256_v49 = vpop.f32.mrf.mxu2 }
  0x9f   :  { %v232_v38 = vpop.f32.mrf.mxu1 }
  0xa0   :  { %v233_v39 = vadd.f32 %v232_v38, %v213_v37 }
  0xa2   :  { %v252_v40 = vadd.f32 %v251_v36, %v233_v39 }
  0xa4   :  { %v261_v41 = vpack.c.bf16 %v252_v40, %v252_v40  ;;  %v218_v48 = vpop.f32.mrf.mxu3  ;;  %v286_v55 = vmul.f32 %v252_v40, %v252_v40  ;;  %v271_v60 = vsel %vm270_vm2, %v252_v40, 0.0 }
  0xa6   :  { %266 = vst.msk [vmem:[%s595_s2] sm:$0xf] %vm265_vm1, %v261_v41  ;;  %v215_v43 = vpop.f32.mrf.mxu0  ;;  %v258_v1 = vpop.f32.mrf.mxu2  ;;  %v290_v2 = vsel %vm270_vm2, %v286_v55, 0.0 }
  0xa7   :  { %v234_v44 = vpop.f32.mrf.mxu1 }
  0xa8   :  { %v235_v45 = vadd.f32 %v234_v44, %v215_v43 }
  0xaa   :  { %v254_v46 = vadd.f32 %v253_v42, %v235_v45 }
  0xac   :  { %v262_v47 = vpack.c.bf16 %v254_v46, %v254_v46  ;;  %v287_v53 = vmul.f32 %v254_v46, %v254_v46  ;;  %v272_v56 = vsel %vm270_vm2, %v254_v46, 0.0  ;;  %v220_v58 = vpop.f32.mrf.mxu3 }
  0xad   :  { %v273_v0 = vadd.f32 %v272_v56, %v271_v60 }
  0xae   :  { %267 = vst.msk [vmem:[%s595_s2 + $0x4] sm:$0xf] %vm265_vm1, %v262_v47  ;;  %v291_v61 = vsel %vm270_vm2, %v287_v53, 0.0 }
  0xaf   :  { %v237_v50 = vpop.f32.mrf.mxu1  ;;  %v292_v5 = vadd.f32 %v291_v61, %v290_v2 }
  0xb0   :  { %v238_v51 = vadd.f32 %v237_v50, %v218_v48 }
  0xb2   :  { %v257_v52 = vadd.f32 %v256_v49, %v238_v51 }
  0xb4   :  { %v263_v54 = vpack.c.bf16 %v257_v52, %v257_v52  ;;  %v288_v57 = vmul.f32 %v257_v52, %v257_v52  ;;  %v274_v62 = vsel %vm270_vm2, %v257_v52, 0.0 }
  0xb5   :  { %v275_v6 = vadd.f32 %v274_v62, %v273_v0 }
  0xb6   :  { %268 = vst.msk [vmem:[%s595_s2 + $0x8] sm:$0xf] %vm265_vm1, %v263_v54  ;;  %v293_v3 = vsel %vm270_vm2, %v288_v57, 0.0 }
  0xb7   :  { %v239_v59 = vpop.f32.mrf.mxu1  ;;  %v294_v10 = vadd.f32 %v293_v3, %v292_v5 }
  0xb8   :  { %v240_v63 = vadd.f32 %v239_v59, %v220_v58 }
  0xba   :  { %v259_v4 = vadd.f32 %v258_v1, %v240_v63 }
  0xbc   :  { %v264_v7 = vpack.c.bf16 %v259_v4, %v259_v4  ;;  %v276_v8 = vsel %vm270_vm2, %v259_v4, 0.0  ;;  %v289_v9 = vmul.f32 %v259_v4, %v259_v4 }
  0xbd   :  { %v277_v11 = vadd.f32 %v276_v8, %v275_v6 }
  0xbe   :  { %269 = vst.msk [vmem:[%s595_s2 + $0xc] sm:$0xf] %vm265_vm1, %v264_v7  ;;  %v295_v12 = vsel %vm270_vm2, %v289_v9, 0.0 }
  0xbf   :  { %v278_v13 = vrot.slane %v277_v11, 4  ;;  %v296_v14 = vadd.f32 %v295_v12, %v294_v10 }
  0xc1   :  { %v279_v15 = vadd.f32 %v278_v13, %v277_v11  ;;  %v297_v16 = vrot.slane %v296_v14, 4 }
  0xc3   :  { %v280_v17 = vrot.slane %v279_v15, 2  ;;  %v298_v18 = vadd.f32 %v297_v16, %v296_v14 }
  0xc5   :  { %v281_v19 = vadd.f32 %v280_v17, %v279_v15  ;;  %v299_v20 = vrot.slane %v298_v18, 2 }
  0xc7   :  { %v282_v21 = vrot.slane %v281_v19, 1  ;;  %v300_v22 = vadd.f32 %v299_v20, %v298_v18 }
  0xc9   :  { %v283_v23 = vadd.f32 %v282_v21, %v281_v19  ;;  %v301_v24 = vrot.slane %v300_v22, 1 }
  0xcb   :  { %285 = vst.msk [vmem:[%s596_s3] sm:$0x1] %vm284_vm3, %v283_v23  ;;  %v302_v25 = vadd.f32 %v301_v24, %v300_v22 }
  0xcd   :  { %303 = vst.msk [vmem:[%s597_s4] sm:$0x1] %vm284_vm3, %v302_v25 }

// kernel: unet_reg_forward.35
= control target key start
LH: loop header
LB: loop body
LE: loop exit
PB: predicated region body
PF: predicated region fallthrough
CT: control target
= control target key end

     0   :  { %vm65_vm0 = vcmask 523264   ;;  %s198_s1 = inlined_call_operand.vmem [shape: bf16[64,128], index: 1, kind: input, shape index: {}]   ;;  %s199_s2 = inlined_call_operand.vmem [shape: f32[1,128], index: 2, kind: input, shape index: {}]   ;;  %s200_s0 = inlined_call_operand.vmem [shape: bf16[32,64], index: 0, kind: input, shape index: {}]   ;;  %s201_s3 = inlined_call_operand.vmem [shape: bf16[32,128], index: 3, kind: output, shape index: {}]  }
   0x1   :  { %v134_v0 = vld [vmem:[%s198_s1 + $0x18] sm:$0xff]  ;;  %v133_v1 = vld [vmem:[%s198_s1 + $0x10] sm:$0xff]  ;;  %v132_v2 = vld [vmem:[%s198_s1 + $0x8] sm:$0xff] }
   0x2   :  { %76 = vmatpush.bf16.msra.mxu0 %v134_v0  ;;  %146 = vmatpush.bf16.msra.mxu1 %v134_v0  ;;  %v131_v3 = vld [vmem:[%s198_s1] sm:$0xff]  ;;  %v130_v5 = vld [vmem:[%s200_s0 + $0x8] sm:$0xff] }
   0x3   :  { %v129_v4 = vld [vmem:[%s200_s0] sm:$0xff] }
   0x4   :  { %v150_v8 = vld [vmem:[%s199_s2] ss:$0 sm:$0xff] }
   0x6   :  { %77 = vmatpush.bf16.msra.mxu0 %v133_v1  ;;  %147 = vmatpush.bf16.msra.mxu1 %v133_v1 }
   0xa   :  { %78 = vmatpush.bf16.msra.mxu0 %v132_v2  ;;  %148 = vmatpush.bf16.msra.mxu1 %v132_v2 }
   0xe   :  { %79 = vmatpush.bf16.msra.mxu0 %v131_v3  ;;  %149 = vmatpush.bf16.msra.mxu1 %v131_v3 }
  0x11   :  { %127 = vmatmul.msk.bf16.vlgmr.msra.gmra.mxu0 %vm65_vm0, %v129_v4  ;;  %128 = vmatmul.msk.bf16.vlgmr.msra.gmra.mxu1 %vm65_vm0, %v130_v5 }
  0x8e   :  { %v81_v6 = vpop.f32.mrf.mxu0  ;;  %v86_v7 = vpop.f32.mrf.mxu1 }
  0x8f   :  { %v82_v11 = vadd.f32 %v150_v8, %v81_v6  ;;  %v87_v12 = vadd.f32 %v150_v8, %v86_v7 }
  0x96   :  { %v83_v9 = vpop.f32.mrf.mxu0  ;;  %v88_v10 = vpop.f32.mrf.mxu1 }
  0x97   :  { %v84_v13 = vadd.f32 %v150_v8, %v83_v9  ;;  %v89_v14 = vadd.f32 %v150_v8, %v88_v10 }
  0x99   :  { %v138_v15 = vpack.c.bf16 %v84_v13, %v82_v11  ;;  %v143_v16 = vpack.c.bf16 %v89_v14, %v87_v12 }
  0x9b   :  { %139 = vst [vmem:[%s201_s3] sm:$0xff] %v138_v15  }
  0x9c   :  { %145 = vst [vmem:[%s201_s3 + $0x8] sm:$0xff] %v143_v16  }

// kernel: unet_reg_forward.33
= control target key start
LH: loop header
LB: loop body
LE: loop exit
PB: predicated region body
PF: predicated region fallthrough
CT: control target
= control target key end

     0   :  { %vm365_vm0 = vcmask 523264   ;;  %vm471_vm1 = vcmask 519168   ;;  %vm489_vm2 = vcmask 516096   ;;  %s982_s1 = inlined_call_operand.vmem [shape: bf16[576,64], index: 1, kind: input, shape index: {}]   ;;  %s983_s0 = inlined_call_operand.vmem [shape: bf16[32,576], index: 0, kind: input, shape index: {}]   ;;  %s984_s2 = inlined_call_operand.vmem [shape: bf16[32,64], index: 2, kind: output, shape index: {0}]   ;;  %s985_s3 = inlined_call_operand.vmem [shape: f32[1,1,64], index: 3, kind: output, shape index: {1}]   ;;  %s986_s4 = inlined_call_operand.vmem [shape: f32[1,1,64], index: 4, kind: output, shape index: {2}]  }
   0x1   :  { %v724_v0 = vld [vmem:[%s982_s1 + $0x38] sm:$0xff]  ;;  %v723_v4 = vld [vmem:[%s982_s1 + $0x30] sm:$0xff]  ;;  %v722_v8 = vld [vmem:[%s982_s1 + $0x28] sm:$0xff] }
   0x2   :  { %v732_v1 = vld [vmem:[%s982_s1 + $0x78] sm:$0xff]  ;;  %372 = vmatpush.bf16.msra.mxu0 %v724_v0  ;;  %v731_v5 = vld [vmem:[%s982_s1 + $0x70] sm:$0xff]  ;;  %v730_v9 = vld [vmem:[%s982_s1 + $0x68] sm:$0xff] }
   0x3   :  { %v740_v2 = vld [vmem:[%s982_s1 + $0xb8] sm:$0xff]  ;;  %391 = vmatpush.bf16.msra.mxu1 %v732_v1  ;;  %v739_v6 = vld [vmem:[%s982_s1 + $0xb0] sm:$0xff]  ;;  %v738_v10 = vld [vmem:[%s982_s1 + $0xa8] sm:$0xff] }
   0x4   :  { %v748_v3 = vld [vmem:[%s982_s1 + $0xf8] sm:$0xff]  ;;  %410 = vmatpush.bf16.msra.mxu2 %v740_v2  ;;  %v747_v7 = vld [vmem:[%s982_s1 + $0xf0] sm:$0xff]  ;;  %v746_v11 = vld [vmem:[%s982_s1 + $0xe8] sm:$0xff] }
   0x5   :  { %429 = vmatpush.bf16.msra.mxu3 %v748_v3  ;;  %v721_v12 = vld [vmem:[%s982_s1 + $0x20] sm:$0xff]  ;;  %v720_v16 = vld [vmem:[%s982_s1 + $0x18] sm:$0xff]  ;;  %v719_v20 = vld [vmem:[%s982_s1 + $0x10] sm:$0xff] }
   0x6   :  { %373 = vmatpush.bf16.msra.mxu0 %v723_v4  ;;  %v729_v13 = vld [vmem:[%s982_s1 + $0x60] sm:$0xff]  ;;  %v728_v17 = vld [vmem:[%s982_s1 + $0x58] sm:$0xff]  ;;  %v727_v21 = vld [vmem:[%s982_s1 + $0x50] sm:$0xff] }
   0x7   :  { %392 = vmatpush.bf16.msra.mxu1 %v731_v5  ;;  %v737_v14 = vld [vmem:[%s982_s1 + $0xa0] sm:$0xff]  ;;  %v736_v18 = vld [vmem:[%s982_s1 + $0x98] sm:$0xff]  ;;  %v735_v22 = vld [vmem:[%s982_s1 + $0x90] sm:$0xff] }
   0x8   :  { %411 = vmatpush.bf16.msra.mxu2 %v739_v6  ;;  %v745_v15 = vld [vmem:[%s982_s1 + $0xe0] sm:$0xff]  ;;  %v744_v19 = vld [vmem:[%s982_s1 + $0xd8] sm:$0xff]  ;;  %v743_v23 = vld [vmem:[%s982_s1 + $0xd0] sm:$0xff] }
   0x9   :  { %430 = vmatpush.bf16.msra.mxu3 %v747_v7  ;;  %v718_v24 = vld [vmem:[%s982_s1 + $0x8] sm:$0xff]  ;;  %v717_v28 = vld [vmem:[%s982_s1] sm:$0xff]  ;;  %v709_v33 = vld [vmem:[%s983_s0 + $0x10] sm:$0xf0] }
   0xa   :  { %374 = vmatpush.bf16.msra.mxu0 %v722_v8  ;;  %v726_v25 = vld [vmem:[%s982_s1 + $0x48] sm:$0xff]  ;;  %v725_v29 = vld [vmem:[%s982_s1 + $0x40] sm:$0xff]  ;;  %v525_v35 = vld [vmem:[%s983_s0 + $0x14] sm:$0xf0] }
   0xb   :  { %393 = vmatpush.bf16.msra.mxu1 %v730_v9  ;;  %v734_v26 = vld [vmem:[%s982_s1 + $0x88] sm:$0xff]  ;;  %v733_v30 = vld [vmem:[%s982_s1 + $0x80] sm:$0xff]  ;;  %v710_v37 = vld [vmem:[%s983_s0 + $0x18] sm:$0xf0] }
   0xc   :  { %412 = vmatpush.bf16.msra.mxu2 %v738_v10  ;;  %v742_v27 = vld [vmem:[%s982_s1 + $0xc8] sm:$0xff]  ;;  %v741_v31 = vld [vmem:[%s982_s1 + $0xc0] sm:$0xff]  ;;  %v752_v40 = vld [vmem:[%s982_s1 + $0x118] sm:$0xff] }
   0xd   :  { %431 = vmatpush.bf16.msra.mxu3 %v746_v11  ;;  %v523_v32 = vld [vmem:[%s983_s0] sm:$0xf]  ;;  %v707_v34 = vld [vmem:[%s983_s0 + $0x4] sm:$0xf]  ;;  %v531_v36 = vld [vmem:[%s983_s0 + $0x8] sm:$0xf] }
   0xe   :  { %375 = vmatpush.bf16.msra.mxu0 %v721_v12  ;;  %v708_v38 = vld [vmem:[%s983_s0 + $0xc] sm:$0xf]  ;;  %v533_v39 = vld [vmem:[%s983_s0 + $0x1c] sm:$0xf0]  ;;  %v524_v41 = vor.u32 %v709_v33, %v523_v32  ;;  %v528_v42 = vor.u32 %v707_v34, %v525_v35  ;;  %v532_v43 = vor.u32 %v710_v37, %v531_v36  ;;  %v751_v45 = vld [vmem:[%s982_s1 + $0x110] sm:$0xff] }
   0xf   :  { %394 = vmatpush.bf16.msra.mxu1 %v729_v13  ;;  %v536_v44 = vor.u32 %v708_v38, %v533_v39  ;;  %v750_v46 = vld [vmem:[%s982_s1 + $0x108] sm:$0xff]  ;;  %v749_v47 = vld [vmem:[%s982_s1 + $0x100] sm:$0xff]  ;;  %v714_v49 = vld [vmem:[%s983_s0 + $0x38] sm:$0xf0] }
  0x10   :  { %413 = vmatpush.bf16.msra.mxu2 %v737_v14  ;;  %v543_v48 = vld [vmem:[%s983_s0 + $0x28] sm:$0xf]  ;;  %v712_v50 = vld [vmem:[%s983_s0 + $0x2c] sm:$0xf]  ;;  %v545_v51 = vld [vmem:[%s983_s0 + $0x3c] sm:$0xf0] }
  0x11   :  { %432 = vmatpush.bf16.msra.mxu3 %v745_v15  ;;  %v551_v52 = vld [vmem:[%s983_s0 + $0x30] sm:$0xf]  ;;  %v715_v53 = vld [vmem:[%s983_s0 + $0x40] sm:$0xf0]  ;;  %v713_v54 = vld [vmem:[%s983_s0 + $0x34] sm:$0xf]  ;;  %v544_v56 = vor.u32 %v714_v49, %v543_v48  ;;  %v548_v57 = vor.u32 %v712_v50, %v545_v51 }
  0x12   :  { %376 = vmatpush.bf16.msra.mxu0 %v720_v16  ;;  %v553_v55 = vld [vmem:[%s983_s0 + $0x44] sm:$0xf0]  ;;  %v552_v58 = vor.u32 %v715_v53, %v551_v52  ;;  %v539_v60 = vld [vmem:[%s983_s0 + $0x10] sm:$0xf]  ;;  %v711_v61 = vld [vmem:[%s983_s0 + $0x20] sm:$0xf0] }
  0x13   :  { %395 = vmatpush.bf16.msra.mxu1 %v728_v17  ;;  %v556_v59 = vor.u32 %v713_v54, %v553_v55  ;;  %v559_v62 = vld [vmem:[%s983_s0 + $0x38] sm:$0xf]  ;;  %v716_v63 = vld [vmem:[%s983_s0 + $0x48] sm:$0xf0]  ;;  %v540_v0 = vor.u32 %v711_v61, %v539_v60 }
  0x14   :  { %414 = vmatpush.bf16.msra.mxu2 %v736_v18  ;;  %v560_v1 = vor.u32 %v716_v63, %v559_v62 }
  0x15   :  { %433 = vmatpush.bf16.msra.mxu3 %v744_v19 }
  0x16   :  { %377 = vmatpush.bf16.msra.mxu0 %v719_v20 }
  0x17   :  { %396 = vmatpush.bf16.msra.mxu1 %v727_v21 }
  0x18   :  { %415 = vmatpush.bf16.msra.mxu2 %v735_v22 }
  0x19   :  { %434 = vmatpush.bf16.msra.mxu3 %v743_v23 }
  0x1a   :  { %378 = vmatpush.bf16.msra.mxu0 %v718_v24 }
  0x1b   :  { %397 = vmatpush.bf16.msra.mxu1 %v726_v25 }
  0x1c   :  { %416 = vmatpush.bf16.msra.mxu2 %v734_v26 }
  0x1d   :  { %435 = vmatpush.bf16.msra.mxu3 %v742_v27 }
  0x1e   :  { %379 = vmatpush.bf16.msra.mxu0 %v717_v28 }
  0x1f   :  { %398 = vmatpush.bf16.msra.mxu1 %v725_v29 }
  0x20   :  { %417 = vmatpush.bf16.msra.mxu2 %v733_v30 }
  0x21   :  { %436 = vmatpush.bf16.msra.mxu3 %v741_v31  ;;  %380 = vmatmul.bf16.vlgmr.msra.gmra.mxu0 %v524_v41 }
  0x22   :  { %452 = vmatpush.bf16.msrb.mxu0 %v752_v40  ;;  %399 = vmatmul.bf16.vlgmr.msra.gmra.mxu1 %v528_v42 }
  0x23   :  { %753 = vmatpush.bf16.msrb.mxu1 %v752_v40  ;;  %418 = vmatmul.bf16.vlgmr.msra.gmra.mxu2 %v532_v43 }
  0x24   :  { %437 = vmatmul.bf16.vlgmr.msra.gmra.mxu3 %v536_v44 }
  0x26   :  { %453 = vmatpush.bf16.msrb.mxu0 %v751_v45 }
  0x27   :  { %754 = vmatpush.bf16.msrb.mxu1 %v751_v45 }
  0x2a   :  { %454 = vmatpush.bf16.msrb.mxu0 %v750_v46 }
  0x2b   :  { %755 = vmatpush.bf16.msrb.mxu1 %v750_v46 }
  0x2e   :  { %455 = vmatpush.bf16.msrb.mxu0 %v749_v47 }
  0x2f   :  { %756 = vmatpush.bf16.msrb.mxu1 %v749_v47 }
  0x31   :  { %385 = vmatmul.bf16.gmra.mxu0 %v544_v56 }
  0x32   :  { %404 = vmatmul.bf16.gmra.mxu1 %v548_v57 }
  0x33   :  { %423 = vmatmul.bf16.gmra.mxu2 %v552_v58 }
  0x34   :  { %442 = vmatmul.bf16.gmra.mxu3 %v556_v59 }
  0x41   :  { %705 = vmatmul.msk.bf16.vlgmr.msrb.gmra.mxu0 %vm365_vm0, %v540_v0 }
  0x42   :  { %706 = vmatmul.msk.bf16.vlgmr.msrb.gmra.mxu1 %vm365_vm0, %v560_v1 }
  0x9e   :  { %v381_v2 = vpop.f32.mrf.mxu0 }
  0x9f   :  { %v400_v3 = vpop.f32.mrf.mxu1 }
  0xa0   :  { %v401_v15 = vadd.f32 %v400_v3, %v381_v2 }
  0xa6   :  { %v419_v4 = vpop.f32.mrf.mxu2  ;;  %v383_v6 = vpop.f32.mrf.mxu0 }
  0xa7   :  { %v438_v5 = vpop.f32.mrf.mxu3  ;;  %v402_v7 = vpop.f32.mrf.mxu1  ;;  %v420_v18 = vadd.f32 %v419_v4, %v401_v15 }
  0xa8   :  { %v403_v25 = vadd.f32 %v402_v7, %v383_v6 }
  0xa9   :  { %v439_v20 = vadd.f32 %v438_v5, %v420_v18 }
  0xae   :  { %v421_v8 = vpop.f32.mrf.mxu2  ;;  %v386_v10 = vpop.f32.mrf.mxu0 }
  0xaf   :  { %v440_v9 = vpop.f32.mrf.mxu3  ;;  %v405_v11 = vpop.f32.mrf.mxu1  ;;  %v422_v29 = vadd.f32 %v421_v8, %v403_v25 }
  0xb0   :  { %v406_v16 = vadd.f32 %v405_v11, %v386_v10 }
  0xb1   :  { %v441_v34 = vadd.f32 %v440_v9, %v422_v29 }
  0xb6   :  { %v424_v12 = vpop.f32.mrf.mxu2  ;;  %v388_v13 = vpop.f32.mrf.mxu0 }
  0xb7   :  { %v407_v14 = vpop.f32.mrf.mxu1  ;;  %v443_v17 = vpop.f32.mrf.mxu3  ;;  %v425_v19 = vadd.f32 %v424_v12, %v406_v16 }
  0xb8   :  { %v408_v26 = vadd.f32 %v407_v14, %v388_v13 }
  0xb9   :  { %v444_v21 = vadd.f32 %v443_v17, %v425_v19 }
  0xbe   :  { %v426_v22 = vpop.f32.mrf.mxu2  ;;  %v457_v23 = vpop.f32.mrf.mxu0 }
  0xbf   :  { %v462_v24 = vpop.f32.mrf.mxu1  ;;  %v458_v27 = vadd.f32 %v457_v23, %v439_v20  ;;  %v427_v30 = vadd.f32 %v426_v22, %v408_v26  ;;  %v445_v33 = vpop.f32.mrf.mxu3 }
  0xc0   :  { %v463_v28 = vadd.f32 %v462_v24, %v444_v21 }
  0xc1   :  { %v467_v31 = vpack.c.bf16 %v458_v27, %v458_v27  ;;  %v446_v35 = vadd.f32 %v445_v33, %v427_v30  ;;  %v491_v38 = vmul.f32 %v458_v27, %v458_v27  ;;  %v476_v41 = vsel %vm365_vm0, %v458_v27, 0.0 }
  0xc2   :  { %v469_v32 = vpack.c.bf16 %v463_v28, %v463_v28  ;;  %v493_v42 = vmul.f32 %v463_v28, %v463_v28  ;;  %v479_v49 = vsel %vm365_vm0, %v463_v28, 0.0 }
  0xc3   :  { %472 = vst.msk [vmem:[%s984_s2] sm:$0xf] %vm471_vm1, %v467_v31  ;;  %v495_v48 = vsel %vm365_vm0, %v491_v38, 0.0 }
  0xc4   :  { %474 = vst.msk [vmem:[%s984_s2 + $0x8] sm:$0xf] %vm471_vm1, %v469_v32  ;;  %v498_v54 = vsel %vm365_vm0, %v493_v42, 0.0 }
  0xc6   :  { %v459_v36 = vpop.f32.mrf.mxu0 }
  0xc7   :  { %v464_v37 = vpop.f32.mrf.mxu1  ;;  %v460_v39 = vadd.f32 %v459_v36, %v441_v34 }
  0xc8   :  { %v465_v40 = vadd.f32 %v464_v37, %v446_v35 }
  0xc9   :  { %v468_v43 = vpack.c.bf16 %v460_v39, %v460_v39  ;;  %v477_v44 = vsel %vm365_vm0, %v460_v39, 0.0  ;;  %v492_v45 = vmul.f32 %v460_v39, %v460_v39 }
  0xca   :  { %v470_v46 = vpack.c.bf16 %v465_v40, %v465_v40  ;;  %v478_v47 = vadd.f32 %v477_v44, %v476_v41  ;;  %v494_v51 = vmul.f32 %v465_v40, %v465_v40  ;;  %v481_v55 = vsel %vm365_vm0, %v465_v40, 0.0 }
  0xcb   :  { %473 = vst.msk [vmem:[%s984_s2 + $0x4] sm:$0xf] %vm471_vm1, %v468_v43  ;;  %v496_v50 = vsel %vm365_vm0, %v492_v45, 0.0 }
  0xcc   :  { %v497_v52 = vadd.f32 %v496_v50, %v495_v48  ;;  %475 = vst.msk [vmem:[%s984_s2 + $0xc] sm:$0xf] %vm471_vm1, %v470_v46  ;;  %v480_v53 = vadd.f32 %v479_v49, %v478_v47  ;;  %v500_v58 = vsel %vm365_vm0, %v494_v51, 0.0 }
  0xce   :  { %v482_v56 = vadd.f32 %v481_v55, %v480_v53  ;;  %v499_v57 = vadd.f32 %v498_v54, %v497_v52 }
  0xd0   :  { %v483_v59 = vrot.slane %v482_v56, 4  ;;  %v501_v60 = vadd.f32 %v500_v58, %v499_v57 }
  0xd2   :  { %v484_v61 = vadd.f32 %v483_v59, %v482_v56  ;;  %v502_v62 = vrot.slane %v501_v60, 4 }
  0xd4   :  { %v485_v63 = vrot.slane %v484_v61, 2  ;;  %v503_v0 = vadd.f32 %v502_v62, %v501_v60 }
  0xd6   :  { %v486_v1 = vadd.f32 %v485_v63, %v484_v61  ;;  %v504_v2 = vrot.slane %v503_v0, 2 }
  0xd8   :  { %v487_v3 = vrot.slane %v486_v1, 1  ;;  %v505_v4 = vadd.f32 %v504_v2, %v503_v0 }
  0xda   :  { %v488_v5 = vadd.f32 %v487_v3, %v486_v1  ;;  %v506_v6 = vrot.slane %v505_v4, 1 }
  0xdc   :  { %490 = vst.msk [vmem:[%s985_s3] sm:$0x1] %vm489_vm2, %v488_v5  ;;  %v507_v7 = vadd.f32 %v506_v6, %v505_v4 }
  0xde   :  { %508 = vst.msk [vmem:[%s986_s4] sm:$0x1] %vm489_vm2, %v507_v7 }

// kernel: unet_reg_forward.40
= control target key start
LH: loop header
LB: loop body
LE: loop exit
PB: predicated region body
PF: predicated region fallthrough
CT: control target
= control target key end

     0   :  { %vm91_vm0 = vcmask 261120   ;;  %vm181_vm1 = vcmask 519168   ;;  %s392_s1 = inlined_call_operand.vmem [shape: bf16[32,64], index: 1, kind: input, shape index: {}]   ;;  %s393_s0 = inlined_call_operand.vmem [shape: bf16[128,32], index: 0, kind: input, shape index: {}]   ;;  %s394_s2 = inlined_call_operand.vmem [shape: f32[1,64], index: 2, kind: input, shape index: {}]   ;;  %s395_s3 = inlined_call_operand.vmem [shape: bf16[128,64], index: 3, kind: output, shape index: {}]  }
   0x1   :  { %v259_v0 = vld [vmem:[%s392_s1 + $0x8] sm:$0xff]  ;;  %v258_v1 = vld [vmem:[%s392_s1] sm:$0xff]  ;;  %v252_v3 = vld [vmem:[%s393_s0 + $0x10] sm:$0xff] }
   0x2   :  { %122 = vmatpush.bf16.msra.mxu0 %v259_v0  ;;  %260 = vmatpush.bf16.msra.mxu1 %v259_v0  ;;  %v250_v2 = vld [vmem:[%s393_s0] sm:$0xff]  ;;  %v256_v5 = vld [vmem:[%s393_s0 + $0x30] sm:$0xff]  ;;  %v251_v6 = vld [vmem:[%s393_s0 + $0x8] sm:$0xff] }
   0x3   :  { %261 = vmatpush.bf16.msra.mxu2 %v259_v0  ;;  %262 = vmatpush.bf16.msra.mxu3 %v259_v0  ;;  %v254_v4 = vld [vmem:[%s393_s0 + $0x20] sm:$0xff]  ;;  %v253_v7 = vld [vmem:[%s393_s0 + $0x18] sm:$0xff]  ;;  %v255_v8 = vld [vmem:[%s393_s0 + $0x28] sm:$0xff] }
   0x4   :  { %v257_v9 = vld [vmem:[%s393_s0 + $0x38] sm:$0xff]  ;;  %v266_v10 = vld [vmem:[%s394_s2] ss:$0 sm:$0xff] }
   0x6   :  { %123 = vmatpush.bf16.msra.mxu0 %v258_v1  ;;  %263 = vmatpush.bf16.msra.mxu1 %v258_v1 }
   0x7   :  { %264 = vmatpush.bf16.msra.mxu2 %v258_v1  ;;  %265 = vmatpush.bf16.msra.mxu3 %v258_v1 }
   0x9   :  { %242 = vmatmul.msk.bf16.vlgmr.msra.gmra.mxu0 %vm91_vm0, %v250_v2  ;;  %244 = vmatmul.msk.bf16.vlgmr.msra.gmra.mxu1 %vm91_vm0, %v252_v3 }
   0xa   :  { %246 = vmatmul.msk.bf16.vlgmr.msra.gmra.mxu2 %vm91_vm0, %v254_v4  ;;  %248 = vmatmul.msk.bf16.vlgmr.msra.gmra.mxu3 %vm91_vm0, %v256_v5 }
  0x19   :  { %243 = vmatmul.msk.bf16.gmra.mxu0 %vm91_vm0, %v251_v6  ;;  %245 = vmatmul.msk.bf16.gmra.mxu1 %vm91_vm0, %v253_v7 }
  0x1a   :  { %247 = vmatmul.msk.bf16.gmra.mxu2 %vm91_vm0, %v255_v8  ;;  %249 = vmatmul.msk.bf16.gmra.mxu3 %vm91_vm0, %v257_v9 }
  0x86   :  { %v125_v11 = vpop.f32.mrf.mxu0  ;;  %v135_v12 = vpop.f32.mrf.mxu1 }
  0x87   :  { %v126_v13 = vadd.f32 %v266_v10, %v125_v11  ;;  %v136_v14 = vadd.f32 %v266_v10, %v135_v12 }
  0x89   :  { %v165_v15 = vpack.c.bf16 %v126_v13, %v126_v13  ;;  %v169_v16 = vpack.c.bf16 %v136_v14, %v136_v14 }
  0x8b   :  { %182 = vst.msk [vmem:[%s395_s3] sm:$0xf] %vm181_vm1, %v165_v15 }
  0x8c   :  { %186 = vst.msk [vmem:[%s395_s3 + $0x10] sm:$0xf] %vm181_vm1, %v169_v16 }
  0x8d   :  { %v145_v17 = vpop.f32.mrf.mxu2  ;;  %v155_v18 = vpop.f32.mrf.mxu3 }
  0x8e   :  { %v146_v19 = vadd.f32 %v266_v10, %v145_v17  ;;  %v156_v20 = vadd.f32 %v266_v10, %v155_v18  ;;  %v127_v21 = vpop.f32.mrf.mxu0  ;;  %v137_v22 = vpop.f32.mrf.mxu1 }
  0x8f   :  { %v128_v23 = vadd.f32 %v266_v10, %v127_v21  ;;  %v138_v24 = vadd.f32 %v266_v10, %v137_v22 }
  0x90   :  { %v173_v25 = vpack.c.bf16 %v146_v19, %v146_v19  ;;  %v177_v26 = vpack.c.bf16 %v156_v20, %v156_v20 }
  0x91   :  { %v166_v27 = vpack.c.bf16 %v128_v23, %v128_v23  ;;  %v170_v28 = vpack.c.bf16 %v138_v24, %v138_v24 }
  0x92   :  { %190 = vst.msk [vmem:[%s395_s3 + $0x20] sm:$0xf] %vm181_vm1, %v173_v25 }
  0x93   :  { %194 = vst.msk [vmem:[%s395_s3 + $0x30] sm:$0xf] %vm181_vm1, %v177_v26 }
  0x94   :  { %183 = vst.msk [vmem:[%s395_s3 + $0x4] sm:$0xf] %vm181_vm1, %v166_v27 }
  0x95   :  { %187 = vst.msk [vmem:[%s395_s3 + $0x14] sm:$0xf] %vm181_vm1, %v170_v28  ;;  %v147_v29 = vpop.f32.mrf.mxu2  ;;  %v157_v30 = vpop.f32.mrf.mxu3 }
  0x96   :  { %v148_v31 = vadd.f32 %v266_v10, %v147_v29  ;;  %v158_v32 = vadd.f32 %v266_v10, %v157_v30  ;;  %v130_v33 = vpop.f32.mrf.mxu0  ;;  %v140_v34 = vpop.f32.mrf.mxu1 }
  0x97   :  { %v131_v35 = vadd.f32 %v266_v10, %v130_v33  ;;  %v141_v36 = vadd.f32 %v266_v10, %v140_v34 }
  0x98   :  { %v174_v37 = vpack.c.bf16 %v148_v31, %v148_v31  ;;  %v178_v38 = vpack.c.bf16 %v158_v32, %v158_v32 }
  0x99   :  { %v167_v39 = vpack.c.bf16 %v131_v35, %v131_v35  ;;  %v171_v40 = vpack.c.bf16 %v141_v36, %v141_v36 }
  0x9a   :  { %191 = vst.msk [vmem:[%s395_s3 + $0x24] sm:$0xf] %vm181_vm1, %v174_v37 }
  0x9b   :  { %195 = vst.msk [vmem:[%s395_s3 + $0x34] sm:$0xf] %vm181_vm1, %v178_v38 }
  0x9c   :  { %184 = vst.msk [vmem:[%s395_s3 + $0x8] sm:$0xf] %vm181_vm1, %v167_v39 }
  0x9d   :  { %188 = vst.msk [vmem:[%s395_s3 + $0x18] sm:$0xf] %vm181_vm1, %v171_v40  ;;  %v150_v41 = vpop.f32.mrf.mxu2  ;;  %v160_v42 = vpop.f32.mrf.mxu3 }
  0x9e   :  { %v151_v43 = vadd.f32 %v266_v10, %v150_v41  ;;  %v161_v44 = vadd.f32 %v266_v10, %v160_v42  ;;  %v132_v45 = vpop.f32.mrf.mxu0  ;;  %v142_v46 = vpop.f32.mrf.mxu1 }
  0x9f   :  { %v133_v47 = vadd.f32 %v266_v10, %v132_v45  ;;  %v143_v48 = vadd.f32 %v266_v10, %v142_v46 }
  0xa0   :  { %v175_v49 = vpack.c.bf16 %v151_v43, %v151_v43  ;;  %v179_v50 = vpack.c.bf16 %v161_v44, %v161_v44 }
  0xa1   :  { %v168_v51 = vpack.c.bf16 %v133_v47, %v133_v47  ;;  %v172_v52 = vpack.c.bf16 %v143_v48, %v143_v48 }
  0xa2   :  { %192 = vst.msk [vmem:[%s395_s3 + $0x28] sm:$0xf] %vm181_vm1, %v175_v49 }
  0xa3   :  { %196 = vst.msk [vmem:[%s395_s3 + $0x38] sm:$0xf] %vm181_vm1, %v179_v50 }
  0xa4   :  { %185 = vst.msk [vmem:[%s395_s3 + $0xc] sm:$0xf] %vm181_vm1, %v168_v51 }
  0xa5   :  { %189 = vst.msk [vmem:[%s395_s3 + $0x1c] sm:$0xf] %vm181_vm1, %v172_v52  ;;  %v152_v53 = vpop.f32.mrf.mxu2  ;;  %v162_v54 = vpop.f32.mrf.mxu3 }
  0xa6   :  { %v153_v55 = vadd.f32 %v266_v10, %v152_v53  ;;  %v163_v56 = vadd.f32 %v266_v10, %v162_v54 }
  0xa8   :  { %v176_v57 = vpack.c.bf16 %v153_v55, %v153_v55  ;;  %v180_v58 = vpack.c.bf16 %v163_v56, %v163_v56 }
  0xaa   :  { %193 = vst.msk [vmem:[%s395_s3 + $0x2c] sm:$0xf] %vm181_vm1, %v176_v57 }
  0xab   :  { %197 = vst.msk [vmem:[%s395_s3 + $0x3c] sm:$0xf] %vm181_vm1, %v180_v58 }

// kernel: unet_reg_forward.36
= control target key start
LH: loop header
LB: loop body
LE: loop exit
PB: predicated region body
PF: predicated region fallthrough
CT: control target
= control target key end

     0   :  { %vm551_vm0 = vcmask 523264   ;;  %vm837_vm1 = vcmask 257024   ;;  %vm854_vm2 = vcmask 261120   ;;  %vm892_vm3 = vcmask 253952   ;;  %s1897_s1 = inlined_call_operand.vmem [shape: bf16[576,32], index: 1, kind: input, shape index: {}]   ;;  %s1898_s0 = inlined_call_operand.vmem [shape: bf16[128,576], index: 0, kind: input, shape index: {}]   ;;  %s1899_s2 = inlined_call_operand.vmem [shape: bf16[128,32], index: 2, kind: output, shape index: {0}]   ;;  %s1900_s3 = inlined_call_operand.vmem [shape: f32[1,1,32], index: 3, kind: output, shape index: {1}]   ;;  %s1901_s4 = inlined_call_operand.vmem [shape: f32[1,1,32], index: 4, kind: output, shape index: {2}]  }
   0x1   :  { %v1319_v0 = vld [vmem:[%s1897_s1 + $0x38] sm:$0xff]  ;;  %v1318_v1 = vld [vmem:[%s1897_s1 + $0x30] sm:$0xff]  ;;  %v1317_v2 = vld [vmem:[%s1897_s1 + $0x28] sm:$0xff] }
   0x2   :  { %1348 = vmatpush.bf16.msra.mxu1 %v1319_v0  ;;  %1349 = vmatpush.bf16.msra.mxu2 %v1319_v0  ;;  %v1316_v3 = vld [vmem:[%s1897_s1 + $0x20] sm:$0xff]  ;;  %v1315_v4 = vld [vmem:[%s1897_s1 + $0x18] sm:$0xff]  ;;  %v1314_v5 = vld [vmem:[%s1897_s1 + $0x10] sm:$0xff] }
   0x3   :  { %1350 = vmatpush.bf16.msra.mxu3 %v1319_v0  ;;  %576 = vmatpush.bf16.msra.mxu0 %v1319_v0  ;;  %v1313_v6 = vld [vmem:[%s1897_s1 + $0x8] sm:$0xff]  ;;  %v1312_v7 = vld [vmem:[%s1897_s1] sm:$0xff]  ;;  %v1002_v8 = vld [vmem:[%s1898_s0 + $0x50] sm:$0xf] }
   0x4   :  { %v1284_v9 = vld [vmem:[%s1898_s0 + $0x60] sm:$0xf0]  ;;  %v1042_v10 = vld [vmem:[%s1898_s0 + $0xa0] sm:$0xf]  ;;  %v1294_v11 = vld [vmem:[%s1898_s0 + $0xb0] sm:$0xf0] }
   0x5   :  { %v1082_v12 = vld [vmem:[%s1898_s0 + $0xf0] sm:$0xf]  ;;  %v1304_v13 = vld [vmem:[%s1898_s0 + $0x100] sm:$0xf0]  ;;  %v962_v14 = vld [vmem:[%s1898_s0] sm:$0xf]  ;;  %v1003_v18 = vor.u32 %v1284_v9, %v1002_v8  ;;  %v1043_v19 = vor.u32 %v1294_v11, %v1042_v10 }
   0x6   :  { %1351 = vmatpush.bf16.msra.mxu1 %v1318_v1  ;;  %1352 = vmatpush.bf16.msra.mxu2 %v1318_v1  ;;  %v1274_v15 = vld [vmem:[%s1898_s0 + $0x10] sm:$0xf0]  ;;  %v1335_v16 = vld [vmem:[%s1897_s1 + $0xb8] sm:$0xff]  ;;  %v1083_v20 = vor.u32 %v1304_v13, %v1082_v12  ;;  %v1333_v28 = vld [vmem:[%s1897_s1 + $0xa8] sm:$0xff] }
   0x7   :  { %1353 = vmatpush.bf16.msra.mxu3 %v1318_v1  ;;  %577 = vmatpush.bf16.msra.mxu0 %v1318_v1  ;;  %v1327_v17 = vld [vmem:[%s1897_s1 + $0x78] sm:$0xff]  ;;  %v963_v21 = vor.u32 %v1274_v15, %v962_v14  ;;  %v1334_v24 = vld [vmem:[%s1897_s1 + $0xb0] sm:$0xff]  ;;  %v1325_v29 = vld [vmem:[%s1897_s1 + $0x68] sm:$0xff] }
   0x8   :  { %v1343_v22 = vld [vmem:[%s1897_s1 + $0xf8] sm:$0xff]  ;;  %v1326_v25 = vld [vmem:[%s1897_s1 + $0x70] sm:$0xff]  ;;  %v1341_v30 = vld [vmem:[%s1897_s1 + $0xe8] sm:$0xff] }
   0x9   :  { %v1347_v23 = vld [vmem:[%s1897_s1 + $0x118] sm:$0xff]  ;;  %v1342_v26 = vld [vmem:[%s1897_s1 + $0xf0] sm:$0xff]  ;;  %v1345_v31 = vld [vmem:[%s1897_s1 + $0x108] sm:$0xff] }
   0xa   :  { %1354 = vmatpush.bf16.msra.mxu1 %v1317_v2  ;;  %1355 = vmatpush.bf16.msra.mxu2 %v1317_v2  ;;  %v1346_v27 = vld [vmem:[%s1897_s1 + $0x110] sm:$0xff]  ;;  %v1332_v32 = vld [vmem:[%s1897_s1 + $0xa0] sm:$0xff]  ;;  %v1022_v35 = vld [vmem:[%s1898_s0 + $0x78] sm:$0xf] }
   0xb   :  { %1356 = vmatpush.bf16.msra.mxu3 %v1317_v2  ;;  %578 = vmatpush.bf16.msra.mxu0 %v1317_v2  ;;  %v1324_v33 = vld [vmem:[%s1897_s1 + $0x60] sm:$0xff]  ;;  %v1289_v36 = vld [vmem:[%s1898_s0 + $0x88] sm:$0xf0]  ;;  %v1062_v37 = vld [vmem:[%s1898_s0 + $0xc8] sm:$0xf] }
   0xc   :  { %v1340_v34 = vld [vmem:[%s1897_s1 + $0xe0] sm:$0xff]  ;;  %v1299_v38 = vld [vmem:[%s1898_s0 + $0xd8] sm:$0xf0]  ;;  %v1102_v39 = vld [vmem:[%s1898_s0 + $0x118] sm:$0xf]  ;;  %v1023_v46 = vor.u32 %v1289_v36, %v1022_v35 }
   0xd   :  { %v1309_v40 = vld [vmem:[%s1898_s0 + $0x128] sm:$0xf0]  ;;  %v982_v41 = vld [vmem:[%s1898_s0 + $0x28] sm:$0xf]  ;;  %v1279_v42 = vld [vmem:[%s1898_s0 + $0x38] sm:$0xf0]  ;;  %v1063_v47 = vor.u32 %v1299_v38, %v1062_v37 }
   0xe   :  { %1357 = vmatpush.bf16.msra.mxu1 %v1316_v3  ;;  %1358 = vmatpush.bf16.msra.mxu2 %v1316_v3  ;;  %v1344_v43 = vld [vmem:[%s1897_s1 + $0x100] sm:$0xff]  ;;  %v1331_v44 = vld [vmem:[%s1897_s1 + $0x98] sm:$0xff]  ;;  %v1103_v48 = vor.u32 %v1309_v40, %v1102_v39  ;;  %v983_v49 = vor.u32 %v1279_v42, %v982_v41  ;;  %v1330_v51 = vld [vmem:[%s1897_s1 + $0x90] sm:$0xff] }
   0xf   :  { %1359 = vmatpush.bf16.msra.mxu3 %v1316_v3  ;;  %579 = vmatpush.bf16.msra.mxu0 %v1316_v3  ;;  %v1323_v45 = vld [vmem:[%s1897_s1 + $0x58] sm:$0xff]  ;;  %v1322_v52 = vld [vmem:[%s1897_s1 + $0x50] sm:$0xff]  ;;  %v1329_v54 = vld [vmem:[%s1897_s1 + $0x88] sm:$0xff] }
  0x10   :  { %v1339_v50 = vld [vmem:[%s1897_s1 + $0xd8] sm:$0xff]  ;;  %v1338_v53 = vld [vmem:[%s1897_s1 + $0xd0] sm:$0xff]  ;;  %v1321_v55 = vld [vmem:[%s1897_s1 + $0x48] sm:$0xff] }
  0x11   :  { %v1337_v56 = vld [vmem:[%s1897_s1 + $0xc8] sm:$0xff]  ;;  %v1328_v57 = vld [vmem:[%s1897_s1 + $0x80] sm:$0xff]  ;;  %v964_v61 = vld [vmem:[%s1898_s0 + $0x14] sm:$0xf0] }
  0x12   :  { %1360 = vmatpush.bf16.msra.mxu1 %v1315_v4  ;;  %1361 = vmatpush.bf16.msra.mxu2 %v1315_v4  ;;  %v1320_v58 = vld [vmem:[%s1897_s1 + $0x40] sm:$0xff]  ;;  %v970_v62 = vld [vmem:[%s1898_s0 + $0x8] sm:$0xf]  ;;  %v1275_v63 = vld [vmem:[%s1898_s0 + $0x18] sm:$0xf0] }
  0x13   :  { %1362 = vmatpush.bf16.msra.mxu3 %v1315_v4  ;;  %580 = vmatpush.bf16.msra.mxu0 %v1315_v4  ;;  %v1336_v59 = vld [vmem:[%s1897_s1 + $0xc0] sm:$0xff]  ;;  %v1273_v0 = vld [vmem:[%s1898_s0 + $0xc] sm:$0xf]  ;;  %v978_v2 = vld [vmem:[%s1898_s0 + $0x10] sm:$0xf] }
  0x14   :  { %v1272_v60 = vld [vmem:[%s1898_s0 + $0x4] sm:$0xf]  ;;  %v972_v1 = vld [vmem:[%s1898_s0 + $0x1c] sm:$0xf0]  ;;  %v1277_v8 = vld [vmem:[%s1898_s0 + $0x2c] sm:$0xf] }
  0x15   :  { %v1276_v3 = vld [vmem:[%s1898_s0 + $0x20] sm:$0xf0]  ;;  %v967_v4 = vor.u32 %v1272_v60, %v964_v61  ;;  %v984_v9 = vld [vmem:[%s1898_s0 + $0x3c] sm:$0xf0]  ;;  %v990_v10 = vld [vmem:[%s1898_s0 + $0x30] sm:$0xf] }
  0x16   :  { %1363 = vmatpush.bf16.msra.mxu1 %v1314_v5  ;;  %1364 = vmatpush.bf16.msra.mxu2 %v1314_v5  ;;  %v1280_v11 = vld [vmem:[%s1898_s0 + $0x40] sm:$0xf0]  ;;  %v1278_v12 = vld [vmem:[%s1898_s0 + $0x34] sm:$0xf]  ;;  %v992_v13 = vld [vmem:[%s1898_s0 + $0x44] sm:$0xf0] }
  0x17   :  { %1365 = vmatpush.bf16.msra.mxu3 %v1314_v5  ;;  %581 = vmatpush.bf16.msra.mxu0 %v1314_v5  ;;  %v971_v5 = vor.u32 %v1275_v63, %v970_v62  ;;  %v998_v14 = vld [vmem:[%s1898_s0 + $0x38] sm:$0xf]  ;;  %v1281_v15 = vld [vmem:[%s1898_s0 + $0x48] sm:$0xf0]  ;;  %v1290_v35 = vld [vmem:[%s1898_s0 + $0x90] sm:$0xf0] }
  0x18   :  { %v1288_v36 = vld [vmem:[%s1898_s0 + $0x84] sm:$0xf]  ;;  %v1032_v37 = vld [vmem:[%s1898_s0 + $0x94] sm:$0xf0]  ;;  %v1038_v38 = vld [vmem:[%s1898_s0 + $0x88] sm:$0xf] }
  0x19   :  { %v1291_v39 = vld [vmem:[%s1898_s0 + $0x98] sm:$0xf0]  ;;  %v1035_v42 = vor.u32 %v1288_v36, %v1032_v37  ;;  %v1298_v60 = vld [vmem:[%s1898_s0 + $0xd4] sm:$0xf]  ;;  %v1072_v61 = vld [vmem:[%s1898_s0 + $0xe4] sm:$0xf0] }
  0x1a   :  { %1366 = vmatpush.bf16.msra.mxu1 %v1313_v6  ;;  %1367 = vmatpush.bf16.msra.mxu2 %v1313_v6  ;;  %v1078_v62 = vld [vmem:[%s1898_s0 + $0xd8] sm:$0xf]  ;;  %v1301_v63 = vld [vmem:[%s1898_s0 + $0xe8] sm:$0xf0] }
  0x1b   :  { %1368 = vmatpush.bf16.msra.mxu3 %v1313_v6  ;;  %582 = vmatpush.bf16.msra.mxu0 %v1313_v6  ;;  %v975_v6 = vor.u32 %v1273_v0, %v972_v1 }
  0x1e   :  { %1369 = vmatpush.bf16.msra.mxu1 %v1312_v7  ;;  %1370 = vmatpush.bf16.msra.mxu2 %v1312_v7 }
  0x1f   :  { %1371 = vmatpush.bf16.msra.mxu3 %v1312_v7  ;;  %583 = vmatpush.bf16.msra.mxu0 %v1312_v7  ;;  %v979_v7 = vor.u32 %v1276_v3, %v978_v2  ;;  %v1075_v2 = vor.u32 %v1298_v60, %v1072_v61  ;;  %v1079_v3 = vor.u32 %v1301_v63, %v1078_v62 }
  0x21   :  { %594 = vmatmul.bf16.vlgmr.msra.gmra.mxu1 %v1003_v18  ;;  %604 = vmatmul.bf16.vlgmr.msra.gmra.mxu2 %v1043_v19  ;;  %v995_v18 = vor.u32 %v1278_v12, %v992_v13  ;;  %v999_v19 = vor.u32 %v1281_v15, %v998_v14 }
  0x22   :  { %674 = vmatpush.bf16.msrb.mxu2 %v1335_v16  ;;  %625 = vmatpush.bf16.msrb.mxu1 %v1327_v17  ;;  %v987_v16 = vor.u32 %v1277_v8, %v984_v9  ;;  %v991_v17 = vor.u32 %v1280_v11, %v990_v10  ;;  %v1303_v8 = vld [vmem:[%s1898_s0 + $0xfc] sm:$0xf]  ;;  %v1092_v9 = vld [vmem:[%s1898_s0 + $0x10c] sm:$0xf0]  ;;  %v1098_v10 = vld [vmem:[%s1898_s0 + $0x100] sm:$0xf] }
  0x23   :  { %614 = vmatmul.bf16.vlgmr.msra.gmra.mxu3 %v1083_v20  ;;  %584 = vmatmul.bf16.vlgmr.msra.gmra.mxu0 %v963_v21  ;;  %v1282_v20 = vld [vmem:[%s1898_s0 + $0x54] sm:$0xf]  ;;  %v1004_v21 = vld [vmem:[%s1898_s0 + $0x64] sm:$0xf0]  ;;  %v1095_v15 = vor.u32 %v1303_v8, %v1092_v9 }
  0x24   :  { %723 = vmatpush.bf16.msrb.mxu3 %v1343_v22  ;;  %776 = vmatpush.bf16.msrb.mxu0 %v1347_v23  ;;  %v1010_v22 = vld [vmem:[%s1898_s0 + $0x58] sm:$0xf]  ;;  %v1285_v23 = vld [vmem:[%s1898_s0 + $0x68] sm:$0xf0]  ;;  %v1306_v11 = vld [vmem:[%s1898_s0 + $0x110] sm:$0xf0] }
  0x26   :  { %675 = vmatpush.bf16.msrb.mxu2 %v1334_v24  ;;  %626 = vmatpush.bf16.msrb.mxu1 %v1326_v25  ;;  %v1283_v24 = vld [vmem:[%s1898_s0 + $0x5c] sm:$0xf]  ;;  %v1012_v25 = vld [vmem:[%s1898_s0 + $0x6c] sm:$0xf0] }
  0x28   :  { %724 = vmatpush.bf16.msrb.mxu3 %v1342_v26  ;;  %777 = vmatpush.bf16.msrb.mxu0 %v1346_v27  ;;  %v1018_v26 = vld [vmem:[%s1898_s0 + $0x60] sm:$0xf]  ;;  %v1286_v27 = vld [vmem:[%s1898_s0 + $0x70] sm:$0xf0] }
  0x2a   :  { %676 = vmatpush.bf16.msrb.mxu2 %v1333_v28  ;;  %627 = vmatpush.bf16.msrb.mxu1 %v1325_v29  ;;  %v1007_v28 = vor.u32 %v1282_v20, %v1004_v21  ;;  %v1011_v29 = vor.u32 %v1285_v23, %v1010_v22  ;;  %v1307_v22 = vld [vmem:[%s1898_s0 + $0x11c] sm:$0xf]  ;;  %v1104_v23 = vld [vmem:[%s1898_s0 + $0x12c] sm:$0xf0] }
  0x2c   :  { %725 = vmatpush.bf16.msrb.mxu3 %v1341_v30  ;;  %778 = vmatpush.bf16.msrb.mxu0 %v1345_v31  ;;  %v1015_v30 = vor.u32 %v1283_v24, %v1012_v25  ;;  %v1019_v31 = vor.u32 %v1286_v27, %v1018_v26  ;;  %v1110_v24 = vld [vmem:[%s1898_s0 + $0x120] sm:$0xf]  ;;  %v1310_v25 = vld [vmem:[%s1898_s0 + $0x130] sm:$0xf0]  ;;  %v1308_v26 = vld [vmem:[%s1898_s0 + $0x124] sm:$0xf] }
  0x2d   :  { %v1112_v27 = vld [vmem:[%s1898_s0 + $0x134] sm:$0xf0] }
  0x2e   :  { %677 = vmatpush.bf16.msrb.mxu2 %v1332_v32  ;;  %628 = vmatpush.bf16.msrb.mxu1 %v1324_v33  ;;  %v1287_v32 = vld [vmem:[%s1898_s0 + $0x7c] sm:$0xf]  ;;  %v1024_v33 = vld [vmem:[%s1898_s0 + $0x8c] sm:$0xf0] }
  0x2f   :  { %v1027_v40 = vor.u32 %v1287_v32, %v1024_v33  ;;  %v1107_v32 = vor.u32 %v1307_v22, %v1104_v23  ;;  %v1111_v33 = vor.u32 %v1310_v25, %v1110_v24 }
  0x30   :  { %726 = vmatpush.bf16.msrb.mxu3 %v1340_v34  ;;  %779 = vmatpush.bf16.msrb.mxu0 %v1344_v43  ;;  %v1030_v34 = vld [vmem:[%s1898_s0 + $0x80] sm:$0xf]  ;;  %v1039_v43 = vor.u32 %v1291_v39, %v1038_v38 }
  0x31   :  { %599 = vmatmul.bf16.gmra.mxu1 %v1023_v46  ;;  %609 = vmatmul.bf16.gmra.mxu2 %v1063_v47  ;;  %v1031_v41 = vor.u32 %v1290_v35, %v1030_v34  ;;  %v1050_v46 = vld [vmem:[%s1898_s0 + $0xa8] sm:$0xf]  ;;  %v1295_v47 = vld [vmem:[%s1898_s0 + $0xb8] sm:$0xf0]  ;;  %v1115_v35 = vor.u32 %v1308_v26, %v1112_v27 }
  0x32   :  { %678 = vmatpush.bf16.msrb.mxu2 %v1331_v44  ;;  %629 = vmatpush.bf16.msrb.mxu1 %v1323_v45  ;;  %v1292_v44 = vld [vmem:[%s1898_s0 + $0xa4] sm:$0xf]  ;;  %v1044_v45 = vld [vmem:[%s1898_s0 + $0xb4] sm:$0xf0] }
  0x33   :  { %619 = vmatmul.bf16.gmra.mxu3 %v1103_v48  ;;  %589 = vmatmul.bf16.gmra.mxu0 %v983_v49  ;;  %v1293_v48 = vld [vmem:[%s1898_s0 + $0xac] sm:$0xf]  ;;  %v1052_v49 = vld [vmem:[%s1898_s0 + $0xbc] sm:$0xf0] }
  0x34   :  { %727 = vmatpush.bf16.msrb.mxu3 %v1339_v50  ;;  %v1058_v50 = vld [vmem:[%s1898_s0 + $0xb0] sm:$0xf] }
  0x36   :  { %679 = vmatpush.bf16.msrb.mxu2 %v1330_v51  ;;  %630 = vmatpush.bf16.msrb.mxu1 %v1322_v52  ;;  %v1296_v51 = vld [vmem:[%s1898_s0 + $0xc0] sm:$0xf0]  ;;  %v1047_v52 = vor.u32 %v1292_v44, %v1044_v45 }
  0x38   :  { %728 = vmatpush.bf16.msrb.mxu3 %v1338_v53  ;;  %v1051_v53 = vor.u32 %v1295_v47, %v1050_v46 }
  0x3a   :  { %680 = vmatpush.bf16.msrb.mxu2 %v1329_v54  ;;  %631 = vmatpush.bf16.msrb.mxu1 %v1321_v55  ;;  %v1055_v54 = vor.u32 %v1293_v48, %v1052_v49  ;;  %v1059_v55 = vor.u32 %v1296_v51, %v1058_v50 }
  0x3c   :  { %729 = vmatpush.bf16.msrb.mxu3 %v1337_v56  ;;  %v1297_v56 = vld [vmem:[%s1898_s0 + $0xcc] sm:$0xf] }
  0x3e   :  { %681 = vmatpush.bf16.msrb.mxu2 %v1328_v57  ;;  %632 = vmatpush.bf16.msrb.mxu1 %v1320_v58  ;;  %v1064_v57 = vld [vmem:[%s1898_s0 + $0xdc] sm:$0xf0]  ;;  %v1070_v58 = vld [vmem:[%s1898_s0 + $0xd0] sm:$0xf] }
  0x3f   :  { %v1067_v0 = vor.u32 %v1297_v56, %v1064_v57 }
  0x40   :  { %730 = vmatpush.bf16.msrb.mxu3 %v1336_v59  ;;  %v1300_v59 = vld [vmem:[%s1898_s0 + $0xe0] sm:$0xf0] }
  0x41   :  { %633 = vmatmul.bf16.vlgmr.msrb.gmra.mxu1 %v967_v4  ;;  %682 = vmatmul.bf16.vlgmr.msrb.gmra.mxu2 %v971_v5  ;;  %v1071_v1 = vor.u32 %v1300_v59, %v1070_v58  ;;  %v1302_v4 = vld [vmem:[%s1898_s0 + $0xf4] sm:$0xf]  ;;  %v1084_v5 = vld [vmem:[%s1898_s0 + $0x104] sm:$0xf0] }
  0x42   :  { %v1087_v12 = vor.u32 %v1302_v4, %v1084_v5 }
  0x43   :  { %731 = vmatmul.bf16.vlgmr.msrb.gmra.mxu3 %v975_v6  ;;  %1264 = vmatmul.msk.bf16.vlgmr.msrb.gmra.mxu0 %vm551_vm0, %v979_v7  ;;  %v1090_v6 = vld [vmem:[%s1898_s0 + $0xf8] sm:$0xf]  ;;  %v1305_v7 = vld [vmem:[%s1898_s0 + $0x108] sm:$0xf0] }
  0x44   :  { %v1091_v13 = vor.u32 %v1305_v7, %v1090_v6 }
  0x51   :  { %638 = vmatmul.bf16.gmra.mxu1 %v987_v16  ;;  %687 = vmatmul.bf16.gmra.mxu2 %v991_v17  ;;  %v1099_v16 = vor.u32 %v1306_v11, %v1098_v10 }
  0x53   :  { %736 = vmatmul.bf16.gmra.mxu3 %v995_v18  ;;  %1265 = vmatmul.msk.bf16.gmra.mxu0 %vm551_vm0, %v999_v19 }
  0x61   :  { %643 = vmatmul.bf16.gmra.mxu1 %v1007_v28  ;;  %692 = vmatmul.bf16.gmra.mxu2 %v1011_v29  ;;  %v1118_v28 = vld [vmem:[%s1898_s0 + $0x128] sm:$0xf]  ;;  %v1311_v29 = vld [vmem:[%s1898_s0 + $0x138] sm:$0xf0] }
  0x62   :  { %v1119_v36 = vor.u32 %v1311_v29, %v1118_v28 }
  0x63   :  { %741 = vmatmul.bf16.gmra.mxu3 %v1015_v30  ;;  %1266 = vmatmul.msk.bf16.gmra.mxu0 %vm551_vm0, %v1019_v31 }
  0x71   :  { %648 = vmatmul.bf16.gmra.mxu1 %v1027_v40  ;;  %697 = vmatmul.bf16.gmra.mxu2 %v1031_v41 }
  0x73   :  { %746 = vmatmul.bf16.gmra.mxu3 %v1035_v42  ;;  %1267 = vmatmul.msk.bf16.gmra.mxu0 %vm551_vm0, %v1039_v43 }
  0x81   :  { %653 = vmatmul.bf16.gmra.mxu1 %v1047_v52  ;;  %702 = vmatmul.bf16.gmra.mxu2 %v1051_v53 }
  0x83   :  { %751 = vmatmul.bf16.gmra.mxu3 %v1055_v54  ;;  %1268 = vmatmul.msk.bf16.gmra.mxu0 %vm551_vm0, %v1059_v55 }
  0x91   :  { %658 = vmatmul.bf16.gmra.mxu1 %v1067_v0  ;;  %707 = vmatmul.bf16.gmra.mxu2 %v1071_v1 }
  0x93   :  { %756 = vmatmul.bf16.gmra.mxu3 %v1075_v2  ;;  %1269 = vmatmul.msk.bf16.gmra.mxu0 %vm551_vm0, %v1079_v3 }
  0x9e   :  { %v1727_v14 = vpop.f32.mrf.mxu1 }
  0xa0   :  { %v585_v17 = vpop.f32.mrf.mxu0 }
  0xa1   :  { %663 = vmatmul.bf16.gmra.mxu1 %v1087_v12  ;;  %712 = vmatmul.bf16.gmra.mxu2 %v1091_v13 }
  0xa3   :  { %761 = vmatmul.bf16.gmra.mxu3 %v1095_v15  ;;  %1270 = vmatmul.msk.bf16.gmra.mxu0 %vm551_vm0, %v1099_v16 }
  0xa4   :  { %v1730_v18 = vpop.f32.mrf.mxu2 }
  0xa6   :  { %v1732_v19 = vpop.f32.mrf.mxu3  ;;  %v1734_v20 = vpop.f32.mrf.mxu1 }
  0xa8   :  { %v587_v21 = vpop.f32.mrf.mxu0 }
  0xac   :  { %v1760_v30 = vpop.f32.mrf.mxu2 }
  0xae   :  { %v1762_v31 = vpop.f32.mrf.mxu3  ;;  %v1764_v34 = vpop.f32.mrf.mxu1 }
  0xb0   :  { %v590_v37 = vpop.f32.mrf.mxu0 }
  0xb1   :  { %668 = vmatmul.bf16.gmra.mxu1 %v1107_v32  ;;  %717 = vmatmul.bf16.gmra.mxu2 %v1111_v33 }
  0xb3   :  { %766 = vmatmul.bf16.gmra.mxu3 %v1115_v35  ;;  %1271 = vmatmul.msk.bf16.gmra.mxu0 %vm551_vm0, %v1119_v36 }
  0xb4   :  { %v1767_v38 = vpop.f32.mrf.mxu2 }
  0xb6   :  { %v1769_v39 = vpop.f32.mrf.mxu3  ;;  %v1771_v40 = vpop.f32.mrf.mxu1 }
  0xb8   :  { %v592_v41 = vpop.f32.mrf.mxu0 }
  0xbc   :  { %v1773_v42 = vpop.f32.mrf.mxu2 }
  0xbe   :  { %v1775_v43 = vpop.f32.mrf.mxu3  ;;  %v634_v44 = vpop.f32.mrf.mxu1 }
  0xbf   :  { %v635_v46 = vadd.f32 %v634_v44, %v585_v17 }
  0xc0   :  { %v781_v45 = vpop.f32.mrf.mxu0 }
  0xc4   :  { %v683_v47 = vpop.f32.mrf.mxu2 }
  0xc5   :  { %v684_v48 = vadd.f32 %v683_v47, %v635_v46 }
  0xc6   :  { %v732_v49 = vpop.f32.mrf.mxu3  ;;  %v636_v50 = vpop.f32.mrf.mxu1 }
  0xc7   :  { %v733_v51 = vadd.f32 %v732_v49, %v684_v48  ;;  %v637_v55 = vadd.f32 %v636_v50, %v587_v21 }
  0xc8   :  { %v783_v52 = vpop.f32.mrf.mxu0 }
  0xc9   :  { %v782_v53 = vadd.f32 %v781_v45, %v733_v51 }
  0xcb   :  { %v821_v54 = vpack.c.bf16 %v782_v53, %v782_v53  ;;  %v894_v62 = vmul.f32 %v782_v53, %v782_v53  ;;  %v855_v0 = vsel %vm854_vm2, %v782_v53, 0.0 }
  0xcc   :  { %v685_v56 = vpop.f32.mrf.mxu2 }
  0xcd   :  { %838 = vst.msk [vmem:[%s1899_s2] sm:$0xf] %vm837_vm1, %v821_v54  ;;  %v686_v57 = vadd.f32 %v685_v56, %v637_v55  ;;  %v910_v7 = vsel %vm854_vm2, %v894_v62, 0.0 }
  0xce   :  { %v734_v58 = vpop.f32.mrf.mxu3  ;;  %v639_v59 = vpop.f32.mrf.mxu1 }
  0xcf   :  { %v735_v60 = vadd.f32 %v734_v58, %v686_v57  ;;  %v640_v4 = vadd.f32 %v639_v59, %v590_v37 }
  0xd0   :  { %v786_v61 = vpop.f32.mrf.mxu0 }
  0xd1   :  { %v784_v63 = vadd.f32 %v783_v52, %v735_v60 }
  0xd3   :  { %v822_v1 = vpack.c.bf16 %v784_v63, %v784_v63  ;;  %v856_v2 = vsel %vm854_vm2, %v784_v63, 0.0  ;;  %v895_v3 = vmul.f32 %v784_v63, %v784_v63 }
  0xd4   :  { %v857_v5 = vadd.f32 %v856_v2, %v855_v0  ;;  %v688_v6 = vpop.f32.mrf.mxu2 }
  0xd5   :  { %839 = vst.msk [vmem:[%s1899_s2 + $0x4] sm:$0xf] %vm837_vm1, %v822_v1  ;;  %v911_v8 = vsel %vm854_vm2, %v895_v3, 0.0  ;;  %v689_v9 = vadd.f32 %v688_v6, %v640_v4 }
  0xd6   :  { %v737_v10 = vpop.f32.mrf.mxu3  ;;  %v912_v11 = vadd.f32 %v911_v8, %v910_v7  ;;  %v641_v12 = vpop.f32.mrf.mxu1 }
  0xd7   :  { %v738_v13 = vadd.f32 %v737_v10, %v689_v9  ;;  %v642_v23 = vadd.f32 %v641_v12, %v592_v41 }
  0xd8   :  { %v788_v15 = vpop.f32.mrf.mxu0 }
  0xd9   :  { %v787_v16 = vadd.f32 %v786_v61, %v738_v13 }
  0xdb   :  { %v823_v17 = vpack.c.bf16 %v787_v16, %v787_v16  ;;  %v858_v21 = vsel %vm854_vm2, %v787_v16, 0.0  ;;  %v896_v22 = vmul.f32 %v787_v16, %v787_v16 }
  0xdc   :  { %v859_v24 = vadd.f32 %v858_v21, %v857_v5  ;;  %v690_v25 = vpop.f32.mrf.mxu2 }
  0xdd   :  { %840 = vst.msk [vmem:[%s1899_s2 + $0x8] sm:$0xf] %vm837_vm1, %v823_v17  ;;  %v913_v26 = vsel %vm854_vm2, %v896_v22, 0.0  ;;  %v691_v27 = vadd.f32 %v690_v25, %v642_v23 }
  0xde   :  { %v739_v28 = vpop.f32.mrf.mxu3  ;;  %v914_v29 = vadd.f32 %v913_v26, %v912_v11  ;;  %v644_v32 = vpop.f32.mrf.mxu1 }
  0xdf   :  { %v740_v33 = vadd.f32 %v739_v28, %v691_v27  ;;  %v645_v45 = vadd.f32 %v644_v32, %v1727_v14 }
  0xe0   :  { %v791_v35 = vpop.f32.mrf.mxu0 }
  0xe1   :  { %v789_v36 = vadd.f32 %v788_v15, %v740_v33 }
  0xe3   :  { %v824_v37 = vpack.c.bf16 %v789_v36, %v789_v36  ;;  %v860_v44 = vsel %vm854_vm2, %v789_v36, 0.0  ;;  %v897_v41 = vmul.f32 %v789_v36, %v789_v36 }
  0xe4   :  { %v861_v46 = vadd.f32 %v860_v44, %v859_v24  ;;  %v693_v47 = vpop.f32.mrf.mxu2 }
  0xe5   :  { %841 = vst.msk [vmem:[%s1899_s2 + $0xc] sm:$0xf] %vm837_vm1, %v824_v37  ;;  %v915_v48 = vsel %vm854_vm2, %v897_v41, 0.0  ;;  %v694_v49 = vadd.f32 %v693_v47, %v645_v45 }
  0xe6   :  { %v742_v50 = vpop.f32.mrf.mxu3  ;;  %v916_v51 = vadd.f32 %v915_v48, %v914_v29  ;;  %v646_v52 = vpop.f32.mrf.mxu1 }
  0xe7   :  { %v743_v53 = vadd.f32 %v742_v50, %v694_v49  ;;  %v647_v58 = vadd.f32 %v646_v52, %v1734_v20 }
  0xe8   :  { %v793_v54 = vpop.f32.mrf.mxu0 }
  0xe9   :  { %v792_v55 = vadd.f32 %v791_v35, %v743_v53 }
  0xeb   :  { %v825_v56 = vpack.c.bf16 %v792_v55, %v792_v55  ;;  %v862_v57 = vsel %vm854_vm2, %v792_v55, 0.0  ;;  %v898_v14 = vmul.f32 %v792_v55, %v792_v55 }
  0xec   :  { %v863_v59 = vadd.f32 %v862_v57, %v861_v46  ;;  %v695_v60 = vpop.f32.mrf.mxu2 }
  0xed   :  { %842 = vst.msk [vmem:[%s1899_s2 + $0x10] sm:$0xf] %vm837_vm1, %v825_v56  ;;  %v917_v61 = vsel %vm854_vm2, %v898_v14, 0.0  ;;  %v696_v62 = vadd.f32 %v695_v60, %v647_v58 }
  0xee   :  { %v744_v63 = vpop.f32.mrf.mxu3  ;;  %v918_v0 = vadd.f32 %v917_v61, %v916_v51  ;;  %v649_v1 = vpop.f32.mrf.mxu1 }
  0xef   :  { %v745_v2 = vadd.f32 %v744_v63, %v696_v62  ;;  %v650_v7 = vadd.f32 %v649_v1, %v1764_v34 }
  0xf0   :  { %v796_v3 = vpop.f32.mrf.mxu0 }
  0xf1   :  { %v794_v4 = vadd.f32 %v793_v54, %v745_v2 }
  0xf3   :  { %v826_v5 = vpack.c.bf16 %v794_v4, %v794_v4  ;;  %v864_v6 = vsel %vm854_vm2, %v794_v4, 0.0  ;;  %v899_v20 = vmul.f32 %v794_v4, %v794_v4 }
  0xf4   :  { %v865_v8 = vadd.f32 %v864_v6, %v863_v59  ;;  %v698_v9 = vpop.f32.mrf.mxu2 }
  0xf5   :  { %843 = vst.msk [vmem:[%s1899_s2 + $0x14] sm:$0xf] %vm837_vm1, %v826_v5  ;;  %v919_v10 = vsel %vm854_vm2, %v899_v20, 0.0  ;;  %v699_v11 = vadd.f32 %v698_v9, %v650_v7 }
  0xf6   :  { %v747_v12 = vpop.f32.mrf.mxu3  ;;  %v920_v13 = vadd.f32 %v919_v10, %v918_v0  ;;  %v651_v15 = vpop.f32.mrf.mxu1 }
  0xf7   :  { %v748_v16 = vadd.f32 %v747_v12, %v699_v11  ;;  %v652_v24 = vadd.f32 %v651_v15, %v1771_v40 }
  0xf8   :  { %v798_v17 = vpop.f32.mrf.mxu0 }
  0xf9   :  { %v797_v21 = vadd.f32 %v796_v3, %v748_v16 }
  0xfb   :  { %v827_v22 = vpack.c.bf16 %v797_v21, %v797_v21  ;;  %v866_v23 = vsel %vm854_vm2, %v797_v21, 0.0  ;;  %v900_v34 = vmul.f32 %v797_v21, %v797_v21 }
  0xfc   :  { %v867_v25 = vadd.f32 %v866_v23, %v865_v8  ;;  %v700_v26 = vpop.f32.mrf.mxu2 }
  0xfd   :  { %844 = vst.msk [vmem:[%s1899_s2 + $0x18] sm:$0xf] %vm837_vm1, %v827_v22  ;;  %v921_v27 = vsel %vm854_vm2, %v900_v34, 0.0  ;;  %v701_v28 = vadd.f32 %v700_v26, %v652_v24 }
  0xfe   :  { %v749_v29 = vpop.f32.mrf.mxu3  ;;  %v922_v32 = vadd.f32 %v921_v27, %v920_v13  ;;  %v654_v33 = vpop.f32.mrf.mxu1 }
  0xff   :  { %v750_v35 = vadd.f32 %v749_v29, %v701_v28  ;;  %v655_v45 = vadd.f32 %v654_v33, %v1730_v18 }
 0x100   :  { %v801_v36 = vpop.f32.mrf.mxu0 }
 0x101   :  { %v799_v37 = vadd.f32 %v798_v17, %v750_v35 }
 0x103   :  { %v828_v44 = vpack.c.bf16 %v799_v37, %v799_v37  ;;  %v868_v41 = vsel %vm854_vm2, %v799_v37, 0.0  ;;  %v901_v40 = vmul.f32 %v799_v37, %v799_v37 }
 0x104   :  { %v1825_v46 = vadd.f32 %v868_v41, %v867_v25  ;;  %v703_v47 = vpop.f32.mrf.mxu2 }
 0x105   :  { %845 = vst.msk [vmem:[%s1899_s2 + $0x1c] sm:$0xf] %vm837_vm1, %v828_v44  ;;  %v923_v48 = vsel %vm854_vm2, %v901_v40, 0.0  ;;  %v704_v49 = vadd.f32 %v703_v47, %v655_v45 }
 0x106   :  { %v752_v50 = vpop.f32.mrf.mxu3  ;;  %v1832_v51 = vadd.f32 %v923_v48, %v922_v32  ;;  %v656_v52 = vpop.f32.mrf.mxu1 }
 0x107   :  { %v753_v53 = vadd.f32 %v752_v50, %v704_v49  ;;  %v657_v18 = vadd.f32 %v656_v52, %v1760_v30 }
 0x108   :  { %v803_v54 = vpop.f32.mrf.mxu0 }
 0x109   :  { %v802_v55 = vadd.f32 %v801_v36, %v753_v53 }
 0x10b   :  { %v829_v56 = vpack.c.bf16 %v802_v55, %v802_v55  ;;  %v902_v33 = vmul.f32 %v802_v55, %v802_v55  ;;  %v870_v36 = vsel %vm854_vm2, %v802_v55, 0.0 }
 0x10c   :  { %v705_v57 = vpop.f32.mrf.mxu2  ;;  %v871_v50 = vadd.f32 %v870_v36, %v1825_v46 }
 0x10d   :  { %846 = vst.msk [vmem:[%s1899_s2 + $0x20] sm:$0xf] %vm837_vm1, %v829_v56  ;;  %v706_v14 = vadd.f32 %v705_v57, %v657_v18  ;;  %v925_v40 = vsel %vm854_vm2, %v902_v33, 0.0 }
 0x10e   :  { %v754_v58 = vpop.f32.mrf.mxu3  ;;  %v659_v59 = vpop.f32.mrf.mxu1  ;;  %v926_v56 = vadd.f32 %v925_v40, %v1832_v51 }
 0x10f   :  { %v755_v60 = vadd.f32 %v754_v58, %v706_v14  ;;  %v660_v0 = vadd.f32 %v659_v59, %v1767_v38 }
 0x110   :  { %v806_v61 = vpop.f32.mrf.mxu0 }
 0x111   :  { %v804_v62 = vadd.f32 %v803_v54, %v755_v60 }
 0x113   :  { %v830_v63 = vpack.c.bf16 %v804_v62, %v804_v62  ;;  %v903_v37 = vmul.f32 %v804_v62, %v804_v62  ;;  %v872_v45 = vsel %vm854_vm2, %v804_v62, 0.0 }
 0x114   :  { %v708_v1 = vpop.f32.mrf.mxu2  ;;  %v873_v18 = vadd.f32 %v872_v45, %v871_v50 }
 0x115   :  { %847 = vst.msk [vmem:[%s1899_s2 + $0x24] sm:$0xf] %vm837_vm1, %v830_v63  ;;  %v709_v30 = vadd.f32 %v708_v1, %v660_v0  ;;  %v927_v54 = vsel %vm854_vm2, %v903_v37, 0.0 }
 0x116   :  { %v757_v2 = vpop.f32.mrf.mxu3  ;;  %v661_v3 = vpop.f32.mrf.mxu1 }
 0x117   :  { %v758_v4 = vadd.f32 %v757_v2, %v709_v30  ;;  %v662_v7 = vadd.f32 %v661_v3, %v1773_v42 }
 0x118   :  { %v808_v5 = vpop.f32.mrf.mxu0 }
 0x119   :  { %v807_v6 = vadd.f32 %v806_v61, %v758_v4  ;;  %v928_v61 = vadd.f32 %v927_v54, %v926_v56 }
 0x11b   :  { %v831_v20 = vpack.c.bf16 %v807_v6, %v807_v6  ;;  %v904_v47 = vmul.f32 %v807_v6, %v807_v6 }
 0x11c   :  { %v710_v8 = vpop.f32.mrf.mxu2 }
 0x11d   :  { %848 = vst.msk [vmem:[%s1899_s2 + $0x28] sm:$0xf] %vm837_vm1, %v831_v20  ;;  %v711_v38 = vadd.f32 %v710_v8, %v662_v7  ;;  %v929_v14 = vsel %vm854_vm2, %v904_v47, 0.0 }
 0x11e   :  { %v759_v9 = vpop.f32.mrf.mxu3  ;;  %v664_v10 = vpop.f32.mrf.mxu1  ;;  %v930_v2 = vadd.f32 %v929_v14, %v928_v61 }
 0x11f   :  { %v760_v11 = vadd.f32 %v759_v9, %v711_v38  ;;  %v665_v16 = vadd.f32 %v664_v10, %v1732_v19 }
 0x120   :  { %v811_v13 = vpop.f32.mrf.mxu0 }
 0x121   :  { %v809_v12 = vadd.f32 %v808_v5, %v760_v11 }
 0x123   :  { %v832_v15 = vpack.c.bf16 %v809_v12, %v809_v12  ;;  %v905_v52 = vmul.f32 %v809_v12, %v809_v12  ;;  %v876_v58 = vsel %vm854_vm2, %v809_v12, 0.0 }
 0x124   :  { %v713_v17 = vpop.f32.mrf.mxu2 }
 0x125   :  { %849 = vst.msk [vmem:[%s1899_s2 + $0x2c] sm:$0xf] %vm837_vm1, %v832_v15  ;;  %v714_v42 = vadd.f32 %v713_v17, %v665_v16  ;;  %v931_v46 = vsel %vm854_vm2, %v905_v52, 0.0 }
 0x126   :  { %v762_v21 = vpop.f32.mrf.mxu3  ;;  %v666_v22 = vpop.f32.mrf.mxu1  ;;  %v932_v7 = vadd.f32 %v931_v46, %v930_v2 }
 0x127   :  { %v763_v23 = vadd.f32 %v762_v21, %v714_v42  ;;  %v667_v25 = vadd.f32 %v666_v22, %v1762_v31 }
 0x128   :  { %v813_v26 = vpop.f32.mrf.mxu0 }
 0x129   :  { %v812_v34 = vadd.f32 %v811_v13, %v763_v23 }
 0x12b   :  { %v833_v24 = vpack.c.bf16 %v812_v34, %v812_v34  ;;  %v906_v59 = vmul.f32 %v812_v34, %v812_v34  ;;  %v878_v63 = vsel %vm854_vm2, %v812_v34, 0.0 }
 0x12c   :  { %v715_v27 = vpop.f32.mrf.mxu2 }
 0x12d   :  { %850 = vst.msk [vmem:[%s1899_s2 + $0x30] sm:$0xf] %vm837_vm1, %v833_v24  ;;  %v716_v19 = vadd.f32 %v715_v27, %v667_v25  ;;  %v933_v4 = vsel %vm854_vm2, %v906_v59, 0.0 }
 0x12e   :  { %v764_v28 = vpop.f32.mrf.mxu3  ;;  %v669_v29 = vpop.f32.mrf.mxu1  ;;  %v934_v11 = vadd.f32 %v933_v4, %v932_v7 }
 0x12f   :  { %v765_v32 = vadd.f32 %v764_v28, %v716_v19  ;;  %v670_v41 = vadd.f32 %v669_v29, %v1769_v39  ;;  %v874_v39 = vsel %vm854_vm2, %v807_v6, 0.0 }
 0x130   :  { %v816_v53 = vpop.f32.mrf.mxu0  ;;  %v875_v62 = vadd.f32 %v874_v39, %v873_v18 }
 0x131   :  { %v814_v35 = vadd.f32 %v813_v26, %v765_v32 }
 0x132   :  { %v877_v51 = vadd.f32 %v876_v58, %v875_v62 }
 0x133   :  { %v834_v44 = vpack.c.bf16 %v814_v35, %v814_v35  ;;  %v907_v0 = vmul.f32 %v814_v35, %v814_v35  ;;  %v880_v5 = vsel %vm854_vm2, %v814_v35, 0.0 }
 0x134   :  { %v718_v31 = vpop.f32.mrf.mxu2  ;;  %v879_v8 = vadd.f32 %v878_v63, %v877_v51 }
 0x135   :  { %851 = vst.msk [vmem:[%s1899_s2 + $0x34] sm:$0xf] %vm837_vm1, %v834_v44  ;;  %v719_v48 = vadd.f32 %v718_v31, %v670_v41  ;;  %v935_v9 = vsel %vm854_vm2, %v907_v0, 0.0 }
 0x136   :  { %v767_v49 = vpop.f32.mrf.mxu3  ;;  %v671_v57 = vpop.f32.mrf.mxu1  ;;  %v881_v12 = vadd.f32 %v880_v5, %v879_v8  ;;  %v936_v17 = vadd.f32 %v935_v9, %v934_v11 }
 0x137   :  { %v768_v55 = vadd.f32 %v767_v49, %v719_v48  ;;  %v672_v30 = vadd.f32 %v671_v57, %v1775_v43 }
 0x138   :  { %v818_v13 = vpop.f32.mrf.mxu0 }
 0x139   :  { %v817_v60 = vadd.f32 %v816_v53, %v768_v55 }
 0x13b   :  { %v835_v1 = vpack.c.bf16 %v817_v60, %v817_v60  ;;  %v908_v6 = vmul.f32 %v817_v60, %v817_v60  ;;  %v882_v43 = vsel %vm854_vm2, %v817_v60, 0.0 }
 0x13c   :  { %v720_v3 = vpop.f32.mrf.mxu2  ;;  %v883_v42 = vadd.f32 %v882_v43, %v881_v12 }
 0x13d   :  { %852 = vst.msk [vmem:[%s1899_s2 + $0x38] sm:$0xf] %vm837_vm1, %v835_v1  ;;  %v721_v20 = vadd.f32 %v720_v3, %v672_v30  ;;  %v937_v15 = vsel %vm854_vm2, %v908_v6, 0.0 }
 0x13e   :  { %v769_v38 = vpop.f32.mrf.mxu3  ;;  %v938_v34 = vadd.f32 %v937_v15, %v936_v17 }
 0x13f   :  { %v770_v10 = vadd.f32 %v769_v38, %v721_v20 }
 0x141   :  { %v819_v16 = vadd.f32 %v818_v13, %v770_v10 }
 0x143   :  { %v836_v21 = vpack.c.bf16 %v819_v16, %v819_v16  ;;  %v884_v22 = vsel %vm854_vm2, %v819_v16, 0.0  ;;  %v909_v23 = vmul.f32 %v819_v16, %v819_v16 }
 0x144   :  { %v885_v24 = vadd.f32 %v884_v22, %v883_v42 }
 0x145   :  { %853 = vst.msk [vmem:[%s1899_s2 + $0x3c] sm:$0xf] %vm837_vm1, %v836_v21  ;;  %v939_v25 = vsel %vm854_vm2, %v909_v23, 0.0 }
 0x146   :  { %v886_v26 = vrot.slane %v885_v24, 4  ;;  %v940_v27 = vadd.f32 %v939_v25, %v938_v34 }
 0x148   :  { %v887_v19 = vadd.f32 %v886_v26, %v885_v24  ;;  %v941_v28 = vrot.slane %v940_v27, 4 }
 0x14a   :  { %v888_v29 = vrot.slane %v887_v19, 2  ;;  %v942_v32 = vadd.f32 %v941_v28, %v940_v27 }
 0x14c   :  { %v889_v33 = vadd.f32 %v888_v29, %v887_v19  ;;  %v943_v35 = vrot.slane %v942_v32, 2 }
 0x14e   :  { %v890_v36 = vrot.slane %v889_v33, 1  ;;  %v944_v37 = vadd.f32 %v943_v35, %v942_v32 }
 0x150   :  { %v891_v44 = vadd.f32 %v890_v36, %v889_v33  ;;  %v945_v41 = vrot.slane %v944_v37, 1 }
 0x152   :  { %893 = vst.msk [vmem:[%s1900_s3] sm:$0x1] %vm892_vm3, %v891_v44  ;;  %v946_v31 = vadd.f32 %v945_v41, %v944_v37 }
 0x154   :  { %947 = vst.msk [vmem:[%s1901_s4] sm:$0x1] %vm892_vm3, %v946_v31 }

// kernel: unet_reg_forward.41
= control target key start
LH: loop header
LB: loop body
LE: loop exit
PB: predicated region body
PF: predicated region fallthrough
CT: control target
= control target key end

     0   :  { %s1748_s15 = smov 0   ;;  %s2184_s0 = inlined_call_operand.vmem [shape: bf16[512,288], index: 0, kind: input, shape index: {}]   ;;  %s2185_s1 = inlined_call_operand.vmem [shape: bf16[288,16], index: 1, kind: input, shape index: {}]   ;;  %s2186_s2 = inlined_call_operand.vmem [shape: bf16[512,16], index: 2, kind: output, shape index: {0}]   ;;  %s2187_s3 = inlined_call_operand.vmem [shape: f32[2,1,16], index: 3, kind: output, shape index: {1}]   ;;  %s2188_s4 = inlined_call_operand.vmem [shape: f32[2,1,16], index: 4, kind: output, shape index: {2}]  }
   0x1 LB: > { %s1754_s16 = sadd.s32 4294967295, %s1721_s15   ;;  %p1335_p0 = scmp.ge.s32.totalorder %s1721_s15, 1  ;;  %s1721_s15 = sphi %s1748_s15, %s15_s15  }
   0x2   : > { %p169_p1 = scmp.lt.s32.totalorder %s1721_s15, 3 }
   0x4   : > { %p170_p2 = pnand %p1335_p0, %p169_p1 }
   0x5   : > { %s1336_s23 = sshll.u32 (!%p170_p2), %s1754_s16, 5  ;;  %p215_p4 = scmp.lt.s32.totalorder (!%p170_p2), %s1754_s16, 1 }
   0x6   : > { %173 = sbr.rel (%p170_p2) target bundleno = 397 (0x18d), region = 28  ;;  %p203_p3 = scmp.lt.s32.totalorder (!%p170_p2), %s1336_s23, 63 }
   0xb   : > { %v1677_v0 = vld [vmem:[%s2185_s1 + $0x38] sm:$0xff]  ;;  %v1769_v2 = vld [vmem:[%s2185_s1 + $0x88] sm:$0xff]  ;;  %v1676_v3 = vld [vmem:[%s2185_s1 + $0x30] sm:$0xff]  ;;  %s2190_s23 = smov (!%p203_p3, %s1336_s23), 63  ;;  %vm670_vm0 = vcmask 261120   ;;  %vm1018_vm1 = vcmask 125952  }
   0xc   : > { %v1764_v1 = vld [vmem:[%s2185_s1 + $0x78] sm:$0xff]  ;;  %719 = vmatpush.bf16.msra.mxu0 %v1677_v0  ;;  %1688 = vmatpush.bf16.msra.mxu3 %v1677_v0  ;;  %v1684_v4 = vld [vmem:[%s2185_s1 + $0x70] sm:$0xff]  ;;  %v1783_v5 = vld [vmem:[%s2185_s1 + $0x80] sm:$0xff]  ;;  %s1706_s30 = smul.u32 12, %s2190_s23  ;;  %s1339_s9 = sshll.u32 %s2190_s23, 2  ;;  %vm1051_vm2 = vcmask 130048  }
   0xd   : > { %808 = vmatpush.bf16.msra.mxu1 %v1764_v1  ;;  %903 = vmatpush.bf16.msra.mxu2 %v1769_v2  ;;  %v1675_v6 = vld [vmem:[%s2185_s1 + $0x28] sm:$0xff]  ;;  %v1674_v11 = vld [vmem:[%s2185_s1 + $0x20] sm:$0xff]  ;;  %v1673_v13 = vld [vmem:[%s2185_s1 + $0x18] sm:$0xff]  ;;  %s1922_s13 = scalar_lea.vmem %s2186_s2, %s1339_s9  ;;  %s2192_s16 = smov (!%p215_p4, %s1754_s16), 1  ;;  %vm1121_vm3 = vcmask 122880  }
   0xe   : > { %v1683_v7 = vld [vmem:[%s2185_s1 + $0x68] sm:$0xff]  ;;  %s1798_s11 = scalar_lea.vmem %s2184_s0, %s1706_s30  ;;  %v1682_v12 = vld [vmem:[%s2185_s1 + $0x60] sm:$0xff]  ;;  %v1681_v14 = vld [vmem:[%s2185_s1 + $0x58] sm:$0xff]  ;;  %s217_s14 = scalar_lea.vmem %s2187_s3, %s2192_s16 }
   0xf   : > { %v1350_v8 = vld [vmem:[%s1798_s11 + $0x8] sm:$0xf]  ;;  %v1624_v9 = vld [vmem:[%s1798_s11 + $0x10] sm:$0xf0]  ;;  %v1362_v17 = vld [vmem:[%s1798_s11 + $0x20] sm:$0xf]  ;;  %s220_s19 = scalar_lea.vmem %s2188_s4, %s2192_s16 }
  0x10   : > { %720 = vmatpush.bf16.msra.mxu0 %v1676_v3  ;;  %1689 = vmatpush.bf16.msra.mxu3 %v1676_v3  ;;  %v1351_v10 = vor.u32 %v1624_v9, %v1350_v8  ;;  %v1672_v15 = vld [vmem:[%s2185_s1 + $0x10] sm:$0xff]  ;;  %v1627_v18 = vld [vmem:[%s1798_s11 + $0x28] sm:$0xf0]  ;;  %v1670_v22 = vld [vmem:[%s2185_s1] sm:$0xff] }
  0x11   : > { %809 = vmatpush.bf16.msra.mxu1 %v1684_v4  ;;  %904 = vmatpush.bf16.msra.mxu2 %v1783_v5  ;;  %v1680_v16 = vld [vmem:[%s2185_s1 + $0x50] sm:$0xff]  ;;  %v1671_v19 = vld [vmem:[%s2185_s1 + $0x8] sm:$0xff]  ;;  %v1363_v21 = vor.u32 %v1627_v18, %v1362_v17  ;;  %v1342_v23 = vld [vmem:[%s1798_s11] sm:$0xf] }
  0x12   : > { %v1679_v20 = vld [vmem:[%s2185_s1 + $0x48] sm:$0xff]  ;;  %v1486_v25 = vld [vmem:[%s1798_s11 + $0x120] sm:$0xf]  ;;  %v1622_v28 = vld [vmem:[%s1798_s11 + $0x4] sm:$0xf] }
  0x13   : > { %v1623_v24 = vld [vmem:[%s1798_s11 + $0x8] sm:$0xf0]  ;;  %v1678_v27 = vld [vmem:[%s2185_s1 + $0x40] sm:$0xff]  ;;  %v1344_v29 = vld [vmem:[%s1798_s11 + $0xc] sm:$0xf0] }
  0x14   : > { %721 = vmatpush.bf16.msra.mxu0 %v1675_v6  ;;  %1690 = vmatpush.bf16.msra.mxu3 %v1675_v6  ;;  %v1659_v26 = vld [vmem:[%s1798_s11 + $0x128] sm:$0xf0]  ;;  %v1343_v30 = vor.u32 %v1623_v24, %v1342_v23  ;;  %v1347_v32 = vor.u32 %v1622_v28, %v1344_v29  ;;  %v1374_v33 = vld [vmem:[%s1798_s11 + $0x38] sm:$0xf]  ;;  %v1630_v34 = vld [vmem:[%s1798_s11 + $0x40] sm:$0xf0] }
  0x15   : > { %810 = vmatpush.bf16.msra.mxu1 %v1683_v7  ;;  %1604 = vmatmul.msk.bf16.vlgmr.msra.gmra.mxu2 %vm670_vm0, %v1351_v10  ;;  %v1487_v31 = vor.u32 %v1659_v26, %v1486_v25  ;;  %v1375_v35 = vor.u32 %v1630_v34, %v1374_v33  ;;  %v1354_v36 = vld [vmem:[%s1798_s11 + $0x18] sm:$0xf]  ;;  %v1626_v37 = vld [vmem:[%s1798_s11 + $0x20] sm:$0xf0]  ;;  %v1625_v40 = vld [vmem:[%s1798_s11 + $0x1c] sm:$0xf] }
  0x16   : > { %v1498_v38 = vld [vmem:[%s1798_s11 + $0x138] sm:$0xf]  ;;  %v1662_v39 = vld [vmem:[%s1798_s11 + $0x140] sm:$0xf0]  ;;  %v1356_v41 = vld [vmem:[%s1798_s11 + $0x24] sm:$0xf0]  ;;  %v1355_v42 = vor.u32 %v1626_v37, %v1354_v36 }
  0x17   : > { %v1499_v43 = vor.u32 %v1662_v39, %v1498_v38  ;;  %v1359_v44 = vor.u32 %v1625_v40, %v1356_v41  ;;  %v1386_v45 = vld [vmem:[%s1798_s11 + $0x50] sm:$0xf]  ;;  %v1633_v46 = vld [vmem:[%s1798_s11 + $0x58] sm:$0xf0]  ;;  %v1628_v52 = vld [vmem:[%s1798_s11 + $0x34] sm:$0xf] }
  0x18   : > { %722 = vmatpush.bf16.msra.mxu0 %v1674_v11  ;;  %1691 = vmatpush.bf16.msra.mxu3 %v1674_v11  ;;  %v1387_v47 = vor.u32 %v1633_v46, %v1386_v45  ;;  %v1366_v48 = vld [vmem:[%s1798_s11 + $0x30] sm:$0xf]  ;;  %v1629_v49 = vld [vmem:[%s1798_s11 + $0x38] sm:$0xf0]  ;;  %v1368_v53 = vld [vmem:[%s1798_s11 + $0x3c] sm:$0xf0] }
  0x19   : > { %811 = vmatpush.bf16.msra.mxu1 %v1682_v12  ;;  %v1510_v50 = vld [vmem:[%s1798_s11 + $0x150] sm:$0xf]  ;;  %v1665_v51 = vld [vmem:[%s1798_s11 + $0x158] sm:$0xf0]  ;;  %v1367_v54 = vor.u32 %v1629_v49, %v1366_v48  ;;  %v1371_v56 = vor.u32 %v1628_v52, %v1368_v53  ;;  %v1398_v57 = vld [vmem:[%s1798_s11 + $0x68] sm:$0xf] }
  0x1a   : > { %v1511_v55 = vor.u32 %v1665_v51, %v1510_v50  ;;  %v1636_v58 = vld [vmem:[%s1798_s11 + $0x70] sm:$0xf0]  ;;  %v1378_v60 = vld [vmem:[%s1798_s11 + $0x48] sm:$0xf]  ;;  %v1631_v0 = vld [vmem:[%s1798_s11 + $0x4c] sm:$0xf] }
  0x1b   : > { %v1399_v59 = vor.u32 %v1636_v58, %v1398_v57  ;;  %v1632_v61 = vld [vmem:[%s1798_s11 + $0x50] sm:$0xf0]  ;;  %v1522_v62 = vld [vmem:[%s1798_s11 + $0x168] sm:$0xf]  ;;  %v1639_v6 = vld [vmem:[%s1798_s11 + $0x88] sm:$0xf0] }
  0x1c   : > { %723 = vmatpush.bf16.msra.mxu0 %v1673_v13  ;;  %1692 = vmatpush.bf16.msra.mxu3 %v1673_v13  ;;  %v1668_v63 = vld [vmem:[%s1798_s11 + $0x170] sm:$0xf0]  ;;  %v1390_v8 = vld [vmem:[%s1798_s11 + $0x60] sm:$0xf]  ;;  %v1635_v9 = vld [vmem:[%s1798_s11 + $0x68] sm:$0xf0] }
  0x1d   : > { %812 = vmatpush.bf16.msra.mxu1 %v1681_v14  ;;  %v1523_v3 = vor.u32 %v1668_v63, %v1522_v62  ;;  %v1658_v10 = vld [vmem:[%s1798_s11 + $0x124] sm:$0xf]  ;;  %v1488_v11 = vld [vmem:[%s1798_s11 + $0x12c] sm:$0xf0]  ;;  %v1422_v17 = vld [vmem:[%s1798_s11 + $0x98] sm:$0xf] }
  0x1e   : > { %v1392_v13 = vld [vmem:[%s1798_s11 + $0x6c] sm:$0xf0]  ;;  %v1642_v18 = vld [vmem:[%s1798_s11 + $0xa0] sm:$0xf0]  ;;  %v1500_v23 = vld [vmem:[%s1798_s11 + $0x144] sm:$0xf0] }
  0x1f   : > { %v1637_v24 = vld [vmem:[%s1798_s11 + $0x7c] sm:$0xf]  ;;  %v1404_v25 = vld [vmem:[%s1798_s11 + $0x84] sm:$0xf0]  ;;  %v1434_v29 = vld [vmem:[%s1798_s11 + $0xb0] sm:$0xf] }
  0x20   : > { %724 = vmatpush.bf16.msra.mxu0 %v1672_v15  ;;  %1693 = vmatpush.bf16.msra.mxu3 %v1672_v15  ;;  %v1491_v15 = vor.u32 %v1658_v10, %v1488_v11  ;;  %v1407_v28 = vor.u32 %v1637_v24, %v1404_v25  ;;  %v1641_v33 = vld [vmem:[%s1798_s11 + $0x98] sm:$0xf0]  ;;  %v1664_v34 = vld [vmem:[%s1798_s11 + $0x154] sm:$0xf]  ;;  %v1416_v37 = vld [vmem:[%s1798_s11 + $0x9c] sm:$0xf0] }
  0x21   : > { %813 = vmatpush.bf16.msra.mxu1 %v1680_v16  ;;  %v1640_v36 = vld [vmem:[%s1798_s11 + $0x94] sm:$0xf]  ;;  %v1446_v41 = vld [vmem:[%s1798_s11 + $0xc8] sm:$0xf]  ;;  %v1667_v46 = vld [vmem:[%s1798_s11 + $0x16c] sm:$0xf] }
  0x22   : > { %v1419_v40 = vor.u32 %v1640_v36, %v1416_v37  ;;  %v1644_v45 = vld [vmem:[%s1798_s11 + $0xb0] sm:$0xf0]  ;;  %v1643_v48 = vld [vmem:[%s1798_s11 + $0xac] sm:$0xf]  ;;  %v1428_v49 = vld [vmem:[%s1798_s11 + $0xb4] sm:$0xf0] }
  0x23   : > { %v1431_v53 = vor.u32 %v1643_v48, %v1428_v49  ;;  %v1438_v58 = vld [vmem:[%s1798_s11 + $0xc0] sm:$0xf]  ;;  %v1646_v62 = vld [vmem:[%s1798_s11 + $0xc4] sm:$0xf]  ;;  %v1440_v63 = vld [vmem:[%s1798_s11 + $0xcc] sm:$0xf0] }
  0x24   : > { %725 = vmatpush.bf16.msra.mxu0 %v1671_v19  ;;  %1694 = vmatpush.bf16.msra.mxu3 %v1671_v19  ;;  %v1423_v19 = vor.u32 %v1642_v18, %v1422_v17  ;;  %v1470_v10 = vld [vmem:[%s1798_s11 + $0xf8] sm:$0xf]  ;;  %v1654_v11 = vld [vmem:[%s1798_s11 + $0x100] sm:$0xf0]  ;;  %v1452_v24 = vld [vmem:[%s1798_s11 + $0xe4] sm:$0xf0] }
  0x25   : > { %814 = vmatpush.bf16.msra.mxu1 %v1679_v20  ;;  %1605 = vmatmul.msk.bf16.gmra.mxu2 %vm670_vm0, %v1363_v21  ;;  %v1638_v21 = vld [vmem:[%s1798_s11 + $0x80] sm:$0xf0]  ;;  %v1450_v17 = vld [vmem:[%s1798_s11 + $0xd8] sm:$0xf] }
  0x28   : > { %726 = vmatpush.bf16.msra.mxu0 %v1670_v22  ;;  %1695 = vmatpush.bf16.msra.mxu3 %v1670_v22  ;;  %v1661_v22 = vld [vmem:[%s1798_s11 + $0x13c] sm:$0xf] }
  0x29   : > { %815 = vmatpush.bf16.msra.mxu1 %v1678_v27 }
  0x2b   : > { %727 = vmatmul.bf16.vlgmr.msra.gmra.mxu0 %v1343_v30  ;;  %787 = vmatmul.bf16.vlgmr.msra.gmra.mxu3 %v1487_v31  ;;  %v1645_v30 = vld [vmem:[%s1798_s11 + $0xb8] sm:$0xf0] }
  0x2c   : > { %1696 = vmatpush.bf16.msrb.mxu3 %v1764_v1  ;;  %816 = vmatmul.bf16.vlgmr.msra.gmra.mxu1 %v1347_v32  ;;  %v1380_v1 = vld [vmem:[%s1798_s11 + $0x54] sm:$0xf0]  ;;  %v1435_v31 = vor.u32 %v1645_v30, %v1434_v29  ;;  %v1414_v32 = vld [vmem:[%s1798_s11 + $0x90] sm:$0xf] }
  0x2d   : > { %v1415_v38 = vor.u32 %v1641_v33, %v1414_v32 }
  0x30   : > { %1697 = vmatpush.bf16.msrb.mxu3 %v1684_v4  ;;  %v1383_v4 = vor.u32 %v1631_v0, %v1380_v1 }
  0x34   : > { %1698 = vmatpush.bf16.msrb.mxu3 %v1683_v7 }
  0x35   : > { %1606 = vmatmul.msk.bf16.gmra.mxu2 %vm670_vm0, %v1375_v35  ;;  %v1512_v35 = vld [vmem:[%s1798_s11 + $0x15c] sm:$0xf0] }
  0x36   : > { %v1515_v39 = vor.u32 %v1664_v34, %v1512_v35 }
  0x38   : > { %1699 = vmatpush.bf16.msrb.mxu3 %v1682_v12  ;;  %v1634_v12 = vld [vmem:[%s1798_s11 + $0x64] sm:$0xf] }
  0x3b   : > { %732 = vmatmul.bf16.gmra.mxu0 %v1355_v42  ;;  %792 = vmatmul.bf16.gmra.mxu3 %v1499_v43  ;;  %v1648_v42 = vld [vmem:[%s1798_s11 + $0xd0] sm:$0xf0] }
  0x3c   : > { %1700 = vmatpush.bf16.msrb.mxu3 %v1681_v14  ;;  %821 = vmatmul.bf16.gmra.mxu1 %v1359_v44  ;;  %v1391_v14 = vor.u32 %v1635_v9, %v1390_v8  ;;  %v1447_v43 = vor.u32 %v1648_v42, %v1446_v41  ;;  %v1426_v44 = vld [vmem:[%s1798_s11 + $0xa8] sm:$0xf] }
  0x3d   : > { %v1427_v50 = vor.u32 %v1644_v45, %v1426_v44 }
  0x40   : > { %1701 = vmatpush.bf16.msrb.mxu3 %v1680_v16  ;;  %v1395_v16 = vor.u32 %v1634_v12, %v1392_v13 }
  0x44   : > { %1702 = vmatpush.bf16.msrb.mxu3 %v1679_v20  ;;  %v1402_v20 = vld [vmem:[%s1798_s11 + $0x78] sm:$0xf] }
  0x45   : > { %1607 = vmatmul.msk.bf16.gmra.mxu2 %vm670_vm0, %v1387_v47  ;;  %v1403_v26 = vor.u32 %v1638_v21, %v1402_v20  ;;  %v1524_v47 = vld [vmem:[%s1798_s11 + $0x174] sm:$0xf0]  ;;  %v1650_v20 = vld [vmem:[%s1798_s11 + $0xe0] sm:$0xf0]  ;;  %v1530_v21 = vld [vmem:[%s1798_s11 + $0x170] sm:$0xf] }
  0x46   : > { %v1527_v51 = vor.u32 %v1667_v46, %v1524_v47  ;;  %v1482_v46 = vld [vmem:[%s1798_s11 + $0x110] sm:$0xf]  ;;  %v1657_v47 = vld [vmem:[%s1798_s11 + $0x118] sm:$0xf0] }
  0x48   : > { %1703 = vmatpush.bf16.msrb.mxu3 %v1678_v27  ;;  %v1503_v27 = vor.u32 %v1661_v22, %v1500_v23  ;;  %v1669_v22 = vld [vmem:[%s1798_s11 + $0x178] sm:$0xf0] }
  0x49   : > { %v1649_v23 = vld [vmem:[%s1798_s11 + $0xdc] sm:$0xf]  ;;  %v1531_v32 = vor.u32 %v1669_v22, %v1530_v21 }
  0x4a   : > { %v1455_v37 = vor.u32 %v1649_v23, %v1452_v24 }
  0x4b   : > { %737 = vmatmul.bf16.gmra.mxu0 %v1367_v54  ;;  %797 = vmatmul.bf16.gmra.mxu3 %v1511_v55  ;;  %v1458_v54 = vld [vmem:[%s1798_s11 + $0xe0] sm:$0xf]  ;;  %v1651_v55 = vld [vmem:[%s1798_s11 + $0xe8] sm:$0xf0] }
  0x4c   : > { %1704 = vmatpush.bf16.msra.mxu3 %v1769_v2  ;;  %826 = vmatmul.bf16.gmra.mxu1 %v1371_v56  ;;  %v1379_v2 = vor.u32 %v1632_v61, %v1378_v60  ;;  %v1459_v57 = vor.u32 %v1651_v55, %v1458_v54  ;;  %v1518_v60 = vld [vmem:[%s1798_s11 + $0x158] sm:$0xf]  ;;  %v1666_v61 = vld [vmem:[%s1798_s11 + $0x160] sm:$0xf0]  ;;  %v1483_v54 = vor.u32 %v1657_v47, %v1482_v46 }
  0x4d   : > { %v1519_v1 = vor.u32 %v1666_v61, %v1518_v60  ;;  %v1464_v60 = vld [vmem:[%s1798_s11 + $0xfc] sm:$0xf0] }
  0x50   : > { %1705 = vmatpush.bf16.msra.mxu3 %v1783_v5  ;;  %v1410_v5 = vld [vmem:[%s1798_s11 + $0x80] sm:$0xf] }
  0x51   : > { %v1411_v7 = vor.u32 %v1639_v6, %v1410_v5 }
  0x55   : > { %1608 = vmatmul.msk.bf16.gmra.mxu2 %vm670_vm0, %v1399_v59  ;;  %v1647_v59 = vld [vmem:[%s1798_s11 + $0xc8] sm:$0xf0] }
  0x56   : > { %v1439_v0 = vor.u32 %v1647_v59, %v1438_v58  ;;  %v1653_v58 = vld [vmem:[%s1798_s11 + $0xf8] sm:$0xf0]  ;;  %v1652_v59 = vld [vmem:[%s1798_s11 + $0xf4] sm:$0xf] }
  0x5b   : > { %742 = vmatmul.bf16.gmra.mxu0 %v1379_v2  ;;  %802 = vmatmul.bf16.gmra.mxu3 %v1523_v3 }
  0x5c   : > { %831 = vmatmul.bf16.gmra.mxu1 %v1383_v4  ;;  %v1443_v4 = vor.u32 %v1646_v62, %v1440_v63 }
  0x65   : > { %1609 = vmatmul.msk.bf16.gmra.mxu2 %vm670_vm0, %v1411_v7 }
  0x6b   : > { %747 = vmatmul.bf16.gmra.mxu0 %v1391_v14  ;;  %876 = vmatmul.bf16.vlgmr.msrb.gmra.mxu3 %v1491_v15  ;;  %v1471_v15 = vor.u32 %v1654_v11, %v1470_v10 }
  0x6c   : > { %836 = vmatmul.bf16.gmra.mxu1 %v1395_v16 }
  0x75   : > { %1610 = vmatmul.msk.bf16.gmra.mxu2 %vm670_vm0, %v1423_v19 }
  0x7b   : > { %752 = vmatmul.bf16.gmra.mxu0 %v1403_v26  ;;  %881 = vmatmul.bf16.gmra.mxu3 %v1503_v27 }
  0x7c   : > { %841 = vmatmul.bf16.gmra.mxu1 %v1407_v28 }
  0x85   : > { %1611 = vmatmul.msk.bf16.gmra.mxu2 %vm670_vm0, %v1435_v31  ;;  %v1451_v31 = vor.u32 %v1650_v20, %v1450_v17  ;;  %v1660_v17 = vld [vmem:[%s1798_s11 + $0x130] sm:$0xf0] }
  0x8b   : > { %757 = vmatmul.bf16.gmra.mxu0 %v1415_v38  ;;  %886 = vmatmul.bf16.gmra.mxu3 %v1515_v39 }
  0x8c   : > { %846 = vmatmul.bf16.gmra.mxu1 %v1419_v40 }
  0x95   : > { %1612 = vmatmul.msk.bf16.gmra.mxu2 %vm670_vm0, %v1447_v43 }
  0x98   : > { %v906_v52 = vpop.f32.mrf.mxu2 }
  0x9b   : > { %762 = vmatmul.bf16.gmra.mxu0 %v1427_v50  ;;  %891 = vmatmul.bf16.gmra.mxu3 %v1527_v51 }
  0x9c   : > { %851 = vmatmul.bf16.gmra.mxu1 %v1431_v53 }
  0xa0   : > { %v908_v56 = vpop.f32.mrf.mxu2 }
  0xa5   : > { %1613 = vmatmul.msk.bf16.gmra.mxu2 %vm670_vm0, %v1459_v57  ;;  %v1462_v57 = vld [vmem:[%s1798_s11 + $0xf0] sm:$0xf] }
  0xa8   : > { %v911_v2 = vpop.f32.mrf.mxu2  ;;  %v728_v3 = vpop.f32.mrf.mxu0 }
  0xa9   : > { %v817_v5 = vpop.f32.mrf.mxu1 }
  0xaa   : > { %v818_v6 = vadd.f32 %v817_v5, %v728_v3 }
  0xab   : > { %767 = vmatmul.bf16.gmra.mxu0 %v1439_v0  ;;  %1618 = vmatmul.msk.bf16.vlgmr.msra.gmra.mxu3 %vm670_vm0, %v1519_v1 }
  0xac   : > { %v907_v7 = vadd.f32 %v906_v52, %v818_v6  ;;  %856 = vmatmul.bf16.gmra.mxu1 %v1443_v4  ;;  %v1467_v6 = vor.u32 %v1652_v59, %v1464_v60 }
  0xae   : > { %v986_v8 = vpack.c.bf16 %v907_v7, %v907_v7  ;;  %v1924_v9 = vpop.f32.mrf.mxu3  ;;  %v1123_v18 = vmul.f32 %v907_v7, %v907_v7  ;;  %v1052_v25 = vsel %vm1051_vm2, %v907_v7, 0.0 }
  0xb0   : > { %1019 = vst.msk [vmem:[%s1922_s13] sm:$0xf] %vm1018_vm1, %v986_v8  ;;  %v913_v12 = vpop.f32.mrf.mxu2  ;;  %v730_v13 = vpop.f32.mrf.mxu0  ;;  %v1155_v33 = vsel %vm1051_vm2, %v1123_v18, 0.0 }
  0xb1   : > { %v819_v14 = vpop.f32.mrf.mxu1 }
  0xb2   : > { %v820_v16 = vadd.f32 %v819_v14, %v730_v13 }
  0xb4   : > { %v909_v19 = vadd.f32 %v908_v56, %v820_v16  ;;  %v1494_v16 = vld [vmem:[%s1798_s11 + $0x128] sm:$0xf] }
  0xb5   : > { %1614 = vmatmul.msk.bf16.gmra.mxu2 %vm670_vm0, %v1471_v15  ;;  %v1495_v24 = vor.u32 %v1660_v17, %v1494_v16 }
  0xb6   : > { %v987_v26 = vpack.c.bf16 %v909_v19, %v909_v19  ;;  %v1053_v27 = vsel %vm1051_vm2, %v909_v19, 0.0  ;;  %v1124_v28 = vmul.f32 %v909_v19, %v909_v19  ;;  %v1939_v29 = vpop.f32.mrf.mxu3 }
  0xb7   : > { %v1054_v30 = vadd.f32 %v1053_v27, %v1052_v25  ;;  %v1474_v27 = vld [vmem:[%s1798_s11 + $0x108] sm:$0xf] }
  0xb8   : > { %1020 = vst.msk [vmem:[%s1922_s13 + $0x4] sm:$0xf] %vm1018_vm1, %v987_v26  ;;  %v1156_v34 = vsel %vm1051_vm2, %v1124_v28, 0.0  ;;  %v916_v35 = vpop.f32.mrf.mxu2  ;;  %v733_v36 = vpop.f32.mrf.mxu0  ;;  %v1656_v28 = vld [vmem:[%s1798_s11 + $0x110] sm:$0xf0] }
  0xb9   : > { %v1157_v38 = vadd.f32 %v1156_v34, %v1155_v33  ;;  %v822_v39 = vpop.f32.mrf.mxu1 }
  0xba   : > { %v823_v40 = vadd.f32 %v822_v39, %v733_v36 }
  0xbb   : > { %772 = vmatmul.bf16.gmra.mxu0 %v1451_v31  ;;  %1619 = vmatmul.msk.bf16.gmra.mxu3 %vm670_vm0, %v1531_v32  ;;  %v1476_v31 = vld [vmem:[%s1798_s11 + $0x114] sm:$0xf0] }
  0xbc   : > { %v912_v41 = vadd.f32 %v911_v2, %v823_v40  ;;  %861 = vmatmul.bf16.gmra.mxu1 %v1455_v37  ;;  %v1463_v2 = vor.u32 %v1653_v58, %v1462_v57  ;;  %v1475_v37 = vor.u32 %v1656_v28, %v1474_v27 }
  0xbe   : > { %v988_v42 = vpack.c.bf16 %v912_v41, %v912_v41  ;;  %v1055_v43 = vsel %vm1051_vm2, %v912_v41, 0.0  ;;  %v1125_v44 = vmul.f32 %v912_v41, %v912_v41  ;;  %v1947_v45 = vpop.f32.mrf.mxu3 }
  0xbf   : > { %v1056_v48 = vadd.f32 %v1055_v43, %v1054_v30  ;;  %v1655_v30 = vld [vmem:[%s1798_s11 + $0x10c] sm:$0xf] }
  0xc0   : > { %1021 = vst.msk [vmem:[%s1922_s13 + $0x8] sm:$0xf] %vm1018_vm1, %v988_v42  ;;  %v1158_v49 = vsel %vm1051_vm2, %v1125_v44, 0.0  ;;  %v918_v50 = vpop.f32.mrf.mxu2  ;;  %v735_v51 = vpop.f32.mrf.mxu0  ;;  %v1479_v41 = vor.u32 %v1655_v30, %v1476_v31 }
  0xc1   : > { %v1159_v52 = vadd.f32 %v1158_v49, %v1157_v38  ;;  %v824_v53 = vpop.f32.mrf.mxu1 }
  0xc2   : > { %v825_v55 = vadd.f32 %v824_v53, %v735_v51  ;;  %v1506_v51 = vld [vmem:[%s1798_s11 + $0x140] sm:$0xf] }
  0xc4   : > { %v914_v56 = vadd.f32 %v913_v12, %v825_v55 }
  0xc5   : > { %1615 = vmatmul.msk.bf16.gmra.mxu2 %vm670_vm0, %v1483_v54 }
  0xc6   : > { %v989_v61 = vpack.c.bf16 %v914_v56, %v914_v56  ;;  %v1057_v62 = vsel %vm1051_vm2, %v914_v56, 0.0  ;;  %v1126_v63 = vmul.f32 %v914_v56, %v914_v56  ;;  %v1960_v0 = vpop.f32.mrf.mxu3 }
  0xc7   : > { %v1058_v1 = vadd.f32 %v1057_v62, %v1056_v48 }
  0xc8   : > { %1022 = vst.msk [vmem:[%s1922_s13 + $0xc] sm:$0xf] %vm1018_vm1, %v989_v61  ;;  %v1160_v3 = vsel %vm1051_vm2, %v1126_v63, 0.0  ;;  %v921_v4 = vpop.f32.mrf.mxu2  ;;  %v738_v5 = vpop.f32.mrf.mxu0 }
  0xc9   : > { %v1161_v7 = vadd.f32 %v1160_v3, %v1159_v52  ;;  %v827_v8 = vpop.f32.mrf.mxu1  ;;  %v1663_v52 = vld [vmem:[%s1798_s11 + $0x148] sm:$0xf0] }
  0xca   : > { %v828_v10 = vadd.f32 %v827_v8, %v738_v5  ;;  %v1507_v59 = vor.u32 %v1663_v52, %v1506_v51 }
  0xcb   : > { %777 = vmatmul.bf16.gmra.mxu0 %v1463_v2 }
  0xcc   : > { %v917_v11 = vadd.f32 %v916_v35, %v828_v10  ;;  %866 = vmatmul.bf16.gmra.mxu1 %v1467_v6 }
  0xce   : > { %v990_v12 = vpack.c.bf16 %v917_v11, %v917_v11  ;;  %v1059_v13 = vsel %vm1051_vm2, %v917_v11, 0.0  ;;  %v1127_v14 = vmul.f32 %v917_v11, %v917_v11  ;;  %v1966_v15 = vpop.f32.mrf.mxu3 }
  0xcf   : > { %v1060_v18 = vadd.f32 %v1059_v13, %v1058_v1 }
  0xd0   : > { %1023 = vst.msk [vmem:[%s1922_s13 + $0x10] sm:$0xf] %vm1018_vm1, %v990_v12  ;;  %v1162_v19 = vsel %vm1051_vm2, %v1127_v14, 0.0  ;;  %v923_v20 = vpop.f32.mrf.mxu2  ;;  %v740_v21 = vpop.f32.mrf.mxu0 }
  0xd1   : > { %v1163_v22 = vadd.f32 %v1162_v19, %v1161_v7  ;;  %v829_v23 = vpop.f32.mrf.mxu1 }
  0xd2   : > { %v830_v25 = vadd.f32 %v829_v23, %v740_v21 }
  0xd4   : > { %v919_v26 = vadd.f32 %v918_v50, %v830_v25 }
  0xd5   : > { %1616 = vmatmul.msk.bf16.gmra.mxu2 %vm670_vm0, %v1495_v24 }
  0xd6   : > { %v991_v32 = vpack.c.bf16 %v919_v26, %v919_v26  ;;  %v1061_v33 = vsel %vm1051_vm2, %v919_v26, 0.0  ;;  %v1128_v34 = vmul.f32 %v919_v26, %v919_v26  ;;  %v1979_v35 = vpop.f32.mrf.mxu3 }
  0xd7   : > { %v1062_v36 = vadd.f32 %v1061_v33, %v1060_v18 }
  0xd8   : > { %1024 = vst.msk [vmem:[%s1922_s13 + $0x14] sm:$0xf] %vm1018_vm1, %v991_v32  ;;  %v1164_v38 = vsel %vm1051_vm2, %v1128_v34, 0.0  ;;  %v926_v39 = vpop.f32.mrf.mxu2  ;;  %v743_v40 = vpop.f32.mrf.mxu0 }
  0xd9   : > { %v1165_v42 = vadd.f32 %v1164_v38, %v1163_v22  ;;  %v832_v43 = vpop.f32.mrf.mxu1 }
  0xda   : > { %v833_v44 = vadd.f32 %v832_v43, %v743_v40 }
  0xdb   : > { %782 = vmatmul.bf16.gmra.mxu0 %v1475_v37 }
  0xdc   : > { %v922_v46 = vadd.f32 %v921_v4, %v833_v44  ;;  %871 = vmatmul.bf16.gmra.mxu1 %v1479_v41 }
  0xde   : > { %v992_v47 = vpack.c.bf16 %v922_v46, %v922_v46  ;;  %v1063_v48 = vsel %vm1051_vm2, %v922_v46, 0.0  ;;  %v1129_v49 = vmul.f32 %v922_v46, %v922_v46  ;;  %v1985_v50 = vpop.f32.mrf.mxu3 }
  0xdf   : > { %v1064_v53 = vadd.f32 %v1063_v48, %v1062_v36 }
  0xe0   : > { %1025 = vst.msk [vmem:[%s1922_s13 + $0x18] sm:$0xf] %vm1018_vm1, %v992_v47  ;;  %v1166_v54 = vsel %vm1051_vm2, %v1129_v49, 0.0  ;;  %v928_v55 = vpop.f32.mrf.mxu2  ;;  %v745_v56 = vpop.f32.mrf.mxu0 }
  0xe1   : > { %v1167_v57 = vadd.f32 %v1166_v54, %v1165_v42  ;;  %v834_v58 = vpop.f32.mrf.mxu1 }
  0xe2   : > { %v835_v60 = vadd.f32 %v834_v58, %v745_v56 }
  0xe4   : > { %v924_v61 = vadd.f32 %v923_v20, %v835_v60 }
  0xe5   : > { %1617 = vmatmul.msk.bf16.gmra.mxu2 %vm670_vm0, %v1507_v59 }
  0xe6   : > { %v993_v62 = vpack.c.bf16 %v924_v61, %v924_v61  ;;  %v1065_v63 = vsel %vm1051_vm2, %v924_v61, 0.0  ;;  %v1130_v1 = vmul.f32 %v924_v61, %v924_v61  ;;  %v1994_v2 = vpop.f32.mrf.mxu3 }
  0xe7   : > { %v1066_v3 = vadd.f32 %v1065_v63, %v1064_v53 }
  0xe8   : > { %1026 = vst.msk [vmem:[%s1922_s13 + $0x1c] sm:$0xf] %vm1018_vm1, %v993_v62  ;;  %v1168_v4 = vsel %vm1051_vm2, %v1130_v1, 0.0  ;;  %v931_v5 = vpop.f32.mrf.mxu2  ;;  %v748_v6 = vpop.f32.mrf.mxu0 }
  0xe9   : > { %v1169_v7 = vadd.f32 %v1168_v4, %v1167_v57  ;;  %v837_v8 = vpop.f32.mrf.mxu1 }
  0xea   : > { %v838_v10 = vadd.f32 %v837_v8, %v748_v6 }
  0xec   : > { %v927_v11 = vadd.f32 %v926_v39, %v838_v10 }
  0xee   : > { %v994_v12 = vpack.c.bf16 %v927_v11, %v927_v11  ;;  %v1067_v13 = vsel %vm1051_vm2, %v927_v11, 0.0  ;;  %v1131_v14 = vmul.f32 %v927_v11, %v927_v11  ;;  %v877_v16 = vpop.f32.mrf.mxu3 }
  0xef   : > { %v1068_v17 = vadd.f32 %v1067_v13, %v1066_v3  ;;  %v2001_v18 = vadd.f32 %v877_v16, %v1924_v9 }
  0xf0   : > { %1027 = vst.msk [vmem:[%s1922_s13 + $0x20] sm:$0xf] %vm1018_vm1, %v994_v12  ;;  %v1170_v19 = vsel %vm1051_vm2, %v1131_v14, 0.0  ;;  %v933_v20 = vpop.f32.mrf.mxu2  ;;  %v750_v21 = vpop.f32.mrf.mxu0 }
  0xf1   : > { %v1171_v22 = vadd.f32 %v1170_v19, %v1169_v7  ;;  %v839_v23 = vpop.f32.mrf.mxu1 }
  0xf2   : > { %v840_v24 = vadd.f32 %v839_v23, %v750_v21 }
  0xf4   : > { %v929_v25 = vadd.f32 %v928_v55, %v840_v24 }
  0xf6   : > { %v995_v26 = vpack.c.bf16 %v929_v25, %v929_v25  ;;  %v1069_v27 = vsel %vm1051_vm2, %v929_v25, 0.0  ;;  %v1132_v28 = vmul.f32 %v929_v25, %v929_v25  ;;  %v879_v30 = vpop.f32.mrf.mxu3 }
  0xf7   : > { %v1070_v31 = vadd.f32 %v1069_v27, %v1068_v17  ;;  %v2008_v9 = vadd.f32 %v879_v30, %v1939_v29 }
  0xf8   : > { %1028 = vst.msk [vmem:[%s1922_s13 + $0x24] sm:$0xf] %vm1018_vm1, %v995_v26  ;;  %v1172_v32 = vsel %vm1051_vm2, %v1132_v28, 0.0  ;;  %v936_v33 = vpop.f32.mrf.mxu2  ;;  %v753_v34 = vpop.f32.mrf.mxu0 }
  0xf9   : > { %v1173_v36 = vadd.f32 %v1172_v32, %v1171_v22  ;;  %v842_v37 = vpop.f32.mrf.mxu1 }
  0xfa   : > { %v843_v38 = vadd.f32 %v842_v37, %v753_v34 }
  0xfc   : > { %v932_v39 = vadd.f32 %v931_v5, %v843_v38 }
  0xfe   : > { %v996_v40 = vpack.c.bf16 %v932_v39, %v932_v39  ;;  %v1071_v41 = vsel %vm1051_vm2, %v932_v39, 0.0  ;;  %v1133_v42 = vmul.f32 %v932_v39, %v932_v39  ;;  %v882_v43 = vpop.f32.mrf.mxu3 }
  0xff   : > { %v1072_v44 = vadd.f32 %v1071_v41, %v1070_v31  ;;  %v2015_v29 = vadd.f32 %v882_v43, %v1947_v45 }
 0x100   : > { %1029 = vst.msk [vmem:[%s1922_s13 + $0x28] sm:$0xf] %vm1018_vm1, %v996_v40  ;;  %v1174_v46 = vsel %vm1051_vm2, %v1133_v42, 0.0  ;;  %v938_v47 = vpop.f32.mrf.mxu2  ;;  %v755_v48 = vpop.f32.mrf.mxu0 }
 0x101   : > { %v1175_v49 = vadd.f32 %v1174_v46, %v1173_v36  ;;  %v844_v51 = vpop.f32.mrf.mxu1 }
 0x102   : > { %v845_v52 = vadd.f32 %v844_v51, %v755_v48 }
 0x104   : > { %v934_v53 = vadd.f32 %v933_v20, %v845_v52 }
 0x106   : > { %v997_v54 = vpack.c.bf16 %v934_v53, %v934_v53  ;;  %v1073_v55 = vsel %vm1051_vm2, %v934_v53, 0.0  ;;  %v1134_v56 = vmul.f32 %v934_v53, %v934_v53  ;;  %v884_v57 = vpop.f32.mrf.mxu3 }
 0x107   : > { %v1074_v58 = vadd.f32 %v1073_v55, %v1072_v44  ;;  %v2022_v45 = vadd.f32 %v884_v57, %v1960_v0 }
 0x108   : > { %1030 = vst.msk [vmem:[%s1922_s13 + $0x2c] sm:$0xf] %vm1018_vm1, %v997_v54  ;;  %v1176_v59 = vsel %vm1051_vm2, %v1134_v56, 0.0  ;;  %v941_v60 = vpop.f32.mrf.mxu2  ;;  %v758_v61 = vpop.f32.mrf.mxu0 }
 0x109   : > { %v1177_v62 = vadd.f32 %v1176_v59, %v1175_v49  ;;  %v847_v63 = vpop.f32.mrf.mxu1 }
 0x10a   : > { %v848_v1 = vadd.f32 %v847_v63, %v758_v61 }
 0x10c   : > { %v937_v3 = vadd.f32 %v936_v33, %v848_v1 }
 0x10e   : > { %v998_v4 = vpack.c.bf16 %v937_v3, %v937_v3  ;;  %v1075_v5 = vsel %vm1051_vm2, %v937_v3, 0.0  ;;  %v1135_v6 = vmul.f32 %v937_v3, %v937_v3  ;;  %v887_v7 = vpop.f32.mrf.mxu3 }
 0x10f   : > { %v1076_v8 = vadd.f32 %v1075_v5, %v1074_v58 }
 0x110   : > { %1031 = vst.msk [vmem:[%s1922_s13 + $0x30] sm:$0xf] %vm1018_vm1, %v998_v4  ;;  %v1178_v0 = vsel %vm1051_vm2, %v1135_v6, 0.0  ;;  %v943_v10 = vpop.f32.mrf.mxu2  ;;  %v760_v11 = vpop.f32.mrf.mxu0 }
 0x111   : > { %v1179_v12 = vadd.f32 %v1178_v0, %v1177_v62  ;;  %v849_v13 = vpop.f32.mrf.mxu1 }
 0x112   : > { %v850_v14 = vadd.f32 %v849_v13, %v760_v11 }
 0x114   : > { %v939_v16 = vadd.f32 %v938_v47, %v850_v14  ;;  %v888_v47 = vadd.f32 %v887_v7, %v1966_v15 }
 0x116   : > { %v999_v17 = vpack.c.bf16 %v939_v16, %v939_v16  ;;  %v1077_v19 = vsel %vm1051_vm2, %v939_v16, 0.0  ;;  %v1136_v20 = vmul.f32 %v939_v16, %v939_v16  ;;  %v889_v21 = vpop.f32.mrf.mxu3 }
 0x117   : > { %v2032_v22 = vadd.f32 %v1077_v19, %v1076_v8  ;;  %v890_v57 = vadd.f32 %v889_v21, %v1979_v35 }
 0x118   : > { %1032 = vst.msk [vmem:[%s1922_s13 + $0x34] sm:$0xf] %vm1018_vm1, %v999_v17  ;;  %v1180_v23 = vsel %vm1051_vm2, %v1136_v20, 0.0  ;;  %v946_v24 = vpop.f32.mrf.mxu2  ;;  %v763_v25 = vpop.f32.mrf.mxu0 }
 0x119   : > { %v2037_v26 = vadd.f32 %v1180_v23, %v1179_v12  ;;  %v852_v27 = vpop.f32.mrf.mxu1 }
 0x11a   : > { %v853_v28 = vadd.f32 %v852_v27, %v763_v25 }
 0x11c   : > { %v2039_v30 = vadd.f32 %v941_v60, %v853_v28 }
 0x11e   : > { %v1000_v31 = vpack.c.bf16 %v2039_v30, %v2039_v30  ;;  %v892_v32 = vpop.f32.mrf.mxu3 }
 0x11f   : > { %v893_v35 = vadd.f32 %v892_v32, %v1985_v50 }
 0x120   : > { %1033 = vst.msk [vmem:[%s1922_s13 + $0x38] sm:$0xf] %vm1018_vm1, %v1000_v31  ;;  %v948_v33 = vpop.f32.mrf.mxu2  ;;  %v765_v34 = vpop.f32.mrf.mxu0 }
 0x121   : > { %v854_v36 = vpop.f32.mrf.mxu1 }
 0x122   : > { %v855_v37 = vadd.f32 %v854_v36, %v765_v34 }
 0x124   : > { %v2045_v38 = vadd.f32 %v943_v10, %v855_v37 }
 0x126   : > { %v1001_v39 = vpack.c.bf16 %v2045_v38, %v2045_v38  ;;  %v894_v40 = vpop.f32.mrf.mxu3  ;;  %v1138_v34 = vmul.f32 %v2045_v38, %v2045_v38 }
 0x127   : > { %v895_v50 = vadd.f32 %v894_v40, %v1994_v2  ;;  %v1137_v2 = vmul.f32 %v2039_v30, %v2039_v30 }
 0x128   : > { %1034 = vst.msk [vmem:[%s1922_s13 + $0x3c] sm:$0xf] %vm1018_vm1, %v1001_v39  ;;  %v951_v41 = vpop.f32.mrf.mxu2  ;;  %v768_v42 = vpop.f32.mrf.mxu0  ;;  %v1081_v39 = vsel %vm1051_vm2, %v2045_v38, 0.0 }
 0x129   : > { %v857_v43 = vpop.f32.mrf.mxu1  ;;  %v1182_v37 = vsel %vm1051_vm2, %v1137_v2, 0.0 }
 0x12a   : > { %v858_v44 = vadd.f32 %v857_v43, %v768_v42  ;;  %v1184_v43 = vsel %vm1051_vm2, %v1138_v34, 0.0 }
 0x12c   : > { %v2051_v46 = vadd.f32 %v946_v24, %v858_v44 }
 0x12e   : > { %v1002_v48 = vpack.c.bf16 %v2051_v46, %v2051_v46  ;;  %v976_v49 = vpop.f32.mrf.mxu3  ;;  %v1139_v40 = vmul.f32 %v2051_v46, %v2051_v46 }
 0x12f   : > { %v2056_v51 = vadd.f32 %v976_v49, %v888_v47 }
 0x130   : > { %1035 = vst.msk [vmem:[%s1922_s13 + $0x40] sm:$0xf] %vm1018_vm1, %v1002_v48  ;;  %v953_v52 = vpop.f32.mrf.mxu2  ;;  %v770_v53 = vpop.f32.mrf.mxu0  ;;  %v1183_v48 = vadd.f32 %v1182_v37, %v2037_v26 }
 0x131   : > { %v1014_v54 = vpack.c.bf16 %v2056_v51, %v2056_v51  ;;  %v859_v55 = vpop.f32.mrf.mxu1 }
 0x132   : > { %v860_v56 = vadd.f32 %v859_v55, %v770_v53 }
 0x133   : > { %1047 = vst.msk [vmem:[%s1922_s13 + $0x70] sm:$0xf] %vm1018_vm1, %v1014_v54 }
 0x134   : > { %v949_v15 = vadd.f32 %v948_v33, %v860_v56  ;;  %v1079_v33 = vsel %vm1051_vm2, %v2039_v30, 0.0  ;;  %v1083_v30 = vsel %vm1051_vm2, %v2051_v46, 0.0 }
 0x135   : > { %v1080_v42 = vadd.f32 %v1079_v33, %v2032_v22  ;;  %v1185_v22 = vadd.f32 %v1184_v43, %v1183_v48 }
 0x136   : > { %v1003_v58 = vpack.c.bf16 %v949_v15, %v949_v15  ;;  %v978_v59 = vpop.f32.mrf.mxu3  ;;  %v1140_v44 = vmul.f32 %v949_v15, %v949_v15  ;;  %v1085_v38 = vsel %vm1051_vm2, %v949_v15, 0.0 }
 0x137   : > { %v2065_v60 = vadd.f32 %v978_v59, %v890_v57  ;;  %v1082_v49 = vadd.f32 %v1081_v39, %v1080_v42 }
 0x138   : > { %1036 = vst.msk [vmem:[%s1922_s13 + $0x44] sm:$0xf] %vm1018_vm1, %v1003_v58  ;;  %v956_v61 = vpop.f32.mrf.mxu2  ;;  %v773_v62 = vpop.f32.mrf.mxu0  ;;  %v1188_v58 = vsel %vm1051_vm2, %v1140_v44, 0.0 }
 0x139   : > { %v1015_v63 = vpack.c.bf16 %v2065_v60, %v2065_v60  ;;  %v862_v1 = vpop.f32.mrf.mxu1  ;;  %v1084_v56 = vadd.f32 %v1083_v30, %v1082_v49 }
 0x13a   : > { %v863_v3 = vadd.f32 %v862_v1, %v773_v62 }
 0x13b   : > { %1048 = vst.msk [vmem:[%s1922_s13 + $0x74] sm:$0xf] %vm1018_vm1, %v1015_v63  ;;  %v1086_v63 = vadd.f32 %v1085_v38, %v1084_v56 }
 0x13c   : > { %v952_v4 = vadd.f32 %v951_v41, %v863_v3 }
 0x13e   : > { %v1004_v5 = vpack.c.bf16 %v952_v4, %v952_v4  ;;  %v981_v6 = vpop.f32.mrf.mxu3  ;;  %v1141_v53 = vmul.f32 %v952_v4, %v952_v4  ;;  %v1087_v26 = vsel %vm1051_vm2, %v952_v4, 0.0 }
 0x13f   : > { %v2074_v7 = vadd.f32 %v981_v6, %v893_v35 }
 0x140   : > { %1037 = vst.msk [vmem:[%s1922_s13 + $0x48] sm:$0xf] %vm1018_vm1, %v1004_v5  ;;  %v958_v8 = vpop.f32.mrf.mxu2  ;;  %v775_v0 = vpop.f32.mrf.mxu0  ;;  %v1190_v1 = vsel %vm1051_vm2, %v1141_v53, 0.0 }
 0x141   : > { %v1016_v10 = vpack.c.bf16 %v2074_v7, %v2074_v7  ;;  %v864_v11 = vpop.f32.mrf.mxu1 }
 0x142   : > { %v865_v12 = vadd.f32 %v864_v11, %v775_v0 }
 0x143   : > { %1049 = vst.msk [vmem:[%s1922_s13 + $0x78] sm:$0xf] %vm1018_vm1, %v1016_v10 }
 0x144   : > { %v954_v13 = vadd.f32 %v953_v52, %v865_v12  ;;  %v1186_v52 = vsel %vm1051_vm2, %v1139_v40, 0.0 }
 0x145   : > { %v1187_v62 = vadd.f32 %v1186_v52, %v1185_v22 }
 0x146   : > { %v1005_v14 = vpack.c.bf16 %v954_v13, %v954_v13  ;;  %v983_v16 = vpop.f32.mrf.mxu3  ;;  %v1142_v59 = vmul.f32 %v954_v13, %v954_v13  ;;  %v1089_v3 = vsel %vm1051_vm2, %v954_v13, 0.0 }
 0x147   : > { %v2083_v17 = vadd.f32 %v983_v16, %v895_v50  ;;  %v1189_v6 = vadd.f32 %v1188_v58, %v1187_v62 }
 0x148   : > { %1038 = vst.msk [vmem:[%s1922_s13 + $0x4c] sm:$0xf] %vm1018_vm1, %v1005_v14  ;;  %v961_v19 = vpop.f32.mrf.mxu2  ;;  %v778_v20 = vpop.f32.mrf.mxu0 }
 0x149   : > { %v1017_v21 = vpack.c.bf16 %v2083_v17, %v2083_v17  ;;  %v867_v23 = vpop.f32.mrf.mxu1  ;;  %v1191_v11 = vadd.f32 %v1190_v1, %v1189_v6  ;;  %v1107_v6 = vsel %vm1051_vm2, %v2056_v51, 0.0 }
 0x14a   : > { %v868_v24 = vadd.f32 %v867_v23, %v778_v20 }
 0x14b   : > { %1050 = vst.msk [vmem:[%s1922_s13 + $0x7c] sm:$0xf] %vm1018_vm1, %v1017_v21 }
 0x14c   : > { %v957_v25 = vadd.f32 %v956_v61, %v868_v24 }
 0x14e   : > { %v1006_v27 = vpack.c.bf16 %v957_v25, %v957_v25  ;;  %v1143_v35 = vmul.f32 %v957_v25, %v957_v25  ;;  %v1091_v4 = vsel %vm1051_vm2, %v957_v25, 0.0 }
 0x150   : > { %1039 = vst.msk [vmem:[%s1922_s13 + $0x50] sm:$0xf] %vm1018_vm1, %v1006_v27  ;;  %v2095_v28 = vpop.f32.mrf.mxu2  ;;  %v780_v31 = vpop.f32.mrf.mxu0  ;;  %v1194_v50 = vsel %vm1051_vm2, %v1143_v35, 0.0 }
 0x151   : > { %v869_v32 = vpop.f32.mrf.mxu1 }
 0x152   : > { %v870_v36 = vadd.f32 %v869_v32, %v780_v31 }
 0x154   : > { %v959_v41 = vadd.f32 %v958_v8, %v870_v36  ;;  %v1088_v8 = vadd.f32 %v1087_v26, %v1086_v63 }
 0x156   : > { %v1007_v47 = vpack.c.bf16 %v959_v41, %v959_v41  ;;  %v1144_v0 = vmul.f32 %v959_v41, %v959_v41  ;;  %v1090_v12 = vadd.f32 %v1089_v3, %v1088_v8  ;;  %v1093_v14 = vsel %vm1051_vm2, %v959_v41, 0.0 }
 0x157   : > { %v1152_v8 = vmul.f32 %v2065_v60, %v2065_v60 }
 0x158   : > { %1040 = vst.msk [vmem:[%s1922_s13 + $0x54] sm:$0xf] %vm1018_vm1, %v1007_v47  ;;  %v966_v54 = vpop.f32.mrf.mxu2  ;;  %v783_v55 = vpop.f32.mrf.mxu0  ;;  %v1092_v21 = vadd.f32 %v1091_v4, %v1090_v12  ;;  %v1196_v25 = vsel %vm1051_vm2, %v1144_v0, 0.0 }
 0x159   : > { %v967_v57 = vadd.f32 %v966_v54, %v2001_v18  ;;  %v872_v46 = vpop.f32.mrf.mxu1  ;;  %v1192_v18 = vsel %vm1051_vm2, %v1142_v59, 0.0 }
 0x15a   : > { %v873_v61 = vadd.f32 %v872_v46, %v783_v55  ;;  %v1193_v20 = vadd.f32 %v1192_v18, %v1191_v11  ;;  %v1094_v32 = vadd.f32 %v1093_v14, %v1092_v21  ;;  %v1153_v11 = vmul.f32 %v2074_v7, %v2074_v7 }
 0x15b   : > { %v1010_v15 = vpack.c.bf16 %v967_v57, %v967_v57  ;;  %v1147_v40 = vmul.f32 %v967_v57, %v967_v57  ;;  %v1099_v44 = vsel %vm1051_vm2, %v967_v57, 0.0  ;;  %v1111_v14 = vsel %vm1051_vm2, %v2074_v7, 0.0 }
 0x15c   : > { %v962_v5 = vadd.f32 %v961_v19, %v873_v61  ;;  %v1195_v31 = vadd.f32 %v1194_v50, %v1193_v20  ;;  %v1212_v50 = vsel %vm1051_vm2, %v1152_v8, 0.0  ;;  %v1214_v20 = vsel %vm1051_vm2, %v1153_v11, 0.0 }
 0x15d   : > { %1043 = vst.msk [vmem:[%s1922_s13 + $0x60] sm:$0xf] %vm1018_vm1, %v1010_v15  ;;  %v1202_v53 = vsel %vm1051_vm2, %v1147_v40, 0.0  ;;  %v1151_v15 = vmul.f32 %v2056_v51, %v2056_v51 }
 0x15e   : > { %v1008_v10 = vpack.c.bf16 %v962_v5, %v962_v5  ;;  %v1145_v13 = vmul.f32 %v962_v5, %v962_v5  ;;  %v1095_v27 = vsel %vm1051_vm2, %v962_v5, 0.0  ;;  %v1197_v37 = vadd.f32 %v1196_v25, %v1195_v31 }
 0x15f   : > { %v1096_v39 = vadd.f32 %v1095_v27, %v1094_v32  ;;  %v1210_v0 = vsel %vm1051_vm2, %v1151_v15, 0.0 }
 0x160   : > { %1041 = vst.msk [vmem:[%s1922_s13 + $0x58] sm:$0xf] %vm1018_vm1, %v1008_v10  ;;  %v968_v16 = vpop.f32.mrf.mxu2  ;;  %v785_v19 = vpop.f32.mrf.mxu0  ;;  %v1198_v34 = vsel %vm1051_vm2, %v1145_v13, 0.0  ;;  %v1109_v10 = vsel %vm1051_vm2, %v2065_v60, 0.0  ;;  %v1154_v13 = vmul.f32 %v2083_v17, %v2083_v17  ;;  %v1113_v60 = vsel %vm1051_vm2, %v2083_v17, 0.0 }
 0x161   : > { %v969_v23 = vadd.f32 %v968_v16, %v2008_v9  ;;  %v874_v24 = vpop.f32.mrf.mxu1  ;;  %v1199_v43 = vadd.f32 %v1198_v34, %v1197_v37 }
 0x162   : > { %v875_v2 = vadd.f32 %v874_v24, %v785_v19  ;;  %v1216_v24 = vsel %vm1051_vm2, %v1154_v13, 0.0 }
 0x163   : > { %v1011_v33 = vpack.c.bf16 %v969_v23, %v969_v23  ;;  %v1101_v54 = vsel %vm1051_vm2, %v969_v23, 0.0 }
 0x164   : > { %v964_v36 = vadd.f32 %v2095_v28, %v875_v2  ;;  %v1148_v28 = vmul.f32 %v969_v23, %v969_v23 }
 0x165   : > { %1044 = vst.msk [vmem:[%s1922_s13 + $0x64] sm:$0xf] %vm1018_vm1, %v1011_v33 }
 0x166   : > { %v1009_v9 = vpack.c.bf16 %v964_v36, %v964_v36  ;;  %v1097_v41 = vsel %vm1051_vm2, %v964_v36, 0.0  ;;  %v1146_v42 = vmul.f32 %v964_v36, %v964_v36  ;;  %v1204_v58 = vsel %vm1051_vm2, %v1148_v28, 0.0 }
 0x167   : > { %v1098_v30 = vadd.f32 %v1097_v41, %v1096_v39 }
 0x168   : > { %1042 = vst.msk [vmem:[%s1922_s13 + $0x5c] sm:$0xf] %vm1018_vm1, %v1009_v9  ;;  %v1200_v47 = vsel %vm1051_vm2, %v1146_v42, 0.0  ;;  %v971_v48 = vpop.f32.mrf.mxu2 }
 0x169   : > { %v1201_v49 = vadd.f32 %v1200_v47, %v1199_v43  ;;  %v972_v52 = vadd.f32 %v971_v48, %v2015_v29  ;;  %v1100_v38 = vadd.f32 %v1099_v44, %v1098_v30 }
 0x16b   : > { %v1012_v55 = vpack.c.bf16 %v972_v52, %v972_v52  ;;  %v1102_v22 = vadd.f32 %v1101_v54, %v1100_v38  ;;  %v1103_v56 = vsel %vm1051_vm2, %v972_v52, 0.0  ;;  %v1149_v57 = vmul.f32 %v972_v52, %v972_v52 }
 0x16c   : > { %v1203_v46 = vadd.f32 %v1202_v53, %v1201_v49 }
 0x16d   : > { %1045 = vst.msk [vmem:[%s1922_s13 + $0x68] sm:$0xf] %vm1018_vm1, %v1012_v55  ;;  %v1104_v26 = vadd.f32 %v1103_v56, %v1102_v22  ;;  %v1206_v59 = vsel %vm1051_vm2, %v1149_v57, 0.0 }
 0x16e   : > { %v1205_v29 = vadd.f32 %v1204_v58, %v1203_v46 }
 0x170   : > { %v1207_v61 = vadd.f32 %v1206_v59, %v1205_v29  ;;  %v973_v62 = vpop.f32.mrf.mxu2 }
 0x171   : > { %v974_v63 = vadd.f32 %v973_v62, %v2022_v45 }
 0x173   : > { %v1013_v1 = vpack.c.bf16 %v974_v63, %v974_v63  ;;  %v1105_v3 = vsel %vm1051_vm2, %v974_v63, 0.0  ;;  %v1150_v35 = vmul.f32 %v974_v63, %v974_v63 }
 0x174   : > { %v1106_v5 = vadd.f32 %v1105_v3, %v1104_v26 }
 0x175   : > { %1046 = vst.msk [vmem:[%s1922_s13 + $0x6c] sm:$0xf] %vm1018_vm1, %v1013_v1  ;;  %v1208_v18 = vsel %vm1051_vm2, %v1150_v35, 0.0 }
 0x176   : > { %v1108_v4 = vadd.f32 %v1107_v6, %v1106_v5  ;;  %v1209_v45 = vadd.f32 %v1208_v18, %v1207_v61 }
 0x178   : > { %v1110_v12 = vadd.f32 %v1109_v10, %v1108_v4  ;;  %v1211_v51 = vadd.f32 %v1210_v0, %v1209_v45 }
 0x17a   : > { %v1112_v16 = vadd.f32 %v1111_v14, %v1110_v12  ;;  %v1213_v19 = vadd.f32 %v1212_v50, %v1211_v51 }
 0x17c   : > { %v1114_v21 = vadd.f32 %v1113_v60, %v1112_v16  ;;  %v1215_v23 = vadd.f32 %v1214_v20, %v1213_v19 }
 0x17e   : > { %v1115_v25 = vrot.slane %v1114_v21, 4  ;;  %v1217_v27 = vadd.f32 %v1216_v24, %v1215_v23 }
 0x180   : > { %v1116_v2 = vadd.f32 %v1115_v25, %v1114_v21  ;;  %v1218_v7 = vrot.slane %v1217_v27, 4 }
 0x182   : > { %v1117_v31 = vrot.slane %v1116_v2, 2  ;;  %v1219_v32 = vadd.f32 %v1218_v7, %v1217_v27 }
 0x184   : > { %v1118_v33 = vadd.f32 %v1117_v31, %v1116_v2  ;;  %v1220_v34 = vrot.slane %v1219_v32, 2 }
 0x186   : > { %v1119_v36 = vrot.slane %v1118_v33, 1  ;;  %v1221_v37 = vadd.f32 %v1220_v34, %v1219_v32 }
 0x188   : > { %v1120_v17 = vadd.f32 %v1119_v36, %v1118_v33  ;;  %v1222_v39 = vrot.slane %v1221_v37, 1 }
 0x18a   : > { %1122 = vst.msk [vmem:[%s217_s14] sm:$0x1] %vm1121_vm3, %v1120_v17  ;;  %v1223_v40 = vadd.f32 %v1222_v39, %v1221_v37 }
 0x18c   : > { %1224 = vst.msk [vmem:[%s220_s19] sm:$0x1] %vm1121_vm3, %v1223_v40 }
 0x18d PF: > { %s15_s15 = sadd.s32 1, %s1721_s15  }
 0x18e   : > { %p12_p5 = scmp.ge.s32.totalorder %s15_s15, 4  }
 0x190   :  { %14 = sbr.rel (!%p12_p5) target bundleno = 1 (0x1), region = 82 }

// kernel: unet_reg_forward.45
= control target key start
LH: loop header
LB: loop body
LE: loop exit
PB: predicated region body
PF: predicated region fallthrough
CT: control target
= control target key end

     0   :  { %v115_v0 = vmov 0   ;;  %vm87_vm0 = vcmask 1040384   ;;  %vm89_vm1 = vcmask 1042434   ;;  %vm91_vm2 = vcmask 1041408   ;;  %s168_s1 = inlined_call_operand.vmem [shape: f32[16,1], index: 1, kind: input, shape index: {}]   ;;  %s169_s2 = inlined_call_operand.<no memory space> [shape: f32[1,1], index: 2, kind: input, shape index: {}]   ;;  %s170_s0 = inlined_call_operand.vmem [shape: bf16[16,512], index: 0, kind: input, shape index: {}]   ;;  %s171_s3 = inlined_call_operand.vmem [shape: f32[1,512], index: 3, kind: input, shape index: {}]   ;;  %s172_s4 = inlined_call_operand.vmem [shape: f32[1,512], index: 4, kind: output, shape index: {}]  }
   0x1   :  { %113 = vset.pattern.permute.xlu0 %v115_v0  ;;  %v31_v1 = vld [vmem:[%s168_s1] sm:$0xff]  ;;  %114 = vset.pattern.permute.xlu1 %v115_v0  ;;  %v9_v2 = vstv %s169_s2  ;;  %v32_v3 = vld [vmem:[%s168_s1 + $0x8] sm:$0xff]  ;;  %v21_v8 = vld [vmem:[%s170_s0 + $0x10] sm:$0xff]  ;;  %v103_v60 = vlaneseq }
   0x2   :  { %35 = vperm.xlu0 %113, %v31_v1   ;;  %10 = vst [vmem:[#allocation2] sm:$0x1] %v9_v2  ;;  %v19_v6 = vld [vmem:[%s170_s0] sm:$0xff]  ;;  %v20_v7 = vld [vmem:[%s170_s0 + $0x8] sm:$0xff]  ;;  %v22_v9 = vld [vmem:[%s170_s0 + $0x18] sm:$0xff]  ;;  %v27_v14 = vunpack.c.l.bf16 %v21_v8  ;;  %v28_v15 = vunpack.c.h.bf16 %v21_v8 }
   0x3   :  { %v23_v10 = vunpack.c.l.bf16 %v19_v6  ;;  %v24_v11 = vunpack.c.h.bf16 %v19_v6  ;;  %v25_v12 = vunpack.c.l.bf16 %v20_v7  ;;  %v26_v13 = vunpack.c.h.bf16 %v20_v7  ;;  %v79_v59 = vld [vmem:[%s171_s3] sm:$0xf] }
   0x4   :  { %v29_v16 = vunpack.c.l.bf16 %v22_v9  ;;  %v30_v17 = vunpack.c.h.bf16 %v22_v9  ;;  %vm105_vm3 = vcmp.lt.s32.totalorder %v103_v60, 512 }
   0x9   :  { %v95_v4 = vld [vmem:[#allocation2] sm:$0x1] }
   0xa   :  { %40 = vperm.xlu0 %113, %v32_v3   ;;  %98 = vperm.xlu1 %114, %v95_v4  }
  0x74   :  { %v36_v5 = vpop.permute.xlu0 %35 }
  0x75   :  { %v43_v18 = vmul.f32 %v36_v5, %v23_v10  ;;  %v44_v19 = vmul.f32 %v36_v5, %v24_v11  ;;  %v45_v20 = vmul.f32 %v36_v5, %v25_v12  ;;  %v46_v21 = vmul.f32 %v36_v5, %v26_v13 }
  0x7c   :  { %v41_v22 = vpop.permute.xlu0 %40  ;;  %v99_v54 = vpop.permute.xlu1 %98 }
  0x7d   :  { %v47_v23 = vmul.f32 %v41_v22, %v27_v14  ;;  %v48_v24 = vmul.f32 %v41_v22, %v28_v15  ;;  %v49_v25 = vmul.f32 %v41_v22, %v29_v16  ;;  %v50_v26 = vmul.f32 %v41_v22, %v30_v17 }
  0x7e   :  { %v101_v63 = vperm.slane %v99_v54, 0 }
  0x7f   :  { %v51_v27 = vadd.f32 %v47_v23, %v43_v18  ;;  %v58_v28 = vadd.f32 %v48_v24, %v44_v19  ;;  %v65_v29 = vadd.f32 %v49_v25, %v45_v20  ;;  %v72_v30 = vadd.f32 %v50_v26, %v46_v21 }
  0x81   :  { %v52_v31 = vrot.slane %v51_v27, 4  ;;  %v59_v32 = vrot.slane %v58_v28, 4  ;;  %v66_v33 = vrot.slane %v65_v29, 4  ;;  %v73_v34 = vrot.slane %v72_v30, 4 }
  0x83   :  { %v53_v35 = vadd.f32 %v52_v31, %v51_v27  ;;  %v60_v36 = vadd.f32 %v59_v32, %v58_v28  ;;  %v67_v37 = vadd.f32 %v66_v33, %v65_v29  ;;  %v74_v38 = vadd.f32 %v73_v34, %v72_v30 }
  0x85   :  { %v54_v39 = vrot.slane %v53_v35, 2  ;;  %v61_v40 = vrot.slane %v60_v36, 2  ;;  %v68_v41 = vrot.slane %v67_v37, 2  ;;  %v75_v42 = vrot.slane %v74_v38, 2 }
  0x87   :  { %v55_v43 = vadd.f32 %v54_v39, %v53_v35  ;;  %v62_v44 = vadd.f32 %v61_v40, %v60_v36  ;;  %v69_v45 = vadd.f32 %v68_v41, %v67_v37  ;;  %v76_v46 = vadd.f32 %v75_v42, %v74_v38 }
  0x89   :  { %v56_v47 = vrot.slane %v55_v43, 1  ;;  %v63_v48 = vrot.slane %v62_v44, 1  ;;  %v70_v49 = vrot.slane %v69_v45, 1  ;;  %v77_v50 = vrot.slane %v76_v46, 1 }
  0x8b   :  { %v64_v51 = vadd.f32 %v63_v48, %v62_v44  ;;  %v71_v52 = vadd.f32 %v70_v49, %v69_v45  ;;  %v78_v53 = vadd.f32 %v77_v50, %v76_v46  ;;  %v57_v55 = vadd.f32 %v56_v47, %v55_v43 }
  0x8d   :  { %v84_v56 = vrot.slane %v64_v51, 7  ;;  %v85_v57 = vrot.slane %v71_v52, 6  ;;  %v86_v58 = vrot.slane %v78_v53, 5 }
  0x8f   :  { %v88_v61 = vsel %vm87_vm0, %v57_v55, %v84_v56  ;;  %v90_v62 = vsel %vm89_vm1, %v85_v57, %v86_v58 }
  0x90   :  { %v92_v0 = vsel %vm91_vm2, %v88_v61, %v90_v62 }
  0x91   :  { %v94_v1 = vadd.f32 %v92_v0, %v79_v59 }
  0x93   :  { %v102_v2 = vadd.f32 %v101_v63, %v94_v1 }
  0x95   :  { %107 = vst.msk [vmem:[%s172_s4] sm:$0xf] %vm105_vm3, %v102_v2 }

</bundles_post_ra>
